<compile_context>
chip_gen: v7x
topology: tpu7x:2x2x1
jax: 0.10.0
libtpu: 0.0.40
codegen_flags: <defaults>
</compile_context>

<pallas_src>
import jax
import jax.numpy as jnp
import numpy as np
from jax.experimental import pallas as pl
from jax.experimental.pallas import tpu as pltpu


# ---------------------------------------------------------------------------
# helpers
# ---------------------------------------------------------------------------
def _pick_tile(n, target):
    """Largest divisor of n that is <= max(1, target)."""
    # TODO(synk): support a ragged/masked final block so a prime line count
    # does not degrade to 1-line tiles.
    target = max(1, min(int(target), n))
    for d in range(target, 0, -1):
        if n % d == 0:
            return d
    return 1


def _vmem_limit_bytes():
    """Per-generation scoped-VMEM limit (~75% of physical VMEM per core)."""
    try:
        kind = jax.devices()[0].device_kind.lower()
    except Exception:
        kind = ""
    if "v2" in kind or "v3" in kind:
        phys = 16 << 20
    elif "v4" in kind or "v5" in kind or "v6" in kind:
        phys = 128 << 20          # v4/v5e/v5p/v6e: 128 MiB VMEM
    else:
        phys = 64 << 20           # v7x (and unknown future parts): 64 MiB
    return int(phys * 3 // 4)


# ---------------------------------------------------------------------------
# Kernel 1: fused (tr-conv + 1x1 conv + bias + ReLU) -> NHWC "super rows",
#           plus per-tile partial BN statistics.
#
# Grid = (line_tile,).  Per grid point (li):
#   up_ref : (tl, W, Cu)          f32   low-res rows (lines = N*H)
#   x_ref  : (tl, 2, W, 2*Cx)     f32   super rows: dims = (line, a, j, (b,c))
#   wtr_ref: (Cu, 4*up_out)       cdt   tr-conv taps, columns = (a, b, oc)
#   btr_ref: (1, 4*up_out)        f32   b_tr tiled over (a, b)
#   wx_ref : (Cx, x_out)  bx_ref: (1, x_out)
#   y_ref  : (tl, 2, W, 2*n_out)  cdt   output super rows: (b, [tr | x]) lanes
#   sttr/stx: (1, 2, C)           f32   partial {sum, sum-of-squares}
# ---------------------------------------------------------------------------
def _fused_convs_relu_stats_kernel(up_ref, x_ref, wtr_ref, btr_ref, wx_ref,
                                   bx_ref, y_ref, sttr_ref, stx_ref):
    tl, W, Cu = up_ref.shape
    two_cx = x_ref.shape[-1]
    cx = two_cx // 2
    cdt = wtr_ref.dtype
    wtr = wtr_ref[...]                          # (Cu, 4*up_out)
    up_out = wtr.shape[-1] // 4
    x_out = wx_ref.shape[-1]
    n_out = up_out + x_out
    odt = y_ref.dtype

    # In-kernel cast (no separate HBM cast pass); f32 accumulation on MXU.
    up2 = up_ref[...].reshape(tl * W, Cu).astype(cdt)

    # ConvTranspose2d(k=2, s=2): one wide dot yields all four (a, b) taps.
    tr = jnp.dot(up2, wtr, preferred_element_type=jnp.float32) + btr_ref[...]
    tr = jnp.maximum(tr, 0.0)                   # (tl*W, 4*up_out)

    # 1x1 conv on both column-parity pixels of each super row (rows = (l,a,j)).
    x2 = x_ref[...].astype(cdt).reshape(tl * 2 * W, two_cx)
    wx = wx_ref[...]
    bx = bx_ref[...]
    xc0 = jnp.maximum(
        jnp.dot(x2[:, :cx], wx, preferred_element_type=jnp.float32) + bx, 0.0)
    xc1 = jnp.maximum(
        jnp.dot(x2[:, cx:], wx, preferred_element_type=jnp.float32) + bx, 0.0)

    # Channel-concatenated, tap-interleaved writes (static, 128-lane aligned).
    for a in range(2):
        for b in range(2):
            tap = tr[:, (2 * a + b) * up_out:(2 * a + b + 1) * up_out]
            y_ref[:, a:a + 1, :, b * n_out:b * n_out + up_out] = (
                tap.reshape(tl, 1, W, up_out).astype(odt))
    y_ref[:, :, :, up_out:n_out] = xc0.reshape(tl, 2, W, x_out).astype(odt)
    y_ref[:, :, :, n_out + up_out:] = xc1.reshape(tl, 2, W, x_out).astype(odt)

    # Per-tile BN partials (f32), written with direct row stores.
    tr_s = jnp.sum(tr, axis=0, keepdims=True)                 # (1, 4*up_out)
    tr_ss = jnp.sum(tr * tr, axis=0, keepdims=True)
    s_tr = (tr_s[:, 0:up_out] + tr_s[:, up_out:2 * up_out]
            + tr_s[:, 2 * up_out:3 * up_out] + tr_s[:, 3 * up_out:])
    ss_tr = (tr_ss[:, 0:up_out] + tr_ss[:, up_out:2 * up_out]
             + tr_ss[:, 2 * up_out:3 * up_out] + tr_ss[:, 3 * up_out:])
    sttr_ref[:, 0:1, :] = s_tr.reshape(1, 1, up_out)
    sttr_ref[:, 1:2, :] = ss_tr.reshape(1, 1, up_out)

    s_x = (jnp.sum(xc0, axis=0, keepdims=True)
           + jnp.sum(xc1, axis=0, keepdims=True))
    ss_x = (jnp.sum(xc0 * xc0, axis=0, keepdims=True)
            + jnp.sum(xc1 * xc1, axis=0, keepdims=True))
    stx_ref[:, 0:1, :] = s_x.reshape(1, 1, x_out)
    stx_ref[:, 1:2, :] = ss_x.reshape(1, 1, x_out)


# ---------------------------------------------------------------------------
# Kernel 2: BatchNorm affine apply (second pass), row-tiled, lane-dense,
#           and in place (output aliases the y input).
# ---------------------------------------------------------------------------
def _bn_apply_kernel(y_ref, scale_ref, shift_ref, o_ref):
    o_ref[...] = (y_ref[...].astype(jnp.float32) * scale_ref[...]
                  + shift_ref[...]).astype(o_ref.dtype)


# ---------------------------------------------------------------------------
# UnetBlock
# ---------------------------------------------------------------------------
class UnetBlock:
    def __init__(self, up_in, x_in, n_out, key, eps=1e-5):
        assert n_out % 2 == 0
        up_out = x_out = n_out // 2
        self.up_in, self.x_in, self.n_out = up_in, x_in, n_out
        self.up_out, self.x_out = up_out, x_out
        self.eps = eps
        ks = jax.random.split(key, 6)
        # nn.Conv2d(x_in, x_out, 1)
        self.w_x = 0.1 * jax.random.normal(ks[0], (x_out, x_in), jnp.float32)
        self.b_x = 0.1 * jax.random.normal(ks[1], (x_out,), jnp.float32)
        # nn.ConvTranspose2d(up_in, up_out, 2, stride=2): weight (in, out, 2, 2)
        self.w_tr = 0.1 * jax.random.normal(ks[2], (up_in, up_out, 2, 2), jnp.float32)
        self.b_tr = 0.1 * jax.random.normal(ks[3], (up_out,), jnp.float32)
        # nn.BatchNorm2d(n_out)
        self.gamma = 1.0 + 0.1 * jax.random.normal(ks[4], (n_out,), jnp.float32)
        self.beta = 0.1 * jax.random.normal(ks[5], (n_out,), jnp.float32)

        # Pre-packed kernel layouts (tiny, one-time):
        #   w_tr_flat4[c, (2a+b)*up_out + oc] = w_tr[c, oc, a, b]
        self.w_tr_flat4 = jnp.transpose(self.w_tr, (0, 2, 3, 1)).reshape(
            up_in, 4 * up_out)
        self.w_x_t = self.w_x.T                                   # (x_in, x_out)
        self.b_tr_tiled4 = jnp.tile(self.b_tr, 4).reshape(1, 4 * up_out)

    # ---- NHWC-native forward (no layout glue beyond free reinterpretation) --
    def forward_nhwc(self, up_nhwc, x_nhwc, compute_dtype=jnp.bfloat16):
        N, H, W, Cu = up_nhwc.shape
        Nx, H2, W2, Cx = x_nhwc.shape
        assert N == Nx and H2 == 2 * H and W2 == 2 * W
        assert Cu == self.up_in and Cx == self.x_in
        up_out, x_out, n_out = self.up_out, self.x_out, self.n_out
        cdt = compute_dtype
        n_lines = N * H
        limit = _vmem_limit_bytes()

        # Kernel-layout views: pure reinterpretations of contiguous NHWC.
        # Big activations are NOT cast host-side; the cast happens in-kernel.
        up_l = up_nhwc.reshape(n_lines, W, Cu)
        x_l = x_nhwc.reshape(n_lines, 2, W, 2 * Cx)
        wtr = self.w_tr_flat4.astype(cdt)        # tiny; constant-folded under jit
        wx = self.w_x_t.astype(cdt)
        btr = self.b_tr_tiled4                   # f32 (1, 4*up_out)
        bx = self.b_x.reshape(1, -1)             # f32 (1, x_out)

        in_bpe = jnp.dtype(up_nhwc.dtype).itemsize
        y_bpe = jnp.dtype(cdt).itemsize

        # --- kernel-1 tiling: VMEM-budget-driven, soft cap keeps grid points -
        per_line1 = (W * Cu * in_bpe                 # up block
                     + 2 * W * 2 * Cx * in_bpe       # x block
                     + 2 * W * 2 * n_out * y_bpe)    # y block
        cap1 = max(1, (limit // 2) // (2 * per_line1))   # /2 headroom, x2 dbl-buf
        cap1 = min(cap1, max(1, 4096 // max(1, W)))      # ~1k-4k spatial rows/step
        tl = _pick_tile(n_lines, cap1)
        g0 = n_lines // tl
        # TODO(synk): add K/N tiling of the weight blocks (reduction axis last,
        # f32 VMEM accumulator) for channel counts too large to keep the
        # weights fully VMEM-resident; trigger ~2x sooner on v7x (64 MiB).

        y, st_tr, st_x = pl.pallas_call(
            _fused_convs_relu_stats_kernel,
            out_shape=(
                jax.ShapeDtypeStruct((n_lines, 2, W, 2 * n_out), cdt),
                jax.ShapeDtypeStruct((g0, 2, up_out), jnp.float32),
                jax.ShapeDtypeStruct((g0, 2, x_out), jnp.float32),
            ),
            grid_spec=pltpu.PrefetchScalarGridSpec(
                num_scalar_prefetch=0,
                grid=(g0,),
                in_specs=[
                    pl.BlockSpec((tl, W, Cu), lambda li: (li, 0, 0)),
                    pl.BlockSpec((tl, 2, W, 2 * Cx), lambda li: (li, 0, 0, 0)),
                    pl.BlockSpec((Cu, 4 * up_out), lambda li: (0, 0)),
                    pl.BlockSpec((1, 4 * up_out), lambda li: (0, 0)),
                    pl.BlockSpec((Cx, x_out), lambda li: (0, 0)),
                    pl.BlockSpec((1, x_out), lambda li: (0, 0)),
                ],
                out_specs=(
                    pl.BlockSpec((tl, 2, W, 2 * n_out), lambda li: (li, 0, 0, 0)),
                    pl.BlockSpec((1, 2, up_out), lambda li: (li, 0, 0)),
                    pl.BlockSpec((1, 2, x_out), lambda li: (li, 0, 0)),
                ),
            ),
            compiler_params=pltpu.CompilerParams(
                dimension_semantics=("parallel",),
                vmem_limit_bytes=limit),
        )(up_l, x_l, wtr, btr, wx, bx)

        # Tiny per-channel reduction + BN affine folding (scalar-sized glue).
        count = jnp.float32(N * H2 * W2)
        st = jnp.concatenate(
            [jnp.sum(st_tr, axis=0), jnp.sum(st_x, axis=0)], axis=-1)  # (2, n_out)
        mean = st[0] / count
        var = jnp.maximum(st[1] / count - mean * mean, 0.0)   # biased (training)
        # TODO(synk): switch to per-tile centered sums / Welford merge if this
        # block is used with very large N*H2*W2 reduction counts.
        scale = self.gamma * jax.lax.rsqrt(var + self.eps)
        shift = self.beta - mean * scale
        scale2 = jnp.tile(scale, 2).reshape(1, 2 * n_out).astype(jnp.float32)
        shift2 = jnp.tile(shift, 2).reshape(1, 2 * n_out).astype(jnp.float32)

        # --- kernel-2 tiling: ~2-8 MiB blocks, in-place (aliased) BN apply ---
        per_line2 = 2 * 2 * W * 2 * n_out * y_bpe          # read + write
        cap2 = max(1, (limit // 2) // (2 * per_line2))
        cap2 = min(cap2, max(1, (8 << 20) // max(1, 2 * W * 2 * n_out * y_bpe)))
        tl2 = _pick_tile(n_lines, cap2)

        out = pl.pallas_call(
            _bn_apply_kernel,
            out_shape=jax.ShapeDtypeStruct((n_lines, 2, W, 2 * n_out), cdt),
            grid_spec=pltpu.PrefetchScalarGridSpec(
                num_scalar_prefetch=0,
                grid=(n_lines // tl2,),
                in_specs=[
                    pl.BlockSpec((tl2, 2, W, 2 * n_out), lambda i: (i, 0, 0, 0)),
                    pl.BlockSpec((1, 2 * n_out), lambda i: (0, 0)),
                    pl.BlockSpec((1, 2 * n_out), lambda i: (0, 0)),
                ],
                out_specs=pl.BlockSpec((tl2, 2, W, 2 * n_out),
                                       lambda i: (i, 0, 0, 0)),
            ),
            input_output_aliases={0: 0},
            compiler_params=pltpu.CompilerParams(
                dimension_semantics=("parallel",),
                vmem_limit_bytes=limit),
        )(y, scale2, shift2)
        # TODO(synk): when the whole y fits in ~half of VMEM, fold this pass
        # into kernel 1 with a VMEM-resident y (two-phase grid), or fuse the
        # folded affine into the consumer of the block output.

        # (lines, a, j, (b, c)) is byte-for-byte NHWC -> pure reinterpretation.
        return out.reshape(N, H2, W2, n_out)

    # ---- PyTorch-style NCHW interface ---------------------------------------
    def __call__(self, up_p, x_p, compute_dtype=jnp.bfloat16):
        # TODO(synk): for NCHW-only pipelines, add an NCHW-native kernel
        # variant (weights-on-the-left matmuls) to avoid these boundary
        # transposes; NHWC pipelines should call forward_nhwc directly.
        up_nhwc = jnp.transpose(up_p, (0, 2, 3, 1))
        x_nhwc = jnp.transpose(x_p, (0, 2, 3, 1))
        out_nhwc = self.forward_nhwc(up_nhwc, x_nhwc, compute_dtype=compute_dtype)
        return jnp.transpose(out_nhwc, (0, 3, 1, 2))


# ---------------------------------------------------------------------------
# Pure-JAX f32 reference (mirrors the PyTorch forward math).
# ---------------------------------------------------------------------------
def reference_forward(blk, up_p, x_p, eps=1e-5):
    N, Cu, H, W = up_p.shape
    hp = jax.lax.Precision.HIGHEST
    t = jnp.einsum("nchw,cokl->nohkwl", up_p, blk.w_tr, precision=hp)
    t = t.reshape(N, blk.up_out, 2 * H, 2 * W) + blk.b_tr[None, :, None, None]
    xc = (jnp.einsum("nchw,oc->nohw", x_p, blk.w_x, precision=hp)
          + blk.b_x[None, :, None, None])
    cat = jnp.concatenate([t, xc], axis=1)
    r = jnp.maximum(cat, 0.0)
    mean = jnp.mean(r, axis=(0, 2, 3), keepdims=True)
    var = jnp.mean((r - mean) ** 2, axis=(0, 2, 3), keepdims=True)
    return ((r - mean) * jax.lax.rsqrt(var + eps)
            * blk.gamma[None, :, None, None] + blk.beta[None, :, None, None])


if __name__ == "__main__":
    key = jax.random.PRNGKey(0)
    k_param, k_up, k_x = jax.random.split(key, 3)

    # Lane-dense channel counts (multiples of 128); small spatial extent.
    N, up_in, x_in, n_out = 2, 128, 128, 256
    H = W = 16                      # x_p / output spatial = 32 x 32

    blk = UnetBlock(up_in, x_in, n_out, k_param)
    up_p = jax.random.normal(k_up, (N, up_in, H, W), jnp.float32)
    x_p = jax.random.normal(k_x, (N, x_in, 2 * H, 2 * W), jnp.float32)

    ref = jax.block_until_ready(reference_forward(blk, up_p, x_p))

    # f32 compute path.
    fwd_f32 = jax.jit(lambda u, x: blk(u, x, compute_dtype=jnp.float32))
    out_f32 = jax.block_until_ready(fwd_f32(up_p, x_p))
    np.testing.assert_allclose(np.asarray(out_f32, dtype=np.float32),
                               np.asarray(ref), rtol=2e-2, atol=2e-2)

    # bf16-fed MXU path (performance default); bf16 output, looser tolerance.
    fwd_bf16 = jax.jit(lambda u, x: blk(u, x, compute_dtype=jnp.bfloat16))
    out_bf16 = jax.block_until_ready(fwd_bf16(up_p, x_p))
    np.testing.assert_allclose(np.asarray(out_bf16.astype(jnp.float32)),
                               np.asarray(ref), rtol=6e-2, atol=6e-2)

    assert out_f32.shape == (N, n_out, 2 * H, 2 * W)
    print("KERNEL_OK")
</pallas_src>

<mosaic_0001>
module attributes {stable_mosaic.version = 11 : i64} {
  func.func @_bn_apply_kernel(%arg0: i32, %arg1: memref<32x2x16x512xf32, #tpu.memory_space<vmem>>, %arg2: memref<1x512xf32, #tpu.memory_space<vmem>>, %arg3: memref<1x512xf32, #tpu.memory_space<vmem>>, %arg4: memref<32x2x16x512xf32, #tpu.memory_space<vmem>>) attributes {dimension_semantics = [#tpu.dimension_semantics<parallel>], iteration_bounds = array<i64: 1>, scalar_prefetch = 0 : i64, scratch_operands = 0 : i64, tpu.core_type = #tpu.core_type<tc>, window_params = [{transform_indices = @transform_0, window_bounds = array<i64: 32, 2, 16, 512>}, {pipeline_mode = #tpu.pipeline_mode<synchronous>, transform_indices = @transform_1, window_bounds = array<i64: 1, 512>}, {pipeline_mode = #tpu.pipeline_mode<synchronous>, transform_indices = @transform_2, window_bounds = array<i64: 1, 512>}, {transform_indices = @transform_3, window_bounds = array<i64: 32, 2, 16, 512>}]} {
    %c0 = arith.constant 0 : index
    %c0_0 = arith.constant 0 : index
    %c0_1 = arith.constant 0 : index
    %c0_2 = arith.constant 0 : index
    %0 = vector.load %arg1[%c0, %c0_0, %c0_1, %c0_2] : memref<32x2x16x512xf32, #tpu.memory_space<vmem>>, vector<32x2x16x512xf32>
    %c0_3 = arith.constant 0 : index
    %c0_4 = arith.constant 0 : index
    %1 = vector.load %arg2[%c0_3, %c0_4] : memref<1x512xf32, #tpu.memory_space<vmem>>, vector<1x512xf32>
    %2 = vector.shape_cast %1 : vector<1x512xf32> to vector<1x1x1x512xf32>
    %3 = vector.broadcast %2 : vector<1x1x1x512xf32> to vector<32x2x16x512xf32>
    %4 = arith.mulf %0, %3 : vector<32x2x16x512xf32>
    %c0_5 = arith.constant 0 : index
    %c0_6 = arith.constant 0 : index
    %5 = vector.load %arg3[%c0_5, %c0_6] : memref<1x512xf32, #tpu.memory_space<vmem>>, vector<1x512xf32>
    %6 = vector.shape_cast %5 : vector<1x512xf32> to vector<1x1x1x512xf32>
    %7 = vector.broadcast %6 : vector<1x1x1x512xf32> to vector<32x2x16x512xf32>
    %8 = arith.addf %4, %7 : vector<32x2x16x512xf32>
    %c0_7 = arith.constant 0 : index
    %c0_8 = arith.constant 0 : index
    %c0_9 = arith.constant 0 : index
    %c0_10 = arith.constant 0 : index
    %9 = vector.load %arg4[%c0_7, %c0_8, %c0_9, %c0_10] : memref<32x2x16x512xf32, #tpu.memory_space<vmem>>, vector<32x2x16x512xf32>
    tpu.vector_store %arg4[%c0_7, %c0_8, %c0_9, %c0_10], %8 {strides = array<i32>} : memref<32x2x16x512xf32, #tpu.memory_space<vmem>>, vector<32x2x16x512xf32>,
    return
  }
  func.func @transform_0(%arg0: i32) -> (i32, i32, i32, i32) {
    %c0_i32 = arith.constant 0 : i32
    %c0_i32_0 = arith.constant 0 : i32
    %c0_i32_1 = arith.constant 0 : i32
    %c0_i32_2 = arith.constant 0 : i32
    return %arg0, %c0_i32, %c0_i32_0, %c0_i32_1 : i32, i32, i32, i32
  }
  func.func @transform_1(%arg0: i32) -> (i32, i32) {
    %c0_i32 = arith.constant 0 : i32
    %c0_i32_0 = arith.constant 0 : i32
    %c0_i32_1 = arith.constant 0 : i32
    return %c0_i32, %c0_i32_0 : i32, i32
  }
  func.func @transform_2(%arg0: i32) -> (i32, i32) {
    %c0_i32 = arith.constant 0 : i32
    %c0_i32_0 = arith.constant 0 : i32
    %c0_i32_1 = arith.constant 0 : i32
    return %c0_i32, %c0_i32_0 : i32, i32
  }
  func.func @transform_3(%arg0: i32) -> (i32, i32, i32, i32) {
    %c0_i32 = arith.constant 0 : i32
    %c0_i32_0 = arith.constant 0 : i32
    %c0_i32_1 = arith.constant 0 : i32
    %c0_i32_2 = arith.constant 0 : i32
    return %arg0, %c0_i32, %c0_i32_0, %c0_i32_1 : i32, i32, i32, i32
  }
}

module attributes {stable_mosaic.version = 11 : i64} {
  func.func @_fused_convs_relu_stats_kernel(%arg0: i32, %arg1: memref<32x16x128xf32, #tpu.memory_space<vmem>>, %arg2: memref<32x2x16x256xf32, #tpu.memory_space<vmem>>, %arg3: memref<128x512xf32, #tpu.memory_space<vmem>>, %arg4: memref<1x512xf32, #tpu.memory_space<vmem>>, %arg5: memref<128x128xf32, #tpu.memory_space<vmem>>, %arg6: memref<1x128xf32, #tpu.memory_space<vmem>>, %arg7: memref<32x2x16x512xf32, #tpu.memory_space<vmem>>, %arg8: memref<1x2x128xf32, #tpu.memory_space<vmem>>, %arg9: memref<1x2x128xf32, #tpu.memory_space<vmem>>) attributes {dimension_semantics = [#tpu.dimension_semantics<parallel>], iteration_bounds = array<i64: 1>, scalar_prefetch = 0 : i64, scratch_operands = 0 : i64, tpu.core_type = #tpu.core_type<tc>, window_params = [{transform_indices = @transform_0, window_bounds = array<i64: 32, 16, 128>}, {transform_indices = @transform_1, window_bounds = array<i64: 32, 2, 16, 256>}, {pipeline_mode = #tpu.pipeline_mode<synchronous>, transform_indices = @transform_2, window_bounds = array<i64: 128, 512>}, {pipeline_mode = #tpu.pipeline_mode<synchronous>, transform_indices = @transform_3, window_bounds = array<i64: 1, 512>}, {pipeline_mode = #tpu.pipeline_mode<synchronous>, transform_indices = @transform_4, window_bounds = array<i64: 128, 128>}, {pipeline_mode = #tpu.pipeline_mode<synchronous>, transform_indices = @transform_5, window_bounds = array<i64: 1, 128>}, {transform_indices = @transform_6, window_bounds = array<i64: 32, 2, 16, 512>}, {transform_indices = @transform_7, window_bounds = array<i64: 1, 2, 128>}, {transform_indices = @transform_8, window_bounds = array<i64: 1, 2, 128>}]} {
    %c0 = arith.constant 0 : index
    %c0_0 = arith.constant 0 : index
    %0 = vector.load %arg3[%c0, %c0_0] : memref<128x512xf32, #tpu.memory_space<vmem>>, vector<128x512xf32>
    %c0_1 = arith.constant 0 : index
    %c0_2 = arith.constant 0 : index
    %c0_3 = arith.constant 0 : index
    %1 = vector.load %arg1[%c0_1, %c0_2, %c0_3] : memref<32x16x128xf32, #tpu.memory_space<vmem>>, vector<32x16x128xf32>
    %2 = vector.shape_cast %1 : vector<32x16x128xf32> to vector<512x128xf32>
    %cst = arith.constant dense<0.000000e+00> : vector<512x512xf32>
    %3 = tpu.matmul %2, %0, %cst {dimension_numbers = #tpu.dot_dimension_numbers<[1], [0], [0], [1], [0, 0, 1, 1], [], []>} : vector<512x128xf32>, vector<128x512xf32>, vector<512x512xf32> -> vector<512x512xf32>
    %c0_4 = arith.constant 0 : index
    %c0_5 = arith.constant 0 : index
    %4 = vector.load %arg4[%c0_4, %c0_5] : memref<1x512xf32, #tpu.memory_space<vmem>>, vector<1x512xf32>
    %5 = vector.broadcast %4 : vector<1x512xf32> to vector<512x512xf32>
    %6 = arith.addf %3, %5 : vector<512x512xf32>
    %cst_6 = arith.constant 0.000000e+00 : f32
    %7 = vector.broadcast %cst_6 : f32 to vector<512x512xf32>
    %8 = arith.maximumf %6, %7 : vector<512x512xf32>
    %c0_7 = arith.constant 0 : index
    %c0_8 = arith.constant 0 : index
    %c0_9 = arith.constant 0 : index
    %c0_10 = arith.constant 0 : index
    %9 = vector.load %arg2[%c0_7, %c0_8, %c0_9, %c0_10] : memref<32x2x16x256xf32, #tpu.memory_space<vmem>>, vector<32x2x16x256xf32>
    %10 = vector.shape_cast %9 : vector<32x2x16x256xf32> to vector<1024x256xf32>
    %c0_11 = arith.constant 0 : index
    %c0_12 = arith.constant 0 : index
    %11 = vector.load %arg5[%c0_11, %c0_12] : memref<128x128xf32, #tpu.memory_space<vmem>>, vector<128x128xf32>
    %c0_13 = arith.constant 0 : index
    %c0_14 = arith.constant 0 : index
    %12 = vector.load %arg6[%c0_13, %c0_14] : memref<1x128xf32, #tpu.memory_space<vmem>>, vector<1x128xf32>
    %13 = vector.extract_strided_slice %10 {offsets = [0, 0], sizes = [1024, 128], strides = [1, 1]} : vector<1024x256xf32> to vector<1024x128xf32>
    %cst_15 = arith.constant dense<0.000000e+00> : vector<1024x128xf32>
    %14 = tpu.matmul %13, %11, %cst_15 {dimension_numbers = #tpu.dot_dimension_numbers<[1], [0], [0], [1], [0, 0, 1, 1], [], []>} : vector<1024x128xf32>, vector<128x128xf32>, vector<1024x128xf32> -> vector<1024x128xf32>
    %15 = vector.broadcast %12 : vector<1x128xf32> to vector<1024x128xf32>
    %16 = arith.addf %14, %15 : vector<1024x128xf32>
    %cst_16 = arith.constant 0.000000e+00 : f32
    %17 = vector.broadcast %cst_16 : f32 to vector<1024x128xf32>
    %18 = arith.maximumf %16, %17 : vector<1024x128xf32>
    %19 = vector.extract_strided_slice %10 {offsets = [0, 128], sizes = [1024, 128], strides = [1, 1]} : vector<1024x256xf32> to vector<1024x128xf32>
    %cst_17 = arith.constant dense<0.000000e+00> : vector<1024x128xf32>
    %20 = tpu.matmul %19, %11, %cst_17 {dimension_numbers = #tpu.dot_dimension_numbers<[1], [0], [0], [1], [0, 0, 1, 1], [], []>} : vector<1024x128xf32>, vector<128x128xf32>, vector<1024x128xf32> -> vector<1024x128xf32>
    %21 = vector.broadcast %12 : vector<1x128xf32> to vector<1024x128xf32>
    %22 = arith.addf %20, %21 : vector<1024x128xf32>
    %cst_18 = arith.constant 0.000000e+00 : f32
    %23 = vector.broadcast %cst_18 : f32 to vector<1024x128xf32>
    %24 = arith.maximumf %22, %23 : vector<1024x128xf32>
    %25 = vector.extract_strided_slice %8 {offsets = [0, 0], sizes = [512, 128], strides = [1, 1]} : vector<512x512xf32> to vector<512x128xf32>
    %26 = vector.shape_cast %25 : vector<512x128xf32> to vector<32x1x16x128xf32>
    %c0_19 = arith.constant 0 : index
    %c0_20 = arith.constant 0 : index
    %c0_21 = arith.constant 0 : index
    %c0_22 = arith.constant 0 : index
    %27 = vector.load %arg7[%c0_19, %c0_20, %c0_21, %c0_22] : memref<32x2x16x512xf32, #tpu.memory_space<vmem>>, vector<32x1x16x128xf32>
    tpu.vector_store %arg7[%c0_19, %c0_20, %c0_21, %c0_22], %26 {strides = array<i32>} : memref<32x2x16x512xf32, #tpu.memory_space<vmem>>, vector<32x1x16x128xf32>,
    %28 = vector.extract_strided_slice %8 {offsets = [0, 128], sizes = [512, 128], strides = [1, 1]} : vector<512x512xf32> to vector<512x128xf32>
    %29 = vector.shape_cast %28 : vector<512x128xf32> to vector<32x1x16x128xf32>
    %c0_23 = arith.constant 0 : index
    %c0_24 = arith.constant 0 : index
    %c0_25 = arith.constant 0 : index
    %c256 = arith.constant 256 : index
    %30 = vector.load %arg7[%c0_23, %c0_24, %c0_25, %c256] : memref<32x2x16x512xf32, #tpu.memory_space<vmem>>, vector<32x1x16x128xf32>
    tpu.vector_store %arg7[%c0_23, %c0_24, %c0_25, %c256], %29 {strides = array<i32>} : memref<32x2x16x512xf32, #tpu.memory_space<vmem>>, vector<32x1x16x128xf32>,
    %31 = vector.extract_strided_slice %8 {offsets = [0, 256], sizes = [512, 128], strides = [1, 1]} : vector<512x512xf32> to vector<512x128xf32>
    %32 = vector.shape_cast %31 : vector<512x128xf32> to vector<32x1x16x128xf32>
    %c0_26 = arith.constant 0 : index
    %c1 = arith.constant 1 : index
    %c0_27 = arith.constant 0 : index
    %c0_28 = arith.constant 0 : index
    %33 = vector.load %arg7[%c0_26, %c1, %c0_27, %c0_28] : memref<32x2x16x512xf32, #tpu.memory_space<vmem>>, vector<32x1x16x128xf32>
    tpu.vector_store %arg7[%c0_26, %c1, %c0_27, %c0_28], %32 {strides = array<i32>} : memref<32x2x16x512xf32, #tpu.memory_space<vmem>>, vector<32x1x16x128xf32>,
    %34 = vector.extract_strided_slice %8 {offsets = [0, 384], sizes = [512, 128], strides = [1, 1]} : vector<512x512xf32> to vector<512x128xf32>
    %35 = vector.shape_cast %34 : vector<512x128xf32> to vector<32x1x16x128xf32>
    %c0_29 = arith.constant 0 : index
    %c1_30 = arith.constant 1 : index
    %c0_31 = arith.constant 0 : index
    %c256_32 = arith.constant 256 : index
    %36 = vector.load %arg7[%c0_29, %c1_30, %c0_31, %c256_32] : memref<32x2x16x512xf32, #tpu.memory_space<vmem>>, vector<32x1x16x128xf32>
    tpu.vector_store %arg7[%c0_29, %c1_30, %c0_31, %c256_32], %35 {strides = array<i32>} : memref<32x2x16x512xf32, #tpu.memory_space<vmem>>, vector<32x1x16x128xf32>,
    %37 = vector.shape_cast %18 : vector<1024x128xf32> to vector<32x2x16x128xf32>
    %c0_33 = arith.constant 0 : index
    %c0_34 = arith.constant 0 : index
    %c0_35 = arith.constant 0 : index
    %c128 = arith.constant 128 : index
    %38 = vector.load %arg7[%c0_33, %c0_34, %c0_35, %c128] : memref<32x2x16x512xf32, #tpu.memory_space<vmem>>, vector<32x2x16x128xf32>
    tpu.vector_store %arg7[%c0_33, %c0_34, %c0_35, %c128], %37 {strides = array<i32>} : memref<32x2x16x512xf32, #tpu.memory_space<vmem>>, vector<32x2x16x128xf32>,
    %39 = vector.shape_cast %24 : vector<1024x128xf32> to vector<32x2x16x128xf32>
    %c0_36 = arith.constant 0 : index
    %c0_37 = arith.constant 0 : index
    %c0_38 = arith.constant 0 : index
    %c384 = arith.constant 384 : index
    %40 = vector.load %arg7[%c0_36, %c0_37, %c0_38, %c384] : memref<32x2x16x512xf32, #tpu.memory_space<vmem>>, vector<32x2x16x128xf32>
    tpu.vector_store %arg7[%c0_36, %c0_37, %c0_38, %c384], %39 {strides = array<i32>} : memref<32x2x16x512xf32, #tpu.memory_space<vmem>>, vector<32x2x16x128xf32>,
    %cst_39 = arith.constant dense<0.000000e+00> : vector<512xf32>
    %41 = vector.multi_reduction <add>, %8, %cst_39 [0] : vector<512x512xf32> to vector<512xf32>
    %42 = vector.shape_cast %41 : vector<512xf32> to vector<1x512xf32>
    %43 = arith.mulf %8, %8 : vector<512x512xf32>
    %cst_40 = arith.constant dense<0.000000e+00> : vector<512xf32>
    %44 = vector.multi_reduction <add>, %43, %cst_40 [0] : vector<512x512xf32> to vector<512xf32>
    %45 = vector.shape_cast %44 : vector<512xf32> to vector<1x512xf32>
    %46 = vector.extract_strided_slice %42 {offsets = [0, 0], sizes = [1, 128], strides = [1, 1]} : vector<1x512xf32> to vector<1x128xf32>
    %47 = vector.extract_strided_slice %42 {offsets = [0, 128], sizes = [1, 128], strides = [1, 1]} : vector<1x512xf32> to vector<1x128xf32>
    %48 = arith.addf %46, %47 : vector<1x128xf32>
    %49 = vector.extract_strided_slice %42 {offsets = [0, 256], sizes = [1, 128], strides = [1, 1]} : vector<1x512xf32> to vector<1x128xf32>
    %50 = arith.addf %48, %49 : vector<1x128xf32>
    %51 = vector.extract_strided_slice %42 {offsets = [0, 384], sizes = [1, 128], strides = [1, 1]} : vector<1x512xf32> to vector<1x128xf32>
    %52 = arith.addf %50, %51 : vector<1x128xf32>
    %53 = vector.extract_strided_slice %45 {offsets = [0, 0], sizes = [1, 128], strides = [1, 1]} : vector<1x512xf32> to vector<1x128xf32>
    %54 = vector.extract_strided_slice %45 {offsets = [0, 128], sizes = [1, 128], strides = [1, 1]} : vector<1x512xf32> to vector<1x128xf32>
    %55 = arith.addf %53, %54 : vector<1x128xf32>
    %56 = vector.extract_strided_slice %45 {offsets = [0, 256], sizes = [1, 128], strides = [1, 1]} : vector<1x512xf32> to vector<1x128xf32>
    %57 = arith.addf %55, %56 : vector<1x128xf32>
    %58 = vector.extract_strided_slice %45 {offsets = [0, 384], sizes = [1, 128], strides = [1, 1]} : vector<1x512xf32> to vector<1x128xf32>
    %59 = arith.addf %57, %58 : vector<1x128xf32>
    %60 = vector.shape_cast %52 : vector<1x128xf32> to vector<1x1x128xf32>
    %c0_41 = arith.constant 0 : index
    %c0_42 = arith.constant 0 : index
    %c0_43 = arith.constant 0 : index
    %61 = vector.load %arg8[%c0_41, %c0_42, %c0_43] : memref<1x2x128xf32, #tpu.memory_space<vmem>>, vector<1x1x128xf32>
    tpu.vector_store %arg8[%c0_41, %c0_42, %c0_43], %60 {strides = array<i32>} : memref<1x2x128xf32, #tpu.memory_space<vmem>>, vector<1x1x128xf32>,
    %62 = vector.shape_cast %59 : vector<1x128xf32> to vector<1x1x128xf32>
    %c0_44 = arith.constant 0 : index
    %c1_45 = arith.constant 1 : index
    %c0_46 = arith.constant 0 : index
    %63 = vector.load %arg8[%c0_44, %c1_45, %c0_46] : memref<1x2x128xf32, #tpu.memory_space<vmem>>, vector<1x1x128xf32>
    tpu.vector_store %arg8[%c0_44, %c1_45, %c0_46], %62 {strides = array<i32>} : memref<1x2x128xf32, #tpu.memory_space<vmem>>, vector<1x1x128xf32>,
    %cst_47 = arith.constant dense<0.000000e+00> : vector<128xf32>
    %64 = vector.multi_reduction <add>, %18, %cst_47 [0] : vector<1024x128xf32> to vector<128xf32>
    %65 = vector.shape_cast %64 : vector<128xf32> to vector<1x128xf32>
    %cst_48 = arith.constant dense<0.000000e+00> : vector<128xf32>
    %66 = vector.multi_reduction <add>, %24, %cst_48 [0] : vector<1024x128xf32> to vector<128xf32>
    %67 = vector.shape_cast %66 : vector<128xf32> to vector<1x128xf32>
    %68 = arith.addf %65, %67 : vector<1x128xf32>
    %69 = arith.mulf %18, %18 : vector<1024x128xf32>
    %cst_49 = arith.constant dense<0.000000e+00> : vector<128xf32>
    %70 = vector.multi_reduction <add>, %69, %cst_49 [0] : vector<1024x128xf32> to vector<128xf32>
    %71 = vector.shape_cast %70 : vector<128xf32> to vector<1x128xf32>
    %72 = arith.mulf %24, %24 : vector<1024x128xf32>
    %cst_50 = arith.constant dense<0.000000e+00> : vector<128xf32>
    %73 = vector.multi_reduction <add>, %72, %cst_50 [0] : vector<1024x128xf32> to vector<128xf32>
    %74 = vector.shape_cast %73 : vector<128xf32> to vector<1x128xf32>
    %75 = arith.addf %71, %74 : vector<1x128xf32>
    %76 = vector.shape_cast %68 : vector<1x128xf32> to vector<1x1x128xf32>
    %c0_51 = arith.constant 0 : index
    %c0_52 = arith.constant 0 : index
    %c0_53 = arith.constant 0 : index
    %77 = vector.load %arg9[%c0_51, %c0_52, %c0_53] : memref<1x2x128xf32, #tpu.memory_space<vmem>>, vector<1x1x128xf32>
    tpu.vector_store %arg9[%c0_51, %c0_52, %c0_53], %76 {strides = array<i32>} : memref<1x2x128xf32, #tpu.memory_space<vmem>>, vector<1x1x128xf32>,
    %78 = vector.shape_cast %75 : vector<1x128xf32> to vector<1x1x128xf32>
    %c0_54 = arith.constant 0 : index
    %c1_55 = arith.constant 1 : index
    %c0_56 = arith.constant 0 : index
    %79 = vector.load %arg9[%c0_54, %c1_55, %c0_56] : memref<1x2x128xf32, #tpu.memory_space<vmem>>, vector<1x1x128xf32>
    tpu.vector_store %arg9[%c0_54, %c1_55, %c0_56], %78 {strides = array<i32>} : memref<1x2x128xf32, #tpu.memory_space<vmem>>, vector<1x1x128xf32>,
    return
  }
  func.func @transform_0(%arg0: i32) -> (i32, i32, i32) {
    %c0_i32 = arith.constant 0 : i32
    %c0_i32_0 = arith.constant 0 : i32
    %c0_i32_1 = arith.constant 0 : i32
    return %arg0, %c0_i32, %c0_i32_0 : i32, i32, i32
  }
  func.func @transform_1(%arg0: i32) -> (i32, i32, i32, i32) {
    %c0_i32 = arith.constant 0 : i32
    %c0_i32_0 = arith.constant 0 : i32
    %c0_i32_1 = arith.constant 0 : i32
    %c0_i32_2 = arith.constant 0 : i32
    return %arg0, %c0_i32, %c0_i32_0, %c0_i32_1 : i32, i32, i32, i32
  }
  func.func @transform_2(%arg0: i32) -> (i32, i32) {
    %c0_i32 = arith.constant 0 : i32
    %c0_i32_0 = arith.constant 0 : i32
    %c0_i32_1 = arith.constant 0 : i32
    return %c0_i32, %c0_i32_0 : i32, i32
  }
  func.func @transform_3(%arg0: i32) -> (i32, i32) {
    %c0_i32 = arith.constant 0 : i32
    %c0_i32_0 = arith.constant 0 : i32
    %c0_i32_1 = arith.constant 0 : i32
    return %c0_i32, %c0_i32_0 : i32, i32
  }
  func.func @transform_4(%arg0: i32) -> (i32, i32) {
    %c0_i32 = arith.constant 0 : i32
    %c0_i32_0 = arith.constant 0 : i32
    %c0_i32_1 = arith.constant 0 : i32
    return %c0_i32, %c0_i32_0 : i32, i32
  }
  func.func @transform_5(%arg0: i32) -> (i32, i32) {
    %c0_i32 = arith.constant 0 : i32
    %c0_i32_0 = arith.constant 0 : i32
    %c0_i32_1 = arith.constant 0 : i32
    return %c0_i32, %c0_i32_0 : i32, i32
  }
  func.func @transform_6(%arg0: i32) -> (i32, i32, i32, i32) {
    %c0_i32 = arith.constant 0 : i32
    %c0_i32_0 = arith.constant 0 : i32
    %c0_i32_1 = arith.constant 0 : i32
    %c0_i32_2 = arith.constant 0 : i32
    return %arg0, %c0_i32, %c0_i32_0, %c0_i32_1 : i32, i32, i32, i32
  }
  func.func @transform_7(%arg0: i32) -> (i32, i32, i32) {
    %c0_i32 = arith.constant 0 : i32
    %c0_i32_0 = arith.constant 0 : i32
    %c0_i32_1 = arith.constant 0 : i32
    return %arg0, %c0_i32, %c0_i32_0 : i32, i32, i32
  }
  func.func @transform_8(%arg0: i32) -> (i32, i32, i32) {
    %c0_i32 = arith.constant 0 : i32
    %c0_i32_0 = arith.constant 0 : i32
    %c0_i32_1 = arith.constant 0 : i32
    return %arg0, %c0_i32, %c0_i32_0 : i32, i32, i32
  }
}

</mosaic_0001>

<bundles_post_ra>
// kernel: _lambda_.3
= control target key start
LH: loop header
LB: loop body
LE: loop exit
PB: predicated region body
PF: predicated region fallthrough
CT: control target
= control target key end

     0   :  { %v528_v0 = vlaneseq  ;;  %s6248_s1 = inlined_call_operand.vmem [shape: f32[1,512], index: 1, kind: input, shape index: {}]   ;;  %s6249_s2 = inlined_call_operand.vmem [shape: f32[1,512], index: 2, kind: input, shape index: {}]   ;;  %s6250_s0 = inlined_call_operand.vmem [shape: f32[32,2,16,512], index: 0, kind: input, shape index: {}, may-alias: {0,3}]   ;;  %s6251_s3 = inlined_call_operand.vmem [shape: f32[32,2,16,512], index: 3, kind: output, shape index: {}, may-alias: {0,3}]  }
   0x1   :  { %v526_v2 = vld [vmem:[%s6248_s1] sm:$0xf]  ;;  %v15_v6 = vld [vmem:[%s6250_s0 + $0x8] sm:$0xff]  ;;  %v16_v10 = vld [vmem:[%s6250_s0 + $0x10] sm:$0xff] }
   0x2   :  { %v529_v1 = vshrl.u32 %v528_v0, 7  ;;  %v1060_v3 = vld [vmem:[%s6249_s2] sm:$0xf]  ;;  %v19_v12 = vld [vmem:[%s6250_s0 + $0x28] sm:$0xff]  ;;  %v17_v17 = vld [vmem:[%s6250_s0 + $0x18] sm:$0xff] }
   0x3   :  { %v14_v4 = vld [vmem:[%s6250_s0] sm:$0xff]  ;;  %v20_v18 = vld [vmem:[%s6250_s0 + $0x30] sm:$0xff]  ;;  %v21_v19 = vld [vmem:[%s6250_s0 + $0x38] sm:$0xff] }
   0x4   :  { %v530_v5 = vsub.s32 0, %v529_v1  ;;  %v534_v7 = vsub.s32 1, %v529_v1  ;;  %v538_v8 = vsub.s32 2, %v529_v1  ;;  %v542_v9 = vsub.s32 3, %v529_v1  ;;  %v18_v11 = vld [vmem:[%s6250_s0 + $0x20] sm:$0xff]  ;;  %v23_v29 = vld [vmem:[%s6250_s0 + $0x48] sm:$0xff] }
   0x5   :  { %v22_v28 = vld [vmem:[%s6250_s0 + $0x40] sm:$0xff]  ;;  %v24_v34 = vld [vmem:[%s6250_s0 + $0x50] sm:$0xff]  ;;  %v25_v35 = vld [vmem:[%s6250_s0 + $0x58] sm:$0xff] }
   0x6   :  { %v2151_v13 = vrot.slane %v526_v2, %v530_v5  ;;  %v2153_v14 = vrot.slane %v1060_v3, %v530_v5  ;;  %v2155_v15 = vrot.slane %v526_v2, %v534_v7  ;;  %v2157_v16 = vrot.slane %v1060_v3, %v534_v7  ;;  %v26_v36 = vld [vmem:[%s6250_s0 + $0x60] sm:$0xff]  ;;  %v27_v41 = vld [vmem:[%s6250_s0 + $0x68] sm:$0xff]  ;;  %v28_v42 = vld [vmem:[%s6250_s0 + $0x70] sm:$0xff] }
   0x7   :  { %v2168_v20 = vrot.slane %v526_v2, %v538_v8  ;;  %v2170_v21 = vrot.slane %v1060_v3, %v538_v8  ;;  %v2172_v22 = vrot.slane %v526_v2, %v542_v9  ;;  %v2174_v23 = vrot.slane %v1060_v3, %v542_v9  ;;  %v29_v43 = vld [vmem:[%s6250_s0 + $0x78] sm:$0xff] }
   0x8   :  { %v548_v24 = vmul.f32 %v2151_v13, %v14_v4  ;;  %v549_v25 = vmul.f32 %v2155_v15, %v15_v6  ;;  %v552_v26 = vmul.f32 %v2151_v13, %v18_v11  ;;  %v553_v27 = vmul.f32 %v2155_v15, %v19_v12 }
   0x9   :  { %v550_v30 = vmul.f32 %v2168_v20, %v16_v10  ;;  %v551_v31 = vmul.f32 %v2172_v22, %v17_v17  ;;  %v554_v32 = vmul.f32 %v2168_v20, %v20_v18  ;;  %v555_v33 = vmul.f32 %v2172_v22, %v21_v19 }
   0xa   :  { %v1082_v37 = vadd.f32 %v2153_v14, %v548_v24  ;;  %v1083_v38 = vadd.f32 %v2157_v16, %v549_v25  ;;  %v1086_v39 = vadd.f32 %v2153_v14, %v552_v26  ;;  %v1087_v40 = vadd.f32 %v2157_v16, %v553_v27 }
   0xb   :  { %v1084_v44 = vadd.f32 %v2170_v21, %v550_v30  ;;  %v1085_v45 = vadd.f32 %v2174_v23, %v551_v31  ;;  %v1088_v46 = vadd.f32 %v2170_v21, %v554_v32  ;;  %v1089_v47 = vadd.f32 %v2174_v23, %v555_v33 }
   0xc   :  { %1594 = vst [vmem:[%s6251_s3] sm:$0xff] %v1082_v37  ;;  %1595 = vst [vmem:[%s6251_s3 + $0x8] sm:$0xff] %v1083_v38  ;;  %v556_v48 = vmul.f32 %v2151_v13, %v22_v28  ;;  %v557_v49 = vmul.f32 %v2155_v15, %v23_v29  ;;  %v558_v50 = vmul.f32 %v2168_v20, %v24_v34 }
   0xd   :  { %1598 = vst [vmem:[%s6251_s3 + $0x20] sm:$0xff] %v1086_v39  ;;  %1599 = vst [vmem:[%s6251_s3 + $0x28] sm:$0xff] %v1087_v40  ;;  %v559_v51 = vmul.f32 %v2172_v22, %v25_v35  ;;  %v560_v54 = vmul.f32 %v2151_v13, %v26_v36  ;;  %v561_v55 = vmul.f32 %v2155_v15, %v27_v41 }
   0xe   :  { %v562_v56 = vmul.f32 %v2168_v20, %v28_v42  ;;  %v563_v57 = vmul.f32 %v2172_v22, %v29_v43  ;;  %v1090_v61 = vadd.f32 %v2153_v14, %v556_v48  ;;  %v1091_v62 = vadd.f32 %v2157_v16, %v557_v49 }
   0xf   :  { %v1092_v63 = vadd.f32 %v2170_v21, %v558_v50  ;;  %v1093_v0 = vadd.f32 %v2174_v23, %v559_v51  ;;  %v1094_v4 = vadd.f32 %v2153_v14, %v560_v54  ;;  %v1095_v5 = vadd.f32 %v2157_v16, %v561_v55 }
  0x10   :  { %v1096_v6 = vadd.f32 %v2170_v21, %v562_v56  ;;  %v1097_v7 = vadd.f32 %v2174_v23, %v563_v57 }
  0x14   :  { %v30_v52 = vld [vmem:[%s6250_s0 + $0x80] sm:$0xff]  ;;  %v31_v53 = vld [vmem:[%s6250_s0 + $0x88] sm:$0xff] }
  0x15   :  { %1596 = vst [vmem:[%s6251_s3 + $0x10] sm:$0xff] %v1084_v44  ;;  %1597 = vst [vmem:[%s6251_s3 + $0x18] sm:$0xff] %v1085_v45  ;;  %v564_v8 = vmul.f32 %v2151_v13, %v30_v52  ;;  %v565_v9 = vmul.f32 %v2155_v15, %v31_v53 }
  0x16   :  { %1600 = vst [vmem:[%s6251_s3 + $0x30] sm:$0xff] %v1088_v46  ;;  %1601 = vst [vmem:[%s6251_s3 + $0x38] sm:$0xff] %v1089_v47 }
  0x17   :  { %v1098_v29 = vadd.f32 %v2153_v14, %v564_v8  ;;  %v1099_v30 = vadd.f32 %v2157_v16, %v565_v9 }
  0x1d   :  { %v32_v58 = vld [vmem:[%s6250_s0 + $0x90] sm:$0xff]  ;;  %v33_v59 = vld [vmem:[%s6250_s0 + $0x98] sm:$0xff]  ;;  %v34_v60 = vld [vmem:[%s6250_s0 + $0xa0] sm:$0xff] }
  0x1e   :  { %v35_v1 = vld [vmem:[%s6250_s0 + $0xa8] sm:$0xff]  ;;  %v36_v2 = vld [vmem:[%s6250_s0 + $0xb0] sm:$0xff]  ;;  %v37_v3 = vld [vmem:[%s6250_s0 + $0xb8] sm:$0xff]  ;;  %v566_v10 = vmul.f32 %v2168_v20, %v32_v58  ;;  %v567_v11 = vmul.f32 %v2172_v22, %v33_v59  ;;  %v568_v18 = vmul.f32 %v2151_v13, %v34_v60 }
  0x1f   :  { %1602 = vst [vmem:[%s6251_s3 + $0x40] sm:$0xff] %v1090_v61  ;;  %1603 = vst [vmem:[%s6251_s3 + $0x48] sm:$0xff] %v1091_v62  ;;  %v569_v19 = vmul.f32 %v2155_v15, %v35_v1  ;;  %v570_v24 = vmul.f32 %v2168_v20, %v36_v2  ;;  %v571_v25 = vmul.f32 %v2172_v22, %v37_v3 }
  0x20   :  { %1604 = vst [vmem:[%s6251_s3 + $0x50] sm:$0xff] %v1092_v63  ;;  %1605 = vst [vmem:[%s6251_s3 + $0x58] sm:$0xff] %v1093_v0  ;;  %v1100_v31 = vadd.f32 %v2170_v21, %v566_v10  ;;  %v1101_v32 = vadd.f32 %v2174_v23, %v567_v11  ;;  %v1102_v36 = vadd.f32 %v2153_v14, %v568_v18 }
  0x21   :  { %v1103_v37 = vadd.f32 %v2157_v16, %v569_v19  ;;  %v1104_v38 = vadd.f32 %v2170_v21, %v570_v24  ;;  %v1105_v39 = vadd.f32 %v2174_v23, %v571_v25 }
  0x27   :  { %v38_v12 = vld [vmem:[%s6250_s0 + $0xc0] sm:$0xff]  ;;  %v39_v17 = vld [vmem:[%s6250_s0 + $0xc8] sm:$0xff] }
  0x28   :  { %1606 = vst [vmem:[%s6251_s3 + $0x60] sm:$0xff] %v1094_v4  ;;  %1607 = vst [vmem:[%s6251_s3 + $0x68] sm:$0xff] %v1095_v5  ;;  %v572_v40 = vmul.f32 %v2151_v13, %v38_v12  ;;  %v573_v41 = vmul.f32 %v2155_v15, %v39_v17 }
  0x29   :  { %1608 = vst [vmem:[%s6251_s3 + $0x70] sm:$0xff] %v1096_v6  ;;  %1609 = vst [vmem:[%s6251_s3 + $0x78] sm:$0xff] %v1097_v7 }
  0x2a   :  { %v1106_v53 = vadd.f32 %v2153_v14, %v572_v40  ;;  %v1107_v54 = vadd.f32 %v2157_v16, %v573_v41 }
  0x30   :  { %v40_v26 = vld [vmem:[%s6250_s0 + $0xd0] sm:$0xff]  ;;  %v41_v27 = vld [vmem:[%s6250_s0 + $0xd8] sm:$0xff]  ;;  %v42_v28 = vld [vmem:[%s6250_s0 + $0xe0] sm:$0xff] }
  0x31   :  { %v43_v33 = vld [vmem:[%s6250_s0 + $0xe8] sm:$0xff]  ;;  %v44_v34 = vld [vmem:[%s6250_s0 + $0xf0] sm:$0xff]  ;;  %v45_v35 = vld [vmem:[%s6250_s0 + $0xf8] sm:$0xff]  ;;  %v574_v42 = vmul.f32 %v2168_v20, %v40_v26  ;;  %v575_v43 = vmul.f32 %v2172_v22, %v41_v27  ;;  %v576_v46 = vmul.f32 %v2151_v13, %v42_v28 }
  0x32   :  { %1610 = vst [vmem:[%s6251_s3 + $0x80] sm:$0xff] %v1098_v29  ;;  %1611 = vst [vmem:[%s6251_s3 + $0x88] sm:$0xff] %v1099_v30  ;;  %v577_v47 = vmul.f32 %v2155_v15, %v43_v33  ;;  %v578_v48 = vmul.f32 %v2168_v20, %v44_v34  ;;  %v579_v49 = vmul.f32 %v2172_v22, %v45_v35 }
  0x33   :  { %1612 = vst [vmem:[%s6251_s3 + $0x90] sm:$0xff] %v1100_v31  ;;  %1613 = vst [vmem:[%s6251_s3 + $0x98] sm:$0xff] %v1101_v32  ;;  %v1108_v55 = vadd.f32 %v2170_v21, %v574_v42  ;;  %v1109_v56 = vadd.f32 %v2174_v23, %v575_v43  ;;  %v1110_v60 = vadd.f32 %v2153_v14, %v576_v46 }
  0x34   :  { %v1111_v61 = vadd.f32 %v2157_v16, %v577_v47  ;;  %v1112_v62 = vadd.f32 %v2170_v21, %v578_v48  ;;  %v1113_v63 = vadd.f32 %v2174_v23, %v579_v49 }
  0x3a   :  { %v46_v44 = vld [vmem:[%s6250_s0 + $0x100] sm:$0xff]  ;;  %v47_v45 = vld [vmem:[%s6250_s0 + $0x108] sm:$0xff] }
  0x3b   :  { %1614 = vst [vmem:[%s6251_s3 + $0xa0] sm:$0xff] %v1102_v36  ;;  %1615 = vst [vmem:[%s6251_s3 + $0xa8] sm:$0xff] %v1103_v37  ;;  %v580_v0 = vmul.f32 %v2151_v13, %v46_v44  ;;  %v581_v1 = vmul.f32 %v2155_v15, %v47_v45 }
  0x3c   :  { %1616 = vst [vmem:[%s6251_s3 + $0xb0] sm:$0xff] %v1104_v38  ;;  %1617 = vst [vmem:[%s6251_s3 + $0xb8] sm:$0xff] %v1105_v39 }
  0x3d   :  { %v1114_v17 = vadd.f32 %v2153_v14, %v580_v0  ;;  %v1115_v18 = vadd.f32 %v2157_v16, %v581_v1 }
  0x43   :  { %v48_v50 = vld [vmem:[%s6250_s0 + $0x110] sm:$0xff]  ;;  %v49_v51 = vld [vmem:[%s6250_s0 + $0x118] sm:$0xff]  ;;  %v50_v52 = vld [vmem:[%s6250_s0 + $0x120] sm:$0xff] }
  0x44   :  { %v51_v57 = vld [vmem:[%s6250_s0 + $0x128] sm:$0xff]  ;;  %v52_v58 = vld [vmem:[%s6250_s0 + $0x130] sm:$0xff]  ;;  %v53_v59 = vld [vmem:[%s6250_s0 + $0x138] sm:$0xff]  ;;  %v582_v2 = vmul.f32 %v2168_v20, %v48_v50  ;;  %v583_v3 = vmul.f32 %v2172_v22, %v49_v51  ;;  %v584_v6 = vmul.f32 %v2151_v13, %v50_v52 }
  0x45   :  { %1618 = vst [vmem:[%s6251_s3 + $0xc0] sm:$0xff] %v1106_v53  ;;  %1619 = vst [vmem:[%s6251_s3 + $0xc8] sm:$0xff] %v1107_v54  ;;  %v585_v7 = vmul.f32 %v2155_v15, %v51_v57  ;;  %v586_v8 = vmul.f32 %v2168_v20, %v52_v58  ;;  %v587_v9 = vmul.f32 %v2172_v22, %v53_v59 }
  0x46   :  { %1620 = vst [vmem:[%s6251_s3 + $0xd0] sm:$0xff] %v1108_v55  ;;  %1621 = vst [vmem:[%s6251_s3 + $0xd8] sm:$0xff] %v1109_v56  ;;  %v1116_v19 = vadd.f32 %v2170_v21, %v582_v2  ;;  %v1117_v24 = vadd.f32 %v2174_v23, %v583_v3  ;;  %v1118_v28 = vadd.f32 %v2153_v14, %v584_v6 }
  0x47   :  { %v1119_v29 = vadd.f32 %v2157_v16, %v585_v7  ;;  %v1120_v30 = vadd.f32 %v2170_v21, %v586_v8  ;;  %v1121_v31 = vadd.f32 %v2174_v23, %v587_v9 }
  0x4d   :  { %v54_v4 = vld [vmem:[%s6250_s0 + $0x140] sm:$0xff]  ;;  %v55_v5 = vld [vmem:[%s6250_s0 + $0x148] sm:$0xff] }
  0x4e   :  { %1622 = vst [vmem:[%s6251_s3 + $0xe0] sm:$0xff] %v1110_v60  ;;  %1623 = vst [vmem:[%s6251_s3 + $0xe8] sm:$0xff] %v1111_v61  ;;  %v588_v32 = vmul.f32 %v2151_v13, %v54_v4  ;;  %v589_v33 = vmul.f32 %v2155_v15, %v55_v5 }
  0x4f   :  { %1624 = vst [vmem:[%s6251_s3 + $0xf0] sm:$0xff] %v1112_v62  ;;  %1625 = vst [vmem:[%s6251_s3 + $0xf8] sm:$0xff] %v1113_v63 }
  0x50   :  { %v1122_v45 = vadd.f32 %v2153_v14, %v588_v32  ;;  %v1123_v46 = vadd.f32 %v2157_v16, %v589_v33 }
  0x56   :  { %v56_v10 = vld [vmem:[%s6250_s0 + $0x150] sm:$0xff]  ;;  %v57_v11 = vld [vmem:[%s6250_s0 + $0x158] sm:$0xff]  ;;  %v58_v12 = vld [vmem:[%s6250_s0 + $0x160] sm:$0xff] }
  0x57   :  { %v59_v25 = vld [vmem:[%s6250_s0 + $0x168] sm:$0xff]  ;;  %v60_v26 = vld [vmem:[%s6250_s0 + $0x170] sm:$0xff]  ;;  %v61_v27 = vld [vmem:[%s6250_s0 + $0x178] sm:$0xff]  ;;  %v590_v34 = vmul.f32 %v2168_v20, %v56_v10  ;;  %v591_v35 = vmul.f32 %v2172_v22, %v57_v11  ;;  %v592_v38 = vmul.f32 %v2151_v13, %v58_v12 }
  0x58   :  { %1626 = vst [vmem:[%s6251_s3 + $0x100] sm:$0xff] %v1114_v17  ;;  %1627 = vst [vmem:[%s6251_s3 + $0x108] sm:$0xff] %v1115_v18  ;;  %v593_v39 = vmul.f32 %v2155_v15, %v59_v25  ;;  %v594_v40 = vmul.f32 %v2168_v20, %v60_v26  ;;  %v595_v41 = vmul.f32 %v2172_v22, %v61_v27 }
  0x59   :  { %1628 = vst [vmem:[%s6251_s3 + $0x110] sm:$0xff] %v1116_v19  ;;  %1629 = vst [vmem:[%s6251_s3 + $0x118] sm:$0xff] %v1117_v24  ;;  %v1124_v47 = vadd.f32 %v2170_v21, %v590_v34  ;;  %v1125_v48 = vadd.f32 %v2174_v23, %v591_v35  ;;  %v1126_v52 = vadd.f32 %v2153_v14, %v592_v38 }
  0x5a   :  { %v1127_v53 = vadd.f32 %v2157_v16, %v593_v39  ;;  %v1128_v54 = vadd.f32 %v2170_v21, %v594_v40  ;;  %v1129_v55 = vadd.f32 %v2174_v23, %v595_v41 }
  0x60   :  { %v62_v36 = vld [vmem:[%s6250_s0 + $0x180] sm:$0xff]  ;;  %v63_v37 = vld [vmem:[%s6250_s0 + $0x188] sm:$0xff] }
  0x61   :  { %1630 = vst [vmem:[%s6251_s3 + $0x120] sm:$0xff] %v1118_v28  ;;  %1631 = vst [vmem:[%s6251_s3 + $0x128] sm:$0xff] %v1119_v29  ;;  %v596_v56 = vmul.f32 %v2151_v13, %v62_v36  ;;  %v597_v57 = vmul.f32 %v2155_v15, %v63_v37 }
  0x62   :  { %1632 = vst [vmem:[%s6251_s3 + $0x130] sm:$0xff] %v1120_v30  ;;  %1633 = vst [vmem:[%s6251_s3 + $0x138] sm:$0xff] %v1121_v31 }
  0x63   :  { %v1130_v5 = vadd.f32 %v2153_v14, %v596_v56  ;;  %v1131_v6 = vadd.f32 %v2157_v16, %v597_v57 }
  0x69   :  { %v64_v42 = vld [vmem:[%s6250_s0 + $0x190] sm:$0xff]  ;;  %v65_v43 = vld [vmem:[%s6250_s0 + $0x198] sm:$0xff]  ;;  %v66_v44 = vld [vmem:[%s6250_s0 + $0x1a0] sm:$0xff] }
  0x6a   :  { %v67_v49 = vld [vmem:[%s6250_s0 + $0x1a8] sm:$0xff]  ;;  %v68_v50 = vld [vmem:[%s6250_s0 + $0x1b0] sm:$0xff]  ;;  %v69_v51 = vld [vmem:[%s6250_s0 + $0x1b8] sm:$0xff]  ;;  %v598_v58 = vmul.f32 %v2168_v20, %v64_v42  ;;  %v599_v59 = vmul.f32 %v2172_v22, %v65_v43  ;;  %v600_v62 = vmul.f32 %v2151_v13, %v66_v44 }
  0x6b   :  { %1634 = vst [vmem:[%s6251_s3 + $0x140] sm:$0xff] %v1122_v45  ;;  %1635 = vst [vmem:[%s6251_s3 + $0x148] sm:$0xff] %v1123_v46  ;;  %v601_v63 = vmul.f32 %v2155_v15, %v67_v49  ;;  %v602_v0 = vmul.f32 %v2168_v20, %v68_v50  ;;  %v603_v1 = vmul.f32 %v2172_v22, %v69_v51 }
  0x6c   :  { %1636 = vst [vmem:[%s6251_s3 + $0x150] sm:$0xff] %v1124_v47  ;;  %1637 = vst [vmem:[%s6251_s3 + $0x158] sm:$0xff] %v1125_v48  ;;  %v1132_v7 = vadd.f32 %v2170_v21, %v598_v58  ;;  %v1133_v8 = vadd.f32 %v2174_v23, %v599_v59  ;;  %v1134_v12 = vadd.f32 %v2153_v14, %v600_v62 }
  0x6d   :  { %v1135_v17 = vadd.f32 %v2157_v16, %v601_v63  ;;  %v1136_v18 = vadd.f32 %v2170_v21, %v602_v0  ;;  %v1137_v19 = vadd.f32 %v2174_v23, %v603_v1 }
  0x73   :  { %v70_v60 = vld [vmem:[%s6250_s0 + $0x1c0] sm:$0xff]  ;;  %v71_v61 = vld [vmem:[%s6250_s0 + $0x1c8] sm:$0xff] }
  0x74   :  { %1638 = vst [vmem:[%s6251_s3 + $0x160] sm:$0xff] %v1126_v52  ;;  %1639 = vst [vmem:[%s6251_s3 + $0x168] sm:$0xff] %v1127_v53  ;;  %v604_v24 = vmul.f32 %v2151_v13, %v70_v60  ;;  %v605_v25 = vmul.f32 %v2155_v15, %v71_v61 }
  0x75   :  { %1640 = vst [vmem:[%s6251_s3 + $0x170] sm:$0xff] %v1128_v54  ;;  %1641 = vst [vmem:[%s6251_s3 + $0x178] sm:$0xff] %v1129_v55 }
  0x76   :  { %v1138_v37 = vadd.f32 %v2153_v14, %v604_v24  ;;  %v1139_v38 = vadd.f32 %v2157_v16, %v605_v25 }
  0x7c   :  { %v72_v2 = vld [vmem:[%s6250_s0 + $0x1d0] sm:$0xff]  ;;  %v73_v3 = vld [vmem:[%s6250_s0 + $0x1d8] sm:$0xff]  ;;  %v74_v4 = vld [vmem:[%s6250_s0 + $0x1e0] sm:$0xff] }
  0x7d   :  { %v75_v9 = vld [vmem:[%s6250_s0 + $0x1e8] sm:$0xff]  ;;  %v76_v10 = vld [vmem:[%s6250_s0 + $0x1f0] sm:$0xff]  ;;  %v77_v11 = vld [vmem:[%s6250_s0 + $0x1f8] sm:$0xff]  ;;  %v606_v26 = vmul.f32 %v2168_v20, %v72_v2  ;;  %v607_v27 = vmul.f32 %v2172_v22, %v73_v3  ;;  %v608_v30 = vmul.f32 %v2151_v13, %v74_v4 }
  0x7e   :  { %1642 = vst [vmem:[%s6251_s3 + $0x180] sm:$0xff] %v1130_v5  ;;  %1643 = vst [vmem:[%s6251_s3 + $0x188] sm:$0xff] %v1131_v6  ;;  %v609_v31 = vmul.f32 %v2155_v15, %v75_v9  ;;  %v610_v32 = vmul.f32 %v2168_v20, %v76_v10  ;;  %v611_v33 = vmul.f32 %v2172_v22, %v77_v11 }
  0x7f   :  { %1644 = vst [vmem:[%s6251_s3 + $0x190] sm:$0xff] %v1132_v7  ;;  %1645 = vst [vmem:[%s6251_s3 + $0x198] sm:$0xff] %v1133_v8  ;;  %v1140_v39 = vadd.f32 %v2170_v21, %v606_v26  ;;  %v1141_v40 = vadd.f32 %v2174_v23, %v607_v27  ;;  %v1142_v44 = vadd.f32 %v2153_v14, %v608_v30 }
  0x80   :  { %v1143_v45 = vadd.f32 %v2157_v16, %v609_v31  ;;  %v1144_v46 = vadd.f32 %v2170_v21, %v610_v32  ;;  %v1145_v47 = vadd.f32 %v2174_v23, %v611_v33 }
  0x86   :  { %v78_v28 = vld [vmem:[%s6250_s0 + $0x200] sm:$0xff]  ;;  %v79_v29 = vld [vmem:[%s6250_s0 + $0x208] sm:$0xff] }
  0x87   :  { %1646 = vst [vmem:[%s6251_s3 + $0x1a0] sm:$0xff] %v1134_v12  ;;  %1647 = vst [vmem:[%s6251_s3 + $0x1a8] sm:$0xff] %v1135_v17  ;;  %v612_v48 = vmul.f32 %v2151_v13, %v78_v28  ;;  %v613_v49 = vmul.f32 %v2155_v15, %v79_v29 }
  0x88   :  { %1648 = vst [vmem:[%s6251_s3 + $0x1b0] sm:$0xff] %v1136_v18  ;;  %1649 = vst [vmem:[%s6251_s3 + $0x1b8] sm:$0xff] %v1137_v19 }
  0x89   :  { %v1146_v61 = vadd.f32 %v2153_v14, %v612_v48  ;;  %v1147_v62 = vadd.f32 %v2157_v16, %v613_v49 }
  0x8f   :  { %v80_v34 = vld [vmem:[%s6250_s0 + $0x210] sm:$0xff]  ;;  %v81_v35 = vld [vmem:[%s6250_s0 + $0x218] sm:$0xff]  ;;  %v82_v36 = vld [vmem:[%s6250_s0 + $0x220] sm:$0xff] }
  0x90   :  { %v83_v41 = vld [vmem:[%s6250_s0 + $0x228] sm:$0xff]  ;;  %v84_v42 = vld [vmem:[%s6250_s0 + $0x230] sm:$0xff]  ;;  %v85_v43 = vld [vmem:[%s6250_s0 + $0x238] sm:$0xff]  ;;  %v614_v50 = vmul.f32 %v2168_v20, %v80_v34  ;;  %v615_v51 = vmul.f32 %v2172_v22, %v81_v35  ;;  %v616_v54 = vmul.f32 %v2151_v13, %v82_v36 }
  0x91   :  { %1650 = vst [vmem:[%s6251_s3 + $0x1c0] sm:$0xff] %v1138_v37  ;;  %1651 = vst [vmem:[%s6251_s3 + $0x1c8] sm:$0xff] %v1139_v38  ;;  %v617_v55 = vmul.f32 %v2155_v15, %v83_v41  ;;  %v618_v56 = vmul.f32 %v2168_v20, %v84_v42  ;;  %v619_v57 = vmul.f32 %v2172_v22, %v85_v43 }
  0x92   :  { %1652 = vst [vmem:[%s6251_s3 + $0x1d0] sm:$0xff] %v1140_v39  ;;  %1653 = vst [vmem:[%s6251_s3 + $0x1d8] sm:$0xff] %v1141_v40  ;;  %v1148_v63 = vadd.f32 %v2170_v21, %v614_v50  ;;  %v1149_v0 = vadd.f32 %v2174_v23, %v615_v51  ;;  %v1150_v4 = vadd.f32 %v2153_v14, %v616_v54 }
  0x93   :  { %v1151_v5 = vadd.f32 %v2157_v16, %v617_v55  ;;  %v1152_v6 = vadd.f32 %v2170_v21, %v618_v56  ;;  %v1153_v7 = vadd.f32 %v2174_v23, %v619_v57 }
  0x99   :  { %v86_v52 = vld [vmem:[%s6250_s0 + $0x240] sm:$0xff]  ;;  %v87_v53 = vld [vmem:[%s6250_s0 + $0x248] sm:$0xff] }
  0x9a   :  { %1654 = vst [vmem:[%s6251_s3 + $0x1e0] sm:$0xff] %v1142_v44  ;;  %1655 = vst [vmem:[%s6251_s3 + $0x1e8] sm:$0xff] %v1143_v45  ;;  %v620_v8 = vmul.f32 %v2151_v13, %v86_v52  ;;  %v621_v9 = vmul.f32 %v2155_v15, %v87_v53 }
  0x9b   :  { %1656 = vst [vmem:[%s6251_s3 + $0x1f0] sm:$0xff] %v1144_v46  ;;  %1657 = vst [vmem:[%s6251_s3 + $0x1f8] sm:$0xff] %v1145_v47 }
  0x9c   :  { %v1154_v29 = vadd.f32 %v2153_v14, %v620_v8  ;;  %v1155_v30 = vadd.f32 %v2157_v16, %v621_v9 }
  0xa2   :  { %v88_v58 = vld [vmem:[%s6250_s0 + $0x250] sm:$0xff]  ;;  %v89_v59 = vld [vmem:[%s6250_s0 + $0x258] sm:$0xff]  ;;  %v90_v60 = vld [vmem:[%s6250_s0 + $0x260] sm:$0xff] }
  0xa3   :  { %v91_v1 = vld [vmem:[%s6250_s0 + $0x268] sm:$0xff]  ;;  %v92_v2 = vld [vmem:[%s6250_s0 + $0x270] sm:$0xff]  ;;  %v93_v3 = vld [vmem:[%s6250_s0 + $0x278] sm:$0xff]  ;;  %v622_v10 = vmul.f32 %v2168_v20, %v88_v58  ;;  %v623_v11 = vmul.f32 %v2172_v22, %v89_v59  ;;  %v624_v18 = vmul.f32 %v2151_v13, %v90_v60 }
  0xa4   :  { %1658 = vst [vmem:[%s6251_s3 + $0x200] sm:$0xff] %v1146_v61  ;;  %1659 = vst [vmem:[%s6251_s3 + $0x208] sm:$0xff] %v1147_v62  ;;  %v625_v19 = vmul.f32 %v2155_v15, %v91_v1  ;;  %v626_v24 = vmul.f32 %v2168_v20, %v92_v2  ;;  %v627_v25 = vmul.f32 %v2172_v22, %v93_v3 }
  0xa5   :  { %1660 = vst [vmem:[%s6251_s3 + $0x210] sm:$0xff] %v1148_v63  ;;  %1661 = vst [vmem:[%s6251_s3 + $0x218] sm:$0xff] %v1149_v0  ;;  %v1156_v31 = vadd.f32 %v2170_v21, %v622_v10  ;;  %v1157_v32 = vadd.f32 %v2174_v23, %v623_v11  ;;  %v1158_v36 = vadd.f32 %v2153_v14, %v624_v18 }
  0xa6   :  { %v1159_v37 = vadd.f32 %v2157_v16, %v625_v19  ;;  %v1160_v38 = vadd.f32 %v2170_v21, %v626_v24  ;;  %v1161_v39 = vadd.f32 %v2174_v23, %v627_v25 }
  0xac   :  { %v94_v12 = vld [vmem:[%s6250_s0 + $0x280] sm:$0xff]  ;;  %v95_v17 = vld [vmem:[%s6250_s0 + $0x288] sm:$0xff] }
  0xad   :  { %1662 = vst [vmem:[%s6251_s3 + $0x220] sm:$0xff] %v1150_v4  ;;  %1663 = vst [vmem:[%s6251_s3 + $0x228] sm:$0xff] %v1151_v5  ;;  %v628_v40 = vmul.f32 %v2151_v13, %v94_v12  ;;  %v629_v41 = vmul.f32 %v2155_v15, %v95_v17 }
  0xae   :  { %1664 = vst [vmem:[%s6251_s3 + $0x230] sm:$0xff] %v1152_v6  ;;  %1665 = vst [vmem:[%s6251_s3 + $0x238] sm:$0xff] %v1153_v7 }
  0xaf   :  { %v1162_v53 = vadd.f32 %v2153_v14, %v628_v40  ;;  %v1163_v54 = vadd.f32 %v2157_v16, %v629_v41 }
  0xb5   :  { %v96_v26 = vld [vmem:[%s6250_s0 + $0x290] sm:$0xff]  ;;  %v97_v27 = vld [vmem:[%s6250_s0 + $0x298] sm:$0xff]  ;;  %v98_v28 = vld [vmem:[%s6250_s0 + $0x2a0] sm:$0xff] }
  0xb6   :  { %v99_v33 = vld [vmem:[%s6250_s0 + $0x2a8] sm:$0xff]  ;;  %v100_v34 = vld [vmem:[%s6250_s0 + $0x2b0] sm:$0xff]  ;;  %v101_v35 = vld [vmem:[%s6250_s0 + $0x2b8] sm:$0xff]  ;;  %v630_v42 = vmul.f32 %v2168_v20, %v96_v26  ;;  %v631_v43 = vmul.f32 %v2172_v22, %v97_v27  ;;  %v632_v46 = vmul.f32 %v2151_v13, %v98_v28 }
  0xb7   :  { %1666 = vst [vmem:[%s6251_s3 + $0x240] sm:$0xff] %v1154_v29  ;;  %1667 = vst [vmem:[%s6251_s3 + $0x248] sm:$0xff] %v1155_v30  ;;  %v633_v47 = vmul.f32 %v2155_v15, %v99_v33  ;;  %v634_v48 = vmul.f32 %v2168_v20, %v100_v34  ;;  %v635_v49 = vmul.f32 %v2172_v22, %v101_v35 }
  0xb8   :  { %1668 = vst [vmem:[%s6251_s3 + $0x250] sm:$0xff] %v1156_v31  ;;  %1669 = vst [vmem:[%s6251_s3 + $0x258] sm:$0xff] %v1157_v32  ;;  %v1164_v55 = vadd.f32 %v2170_v21, %v630_v42  ;;  %v1165_v56 = vadd.f32 %v2174_v23, %v631_v43  ;;  %v1166_v60 = vadd.f32 %v2153_v14, %v632_v46 }
  0xb9   :  { %v1167_v61 = vadd.f32 %v2157_v16, %v633_v47  ;;  %v1168_v62 = vadd.f32 %v2170_v21, %v634_v48  ;;  %v1169_v63 = vadd.f32 %v2174_v23, %v635_v49 }
  0xbf   :  { %v102_v44 = vld [vmem:[%s6250_s0 + $0x2c0] sm:$0xff]  ;;  %v103_v45 = vld [vmem:[%s6250_s0 + $0x2c8] sm:$0xff] }
  0xc0   :  { %1670 = vst [vmem:[%s6251_s3 + $0x260] sm:$0xff] %v1158_v36  ;;  %1671 = vst [vmem:[%s6251_s3 + $0x268] sm:$0xff] %v1159_v37  ;;  %v636_v0 = vmul.f32 %v2151_v13, %v102_v44  ;;  %v637_v1 = vmul.f32 %v2155_v15, %v103_v45 }
  0xc1   :  { %1672 = vst [vmem:[%s6251_s3 + $0x270] sm:$0xff] %v1160_v38  ;;  %1673 = vst [vmem:[%s6251_s3 + $0x278] sm:$0xff] %v1161_v39 }
  0xc2   :  { %v1170_v17 = vadd.f32 %v2153_v14, %v636_v0  ;;  %v1171_v18 = vadd.f32 %v2157_v16, %v637_v1 }
  0xc8   :  { %v104_v50 = vld [vmem:[%s6250_s0 + $0x2d0] sm:$0xff]  ;;  %v105_v51 = vld [vmem:[%s6250_s0 + $0x2d8] sm:$0xff]  ;;  %v106_v52 = vld [vmem:[%s6250_s0 + $0x2e0] sm:$0xff] }
  0xc9   :  { %v107_v57 = vld [vmem:[%s6250_s0 + $0x2e8] sm:$0xff]  ;;  %v108_v58 = vld [vmem:[%s6250_s0 + $0x2f0] sm:$0xff]  ;;  %v109_v59 = vld [vmem:[%s6250_s0 + $0x2f8] sm:$0xff]  ;;  %v638_v2 = vmul.f32 %v2168_v20, %v104_v50  ;;  %v639_v3 = vmul.f32 %v2172_v22, %v105_v51  ;;  %v640_v6 = vmul.f32 %v2151_v13, %v106_v52 }
  0xca   :  { %1674 = vst [vmem:[%s6251_s3 + $0x280] sm:$0xff] %v1162_v53  ;;  %1675 = vst [vmem:[%s6251_s3 + $0x288] sm:$0xff] %v1163_v54  ;;  %v641_v7 = vmul.f32 %v2155_v15, %v107_v57  ;;  %v642_v8 = vmul.f32 %v2168_v20, %v108_v58  ;;  %v643_v9 = vmul.f32 %v2172_v22, %v109_v59 }
  0xcb   :  { %1676 = vst [vmem:[%s6251_s3 + $0x290] sm:$0xff] %v1164_v55  ;;  %1677 = vst [vmem:[%s6251_s3 + $0x298] sm:$0xff] %v1165_v56  ;;  %v1172_v19 = vadd.f32 %v2170_v21, %v638_v2  ;;  %v1173_v24 = vadd.f32 %v2174_v23, %v639_v3  ;;  %v1174_v28 = vadd.f32 %v2153_v14, %v640_v6 }
  0xcc   :  { %v1175_v29 = vadd.f32 %v2157_v16, %v641_v7  ;;  %v1176_v30 = vadd.f32 %v2170_v21, %v642_v8  ;;  %v1177_v31 = vadd.f32 %v2174_v23, %v643_v9 }
  0xd2   :  { %v110_v4 = vld [vmem:[%s6250_s0 + $0x300] sm:$0xff]  ;;  %v111_v5 = vld [vmem:[%s6250_s0 + $0x308] sm:$0xff] }
  0xd3   :  { %1678 = vst [vmem:[%s6251_s3 + $0x2a0] sm:$0xff] %v1166_v60  ;;  %1679 = vst [vmem:[%s6251_s3 + $0x2a8] sm:$0xff] %v1167_v61  ;;  %v644_v32 = vmul.f32 %v2151_v13, %v110_v4  ;;  %v645_v33 = vmul.f32 %v2155_v15, %v111_v5 }
  0xd4   :  { %1680 = vst [vmem:[%s6251_s3 + $0x2b0] sm:$0xff] %v1168_v62  ;;  %1681 = vst [vmem:[%s6251_s3 + $0x2b8] sm:$0xff] %v1169_v63 }
  0xd5   :  { %v1178_v45 = vadd.f32 %v2153_v14, %v644_v32  ;;  %v1179_v46 = vadd.f32 %v2157_v16, %v645_v33 }
  0xdb   :  { %v112_v10 = vld [vmem:[%s6250_s0 + $0x310] sm:$0xff]  ;;  %v113_v11 = vld [vmem:[%s6250_s0 + $0x318] sm:$0xff]  ;;  %v114_v12 = vld [vmem:[%s6250_s0 + $0x320] sm:$0xff] }
  0xdc   :  { %v115_v25 = vld [vmem:[%s6250_s0 + $0x328] sm:$0xff]  ;;  %v116_v26 = vld [vmem:[%s6250_s0 + $0x330] sm:$0xff]  ;;  %v117_v27 = vld [vmem:[%s6250_s0 + $0x338] sm:$0xff]  ;;  %v646_v34 = vmul.f32 %v2168_v20, %v112_v10  ;;  %v647_v35 = vmul.f32 %v2172_v22, %v113_v11  ;;  %v648_v38 = vmul.f32 %v2151_v13, %v114_v12 }
  0xdd   :  { %1682 = vst [vmem:[%s6251_s3 + $0x2c0] sm:$0xff] %v1170_v17  ;;  %1683 = vst [vmem:[%s6251_s3 + $0x2c8] sm:$0xff] %v1171_v18  ;;  %v649_v39 = vmul.f32 %v2155_v15, %v115_v25  ;;  %v650_v40 = vmul.f32 %v2168_v20, %v116_v26  ;;  %v651_v41 = vmul.f32 %v2172_v22, %v117_v27 }
  0xde   :  { %1684 = vst [vmem:[%s6251_s3 + $0x2d0] sm:$0xff] %v1172_v19  ;;  %1685 = vst [vmem:[%s6251_s3 + $0x2d8] sm:$0xff] %v1173_v24  ;;  %v1180_v47 = vadd.f32 %v2170_v21, %v646_v34  ;;  %v1181_v48 = vadd.f32 %v2174_v23, %v647_v35  ;;  %v1182_v52 = vadd.f32 %v2153_v14, %v648_v38 }
  0xdf   :  { %v1183_v53 = vadd.f32 %v2157_v16, %v649_v39  ;;  %v1184_v54 = vadd.f32 %v2170_v21, %v650_v40  ;;  %v1185_v55 = vadd.f32 %v2174_v23, %v651_v41 }
  0xe5   :  { %v118_v36 = vld [vmem:[%s6250_s0 + $0x340] sm:$0xff]  ;;  %v119_v37 = vld [vmem:[%s6250_s0 + $0x348] sm:$0xff] }
  0xe6   :  { %1686 = vst [vmem:[%s6251_s3 + $0x2e0] sm:$0xff] %v1174_v28  ;;  %1687 = vst [vmem:[%s6251_s3 + $0x2e8] sm:$0xff] %v1175_v29  ;;  %v652_v56 = vmul.f32 %v2151_v13, %v118_v36  ;;  %v653_v57 = vmul.f32 %v2155_v15, %v119_v37 }
  0xe7   :  { %1688 = vst [vmem:[%s6251_s3 + $0x2f0] sm:$0xff] %v1176_v30  ;;  %1689 = vst [vmem:[%s6251_s3 + $0x2f8] sm:$0xff] %v1177_v31 }
  0xe8   :  { %v1186_v5 = vadd.f32 %v2153_v14, %v652_v56  ;;  %v1187_v6 = vadd.f32 %v2157_v16, %v653_v57 }
  0xee   :  { %v120_v42 = vld [vmem:[%s6250_s0 + $0x350] sm:$0xff]  ;;  %v121_v43 = vld [vmem:[%s6250_s0 + $0x358] sm:$0xff]  ;;  %v122_v44 = vld [vmem:[%s6250_s0 + $0x360] sm:$0xff] }
  0xef   :  { %v123_v49 = vld [vmem:[%s6250_s0 + $0x368] sm:$0xff]  ;;  %v124_v50 = vld [vmem:[%s6250_s0 + $0x370] sm:$0xff]  ;;  %v125_v51 = vld [vmem:[%s6250_s0 + $0x378] sm:$0xff]  ;;  %v654_v58 = vmul.f32 %v2168_v20, %v120_v42  ;;  %v655_v59 = vmul.f32 %v2172_v22, %v121_v43  ;;  %v656_v62 = vmul.f32 %v2151_v13, %v122_v44 }
  0xf0   :  { %1690 = vst [vmem:[%s6251_s3 + $0x300] sm:$0xff] %v1178_v45  ;;  %1691 = vst [vmem:[%s6251_s3 + $0x308] sm:$0xff] %v1179_v46  ;;  %v657_v63 = vmul.f32 %v2155_v15, %v123_v49  ;;  %v658_v0 = vmul.f32 %v2168_v20, %v124_v50  ;;  %v659_v1 = vmul.f32 %v2172_v22, %v125_v51 }
  0xf1   :  { %1692 = vst [vmem:[%s6251_s3 + $0x310] sm:$0xff] %v1180_v47  ;;  %1693 = vst [vmem:[%s6251_s3 + $0x318] sm:$0xff] %v1181_v48  ;;  %v1188_v7 = vadd.f32 %v2170_v21, %v654_v58  ;;  %v1189_v8 = vadd.f32 %v2174_v23, %v655_v59  ;;  %v1190_v12 = vadd.f32 %v2153_v14, %v656_v62 }
  0xf2   :  { %v1191_v17 = vadd.f32 %v2157_v16, %v657_v63  ;;  %v1192_v18 = vadd.f32 %v2170_v21, %v658_v0  ;;  %v1193_v19 = vadd.f32 %v2174_v23, %v659_v1 }
  0xf8   :  { %v126_v60 = vld [vmem:[%s6250_s0 + $0x380] sm:$0xff]  ;;  %v127_v61 = vld [vmem:[%s6250_s0 + $0x388] sm:$0xff] }
  0xf9   :  { %1694 = vst [vmem:[%s6251_s3 + $0x320] sm:$0xff] %v1182_v52  ;;  %1695 = vst [vmem:[%s6251_s3 + $0x328] sm:$0xff] %v1183_v53  ;;  %v660_v24 = vmul.f32 %v2151_v13, %v126_v60  ;;  %v661_v25 = vmul.f32 %v2155_v15, %v127_v61 }
  0xfa   :  { %1696 = vst [vmem:[%s6251_s3 + $0x330] sm:$0xff] %v1184_v54  ;;  %1697 = vst [vmem:[%s6251_s3 + $0x338] sm:$0xff] %v1185_v55 }
  0xfb   :  { %v1194_v37 = vadd.f32 %v2153_v14, %v660_v24  ;;  %v1195_v38 = vadd.f32 %v2157_v16, %v661_v25 }
 0x101   :  { %v128_v2 = vld [vmem:[%s6250_s0 + $0x390] sm:$0xff]  ;;  %v129_v3 = vld [vmem:[%s6250_s0 + $0x398] sm:$0xff]  ;;  %v130_v4 = vld [vmem:[%s6250_s0 + $0x3a0] sm:$0xff] }
 0x102   :  { %v131_v9 = vld [vmem:[%s6250_s0 + $0x3a8] sm:$0xff]  ;;  %v132_v10 = vld [vmem:[%s6250_s0 + $0x3b0] sm:$0xff]  ;;  %v133_v11 = vld [vmem:[%s6250_s0 + $0x3b8] sm:$0xff]  ;;  %v662_v26 = vmul.f32 %v2168_v20, %v128_v2  ;;  %v663_v27 = vmul.f32 %v2172_v22, %v129_v3  ;;  %v664_v30 = vmul.f32 %v2151_v13, %v130_v4 }
 0x103   :  { %1698 = vst [vmem:[%s6251_s3 + $0x340] sm:$0xff] %v1186_v5  ;;  %1699 = vst [vmem:[%s6251_s3 + $0x348] sm:$0xff] %v1187_v6  ;;  %v665_v31 = vmul.f32 %v2155_v15, %v131_v9  ;;  %v666_v32 = vmul.f32 %v2168_v20, %v132_v10  ;;  %v667_v33 = vmul.f32 %v2172_v22, %v133_v11 }
 0x104   :  { %1700 = vst [vmem:[%s6251_s3 + $0x350] sm:$0xff] %v1188_v7  ;;  %1701 = vst [vmem:[%s6251_s3 + $0x358] sm:$0xff] %v1189_v8  ;;  %v1196_v39 = vadd.f32 %v2170_v21, %v662_v26  ;;  %v1197_v40 = vadd.f32 %v2174_v23, %v663_v27  ;;  %v1198_v44 = vadd.f32 %v2153_v14, %v664_v30 }
 0x105   :  { %v1199_v45 = vadd.f32 %v2157_v16, %v665_v31  ;;  %v1200_v46 = vadd.f32 %v2170_v21, %v666_v32  ;;  %v1201_v47 = vadd.f32 %v2174_v23, %v667_v33 }
 0x10b   :  { %v134_v28 = vld [vmem:[%s6250_s0 + $0x3c0] sm:$0xff]  ;;  %v135_v29 = vld [vmem:[%s6250_s0 + $0x3c8] sm:$0xff] }
 0x10c   :  { %1702 = vst [vmem:[%s6251_s3 + $0x360] sm:$0xff] %v1190_v12  ;;  %1703 = vst [vmem:[%s6251_s3 + $0x368] sm:$0xff] %v1191_v17  ;;  %v668_v48 = vmul.f32 %v2151_v13, %v134_v28  ;;  %v669_v49 = vmul.f32 %v2155_v15, %v135_v29 }
 0x10d   :  { %1704 = vst [vmem:[%s6251_s3 + $0x370] sm:$0xff] %v1192_v18  ;;  %1705 = vst [vmem:[%s6251_s3 + $0x378] sm:$0xff] %v1193_v19 }
 0x10e   :  { %v1202_v61 = vadd.f32 %v2153_v14, %v668_v48  ;;  %v1203_v62 = vadd.f32 %v2157_v16, %v669_v49 }
 0x114   :  { %v136_v34 = vld [vmem:[%s6250_s0 + $0x3d0] sm:$0xff]  ;;  %v137_v35 = vld [vmem:[%s6250_s0 + $0x3d8] sm:$0xff]  ;;  %v138_v36 = vld [vmem:[%s6250_s0 + $0x3e0] sm:$0xff] }
 0x115   :  { %v139_v41 = vld [vmem:[%s6250_s0 + $0x3e8] sm:$0xff]  ;;  %v140_v42 = vld [vmem:[%s6250_s0 + $0x3f0] sm:$0xff]  ;;  %v141_v43 = vld [vmem:[%s6250_s0 + $0x3f8] sm:$0xff]  ;;  %v670_v50 = vmul.f32 %v2168_v20, %v136_v34  ;;  %v671_v51 = vmul.f32 %v2172_v22, %v137_v35  ;;  %v672_v54 = vmul.f32 %v2151_v13, %v138_v36 }
 0x116   :  { %1706 = vst [vmem:[%s6251_s3 + $0x380] sm:$0xff] %v1194_v37  ;;  %1707 = vst [vmem:[%s6251_s3 + $0x388] sm:$0xff] %v1195_v38  ;;  %v673_v55 = vmul.f32 %v2155_v15, %v139_v41  ;;  %v674_v56 = vmul.f32 %v2168_v20, %v140_v42  ;;  %v675_v57 = vmul.f32 %v2172_v22, %v141_v43 }
 0x117   :  { %1708 = vst [vmem:[%s6251_s3 + $0x390] sm:$0xff] %v1196_v39  ;;  %1709 = vst [vmem:[%s6251_s3 + $0x398] sm:$0xff] %v1197_v40  ;;  %v1204_v63 = vadd.f32 %v2170_v21, %v670_v50  ;;  %v1205_v0 = vadd.f32 %v2174_v23, %v671_v51  ;;  %v1206_v4 = vadd.f32 %v2153_v14, %v672_v54 }
 0x118   :  { %v1207_v5 = vadd.f32 %v2157_v16, %v673_v55  ;;  %v1208_v6 = vadd.f32 %v2170_v21, %v674_v56  ;;  %v1209_v7 = vadd.f32 %v2174_v23, %v675_v57 }
 0x11e   :  { %v142_v52 = vld [vmem:[%s6250_s0 + $0x400] sm:$0xff]  ;;  %v143_v53 = vld [vmem:[%s6250_s0 + $0x408] sm:$0xff] }
 0x11f   :  { %1710 = vst [vmem:[%s6251_s3 + $0x3a0] sm:$0xff] %v1198_v44  ;;  %1711 = vst [vmem:[%s6251_s3 + $0x3a8] sm:$0xff] %v1199_v45  ;;  %v676_v8 = vmul.f32 %v2151_v13, %v142_v52  ;;  %v677_v9 = vmul.f32 %v2155_v15, %v143_v53 }
 0x120   :  { %1712 = vst [vmem:[%s6251_s3 + $0x3b0] sm:$0xff] %v1200_v46  ;;  %1713 = vst [vmem:[%s6251_s3 + $0x3b8] sm:$0xff] %v1201_v47 }
 0x121   :  { %v1210_v29 = vadd.f32 %v2153_v14, %v676_v8  ;;  %v1211_v30 = vadd.f32 %v2157_v16, %v677_v9 }
 0x127   :  { %v144_v58 = vld [vmem:[%s6250_s0 + $0x410] sm:$0xff]  ;;  %v145_v59 = vld [vmem:[%s6250_s0 + $0x418] sm:$0xff]  ;;  %v146_v60 = vld [vmem:[%s6250_s0 + $0x420] sm:$0xff] }
 0x128   :  { %v147_v1 = vld [vmem:[%s6250_s0 + $0x428] sm:$0xff]  ;;  %v148_v2 = vld [vmem:[%s6250_s0 + $0x430] sm:$0xff]  ;;  %v149_v3 = vld [vmem:[%s6250_s0 + $0x438] sm:$0xff]  ;;  %v678_v10 = vmul.f32 %v2168_v20, %v144_v58  ;;  %v679_v11 = vmul.f32 %v2172_v22, %v145_v59  ;;  %v680_v18 = vmul.f32 %v2151_v13, %v146_v60 }
 0x129   :  { %1714 = vst [vmem:[%s6251_s3 + $0x3c0] sm:$0xff] %v1202_v61  ;;  %1715 = vst [vmem:[%s6251_s3 + $0x3c8] sm:$0xff] %v1203_v62  ;;  %v681_v19 = vmul.f32 %v2155_v15, %v147_v1  ;;  %v682_v24 = vmul.f32 %v2168_v20, %v148_v2  ;;  %v683_v25 = vmul.f32 %v2172_v22, %v149_v3 }
 0x12a   :  { %1716 = vst [vmem:[%s6251_s3 + $0x3d0] sm:$0xff] %v1204_v63  ;;  %1717 = vst [vmem:[%s6251_s3 + $0x3d8] sm:$0xff] %v1205_v0  ;;  %v1212_v31 = vadd.f32 %v2170_v21, %v678_v10  ;;  %v1213_v32 = vadd.f32 %v2174_v23, %v679_v11  ;;  %v1214_v36 = vadd.f32 %v2153_v14, %v680_v18 }
 0x12b   :  { %v1215_v37 = vadd.f32 %v2157_v16, %v681_v19  ;;  %v1216_v38 = vadd.f32 %v2170_v21, %v682_v24  ;;  %v1217_v39 = vadd.f32 %v2174_v23, %v683_v25 }
 0x131   :  { %v150_v12 = vld [vmem:[%s6250_s0 + $0x440] sm:$0xff]  ;;  %v151_v17 = vld [vmem:[%s6250_s0 + $0x448] sm:$0xff] }
 0x132   :  { %1718 = vst [vmem:[%s6251_s3 + $0x3e0] sm:$0xff] %v1206_v4  ;;  %1719 = vst [vmem:[%s6251_s3 + $0x3e8] sm:$0xff] %v1207_v5  ;;  %v684_v40 = vmul.f32 %v2151_v13, %v150_v12  ;;  %v685_v41 = vmul.f32 %v2155_v15, %v151_v17 }
 0x133   :  { %1720 = vst [vmem:[%s6251_s3 + $0x3f0] sm:$0xff] %v1208_v6  ;;  %1721 = vst [vmem:[%s6251_s3 + $0x3f8] sm:$0xff] %v1209_v7 }
 0x134   :  { %v1218_v53 = vadd.f32 %v2153_v14, %v684_v40  ;;  %v1219_v54 = vadd.f32 %v2157_v16, %v685_v41 }
 0x13a   :  { %v152_v26 = vld [vmem:[%s6250_s0 + $0x450] sm:$0xff]  ;;  %v153_v27 = vld [vmem:[%s6250_s0 + $0x458] sm:$0xff]  ;;  %v154_v28 = vld [vmem:[%s6250_s0 + $0x460] sm:$0xff] }
 0x13b   :  { %v155_v33 = vld [vmem:[%s6250_s0 + $0x468] sm:$0xff]  ;;  %v156_v34 = vld [vmem:[%s6250_s0 + $0x470] sm:$0xff]  ;;  %v157_v35 = vld [vmem:[%s6250_s0 + $0x478] sm:$0xff]  ;;  %v686_v42 = vmul.f32 %v2168_v20, %v152_v26  ;;  %v687_v43 = vmul.f32 %v2172_v22, %v153_v27  ;;  %v688_v46 = vmul.f32 %v2151_v13, %v154_v28 }
 0x13c   :  { %1722 = vst [vmem:[%s6251_s3 + $0x400] sm:$0xff] %v1210_v29  ;;  %1723 = vst [vmem:[%s6251_s3 + $0x408] sm:$0xff] %v1211_v30  ;;  %v689_v47 = vmul.f32 %v2155_v15, %v155_v33  ;;  %v690_v48 = vmul.f32 %v2168_v20, %v156_v34  ;;  %v691_v49 = vmul.f32 %v2172_v22, %v157_v35 }
 0x13d   :  { %1724 = vst [vmem:[%s6251_s3 + $0x410] sm:$0xff] %v1212_v31  ;;  %1725 = vst [vmem:[%s6251_s3 + $0x418] sm:$0xff] %v1213_v32  ;;  %v1220_v55 = vadd.f32 %v2170_v21, %v686_v42  ;;  %v1221_v56 = vadd.f32 %v2174_v23, %v687_v43  ;;  %v1222_v60 = vadd.f32 %v2153_v14, %v688_v46 }
 0x13e   :  { %v1223_v61 = vadd.f32 %v2157_v16, %v689_v47  ;;  %v1224_v62 = vadd.f32 %v2170_v21, %v690_v48  ;;  %v1225_v63 = vadd.f32 %v2174_v23, %v691_v49 }
 0x144   :  { %v158_v44 = vld [vmem:[%s6250_s0 + $0x480] sm:$0xff]  ;;  %v159_v45 = vld [vmem:[%s6250_s0 + $0x488] sm:$0xff] }
 0x145   :  { %1726 = vst [vmem:[%s6251_s3 + $0x420] sm:$0xff] %v1214_v36  ;;  %1727 = vst [vmem:[%s6251_s3 + $0x428] sm:$0xff] %v1215_v37  ;;  %v692_v0 = vmul.f32 %v2151_v13, %v158_v44  ;;  %v693_v1 = vmul.f32 %v2155_v15, %v159_v45 }
 0x146   :  { %1728 = vst [vmem:[%s6251_s3 + $0x430] sm:$0xff] %v1216_v38  ;;  %1729 = vst [vmem:[%s6251_s3 + $0x438] sm:$0xff] %v1217_v39 }
 0x147   :  { %v1226_v17 = vadd.f32 %v2153_v14, %v692_v0  ;;  %v1227_v18 = vadd.f32 %v2157_v16, %v693_v1 }
 0x14d   :  { %v160_v50 = vld [vmem:[%s6250_s0 + $0x490] sm:$0xff]  ;;  %v161_v51 = vld [vmem:[%s6250_s0 + $0x498] sm:$0xff]  ;;  %v162_v52 = vld [vmem:[%s6250_s0 + $0x4a0] sm:$0xff] }
 0x14e   :  { %v163_v57 = vld [vmem:[%s6250_s0 + $0x4a8] sm:$0xff]  ;;  %v164_v58 = vld [vmem:[%s6250_s0 + $0x4b0] sm:$0xff]  ;;  %v165_v59 = vld [vmem:[%s6250_s0 + $0x4b8] sm:$0xff]  ;;  %v694_v2 = vmul.f32 %v2168_v20, %v160_v50  ;;  %v695_v3 = vmul.f32 %v2172_v22, %v161_v51  ;;  %v696_v6 = vmul.f32 %v2151_v13, %v162_v52 }
 0x14f   :  { %1730 = vst [vmem:[%s6251_s3 + $0x440] sm:$0xff] %v1218_v53  ;;  %1731 = vst [vmem:[%s6251_s3 + $0x448] sm:$0xff] %v1219_v54  ;;  %v697_v7 = vmul.f32 %v2155_v15, %v163_v57  ;;  %v698_v8 = vmul.f32 %v2168_v20, %v164_v58  ;;  %v699_v9 = vmul.f32 %v2172_v22, %v165_v59 }
 0x150   :  { %1732 = vst [vmem:[%s6251_s3 + $0x450] sm:$0xff] %v1220_v55  ;;  %1733 = vst [vmem:[%s6251_s3 + $0x458] sm:$0xff] %v1221_v56  ;;  %v1228_v19 = vadd.f32 %v2170_v21, %v694_v2  ;;  %v1229_v24 = vadd.f32 %v2174_v23, %v695_v3  ;;  %v1230_v28 = vadd.f32 %v2153_v14, %v696_v6 }
 0x151   :  { %v1231_v29 = vadd.f32 %v2157_v16, %v697_v7  ;;  %v1232_v30 = vadd.f32 %v2170_v21, %v698_v8  ;;  %v1233_v31 = vadd.f32 %v2174_v23, %v699_v9 }
 0x157   :  { %v166_v4 = vld [vmem:[%s6250_s0 + $0x4c0] sm:$0xff]  ;;  %v167_v5 = vld [vmem:[%s6250_s0 + $0x4c8] sm:$0xff] }
 0x158   :  { %1734 = vst [vmem:[%s6251_s3 + $0x460] sm:$0xff] %v1222_v60  ;;  %1735 = vst [vmem:[%s6251_s3 + $0x468] sm:$0xff] %v1223_v61  ;;  %v700_v32 = vmul.f32 %v2151_v13, %v166_v4  ;;  %v701_v33 = vmul.f32 %v2155_v15, %v167_v5 }
 0x159   :  { %1736 = vst [vmem:[%s6251_s3 + $0x470] sm:$0xff] %v1224_v62  ;;  %1737 = vst [vmem:[%s6251_s3 + $0x478] sm:$0xff] %v1225_v63 }
 0x15a   :  { %v1234_v45 = vadd.f32 %v2153_v14, %v700_v32  ;;  %v1235_v46 = vadd.f32 %v2157_v16, %v701_v33 }
 0x160   :  { %v168_v10 = vld [vmem:[%s6250_s0 + $0x4d0] sm:$0xff]  ;;  %v169_v11 = vld [vmem:[%s6250_s0 + $0x4d8] sm:$0xff]  ;;  %v170_v12 = vld [vmem:[%s6250_s0 + $0x4e0] sm:$0xff] }
 0x161   :  { %v171_v25 = vld [vmem:[%s6250_s0 + $0x4e8] sm:$0xff]  ;;  %v172_v26 = vld [vmem:[%s6250_s0 + $0x4f0] sm:$0xff]  ;;  %v173_v27 = vld [vmem:[%s6250_s0 + $0x4f8] sm:$0xff]  ;;  %v702_v34 = vmul.f32 %v2168_v20, %v168_v10  ;;  %v703_v35 = vmul.f32 %v2172_v22, %v169_v11  ;;  %v704_v38 = vmul.f32 %v2151_v13, %v170_v12 }
 0x162   :  { %1738 = vst [vmem:[%s6251_s3 + $0x480] sm:$0xff] %v1226_v17  ;;  %1739 = vst [vmem:[%s6251_s3 + $0x488] sm:$0xff] %v1227_v18  ;;  %v705_v39 = vmul.f32 %v2155_v15, %v171_v25  ;;  %v706_v40 = vmul.f32 %v2168_v20, %v172_v26  ;;  %v707_v41 = vmul.f32 %v2172_v22, %v173_v27 }
 0x163   :  { %1740 = vst [vmem:[%s6251_s3 + $0x490] sm:$0xff] %v1228_v19  ;;  %1741 = vst [vmem:[%s6251_s3 + $0x498] sm:$0xff] %v1229_v24  ;;  %v1236_v47 = vadd.f32 %v2170_v21, %v702_v34  ;;  %v1237_v48 = vadd.f32 %v2174_v23, %v703_v35  ;;  %v1238_v52 = vadd.f32 %v2153_v14, %v704_v38 }
 0x164   :  { %v1239_v53 = vadd.f32 %v2157_v16, %v705_v39  ;;  %v1240_v54 = vadd.f32 %v2170_v21, %v706_v40  ;;  %v1241_v55 = vadd.f32 %v2174_v23, %v707_v41 }
 0x16a   :  { %v174_v36 = vld [vmem:[%s6250_s0 + $0x500] sm:$0xff]  ;;  %v175_v37 = vld [vmem:[%s6250_s0 + $0x508] sm:$0xff] }
 0x16b   :  { %1742 = vst [vmem:[%s6251_s3 + $0x4a0] sm:$0xff] %v1230_v28  ;;  %1743 = vst [vmem:[%s6251_s3 + $0x4a8] sm:$0xff] %v1231_v29  ;;  %v708_v56 = vmul.f32 %v2151_v13, %v174_v36  ;;  %v709_v57 = vmul.f32 %v2155_v15, %v175_v37 }
 0x16c   :  { %1744 = vst [vmem:[%s6251_s3 + $0x4b0] sm:$0xff] %v1232_v30  ;;  %1745 = vst [vmem:[%s6251_s3 + $0x4b8] sm:$0xff] %v1233_v31 }
 0x16d   :  { %v1242_v5 = vadd.f32 %v2153_v14, %v708_v56  ;;  %v1243_v6 = vadd.f32 %v2157_v16, %v709_v57 }
 0x173   :  { %v176_v42 = vld [vmem:[%s6250_s0 + $0x510] sm:$0xff]  ;;  %v177_v43 = vld [vmem:[%s6250_s0 + $0x518] sm:$0xff]  ;;  %v178_v44 = vld [vmem:[%s6250_s0 + $0x520] sm:$0xff] }
 0x174   :  { %v179_v49 = vld [vmem:[%s6250_s0 + $0x528] sm:$0xff]  ;;  %v180_v50 = vld [vmem:[%s6250_s0 + $0x530] sm:$0xff]  ;;  %v181_v51 = vld [vmem:[%s6250_s0 + $0x538] sm:$0xff]  ;;  %v710_v58 = vmul.f32 %v2168_v20, %v176_v42  ;;  %v711_v59 = vmul.f32 %v2172_v22, %v177_v43  ;;  %v712_v62 = vmul.f32 %v2151_v13, %v178_v44 }
 0x175   :  { %1746 = vst [vmem:[%s6251_s3 + $0x4c0] sm:$0xff] %v1234_v45  ;;  %1747 = vst [vmem:[%s6251_s3 + $0x4c8] sm:$0xff] %v1235_v46  ;;  %v713_v63 = vmul.f32 %v2155_v15, %v179_v49  ;;  %v714_v0 = vmul.f32 %v2168_v20, %v180_v50  ;;  %v715_v1 = vmul.f32 %v2172_v22, %v181_v51 }
 0x176   :  { %1748 = vst [vmem:[%s6251_s3 + $0x4d0] sm:$0xff] %v1236_v47  ;;  %1749 = vst [vmem:[%s6251_s3 + $0x4d8] sm:$0xff] %v1237_v48  ;;  %v1244_v7 = vadd.f32 %v2170_v21, %v710_v58  ;;  %v1245_v8 = vadd.f32 %v2174_v23, %v711_v59  ;;  %v1246_v12 = vadd.f32 %v2153_v14, %v712_v62 }
 0x177   :  { %v1247_v17 = vadd.f32 %v2157_v16, %v713_v63  ;;  %v1248_v18 = vadd.f32 %v2170_v21, %v714_v0  ;;  %v1249_v19 = vadd.f32 %v2174_v23, %v715_v1 }
 0x17d   :  { %v182_v60 = vld [vmem:[%s6250_s0 + $0x540] sm:$0xff]  ;;  %v183_v61 = vld [vmem:[%s6250_s0 + $0x548] sm:$0xff] }
 0x17e   :  { %1750 = vst [vmem:[%s6251_s3 + $0x4e0] sm:$0xff] %v1238_v52  ;;  %1751 = vst [vmem:[%s6251_s3 + $0x4e8] sm:$0xff] %v1239_v53  ;;  %v716_v24 = vmul.f32 %v2151_v13, %v182_v60  ;;  %v717_v25 = vmul.f32 %v2155_v15, %v183_v61 }
 0x17f   :  { %1752 = vst [vmem:[%s6251_s3 + $0x4f0] sm:$0xff] %v1240_v54  ;;  %1753 = vst [vmem:[%s6251_s3 + $0x4f8] sm:$0xff] %v1241_v55 }
 0x180   :  { %v1250_v37 = vadd.f32 %v2153_v14, %v716_v24  ;;  %v1251_v38 = vadd.f32 %v2157_v16, %v717_v25 }
 0x186   :  { %v184_v2 = vld [vmem:[%s6250_s0 + $0x550] sm:$0xff]  ;;  %v185_v3 = vld [vmem:[%s6250_s0 + $0x558] sm:$0xff]  ;;  %v186_v4 = vld [vmem:[%s6250_s0 + $0x560] sm:$0xff] }
 0x187   :  { %v187_v9 = vld [vmem:[%s6250_s0 + $0x568] sm:$0xff]  ;;  %v188_v10 = vld [vmem:[%s6250_s0 + $0x570] sm:$0xff]  ;;  %v189_v11 = vld [vmem:[%s6250_s0 + $0x578] sm:$0xff]  ;;  %v718_v26 = vmul.f32 %v2168_v20, %v184_v2  ;;  %v719_v27 = vmul.f32 %v2172_v22, %v185_v3  ;;  %v720_v30 = vmul.f32 %v2151_v13, %v186_v4 }
 0x188   :  { %1754 = vst [vmem:[%s6251_s3 + $0x500] sm:$0xff] %v1242_v5  ;;  %1755 = vst [vmem:[%s6251_s3 + $0x508] sm:$0xff] %v1243_v6  ;;  %v721_v31 = vmul.f32 %v2155_v15, %v187_v9  ;;  %v722_v32 = vmul.f32 %v2168_v20, %v188_v10  ;;  %v723_v33 = vmul.f32 %v2172_v22, %v189_v11 }
 0x189   :  { %1756 = vst [vmem:[%s6251_s3 + $0x510] sm:$0xff] %v1244_v7  ;;  %1757 = vst [vmem:[%s6251_s3 + $0x518] sm:$0xff] %v1245_v8  ;;  %v1252_v39 = vadd.f32 %v2170_v21, %v718_v26  ;;  %v1253_v40 = vadd.f32 %v2174_v23, %v719_v27  ;;  %v1254_v44 = vadd.f32 %v2153_v14, %v720_v30 }
 0x18a   :  { %v1255_v45 = vadd.f32 %v2157_v16, %v721_v31  ;;  %v1256_v46 = vadd.f32 %v2170_v21, %v722_v32  ;;  %v1257_v47 = vadd.f32 %v2174_v23, %v723_v33 }
 0x190   :  { %v190_v28 = vld [vmem:[%s6250_s0 + $0x580] sm:$0xff]  ;;  %v191_v29 = vld [vmem:[%s6250_s0 + $0x588] sm:$0xff] }
 0x191   :  { %1758 = vst [vmem:[%s6251_s3 + $0x520] sm:$0xff] %v1246_v12  ;;  %1759 = vst [vmem:[%s6251_s3 + $0x528] sm:$0xff] %v1247_v17  ;;  %v724_v48 = vmul.f32 %v2151_v13, %v190_v28  ;;  %v725_v49 = vmul.f32 %v2155_v15, %v191_v29 }
 0x192   :  { %1760 = vst [vmem:[%s6251_s3 + $0x530] sm:$0xff] %v1248_v18  ;;  %1761 = vst [vmem:[%s6251_s3 + $0x538] sm:$0xff] %v1249_v19 }
 0x193   :  { %v1258_v61 = vadd.f32 %v2153_v14, %v724_v48  ;;  %v1259_v62 = vadd.f32 %v2157_v16, %v725_v49 }
 0x199   :  { %v192_v34 = vld [vmem:[%s6250_s0 + $0x590] sm:$0xff]  ;;  %v193_v35 = vld [vmem:[%s6250_s0 + $0x598] sm:$0xff]  ;;  %v194_v36 = vld [vmem:[%s6250_s0 + $0x5a0] sm:$0xff] }
 0x19a   :  { %v195_v41 = vld [vmem:[%s6250_s0 + $0x5a8] sm:$0xff]  ;;  %v196_v42 = vld [vmem:[%s6250_s0 + $0x5b0] sm:$0xff]  ;;  %v197_v43 = vld [vmem:[%s6250_s0 + $0x5b8] sm:$0xff]  ;;  %v726_v50 = vmul.f32 %v2168_v20, %v192_v34  ;;  %v727_v51 = vmul.f32 %v2172_v22, %v193_v35  ;;  %v728_v54 = vmul.f32 %v2151_v13, %v194_v36 }
 0x19b   :  { %1762 = vst [vmem:[%s6251_s3 + $0x540] sm:$0xff] %v1250_v37  ;;  %1763 = vst [vmem:[%s6251_s3 + $0x548] sm:$0xff] %v1251_v38  ;;  %v729_v55 = vmul.f32 %v2155_v15, %v195_v41  ;;  %v730_v56 = vmul.f32 %v2168_v20, %v196_v42  ;;  %v731_v57 = vmul.f32 %v2172_v22, %v197_v43 }
 0x19c   :  { %1764 = vst [vmem:[%s6251_s3 + $0x550] sm:$0xff] %v1252_v39  ;;  %1765 = vst [vmem:[%s6251_s3 + $0x558] sm:$0xff] %v1253_v40  ;;  %v1260_v63 = vadd.f32 %v2170_v21, %v726_v50  ;;  %v1261_v0 = vadd.f32 %v2174_v23, %v727_v51  ;;  %v1262_v4 = vadd.f32 %v2153_v14, %v728_v54 }
 0x19d   :  { %v1263_v5 = vadd.f32 %v2157_v16, %v729_v55  ;;  %v1264_v6 = vadd.f32 %v2170_v21, %v730_v56  ;;  %v1265_v7 = vadd.f32 %v2174_v23, %v731_v57 }
 0x1a3   :  { %v198_v52 = vld [vmem:[%s6250_s0 + $0x5c0] sm:$0xff]  ;;  %v199_v53 = vld [vmem:[%s6250_s0 + $0x5c8] sm:$0xff] }
 0x1a4   :  { %1766 = vst [vmem:[%s6251_s3 + $0x560] sm:$0xff] %v1254_v44  ;;  %1767 = vst [vmem:[%s6251_s3 + $0x568] sm:$0xff] %v1255_v45  ;;  %v732_v8 = vmul.f32 %v2151_v13, %v198_v52  ;;  %v733_v9 = vmul.f32 %v2155_v15, %v199_v53 }
 0x1a5   :  { %1768 = vst [vmem:[%s6251_s3 + $0x570] sm:$0xff] %v1256_v46  ;;  %1769 = vst [vmem:[%s6251_s3 + $0x578] sm:$0xff] %v1257_v47 }
 0x1a6   :  { %v1266_v29 = vadd.f32 %v2153_v14, %v732_v8  ;;  %v1267_v30 = vadd.f32 %v2157_v16, %v733_v9 }
 0x1ac   :  { %v200_v58 = vld [vmem:[%s6250_s0 + $0x5d0] sm:$0xff]  ;;  %v201_v59 = vld [vmem:[%s6250_s0 + $0x5d8] sm:$0xff]  ;;  %v202_v60 = vld [vmem:[%s6250_s0 + $0x5e0] sm:$0xff] }
 0x1ad   :  { %v203_v1 = vld [vmem:[%s6250_s0 + $0x5e8] sm:$0xff]  ;;  %v204_v2 = vld [vmem:[%s6250_s0 + $0x5f0] sm:$0xff]  ;;  %v205_v3 = vld [vmem:[%s6250_s0 + $0x5f8] sm:$0xff]  ;;  %v734_v10 = vmul.f32 %v2168_v20, %v200_v58  ;;  %v735_v11 = vmul.f32 %v2172_v22, %v201_v59  ;;  %v736_v18 = vmul.f32 %v2151_v13, %v202_v60 }
 0x1ae   :  { %1770 = vst [vmem:[%s6251_s3 + $0x580] sm:$0xff] %v1258_v61  ;;  %1771 = vst [vmem:[%s6251_s3 + $0x588] sm:$0xff] %v1259_v62  ;;  %v737_v19 = vmul.f32 %v2155_v15, %v203_v1  ;;  %v738_v24 = vmul.f32 %v2168_v20, %v204_v2  ;;  %v739_v25 = vmul.f32 %v2172_v22, %v205_v3 }
 0x1af   :  { %1772 = vst [vmem:[%s6251_s3 + $0x590] sm:$0xff] %v1260_v63  ;;  %1773 = vst [vmem:[%s6251_s3 + $0x598] sm:$0xff] %v1261_v0  ;;  %v1268_v31 = vadd.f32 %v2170_v21, %v734_v10  ;;  %v1269_v32 = vadd.f32 %v2174_v23, %v735_v11  ;;  %v1270_v36 = vadd.f32 %v2153_v14, %v736_v18 }
 0x1b0   :  { %v1271_v37 = vadd.f32 %v2157_v16, %v737_v19  ;;  %v1272_v38 = vadd.f32 %v2170_v21, %v738_v24  ;;  %v1273_v39 = vadd.f32 %v2174_v23, %v739_v25 }
 0x1b6   :  { %v206_v12 = vld [vmem:[%s6250_s0 + $0x600] sm:$0xff]  ;;  %v207_v17 = vld [vmem:[%s6250_s0 + $0x608] sm:$0xff] }
 0x1b7   :  { %1774 = vst [vmem:[%s6251_s3 + $0x5a0] sm:$0xff] %v1262_v4  ;;  %1775 = vst [vmem:[%s6251_s3 + $0x5a8] sm:$0xff] %v1263_v5  ;;  %v740_v40 = vmul.f32 %v2151_v13, %v206_v12  ;;  %v741_v41 = vmul.f32 %v2155_v15, %v207_v17 }
 0x1b8   :  { %1776 = vst [vmem:[%s6251_s3 + $0x5b0] sm:$0xff] %v1264_v6  ;;  %1777 = vst [vmem:[%s6251_s3 + $0x5b8] sm:$0xff] %v1265_v7 }
 0x1b9   :  { %v1274_v53 = vadd.f32 %v2153_v14, %v740_v40  ;;  %v1275_v54 = vadd.f32 %v2157_v16, %v741_v41 }
 0x1bf   :  { %v208_v26 = vld [vmem:[%s6250_s0 + $0x610] sm:$0xff]  ;;  %v209_v27 = vld [vmem:[%s6250_s0 + $0x618] sm:$0xff]  ;;  %v210_v28 = vld [vmem:[%s6250_s0 + $0x620] sm:$0xff] }
 0x1c0   :  { %v211_v33 = vld [vmem:[%s6250_s0 + $0x628] sm:$0xff]  ;;  %v212_v34 = vld [vmem:[%s6250_s0 + $0x630] sm:$0xff]  ;;  %v213_v35 = vld [vmem:[%s6250_s0 + $0x638] sm:$0xff]  ;;  %v742_v42 = vmul.f32 %v2168_v20, %v208_v26  ;;  %v743_v43 = vmul.f32 %v2172_v22, %v209_v27  ;;  %v744_v46 = vmul.f32 %v2151_v13, %v210_v28 }
 0x1c1   :  { %1778 = vst [vmem:[%s6251_s3 + $0x5c0] sm:$0xff] %v1266_v29  ;;  %1779 = vst [vmem:[%s6251_s3 + $0x5c8] sm:$0xff] %v1267_v30  ;;  %v745_v47 = vmul.f32 %v2155_v15, %v211_v33  ;;  %v746_v48 = vmul.f32 %v2168_v20, %v212_v34  ;;  %v747_v49 = vmul.f32 %v2172_v22, %v213_v35 }
 0x1c2   :  { %1780 = vst [vmem:[%s6251_s3 + $0x5d0] sm:$0xff] %v1268_v31  ;;  %1781 = vst [vmem:[%s6251_s3 + $0x5d8] sm:$0xff] %v1269_v32  ;;  %v1276_v55 = vadd.f32 %v2170_v21, %v742_v42  ;;  %v1277_v56 = vadd.f32 %v2174_v23, %v743_v43  ;;  %v1278_v60 = vadd.f32 %v2153_v14, %v744_v46 }
 0x1c3   :  { %v1279_v61 = vadd.f32 %v2157_v16, %v745_v47  ;;  %v1280_v62 = vadd.f32 %v2170_v21, %v746_v48  ;;  %v1281_v63 = vadd.f32 %v2174_v23, %v747_v49 }
 0x1c9   :  { %v214_v44 = vld [vmem:[%s6250_s0 + $0x640] sm:$0xff]  ;;  %v215_v45 = vld [vmem:[%s6250_s0 + $0x648] sm:$0xff] }
 0x1ca   :  { %1782 = vst [vmem:[%s6251_s3 + $0x5e0] sm:$0xff] %v1270_v36  ;;  %1783 = vst [vmem:[%s6251_s3 + $0x5e8] sm:$0xff] %v1271_v37  ;;  %v748_v0 = vmul.f32 %v2151_v13, %v214_v44  ;;  %v749_v1 = vmul.f32 %v2155_v15, %v215_v45 }
 0x1cb   :  { %1784 = vst [vmem:[%s6251_s3 + $0x5f0] sm:$0xff] %v1272_v38  ;;  %1785 = vst [vmem:[%s6251_s3 + $0x5f8] sm:$0xff] %v1273_v39 }
 0x1cc   :  { %v1282_v17 = vadd.f32 %v2153_v14, %v748_v0  ;;  %v1283_v18 = vadd.f32 %v2157_v16, %v749_v1 }
 0x1d2   :  { %v216_v50 = vld [vmem:[%s6250_s0 + $0x650] sm:$0xff]  ;;  %v217_v51 = vld [vmem:[%s6250_s0 + $0x658] sm:$0xff]  ;;  %v218_v52 = vld [vmem:[%s6250_s0 + $0x660] sm:$0xff] }
 0x1d3   :  { %v219_v57 = vld [vmem:[%s6250_s0 + $0x668] sm:$0xff]  ;;  %v220_v58 = vld [vmem:[%s6250_s0 + $0x670] sm:$0xff]  ;;  %v221_v59 = vld [vmem:[%s6250_s0 + $0x678] sm:$0xff]  ;;  %v750_v2 = vmul.f32 %v2168_v20, %v216_v50  ;;  %v751_v3 = vmul.f32 %v2172_v22, %v217_v51  ;;  %v752_v6 = vmul.f32 %v2151_v13, %v218_v52 }
 0x1d4   :  { %1786 = vst [vmem:[%s6251_s3 + $0x600] sm:$0xff] %v1274_v53  ;;  %1787 = vst [vmem:[%s6251_s3 + $0x608] sm:$0xff] %v1275_v54  ;;  %v753_v7 = vmul.f32 %v2155_v15, %v219_v57  ;;  %v754_v8 = vmul.f32 %v2168_v20, %v220_v58  ;;  %v755_v9 = vmul.f32 %v2172_v22, %v221_v59 }
 0x1d5   :  { %1788 = vst [vmem:[%s6251_s3 + $0x610] sm:$0xff] %v1276_v55  ;;  %1789 = vst [vmem:[%s6251_s3 + $0x618] sm:$0xff] %v1277_v56  ;;  %v1284_v19 = vadd.f32 %v2170_v21, %v750_v2  ;;  %v1285_v24 = vadd.f32 %v2174_v23, %v751_v3  ;;  %v1286_v28 = vadd.f32 %v2153_v14, %v752_v6 }
 0x1d6   :  { %v1287_v29 = vadd.f32 %v2157_v16, %v753_v7  ;;  %v1288_v30 = vadd.f32 %v2170_v21, %v754_v8  ;;  %v1289_v31 = vadd.f32 %v2174_v23, %v755_v9 }
 0x1dc   :  { %v222_v4 = vld [vmem:[%s6250_s0 + $0x680] sm:$0xff]  ;;  %v223_v5 = vld [vmem:[%s6250_s0 + $0x688] sm:$0xff] }
 0x1dd   :  { %1790 = vst [vmem:[%s6251_s3 + $0x620] sm:$0xff] %v1278_v60  ;;  %1791 = vst [vmem:[%s6251_s3 + $0x628] sm:$0xff] %v1279_v61  ;;  %v756_v32 = vmul.f32 %v2151_v13, %v222_v4  ;;  %v757_v33 = vmul.f32 %v2155_v15, %v223_v5 }
 0x1de   :  { %1792 = vst [vmem:[%s6251_s3 + $0x630] sm:$0xff] %v1280_v62  ;;  %1793 = vst [vmem:[%s6251_s3 + $0x638] sm:$0xff] %v1281_v63 }
 0x1df   :  { %v1290_v45 = vadd.f32 %v2153_v14, %v756_v32  ;;  %v1291_v46 = vadd.f32 %v2157_v16, %v757_v33 }
 0x1e5   :  { %v224_v10 = vld [vmem:[%s6250_s0 + $0x690] sm:$0xff]  ;;  %v225_v11 = vld [vmem:[%s6250_s0 + $0x698] sm:$0xff]  ;;  %v226_v12 = vld [vmem:[%s6250_s0 + $0x6a0] sm:$0xff] }
 0x1e6   :  { %v227_v25 = vld [vmem:[%s6250_s0 + $0x6a8] sm:$0xff]  ;;  %v228_v26 = vld [vmem:[%s6250_s0 + $0x6b0] sm:$0xff]  ;;  %v229_v27 = vld [vmem:[%s6250_s0 + $0x6b8] sm:$0xff]  ;;  %v758_v34 = vmul.f32 %v2168_v20, %v224_v10  ;;  %v759_v35 = vmul.f32 %v2172_v22, %v225_v11  ;;  %v760_v38 = vmul.f32 %v2151_v13, %v226_v12 }
 0x1e7   :  { %1794 = vst [vmem:[%s6251_s3 + $0x640] sm:$0xff] %v1282_v17  ;;  %1795 = vst [vmem:[%s6251_s3 + $0x648] sm:$0xff] %v1283_v18  ;;  %v761_v39 = vmul.f32 %v2155_v15, %v227_v25  ;;  %v762_v40 = vmul.f32 %v2168_v20, %v228_v26  ;;  %v763_v41 = vmul.f32 %v2172_v22, %v229_v27 }
 0x1e8   :  { %1796 = vst [vmem:[%s6251_s3 + $0x650] sm:$0xff] %v1284_v19  ;;  %1797 = vst [vmem:[%s6251_s3 + $0x658] sm:$0xff] %v1285_v24  ;;  %v1292_v47 = vadd.f32 %v2170_v21, %v758_v34  ;;  %v1293_v48 = vadd.f32 %v2174_v23, %v759_v35  ;;  %v1294_v52 = vadd.f32 %v2153_v14, %v760_v38 }
 0x1e9   :  { %v1295_v53 = vadd.f32 %v2157_v16, %v761_v39  ;;  %v1296_v54 = vadd.f32 %v2170_v21, %v762_v40  ;;  %v1297_v55 = vadd.f32 %v2174_v23, %v763_v41 }
 0x1ef   :  { %v230_v36 = vld [vmem:[%s6250_s0 + $0x6c0] sm:$0xff]  ;;  %v231_v37 = vld [vmem:[%s6250_s0 + $0x6c8] sm:$0xff] }
 0x1f0   :  { %1798 = vst [vmem:[%s6251_s3 + $0x660] sm:$0xff] %v1286_v28  ;;  %1799 = vst [vmem:[%s6251_s3 + $0x668] sm:$0xff] %v1287_v29  ;;  %v764_v56 = vmul.f32 %v2151_v13, %v230_v36  ;;  %v765_v57 = vmul.f32 %v2155_v15, %v231_v37 }
 0x1f1   :  { %1800 = vst [vmem:[%s6251_s3 + $0x670] sm:$0xff] %v1288_v30  ;;  %1801 = vst [vmem:[%s6251_s3 + $0x678] sm:$0xff] %v1289_v31 }
 0x1f2   :  { %v1298_v5 = vadd.f32 %v2153_v14, %v764_v56  ;;  %v1299_v6 = vadd.f32 %v2157_v16, %v765_v57 }
 0x1f8   :  { %v232_v42 = vld [vmem:[%s6250_s0 + $0x6d0] sm:$0xff]  ;;  %v233_v43 = vld [vmem:[%s6250_s0 + $0x6d8] sm:$0xff]  ;;  %v234_v44 = vld [vmem:[%s6250_s0 + $0x6e0] sm:$0xff] }
 0x1f9   :  { %v235_v49 = vld [vmem:[%s6250_s0 + $0x6e8] sm:$0xff]  ;;  %v236_v50 = vld [vmem:[%s6250_s0 + $0x6f0] sm:$0xff]  ;;  %v237_v51 = vld [vmem:[%s6250_s0 + $0x6f8] sm:$0xff]  ;;  %v766_v58 = vmul.f32 %v2168_v20, %v232_v42  ;;  %v767_v59 = vmul.f32 %v2172_v22, %v233_v43  ;;  %v768_v62 = vmul.f32 %v2151_v13, %v234_v44 }
 0x1fa   :  { %1802 = vst [vmem:[%s6251_s3 + $0x680] sm:$0xff] %v1290_v45  ;;  %1803 = vst [vmem:[%s6251_s3 + $0x688] sm:$0xff] %v1291_v46  ;;  %v769_v63 = vmul.f32 %v2155_v15, %v235_v49  ;;  %v770_v0 = vmul.f32 %v2168_v20, %v236_v50  ;;  %v771_v1 = vmul.f32 %v2172_v22, %v237_v51 }
 0x1fb   :  { %1804 = vst [vmem:[%s6251_s3 + $0x690] sm:$0xff] %v1292_v47  ;;  %1805 = vst [vmem:[%s6251_s3 + $0x698] sm:$0xff] %v1293_v48  ;;  %v1300_v7 = vadd.f32 %v2170_v21, %v766_v58  ;;  %v1301_v8 = vadd.f32 %v2174_v23, %v767_v59  ;;  %v1302_v12 = vadd.f32 %v2153_v14, %v768_v62 }
 0x1fc   :  { %v1303_v17 = vadd.f32 %v2157_v16, %v769_v63  ;;  %v1304_v18 = vadd.f32 %v2170_v21, %v770_v0  ;;  %v1305_v19 = vadd.f32 %v2174_v23, %v771_v1 }
 0x202   :  { %v238_v60 = vld [vmem:[%s6250_s0 + $0x700] sm:$0xff]  ;;  %v239_v61 = vld [vmem:[%s6250_s0 + $0x708] sm:$0xff] }
 0x203   :  { %1806 = vst [vmem:[%s6251_s3 + $0x6a0] sm:$0xff] %v1294_v52  ;;  %1807 = vst [vmem:[%s6251_s3 + $0x6a8] sm:$0xff] %v1295_v53  ;;  %v772_v24 = vmul.f32 %v2151_v13, %v238_v60  ;;  %v773_v25 = vmul.f32 %v2155_v15, %v239_v61 }
 0x204   :  { %1808 = vst [vmem:[%s6251_s3 + $0x6b0] sm:$0xff] %v1296_v54  ;;  %1809 = vst [vmem:[%s6251_s3 + $0x6b8] sm:$0xff] %v1297_v55 }
 0x205   :  { %v1306_v37 = vadd.f32 %v2153_v14, %v772_v24  ;;  %v1307_v38 = vadd.f32 %v2157_v16, %v773_v25 }
 0x20b   :  { %v240_v2 = vld [vmem:[%s6250_s0 + $0x710] sm:$0xff]  ;;  %v241_v3 = vld [vmem:[%s6250_s0 + $0x718] sm:$0xff]  ;;  %v242_v4 = vld [vmem:[%s6250_s0 + $0x720] sm:$0xff] }
 0x20c   :  { %v243_v9 = vld [vmem:[%s6250_s0 + $0x728] sm:$0xff]  ;;  %v244_v10 = vld [vmem:[%s6250_s0 + $0x730] sm:$0xff]  ;;  %v245_v11 = vld [vmem:[%s6250_s0 + $0x738] sm:$0xff]  ;;  %v774_v26 = vmul.f32 %v2168_v20, %v240_v2  ;;  %v775_v27 = vmul.f32 %v2172_v22, %v241_v3  ;;  %v776_v30 = vmul.f32 %v2151_v13, %v242_v4 }
 0x20d   :  { %1810 = vst [vmem:[%s6251_s3 + $0x6c0] sm:$0xff] %v1298_v5  ;;  %1811 = vst [vmem:[%s6251_s3 + $0x6c8] sm:$0xff] %v1299_v6  ;;  %v777_v31 = vmul.f32 %v2155_v15, %v243_v9  ;;  %v778_v32 = vmul.f32 %v2168_v20, %v244_v10  ;;  %v779_v33 = vmul.f32 %v2172_v22, %v245_v11 }
 0x20e   :  { %1812 = vst [vmem:[%s6251_s3 + $0x6d0] sm:$0xff] %v1300_v7  ;;  %1813 = vst [vmem:[%s6251_s3 + $0x6d8] sm:$0xff] %v1301_v8  ;;  %v1308_v39 = vadd.f32 %v2170_v21, %v774_v26  ;;  %v1309_v40 = vadd.f32 %v2174_v23, %v775_v27  ;;  %v1310_v44 = vadd.f32 %v2153_v14, %v776_v30 }
 0x20f   :  { %v1311_v45 = vadd.f32 %v2157_v16, %v777_v31  ;;  %v1312_v46 = vadd.f32 %v2170_v21, %v778_v32  ;;  %v1313_v47 = vadd.f32 %v2174_v23, %v779_v33 }
 0x215   :  { %v246_v28 = vld [vmem:[%s6250_s0 + $0x740] sm:$0xff]  ;;  %v247_v29 = vld [vmem:[%s6250_s0 + $0x748] sm:$0xff] }
 0x216   :  { %1814 = vst [vmem:[%s6251_s3 + $0x6e0] sm:$0xff] %v1302_v12  ;;  %1815 = vst [vmem:[%s6251_s3 + $0x6e8] sm:$0xff] %v1303_v17  ;;  %v780_v48 = vmul.f32 %v2151_v13, %v246_v28  ;;  %v781_v49 = vmul.f32 %v2155_v15, %v247_v29 }
 0x217   :  { %1816 = vst [vmem:[%s6251_s3 + $0x6f0] sm:$0xff] %v1304_v18  ;;  %1817 = vst [vmem:[%s6251_s3 + $0x6f8] sm:$0xff] %v1305_v19 }
 0x218   :  { %v1314_v61 = vadd.f32 %v2153_v14, %v780_v48  ;;  %v1315_v62 = vadd.f32 %v2157_v16, %v781_v49 }
 0x21e   :  { %v248_v34 = vld [vmem:[%s6250_s0 + $0x750] sm:$0xff]  ;;  %v249_v35 = vld [vmem:[%s6250_s0 + $0x758] sm:$0xff]  ;;  %v250_v36 = vld [vmem:[%s6250_s0 + $0x760] sm:$0xff] }
 0x21f   :  { %v251_v41 = vld [vmem:[%s6250_s0 + $0x768] sm:$0xff]  ;;  %v252_v42 = vld [vmem:[%s6250_s0 + $0x770] sm:$0xff]  ;;  %v253_v43 = vld [vmem:[%s6250_s0 + $0x778] sm:$0xff]  ;;  %v782_v50 = vmul.f32 %v2168_v20, %v248_v34  ;;  %v783_v51 = vmul.f32 %v2172_v22, %v249_v35  ;;  %v784_v54 = vmul.f32 %v2151_v13, %v250_v36 }
 0x220   :  { %1818 = vst [vmem:[%s6251_s3 + $0x700] sm:$0xff] %v1306_v37  ;;  %1819 = vst [vmem:[%s6251_s3 + $0x708] sm:$0xff] %v1307_v38  ;;  %v785_v55 = vmul.f32 %v2155_v15, %v251_v41  ;;  %v786_v56 = vmul.f32 %v2168_v20, %v252_v42  ;;  %v787_v57 = vmul.f32 %v2172_v22, %v253_v43 }
 0x221   :  { %1820 = vst [vmem:[%s6251_s3 + $0x710] sm:$0xff] %v1308_v39  ;;  %1821 = vst [vmem:[%s6251_s3 + $0x718] sm:$0xff] %v1309_v40  ;;  %v1316_v63 = vadd.f32 %v2170_v21, %v782_v50  ;;  %v1317_v0 = vadd.f32 %v2174_v23, %v783_v51  ;;  %v1318_v4 = vadd.f32 %v2153_v14, %v784_v54 }
 0x222   :  { %v1319_v5 = vadd.f32 %v2157_v16, %v785_v55  ;;  %v1320_v6 = vadd.f32 %v2170_v21, %v786_v56  ;;  %v1321_v7 = vadd.f32 %v2174_v23, %v787_v57 }
 0x228   :  { %v254_v52 = vld [vmem:[%s6250_s0 + $0x780] sm:$0xff]  ;;  %v255_v53 = vld [vmem:[%s6250_s0 + $0x788] sm:$0xff] }
 0x229   :  { %1822 = vst [vmem:[%s6251_s3 + $0x720] sm:$0xff] %v1310_v44  ;;  %1823 = vst [vmem:[%s6251_s3 + $0x728] sm:$0xff] %v1311_v45  ;;  %v788_v8 = vmul.f32 %v2151_v13, %v254_v52  ;;  %v789_v9 = vmul.f32 %v2155_v15, %v255_v53 }
 0x22a   :  { %1824 = vst [vmem:[%s6251_s3 + $0x730] sm:$0xff] %v1312_v46  ;;  %1825 = vst [vmem:[%s6251_s3 + $0x738] sm:$0xff] %v1313_v47 }
 0x22b   :  { %v1322_v29 = vadd.f32 %v2153_v14, %v788_v8  ;;  %v1323_v30 = vadd.f32 %v2157_v16, %v789_v9 }
 0x231   :  { %v256_v58 = vld [vmem:[%s6250_s0 + $0x790] sm:$0xff]  ;;  %v257_v59 = vld [vmem:[%s6250_s0 + $0x798] sm:$0xff]  ;;  %v258_v60 = vld [vmem:[%s6250_s0 + $0x7a0] sm:$0xff] }
 0x232   :  { %v259_v1 = vld [vmem:[%s6250_s0 + $0x7a8] sm:$0xff]  ;;  %v260_v2 = vld [vmem:[%s6250_s0 + $0x7b0] sm:$0xff]  ;;  %v261_v3 = vld [vmem:[%s6250_s0 + $0x7b8] sm:$0xff]  ;;  %v790_v10 = vmul.f32 %v2168_v20, %v256_v58  ;;  %v791_v11 = vmul.f32 %v2172_v22, %v257_v59  ;;  %v792_v18 = vmul.f32 %v2151_v13, %v258_v60 }
 0x233   :  { %1826 = vst [vmem:[%s6251_s3 + $0x740] sm:$0xff] %v1314_v61  ;;  %1827 = vst [vmem:[%s6251_s3 + $0x748] sm:$0xff] %v1315_v62  ;;  %v793_v19 = vmul.f32 %v2155_v15, %v259_v1  ;;  %v794_v24 = vmul.f32 %v2168_v20, %v260_v2  ;;  %v795_v25 = vmul.f32 %v2172_v22, %v261_v3 }
 0x234   :  { %1828 = vst [vmem:[%s6251_s3 + $0x750] sm:$0xff] %v1316_v63  ;;  %1829 = vst [vmem:[%s6251_s3 + $0x758] sm:$0xff] %v1317_v0  ;;  %v1324_v31 = vadd.f32 %v2170_v21, %v790_v10  ;;  %v1325_v32 = vadd.f32 %v2174_v23, %v791_v11  ;;  %v1326_v36 = vadd.f32 %v2153_v14, %v792_v18 }
 0x235   :  { %v1327_v37 = vadd.f32 %v2157_v16, %v793_v19  ;;  %v1328_v38 = vadd.f32 %v2170_v21, %v794_v24  ;;  %v1329_v39 = vadd.f32 %v2174_v23, %v795_v25 }
 0x23b   :  { %v262_v12 = vld [vmem:[%s6250_s0 + $0x7c0] sm:$0xff]  ;;  %v263_v17 = vld [vmem:[%s6250_s0 + $0x7c8] sm:$0xff] }
 0x23c   :  { %1830 = vst [vmem:[%s6251_s3 + $0x760] sm:$0xff] %v1318_v4  ;;  %1831 = vst [vmem:[%s6251_s3 + $0x768] sm:$0xff] %v1319_v5  ;;  %v796_v40 = vmul.f32 %v2151_v13, %v262_v12  ;;  %v797_v41 = vmul.f32 %v2155_v15, %v263_v17 }
 0x23d   :  { %1832 = vst [vmem:[%s6251_s3 + $0x770] sm:$0xff] %v1320_v6  ;;  %1833 = vst [vmem:[%s6251_s3 + $0x778] sm:$0xff] %v1321_v7 }
 0x23e   :  { %v1330_v53 = vadd.f32 %v2153_v14, %v796_v40  ;;  %v1331_v54 = vadd.f32 %v2157_v16, %v797_v41 }
 0x244   :  { %v264_v26 = vld [vmem:[%s6250_s0 + $0x7d0] sm:$0xff]  ;;  %v265_v27 = vld [vmem:[%s6250_s0 + $0x7d8] sm:$0xff]  ;;  %v266_v28 = vld [vmem:[%s6250_s0 + $0x7e0] sm:$0xff] }
 0x245   :  { %v267_v33 = vld [vmem:[%s6250_s0 + $0x7e8] sm:$0xff]  ;;  %v268_v34 = vld [vmem:[%s6250_s0 + $0x7f0] sm:$0xff]  ;;  %v269_v35 = vld [vmem:[%s6250_s0 + $0x7f8] sm:$0xff]  ;;  %v798_v42 = vmul.f32 %v2168_v20, %v264_v26  ;;  %v799_v43 = vmul.f32 %v2172_v22, %v265_v27  ;;  %v800_v46 = vmul.f32 %v2151_v13, %v266_v28 }
 0x246   :  { %1834 = vst [vmem:[%s6251_s3 + $0x780] sm:$0xff] %v1322_v29  ;;  %1835 = vst [vmem:[%s6251_s3 + $0x788] sm:$0xff] %v1323_v30  ;;  %v801_v47 = vmul.f32 %v2155_v15, %v267_v33  ;;  %v802_v48 = vmul.f32 %v2168_v20, %v268_v34  ;;  %v803_v49 = vmul.f32 %v2172_v22, %v269_v35 }
 0x247   :  { %1836 = vst [vmem:[%s6251_s3 + $0x790] sm:$0xff] %v1324_v31  ;;  %1837 = vst [vmem:[%s6251_s3 + $0x798] sm:$0xff] %v1325_v32  ;;  %v1332_v55 = vadd.f32 %v2170_v21, %v798_v42  ;;  %v1333_v56 = vadd.f32 %v2174_v23, %v799_v43  ;;  %v1334_v60 = vadd.f32 %v2153_v14, %v800_v46 }
 0x248   :  { %v1335_v61 = vadd.f32 %v2157_v16, %v801_v47  ;;  %v1336_v62 = vadd.f32 %v2170_v21, %v802_v48  ;;  %v1337_v63 = vadd.f32 %v2174_v23, %v803_v49 }
 0x24e   :  { %v270_v44 = vld [vmem:[%s6250_s0 + $0x800] sm:$0xff]  ;;  %v271_v45 = vld [vmem:[%s6250_s0 + $0x808] sm:$0xff] }
 0x24f   :  { %1838 = vst [vmem:[%s6251_s3 + $0x7a0] sm:$0xff] %v1326_v36  ;;  %1839 = vst [vmem:[%s6251_s3 + $0x7a8] sm:$0xff] %v1327_v37  ;;  %v804_v0 = vmul.f32 %v2151_v13, %v270_v44  ;;  %v805_v1 = vmul.f32 %v2155_v15, %v271_v45 }
 0x250   :  { %1840 = vst [vmem:[%s6251_s3 + $0x7b0] sm:$0xff] %v1328_v38  ;;  %1841 = vst [vmem:[%s6251_s3 + $0x7b8] sm:$0xff] %v1329_v39 }
 0x251   :  { %v1338_v17 = vadd.f32 %v2153_v14, %v804_v0  ;;  %v1339_v18 = vadd.f32 %v2157_v16, %v805_v1 }
 0x257   :  { %v272_v50 = vld [vmem:[%s6250_s0 + $0x810] sm:$0xff]  ;;  %v273_v51 = vld [vmem:[%s6250_s0 + $0x818] sm:$0xff]  ;;  %v274_v52 = vld [vmem:[%s6250_s0 + $0x820] sm:$0xff] }
 0x258   :  { %v275_v57 = vld [vmem:[%s6250_s0 + $0x828] sm:$0xff]  ;;  %v276_v58 = vld [vmem:[%s6250_s0 + $0x830] sm:$0xff]  ;;  %v277_v59 = vld [vmem:[%s6250_s0 + $0x838] sm:$0xff]  ;;  %v806_v2 = vmul.f32 %v2168_v20, %v272_v50  ;;  %v807_v3 = vmul.f32 %v2172_v22, %v273_v51  ;;  %v808_v6 = vmul.f32 %v2151_v13, %v274_v52 }
 0x259   :  { %1842 = vst [vmem:[%s6251_s3 + $0x7c0] sm:$0xff] %v1330_v53  ;;  %1843 = vst [vmem:[%s6251_s3 + $0x7c8] sm:$0xff] %v1331_v54  ;;  %v809_v7 = vmul.f32 %v2155_v15, %v275_v57  ;;  %v810_v8 = vmul.f32 %v2168_v20, %v276_v58  ;;  %v811_v9 = vmul.f32 %v2172_v22, %v277_v59 }
 0x25a   :  { %1844 = vst [vmem:[%s6251_s3 + $0x7d0] sm:$0xff] %v1332_v55  ;;  %1845 = vst [vmem:[%s6251_s3 + $0x7d8] sm:$0xff] %v1333_v56  ;;  %v1340_v19 = vadd.f32 %v2170_v21, %v806_v2  ;;  %v1341_v24 = vadd.f32 %v2174_v23, %v807_v3  ;;  %v1342_v28 = vadd.f32 %v2153_v14, %v808_v6 }
 0x25b   :  { %v1343_v29 = vadd.f32 %v2157_v16, %v809_v7  ;;  %v1344_v30 = vadd.f32 %v2170_v21, %v810_v8  ;;  %v1345_v31 = vadd.f32 %v2174_v23, %v811_v9 }
 0x261   :  { %v278_v4 = vld [vmem:[%s6250_s0 + $0x840] sm:$0xff]  ;;  %v279_v5 = vld [vmem:[%s6250_s0 + $0x848] sm:$0xff] }
 0x262   :  { %1846 = vst [vmem:[%s6251_s3 + $0x7e0] sm:$0xff] %v1334_v60  ;;  %1847 = vst [vmem:[%s6251_s3 + $0x7e8] sm:$0xff] %v1335_v61  ;;  %v812_v32 = vmul.f32 %v2151_v13, %v278_v4  ;;  %v813_v33 = vmul.f32 %v2155_v15, %v279_v5 }
 0x263   :  { %1848 = vst [vmem:[%s6251_s3 + $0x7f0] sm:$0xff] %v1336_v62  ;;  %1849 = vst [vmem:[%s6251_s3 + $0x7f8] sm:$0xff] %v1337_v63 }
 0x264   :  { %v1346_v45 = vadd.f32 %v2153_v14, %v812_v32  ;;  %v1347_v46 = vadd.f32 %v2157_v16, %v813_v33 }
 0x26a   :  { %v280_v10 = vld [vmem:[%s6250_s0 + $0x850] sm:$0xff]  ;;  %v281_v11 = vld [vmem:[%s6250_s0 + $0x858] sm:$0xff]  ;;  %v282_v12 = vld [vmem:[%s6250_s0 + $0x860] sm:$0xff] }
 0x26b   :  { %v283_v25 = vld [vmem:[%s6250_s0 + $0x868] sm:$0xff]  ;;  %v284_v26 = vld [vmem:[%s6250_s0 + $0x870] sm:$0xff]  ;;  %v285_v27 = vld [vmem:[%s6250_s0 + $0x878] sm:$0xff]  ;;  %v814_v34 = vmul.f32 %v2168_v20, %v280_v10  ;;  %v815_v35 = vmul.f32 %v2172_v22, %v281_v11  ;;  %v816_v38 = vmul.f32 %v2151_v13, %v282_v12 }
 0x26c   :  { %1850 = vst [vmem:[%s6251_s3 + $0x800] sm:$0xff] %v1338_v17  ;;  %1851 = vst [vmem:[%s6251_s3 + $0x808] sm:$0xff] %v1339_v18  ;;  %v817_v39 = vmul.f32 %v2155_v15, %v283_v25  ;;  %v818_v40 = vmul.f32 %v2168_v20, %v284_v26  ;;  %v819_v41 = vmul.f32 %v2172_v22, %v285_v27 }
 0x26d   :  { %1852 = vst [vmem:[%s6251_s3 + $0x810] sm:$0xff] %v1340_v19  ;;  %1853 = vst [vmem:[%s6251_s3 + $0x818] sm:$0xff] %v1341_v24  ;;  %v1348_v47 = vadd.f32 %v2170_v21, %v814_v34  ;;  %v1349_v48 = vadd.f32 %v2174_v23, %v815_v35  ;;  %v1350_v52 = vadd.f32 %v2153_v14, %v816_v38 }
 0x26e   :  { %v1351_v53 = vadd.f32 %v2157_v16, %v817_v39  ;;  %v1352_v54 = vadd.f32 %v2170_v21, %v818_v40  ;;  %v1353_v55 = vadd.f32 %v2174_v23, %v819_v41 }
 0x274   :  { %v286_v36 = vld [vmem:[%s6250_s0 + $0x880] sm:$0xff]  ;;  %v287_v37 = vld [vmem:[%s6250_s0 + $0x888] sm:$0xff] }
 0x275   :  { %1854 = vst [vmem:[%s6251_s3 + $0x820] sm:$0xff] %v1342_v28  ;;  %1855 = vst [vmem:[%s6251_s3 + $0x828] sm:$0xff] %v1343_v29  ;;  %v820_v56 = vmul.f32 %v2151_v13, %v286_v36  ;;  %v821_v57 = vmul.f32 %v2155_v15, %v287_v37 }
 0x276   :  { %1856 = vst [vmem:[%s6251_s3 + $0x830] sm:$0xff] %v1344_v30  ;;  %1857 = vst [vmem:[%s6251_s3 + $0x838] sm:$0xff] %v1345_v31 }
 0x277   :  { %v1354_v5 = vadd.f32 %v2153_v14, %v820_v56  ;;  %v1355_v6 = vadd.f32 %v2157_v16, %v821_v57 }
 0x27d   :  { %v288_v42 = vld [vmem:[%s6250_s0 + $0x890] sm:$0xff]  ;;  %v289_v43 = vld [vmem:[%s6250_s0 + $0x898] sm:$0xff]  ;;  %v290_v44 = vld [vmem:[%s6250_s0 + $0x8a0] sm:$0xff] }
 0x27e   :  { %v291_v49 = vld [vmem:[%s6250_s0 + $0x8a8] sm:$0xff]  ;;  %v292_v50 = vld [vmem:[%s6250_s0 + $0x8b0] sm:$0xff]  ;;  %v293_v51 = vld [vmem:[%s6250_s0 + $0x8b8] sm:$0xff]  ;;  %v822_v58 = vmul.f32 %v2168_v20, %v288_v42  ;;  %v823_v59 = vmul.f32 %v2172_v22, %v289_v43  ;;  %v824_v62 = vmul.f32 %v2151_v13, %v290_v44 }
 0x27f   :  { %1858 = vst [vmem:[%s6251_s3 + $0x840] sm:$0xff] %v1346_v45  ;;  %1859 = vst [vmem:[%s6251_s3 + $0x848] sm:$0xff] %v1347_v46  ;;  %v825_v63 = vmul.f32 %v2155_v15, %v291_v49  ;;  %v826_v0 = vmul.f32 %v2168_v20, %v292_v50  ;;  %v827_v1 = vmul.f32 %v2172_v22, %v293_v51 }
 0x280   :  { %1860 = vst [vmem:[%s6251_s3 + $0x850] sm:$0xff] %v1348_v47  ;;  %1861 = vst [vmem:[%s6251_s3 + $0x858] sm:$0xff] %v1349_v48  ;;  %v1356_v7 = vadd.f32 %v2170_v21, %v822_v58  ;;  %v1357_v8 = vadd.f32 %v2174_v23, %v823_v59  ;;  %v1358_v12 = vadd.f32 %v2153_v14, %v824_v62 }
 0x281   :  { %v1359_v17 = vadd.f32 %v2157_v16, %v825_v63  ;;  %v1360_v18 = vadd.f32 %v2170_v21, %v826_v0  ;;  %v1361_v19 = vadd.f32 %v2174_v23, %v827_v1 }
 0x287   :  { %v294_v60 = vld [vmem:[%s6250_s0 + $0x8c0] sm:$0xff]  ;;  %v295_v61 = vld [vmem:[%s6250_s0 + $0x8c8] sm:$0xff] }
 0x288   :  { %1862 = vst [vmem:[%s6251_s3 + $0x860] sm:$0xff] %v1350_v52  ;;  %1863 = vst [vmem:[%s6251_s3 + $0x868] sm:$0xff] %v1351_v53  ;;  %v828_v24 = vmul.f32 %v2151_v13, %v294_v60  ;;  %v829_v25 = vmul.f32 %v2155_v15, %v295_v61 }
 0x289   :  { %1864 = vst [vmem:[%s6251_s3 + $0x870] sm:$0xff] %v1352_v54  ;;  %1865 = vst [vmem:[%s6251_s3 + $0x878] sm:$0xff] %v1353_v55 }
 0x28a   :  { %v1362_v37 = vadd.f32 %v2153_v14, %v828_v24  ;;  %v1363_v38 = vadd.f32 %v2157_v16, %v829_v25 }
 0x290   :  { %v296_v2 = vld [vmem:[%s6250_s0 + $0x8d0] sm:$0xff]  ;;  %v297_v3 = vld [vmem:[%s6250_s0 + $0x8d8] sm:$0xff]  ;;  %v298_v4 = vld [vmem:[%s6250_s0 + $0x8e0] sm:$0xff] }
 0x291   :  { %v299_v9 = vld [vmem:[%s6250_s0 + $0x8e8] sm:$0xff]  ;;  %v300_v10 = vld [vmem:[%s6250_s0 + $0x8f0] sm:$0xff]  ;;  %v301_v11 = vld [vmem:[%s6250_s0 + $0x8f8] sm:$0xff]  ;;  %v830_v26 = vmul.f32 %v2168_v20, %v296_v2  ;;  %v831_v27 = vmul.f32 %v2172_v22, %v297_v3  ;;  %v832_v30 = vmul.f32 %v2151_v13, %v298_v4 }
 0x292   :  { %1866 = vst [vmem:[%s6251_s3 + $0x880] sm:$0xff] %v1354_v5  ;;  %1867 = vst [vmem:[%s6251_s3 + $0x888] sm:$0xff] %v1355_v6  ;;  %v833_v31 = vmul.f32 %v2155_v15, %v299_v9  ;;  %v834_v32 = vmul.f32 %v2168_v20, %v300_v10  ;;  %v835_v33 = vmul.f32 %v2172_v22, %v301_v11 }
 0x293   :  { %1868 = vst [vmem:[%s6251_s3 + $0x890] sm:$0xff] %v1356_v7  ;;  %1869 = vst [vmem:[%s6251_s3 + $0x898] sm:$0xff] %v1357_v8  ;;  %v1364_v39 = vadd.f32 %v2170_v21, %v830_v26  ;;  %v1365_v40 = vadd.f32 %v2174_v23, %v831_v27  ;;  %v1366_v44 = vadd.f32 %v2153_v14, %v832_v30 }
 0x294   :  { %v1367_v45 = vadd.f32 %v2157_v16, %v833_v31  ;;  %v1368_v46 = vadd.f32 %v2170_v21, %v834_v32  ;;  %v1369_v47 = vadd.f32 %v2174_v23, %v835_v33 }
 0x29a   :  { %v302_v28 = vld [vmem:[%s6250_s0 + $0x900] sm:$0xff]  ;;  %v303_v29 = vld [vmem:[%s6250_s0 + $0x908] sm:$0xff] }
 0x29b   :  { %1870 = vst [vmem:[%s6251_s3 + $0x8a0] sm:$0xff] %v1358_v12  ;;  %1871 = vst [vmem:[%s6251_s3 + $0x8a8] sm:$0xff] %v1359_v17  ;;  %v836_v48 = vmul.f32 %v2151_v13, %v302_v28  ;;  %v837_v49 = vmul.f32 %v2155_v15, %v303_v29 }
 0x29c   :  { %1872 = vst [vmem:[%s6251_s3 + $0x8b0] sm:$0xff] %v1360_v18  ;;  %1873 = vst [vmem:[%s6251_s3 + $0x8b8] sm:$0xff] %v1361_v19 }
 0x29d   :  { %v1370_v61 = vadd.f32 %v2153_v14, %v836_v48  ;;  %v1371_v62 = vadd.f32 %v2157_v16, %v837_v49 }
 0x2a3   :  { %v304_v34 = vld [vmem:[%s6250_s0 + $0x910] sm:$0xff]  ;;  %v305_v35 = vld [vmem:[%s6250_s0 + $0x918] sm:$0xff]  ;;  %v306_v36 = vld [vmem:[%s6250_s0 + $0x920] sm:$0xff] }
 0x2a4   :  { %v307_v41 = vld [vmem:[%s6250_s0 + $0x928] sm:$0xff]  ;;  %v308_v42 = vld [vmem:[%s6250_s0 + $0x930] sm:$0xff]  ;;  %v309_v43 = vld [vmem:[%s6250_s0 + $0x938] sm:$0xff]  ;;  %v838_v50 = vmul.f32 %v2168_v20, %v304_v34  ;;  %v839_v51 = vmul.f32 %v2172_v22, %v305_v35  ;;  %v840_v54 = vmul.f32 %v2151_v13, %v306_v36 }
 0x2a5   :  { %1874 = vst [vmem:[%s6251_s3 + $0x8c0] sm:$0xff] %v1362_v37  ;;  %1875 = vst [vmem:[%s6251_s3 + $0x8c8] sm:$0xff] %v1363_v38  ;;  %v841_v55 = vmul.f32 %v2155_v15, %v307_v41  ;;  %v842_v56 = vmul.f32 %v2168_v20, %v308_v42  ;;  %v843_v57 = vmul.f32 %v2172_v22, %v309_v43 }
 0x2a6   :  { %1876 = vst [vmem:[%s6251_s3 + $0x8d0] sm:$0xff] %v1364_v39  ;;  %1877 = vst [vmem:[%s6251_s3 + $0x8d8] sm:$0xff] %v1365_v40  ;;  %v1372_v63 = vadd.f32 %v2170_v21, %v838_v50  ;;  %v1373_v0 = vadd.f32 %v2174_v23, %v839_v51  ;;  %v1374_v4 = vadd.f32 %v2153_v14, %v840_v54 }
 0x2a7   :  { %v1375_v5 = vadd.f32 %v2157_v16, %v841_v55  ;;  %v1376_v6 = vadd.f32 %v2170_v21, %v842_v56  ;;  %v1377_v7 = vadd.f32 %v2174_v23, %v843_v57 }
 0x2ad   :  { %v310_v52 = vld [vmem:[%s6250_s0 + $0x940] sm:$0xff]  ;;  %v311_v53 = vld [vmem:[%s6250_s0 + $0x948] sm:$0xff] }
 0x2ae   :  { %1878 = vst [vmem:[%s6251_s3 + $0x8e0] sm:$0xff] %v1366_v44  ;;  %1879 = vst [vmem:[%s6251_s3 + $0x8e8] sm:$0xff] %v1367_v45  ;;  %v844_v8 = vmul.f32 %v2151_v13, %v310_v52  ;;  %v845_v9 = vmul.f32 %v2155_v15, %v311_v53 }
 0x2af   :  { %1880 = vst [vmem:[%s6251_s3 + $0x8f0] sm:$0xff] %v1368_v46  ;;  %1881 = vst [vmem:[%s6251_s3 + $0x8f8] sm:$0xff] %v1369_v47 }
 0x2b0   :  { %v1378_v29 = vadd.f32 %v2153_v14, %v844_v8  ;;  %v1379_v30 = vadd.f32 %v2157_v16, %v845_v9 }
 0x2b6   :  { %v312_v58 = vld [vmem:[%s6250_s0 + $0x950] sm:$0xff]  ;;  %v313_v59 = vld [vmem:[%s6250_s0 + $0x958] sm:$0xff]  ;;  %v314_v60 = vld [vmem:[%s6250_s0 + $0x960] sm:$0xff] }
 0x2b7   :  { %v315_v1 = vld [vmem:[%s6250_s0 + $0x968] sm:$0xff]  ;;  %v316_v2 = vld [vmem:[%s6250_s0 + $0x970] sm:$0xff]  ;;  %v317_v3 = vld [vmem:[%s6250_s0 + $0x978] sm:$0xff]  ;;  %v846_v10 = vmul.f32 %v2168_v20, %v312_v58  ;;  %v847_v11 = vmul.f32 %v2172_v22, %v313_v59  ;;  %v848_v18 = vmul.f32 %v2151_v13, %v314_v60 }
 0x2b8   :  { %1882 = vst [vmem:[%s6251_s3 + $0x900] sm:$0xff] %v1370_v61  ;;  %1883 = vst [vmem:[%s6251_s3 + $0x908] sm:$0xff] %v1371_v62  ;;  %v849_v19 = vmul.f32 %v2155_v15, %v315_v1  ;;  %v850_v24 = vmul.f32 %v2168_v20, %v316_v2  ;;  %v851_v25 = vmul.f32 %v2172_v22, %v317_v3 }
 0x2b9   :  { %1884 = vst [vmem:[%s6251_s3 + $0x910] sm:$0xff] %v1372_v63  ;;  %1885 = vst [vmem:[%s6251_s3 + $0x918] sm:$0xff] %v1373_v0  ;;  %v1380_v31 = vadd.f32 %v2170_v21, %v846_v10  ;;  %v1381_v32 = vadd.f32 %v2174_v23, %v847_v11  ;;  %v1382_v36 = vadd.f32 %v2153_v14, %v848_v18 }
 0x2ba   :  { %v1383_v37 = vadd.f32 %v2157_v16, %v849_v19  ;;  %v1384_v38 = vadd.f32 %v2170_v21, %v850_v24  ;;  %v1385_v39 = vadd.f32 %v2174_v23, %v851_v25 }
 0x2c0   :  { %v318_v12 = vld [vmem:[%s6250_s0 + $0x980] sm:$0xff]  ;;  %v319_v17 = vld [vmem:[%s6250_s0 + $0x988] sm:$0xff] }
 0x2c1   :  { %1886 = vst [vmem:[%s6251_s3 + $0x920] sm:$0xff] %v1374_v4  ;;  %1887 = vst [vmem:[%s6251_s3 + $0x928] sm:$0xff] %v1375_v5  ;;  %v852_v40 = vmul.f32 %v2151_v13, %v318_v12  ;;  %v853_v41 = vmul.f32 %v2155_v15, %v319_v17 }
 0x2c2   :  { %1888 = vst [vmem:[%s6251_s3 + $0x930] sm:$0xff] %v1376_v6  ;;  %1889 = vst [vmem:[%s6251_s3 + $0x938] sm:$0xff] %v1377_v7 }
 0x2c3   :  { %v1386_v53 = vadd.f32 %v2153_v14, %v852_v40  ;;  %v1387_v54 = vadd.f32 %v2157_v16, %v853_v41 }
 0x2c9   :  { %v320_v26 = vld [vmem:[%s6250_s0 + $0x990] sm:$0xff]  ;;  %v321_v27 = vld [vmem:[%s6250_s0 + $0x998] sm:$0xff]  ;;  %v322_v28 = vld [vmem:[%s6250_s0 + $0x9a0] sm:$0xff] }
 0x2ca   :  { %v323_v33 = vld [vmem:[%s6250_s0 + $0x9a8] sm:$0xff]  ;;  %v324_v34 = vld [vmem:[%s6250_s0 + $0x9b0] sm:$0xff]  ;;  %v325_v35 = vld [vmem:[%s6250_s0 + $0x9b8] sm:$0xff]  ;;  %v854_v42 = vmul.f32 %v2168_v20, %v320_v26  ;;  %v855_v43 = vmul.f32 %v2172_v22, %v321_v27  ;;  %v856_v46 = vmul.f32 %v2151_v13, %v322_v28 }
 0x2cb   :  { %1890 = vst [vmem:[%s6251_s3 + $0x940] sm:$0xff] %v1378_v29  ;;  %1891 = vst [vmem:[%s6251_s3 + $0x948] sm:$0xff] %v1379_v30  ;;  %v857_v47 = vmul.f32 %v2155_v15, %v323_v33  ;;  %v858_v48 = vmul.f32 %v2168_v20, %v324_v34  ;;  %v859_v49 = vmul.f32 %v2172_v22, %v325_v35 }
 0x2cc   :  { %1892 = vst [vmem:[%s6251_s3 + $0x950] sm:$0xff] %v1380_v31  ;;  %1893 = vst [vmem:[%s6251_s3 + $0x958] sm:$0xff] %v1381_v32  ;;  %v1388_v55 = vadd.f32 %v2170_v21, %v854_v42  ;;  %v1389_v56 = vadd.f32 %v2174_v23, %v855_v43  ;;  %v1390_v60 = vadd.f32 %v2153_v14, %v856_v46 }
 0x2cd   :  { %v1391_v61 = vadd.f32 %v2157_v16, %v857_v47  ;;  %v1392_v62 = vadd.f32 %v2170_v21, %v858_v48  ;;  %v1393_v63 = vadd.f32 %v2174_v23, %v859_v49 }
 0x2d3   :  { %v326_v44 = vld [vmem:[%s6250_s0 + $0x9c0] sm:$0xff]  ;;  %v327_v45 = vld [vmem:[%s6250_s0 + $0x9c8] sm:$0xff] }
 0x2d4   :  { %1894 = vst [vmem:[%s6251_s3 + $0x960] sm:$0xff] %v1382_v36  ;;  %1895 = vst [vmem:[%s6251_s3 + $0x968] sm:$0xff] %v1383_v37  ;;  %v860_v0 = vmul.f32 %v2151_v13, %v326_v44  ;;  %v861_v1 = vmul.f32 %v2155_v15, %v327_v45 }
 0x2d5   :  { %1896 = vst [vmem:[%s6251_s3 + $0x970] sm:$0xff] %v1384_v38  ;;  %1897 = vst [vmem:[%s6251_s3 + $0x978] sm:$0xff] %v1385_v39 }
 0x2d6   :  { %v1394_v17 = vadd.f32 %v2153_v14, %v860_v0  ;;  %v1395_v18 = vadd.f32 %v2157_v16, %v861_v1 }
 0x2dc   :  { %v328_v50 = vld [vmem:[%s6250_s0 + $0x9d0] sm:$0xff]  ;;  %v329_v51 = vld [vmem:[%s6250_s0 + $0x9d8] sm:$0xff]  ;;  %v330_v52 = vld [vmem:[%s6250_s0 + $0x9e0] sm:$0xff] }
 0x2dd   :  { %v331_v57 = vld [vmem:[%s6250_s0 + $0x9e8] sm:$0xff]  ;;  %v332_v58 = vld [vmem:[%s6250_s0 + $0x9f0] sm:$0xff]  ;;  %v333_v59 = vld [vmem:[%s6250_s0 + $0x9f8] sm:$0xff]  ;;  %v862_v2 = vmul.f32 %v2168_v20, %v328_v50  ;;  %v863_v3 = vmul.f32 %v2172_v22, %v329_v51  ;;  %v864_v6 = vmul.f32 %v2151_v13, %v330_v52 }
 0x2de   :  { %1898 = vst [vmem:[%s6251_s3 + $0x980] sm:$0xff] %v1386_v53  ;;  %1899 = vst [vmem:[%s6251_s3 + $0x988] sm:$0xff] %v1387_v54  ;;  %v865_v7 = vmul.f32 %v2155_v15, %v331_v57  ;;  %v866_v8 = vmul.f32 %v2168_v20, %v332_v58  ;;  %v867_v9 = vmul.f32 %v2172_v22, %v333_v59 }
 0x2df   :  { %1900 = vst [vmem:[%s6251_s3 + $0x990] sm:$0xff] %v1388_v55  ;;  %1901 = vst [vmem:[%s6251_s3 + $0x998] sm:$0xff] %v1389_v56  ;;  %v1396_v19 = vadd.f32 %v2170_v21, %v862_v2  ;;  %v1397_v24 = vadd.f32 %v2174_v23, %v863_v3  ;;  %v1398_v28 = vadd.f32 %v2153_v14, %v864_v6 }
 0x2e0   :  { %v1399_v29 = vadd.f32 %v2157_v16, %v865_v7  ;;  %v1400_v30 = vadd.f32 %v2170_v21, %v866_v8  ;;  %v1401_v31 = vadd.f32 %v2174_v23, %v867_v9 }
 0x2e6   :  { %v334_v4 = vld [vmem:[%s6250_s0 + $0xa00] sm:$0xff]  ;;  %v335_v5 = vld [vmem:[%s6250_s0 + $0xa08] sm:$0xff] }
 0x2e7   :  { %1902 = vst [vmem:[%s6251_s3 + $0x9a0] sm:$0xff] %v1390_v60  ;;  %1903 = vst [vmem:[%s6251_s3 + $0x9a8] sm:$0xff] %v1391_v61  ;;  %v868_v32 = vmul.f32 %v2151_v13, %v334_v4  ;;  %v869_v33 = vmul.f32 %v2155_v15, %v335_v5 }
 0x2e8   :  { %1904 = vst [vmem:[%s6251_s3 + $0x9b0] sm:$0xff] %v1392_v62  ;;  %1905 = vst [vmem:[%s6251_s3 + $0x9b8] sm:$0xff] %v1393_v63 }
 0x2e9   :  { %v1402_v45 = vadd.f32 %v2153_v14, %v868_v32  ;;  %v1403_v46 = vadd.f32 %v2157_v16, %v869_v33 }
 0x2ef   :  { %v336_v10 = vld [vmem:[%s6250_s0 + $0xa10] sm:$0xff]  ;;  %v337_v11 = vld [vmem:[%s6250_s0 + $0xa18] sm:$0xff]  ;;  %v338_v12 = vld [vmem:[%s6250_s0 + $0xa20] sm:$0xff] }
 0x2f0   :  { %v339_v25 = vld [vmem:[%s6250_s0 + $0xa28] sm:$0xff]  ;;  %v340_v26 = vld [vmem:[%s6250_s0 + $0xa30] sm:$0xff]  ;;  %v341_v27 = vld [vmem:[%s6250_s0 + $0xa38] sm:$0xff]  ;;  %v870_v34 = vmul.f32 %v2168_v20, %v336_v10  ;;  %v871_v35 = vmul.f32 %v2172_v22, %v337_v11  ;;  %v872_v38 = vmul.f32 %v2151_v13, %v338_v12 }
 0x2f1   :  { %1906 = vst [vmem:[%s6251_s3 + $0x9c0] sm:$0xff] %v1394_v17  ;;  %1907 = vst [vmem:[%s6251_s3 + $0x9c8] sm:$0xff] %v1395_v18  ;;  %v873_v39 = vmul.f32 %v2155_v15, %v339_v25  ;;  %v874_v40 = vmul.f32 %v2168_v20, %v340_v26  ;;  %v875_v41 = vmul.f32 %v2172_v22, %v341_v27 }
 0x2f2   :  { %1908 = vst [vmem:[%s6251_s3 + $0x9d0] sm:$0xff] %v1396_v19  ;;  %1909 = vst [vmem:[%s6251_s3 + $0x9d8] sm:$0xff] %v1397_v24  ;;  %v1404_v47 = vadd.f32 %v2170_v21, %v870_v34  ;;  %v1405_v48 = vadd.f32 %v2174_v23, %v871_v35  ;;  %v1406_v52 = vadd.f32 %v2153_v14, %v872_v38 }
 0x2f3   :  { %v1407_v53 = vadd.f32 %v2157_v16, %v873_v39  ;;  %v1408_v54 = vadd.f32 %v2170_v21, %v874_v40  ;;  %v1409_v55 = vadd.f32 %v2174_v23, %v875_v41 }
 0x2f9   :  { %v342_v36 = vld [vmem:[%s6250_s0 + $0xa40] sm:$0xff]  ;;  %v343_v37 = vld [vmem:[%s6250_s0 + $0xa48] sm:$0xff] }
 0x2fa   :  { %1910 = vst [vmem:[%s6251_s3 + $0x9e0] sm:$0xff] %v1398_v28  ;;  %1911 = vst [vmem:[%s6251_s3 + $0x9e8] sm:$0xff] %v1399_v29  ;;  %v876_v56 = vmul.f32 %v2151_v13, %v342_v36  ;;  %v877_v57 = vmul.f32 %v2155_v15, %v343_v37 }
 0x2fb   :  { %1912 = vst [vmem:[%s6251_s3 + $0x9f0] sm:$0xff] %v1400_v30  ;;  %1913 = vst [vmem:[%s6251_s3 + $0x9f8] sm:$0xff] %v1401_v31 }
 0x2fc   :  { %v1410_v5 = vadd.f32 %v2153_v14, %v876_v56  ;;  %v1411_v6 = vadd.f32 %v2157_v16, %v877_v57 }
 0x302   :  { %v344_v42 = vld [vmem:[%s6250_s0 + $0xa50] sm:$0xff]  ;;  %v345_v43 = vld [vmem:[%s6250_s0 + $0xa58] sm:$0xff]  ;;  %v346_v44 = vld [vmem:[%s6250_s0 + $0xa60] sm:$0xff] }
 0x303   :  { %v347_v49 = vld [vmem:[%s6250_s0 + $0xa68] sm:$0xff]  ;;  %v348_v50 = vld [vmem:[%s6250_s0 + $0xa70] sm:$0xff]  ;;  %v349_v51 = vld [vmem:[%s6250_s0 + $0xa78] sm:$0xff]  ;;  %v878_v58 = vmul.f32 %v2168_v20, %v344_v42  ;;  %v879_v59 = vmul.f32 %v2172_v22, %v345_v43  ;;  %v880_v62 = vmul.f32 %v2151_v13, %v346_v44 }
 0x304   :  { %1914 = vst [vmem:[%s6251_s3 + $0xa00] sm:$0xff] %v1402_v45  ;;  %1915 = vst [vmem:[%s6251_s3 + $0xa08] sm:$0xff] %v1403_v46  ;;  %v881_v63 = vmul.f32 %v2155_v15, %v347_v49  ;;  %v882_v0 = vmul.f32 %v2168_v20, %v348_v50  ;;  %v883_v1 = vmul.f32 %v2172_v22, %v349_v51 }
 0x305   :  { %1916 = vst [vmem:[%s6251_s3 + $0xa10] sm:$0xff] %v1404_v47  ;;  %1917 = vst [vmem:[%s6251_s3 + $0xa18] sm:$0xff] %v1405_v48  ;;  %v1412_v7 = vadd.f32 %v2170_v21, %v878_v58  ;;  %v1413_v8 = vadd.f32 %v2174_v23, %v879_v59  ;;  %v1414_v12 = vadd.f32 %v2153_v14, %v880_v62 }
 0x306   :  { %v1415_v17 = vadd.f32 %v2157_v16, %v881_v63  ;;  %v1416_v18 = vadd.f32 %v2170_v21, %v882_v0  ;;  %v1417_v19 = vadd.f32 %v2174_v23, %v883_v1 }
 0x30c   :  { %v350_v60 = vld [vmem:[%s6250_s0 + $0xa80] sm:$0xff]  ;;  %v351_v61 = vld [vmem:[%s6250_s0 + $0xa88] sm:$0xff] }
 0x30d   :  { %1918 = vst [vmem:[%s6251_s3 + $0xa20] sm:$0xff] %v1406_v52  ;;  %1919 = vst [vmem:[%s6251_s3 + $0xa28] sm:$0xff] %v1407_v53  ;;  %v884_v24 = vmul.f32 %v2151_v13, %v350_v60  ;;  %v885_v25 = vmul.f32 %v2155_v15, %v351_v61 }
 0x30e   :  { %1920 = vst [vmem:[%s6251_s3 + $0xa30] sm:$0xff] %v1408_v54  ;;  %1921 = vst [vmem:[%s6251_s3 + $0xa38] sm:$0xff] %v1409_v55 }
 0x30f   :  { %v1418_v37 = vadd.f32 %v2153_v14, %v884_v24  ;;  %v1419_v38 = vadd.f32 %v2157_v16, %v885_v25 }
 0x315   :  { %v352_v2 = vld [vmem:[%s6250_s0 + $0xa90] sm:$0xff]  ;;  %v353_v3 = vld [vmem:[%s6250_s0 + $0xa98] sm:$0xff]  ;;  %v354_v4 = vld [vmem:[%s6250_s0 + $0xaa0] sm:$0xff] }
 0x316   :  { %v355_v9 = vld [vmem:[%s6250_s0 + $0xaa8] sm:$0xff]  ;;  %v356_v10 = vld [vmem:[%s6250_s0 + $0xab0] sm:$0xff]  ;;  %v357_v11 = vld [vmem:[%s6250_s0 + $0xab8] sm:$0xff]  ;;  %v886_v26 = vmul.f32 %v2168_v20, %v352_v2  ;;  %v887_v27 = vmul.f32 %v2172_v22, %v353_v3  ;;  %v888_v30 = vmul.f32 %v2151_v13, %v354_v4 }
 0x317   :  { %1922 = vst [vmem:[%s6251_s3 + $0xa40] sm:$0xff] %v1410_v5  ;;  %1923 = vst [vmem:[%s6251_s3 + $0xa48] sm:$0xff] %v1411_v6  ;;  %v889_v31 = vmul.f32 %v2155_v15, %v355_v9  ;;  %v890_v32 = vmul.f32 %v2168_v20, %v356_v10  ;;  %v891_v33 = vmul.f32 %v2172_v22, %v357_v11 }
 0x318   :  { %1924 = vst [vmem:[%s6251_s3 + $0xa50] sm:$0xff] %v1412_v7  ;;  %1925 = vst [vmem:[%s6251_s3 + $0xa58] sm:$0xff] %v1413_v8  ;;  %v1420_v39 = vadd.f32 %v2170_v21, %v886_v26  ;;  %v1421_v40 = vadd.f32 %v2174_v23, %v887_v27  ;;  %v1422_v44 = vadd.f32 %v2153_v14, %v888_v30 }
 0x319   :  { %v1423_v45 = vadd.f32 %v2157_v16, %v889_v31  ;;  %v1424_v46 = vadd.f32 %v2170_v21, %v890_v32  ;;  %v1425_v47 = vadd.f32 %v2174_v23, %v891_v33 }
 0x31f   :  { %v358_v28 = vld [vmem:[%s6250_s0 + $0xac0] sm:$0xff]  ;;  %v359_v29 = vld [vmem:[%s6250_s0 + $0xac8] sm:$0xff] }
 0x320   :  { %1926 = vst [vmem:[%s6251_s3 + $0xa60] sm:$0xff] %v1414_v12  ;;  %1927 = vst [vmem:[%s6251_s3 + $0xa68] sm:$0xff] %v1415_v17  ;;  %v892_v48 = vmul.f32 %v2151_v13, %v358_v28  ;;  %v893_v49 = vmul.f32 %v2155_v15, %v359_v29 }
 0x321   :  { %1928 = vst [vmem:[%s6251_s3 + $0xa70] sm:$0xff] %v1416_v18  ;;  %1929 = vst [vmem:[%s6251_s3 + $0xa78] sm:$0xff] %v1417_v19 }
 0x322   :  { %v1426_v61 = vadd.f32 %v2153_v14, %v892_v48  ;;  %v1427_v62 = vadd.f32 %v2157_v16, %v893_v49 }
 0x328   :  { %v360_v34 = vld [vmem:[%s6250_s0 + $0xad0] sm:$0xff]  ;;  %v361_v35 = vld [vmem:[%s6250_s0 + $0xad8] sm:$0xff]  ;;  %v362_v36 = vld [vmem:[%s6250_s0 + $0xae0] sm:$0xff] }
 0x329   :  { %v363_v41 = vld [vmem:[%s6250_s0 + $0xae8] sm:$0xff]  ;;  %v364_v42 = vld [vmem:[%s6250_s0 + $0xaf0] sm:$0xff]  ;;  %v365_v43 = vld [vmem:[%s6250_s0 + $0xaf8] sm:$0xff]  ;;  %v894_v50 = vmul.f32 %v2168_v20, %v360_v34  ;;  %v895_v51 = vmul.f32 %v2172_v22, %v361_v35  ;;  %v896_v54 = vmul.f32 %v2151_v13, %v362_v36 }
 0x32a   :  { %1930 = vst [vmem:[%s6251_s3 + $0xa80] sm:$0xff] %v1418_v37  ;;  %1931 = vst [vmem:[%s6251_s3 + $0xa88] sm:$0xff] %v1419_v38  ;;  %v897_v55 = vmul.f32 %v2155_v15, %v363_v41  ;;  %v898_v56 = vmul.f32 %v2168_v20, %v364_v42  ;;  %v899_v57 = vmul.f32 %v2172_v22, %v365_v43 }
 0x32b   :  { %1932 = vst [vmem:[%s6251_s3 + $0xa90] sm:$0xff] %v1420_v39  ;;  %1933 = vst [vmem:[%s6251_s3 + $0xa98] sm:$0xff] %v1421_v40  ;;  %v1428_v63 = vadd.f32 %v2170_v21, %v894_v50  ;;  %v1429_v0 = vadd.f32 %v2174_v23, %v895_v51  ;;  %v1430_v4 = vadd.f32 %v2153_v14, %v896_v54 }
 0x32c   :  { %v1431_v5 = vadd.f32 %v2157_v16, %v897_v55  ;;  %v1432_v6 = vadd.f32 %v2170_v21, %v898_v56  ;;  %v1433_v7 = vadd.f32 %v2174_v23, %v899_v57 }
 0x332   :  { %v366_v52 = vld [vmem:[%s6250_s0 + $0xb00] sm:$0xff]  ;;  %v367_v53 = vld [vmem:[%s6250_s0 + $0xb08] sm:$0xff] }
 0x333   :  { %1934 = vst [vmem:[%s6251_s3 + $0xaa0] sm:$0xff] %v1422_v44  ;;  %1935 = vst [vmem:[%s6251_s3 + $0xaa8] sm:$0xff] %v1423_v45  ;;  %v900_v8 = vmul.f32 %v2151_v13, %v366_v52  ;;  %v901_v9 = vmul.f32 %v2155_v15, %v367_v53 }
 0x334   :  { %1936 = vst [vmem:[%s6251_s3 + $0xab0] sm:$0xff] %v1424_v46  ;;  %1937 = vst [vmem:[%s6251_s3 + $0xab8] sm:$0xff] %v1425_v47 }
 0x335   :  { %v1434_v29 = vadd.f32 %v2153_v14, %v900_v8  ;;  %v1435_v30 = vadd.f32 %v2157_v16, %v901_v9 }
 0x33b   :  { %v368_v58 = vld [vmem:[%s6250_s0 + $0xb10] sm:$0xff]  ;;  %v369_v59 = vld [vmem:[%s6250_s0 + $0xb18] sm:$0xff]  ;;  %v370_v60 = vld [vmem:[%s6250_s0 + $0xb20] sm:$0xff] }
 0x33c   :  { %v371_v1 = vld [vmem:[%s6250_s0 + $0xb28] sm:$0xff]  ;;  %v372_v2 = vld [vmem:[%s6250_s0 + $0xb30] sm:$0xff]  ;;  %v373_v3 = vld [vmem:[%s6250_s0 + $0xb38] sm:$0xff]  ;;  %v902_v10 = vmul.f32 %v2168_v20, %v368_v58  ;;  %v903_v11 = vmul.f32 %v2172_v22, %v369_v59  ;;  %v904_v18 = vmul.f32 %v2151_v13, %v370_v60 }
 0x33d   :  { %1938 = vst [vmem:[%s6251_s3 + $0xac0] sm:$0xff] %v1426_v61  ;;  %1939 = vst [vmem:[%s6251_s3 + $0xac8] sm:$0xff] %v1427_v62  ;;  %v905_v19 = vmul.f32 %v2155_v15, %v371_v1  ;;  %v906_v24 = vmul.f32 %v2168_v20, %v372_v2  ;;  %v907_v25 = vmul.f32 %v2172_v22, %v373_v3 }
 0x33e   :  { %1940 = vst [vmem:[%s6251_s3 + $0xad0] sm:$0xff] %v1428_v63  ;;  %1941 = vst [vmem:[%s6251_s3 + $0xad8] sm:$0xff] %v1429_v0  ;;  %v1436_v31 = vadd.f32 %v2170_v21, %v902_v10  ;;  %v1437_v32 = vadd.f32 %v2174_v23, %v903_v11  ;;  %v1438_v36 = vadd.f32 %v2153_v14, %v904_v18 }
 0x33f   :  { %v1439_v37 = vadd.f32 %v2157_v16, %v905_v19  ;;  %v1440_v38 = vadd.f32 %v2170_v21, %v906_v24  ;;  %v1441_v39 = vadd.f32 %v2174_v23, %v907_v25 }
 0x345   :  { %v374_v12 = vld [vmem:[%s6250_s0 + $0xb40] sm:$0xff]  ;;  %v375_v17 = vld [vmem:[%s6250_s0 + $0xb48] sm:$0xff] }
 0x346   :  { %1942 = vst [vmem:[%s6251_s3 + $0xae0] sm:$0xff] %v1430_v4  ;;  %1943 = vst [vmem:[%s6251_s3 + $0xae8] sm:$0xff] %v1431_v5  ;;  %v908_v40 = vmul.f32 %v2151_v13, %v374_v12  ;;  %v909_v41 = vmul.f32 %v2155_v15, %v375_v17 }
 0x347   :  { %1944 = vst [vmem:[%s6251_s3 + $0xaf0] sm:$0xff] %v1432_v6  ;;  %1945 = vst [vmem:[%s6251_s3 + $0xaf8] sm:$0xff] %v1433_v7 }
 0x348   :  { %v1442_v53 = vadd.f32 %v2153_v14, %v908_v40  ;;  %v1443_v54 = vadd.f32 %v2157_v16, %v909_v41 }
 0x34e   :  { %v376_v26 = vld [vmem:[%s6250_s0 + $0xb50] sm:$0xff]  ;;  %v377_v27 = vld [vmem:[%s6250_s0 + $0xb58] sm:$0xff]  ;;  %v378_v28 = vld [vmem:[%s6250_s0 + $0xb60] sm:$0xff] }
 0x34f   :  { %v379_v33 = vld [vmem:[%s6250_s0 + $0xb68] sm:$0xff]  ;;  %v380_v34 = vld [vmem:[%s6250_s0 + $0xb70] sm:$0xff]  ;;  %v381_v35 = vld [vmem:[%s6250_s0 + $0xb78] sm:$0xff]  ;;  %v910_v42 = vmul.f32 %v2168_v20, %v376_v26  ;;  %v911_v43 = vmul.f32 %v2172_v22, %v377_v27  ;;  %v912_v46 = vmul.f32 %v2151_v13, %v378_v28 }
 0x350   :  { %1946 = vst [vmem:[%s6251_s3 + $0xb00] sm:$0xff] %v1434_v29  ;;  %1947 = vst [vmem:[%s6251_s3 + $0xb08] sm:$0xff] %v1435_v30  ;;  %v913_v47 = vmul.f32 %v2155_v15, %v379_v33  ;;  %v914_v48 = vmul.f32 %v2168_v20, %v380_v34  ;;  %v915_v49 = vmul.f32 %v2172_v22, %v381_v35 }
 0x351   :  { %1948 = vst [vmem:[%s6251_s3 + $0xb10] sm:$0xff] %v1436_v31  ;;  %1949 = vst [vmem:[%s6251_s3 + $0xb18] sm:$0xff] %v1437_v32  ;;  %v1444_v55 = vadd.f32 %v2170_v21, %v910_v42  ;;  %v1445_v56 = vadd.f32 %v2174_v23, %v911_v43  ;;  %v1446_v60 = vadd.f32 %v2153_v14, %v912_v46 }
 0x352   :  { %v1447_v61 = vadd.f32 %v2157_v16, %v913_v47  ;;  %v1448_v62 = vadd.f32 %v2170_v21, %v914_v48  ;;  %v1449_v63 = vadd.f32 %v2174_v23, %v915_v49 }
 0x358   :  { %v382_v44 = vld [vmem:[%s6250_s0 + $0xb80] sm:$0xff]  ;;  %v383_v45 = vld [vmem:[%s6250_s0 + $0xb88] sm:$0xff] }
 0x359   :  { %1950 = vst [vmem:[%s6251_s3 + $0xb20] sm:$0xff] %v1438_v36  ;;  %1951 = vst [vmem:[%s6251_s3 + $0xb28] sm:$0xff] %v1439_v37  ;;  %v916_v0 = vmul.f32 %v2151_v13, %v382_v44  ;;  %v917_v1 = vmul.f32 %v2155_v15, %v383_v45 }
 0x35a   :  { %1952 = vst [vmem:[%s6251_s3 + $0xb30] sm:$0xff] %v1440_v38  ;;  %1953 = vst [vmem:[%s6251_s3 + $0xb38] sm:$0xff] %v1441_v39 }
 0x35b   :  { %v1450_v17 = vadd.f32 %v2153_v14, %v916_v0  ;;  %v1451_v18 = vadd.f32 %v2157_v16, %v917_v1 }
 0x361   :  { %v384_v50 = vld [vmem:[%s6250_s0 + $0xb90] sm:$0xff]  ;;  %v385_v51 = vld [vmem:[%s6250_s0 + $0xb98] sm:$0xff]  ;;  %v386_v52 = vld [vmem:[%s6250_s0 + $0xba0] sm:$0xff] }
 0x362   :  { %v387_v57 = vld [vmem:[%s6250_s0 + $0xba8] sm:$0xff]  ;;  %v388_v58 = vld [vmem:[%s6250_s0 + $0xbb0] sm:$0xff]  ;;  %v389_v59 = vld [vmem:[%s6250_s0 + $0xbb8] sm:$0xff]  ;;  %v918_v2 = vmul.f32 %v2168_v20, %v384_v50  ;;  %v919_v3 = vmul.f32 %v2172_v22, %v385_v51  ;;  %v920_v6 = vmul.f32 %v2151_v13, %v386_v52 }
 0x363   :  { %1954 = vst [vmem:[%s6251_s3 + $0xb40] sm:$0xff] %v1442_v53  ;;  %1955 = vst [vmem:[%s6251_s3 + $0xb48] sm:$0xff] %v1443_v54  ;;  %v921_v7 = vmul.f32 %v2155_v15, %v387_v57  ;;  %v922_v8 = vmul.f32 %v2168_v20, %v388_v58  ;;  %v923_v9 = vmul.f32 %v2172_v22, %v389_v59 }
 0x364   :  { %1956 = vst [vmem:[%s6251_s3 + $0xb50] sm:$0xff] %v1444_v55  ;;  %1957 = vst [vmem:[%s6251_s3 + $0xb58] sm:$0xff] %v1445_v56  ;;  %v1452_v19 = vadd.f32 %v2170_v21, %v918_v2  ;;  %v1453_v24 = vadd.f32 %v2174_v23, %v919_v3  ;;  %v1454_v28 = vadd.f32 %v2153_v14, %v920_v6 }
 0x365   :  { %v1455_v29 = vadd.f32 %v2157_v16, %v921_v7  ;;  %v1456_v30 = vadd.f32 %v2170_v21, %v922_v8  ;;  %v1457_v31 = vadd.f32 %v2174_v23, %v923_v9 }
 0x36b   :  { %v390_v4 = vld [vmem:[%s6250_s0 + $0xbc0] sm:$0xff]  ;;  %v391_v5 = vld [vmem:[%s6250_s0 + $0xbc8] sm:$0xff] }
 0x36c   :  { %1958 = vst [vmem:[%s6251_s3 + $0xb60] sm:$0xff] %v1446_v60  ;;  %1959 = vst [vmem:[%s6251_s3 + $0xb68] sm:$0xff] %v1447_v61  ;;  %v924_v32 = vmul.f32 %v2151_v13, %v390_v4  ;;  %v925_v33 = vmul.f32 %v2155_v15, %v391_v5 }
 0x36d   :  { %1960 = vst [vmem:[%s6251_s3 + $0xb70] sm:$0xff] %v1448_v62  ;;  %1961 = vst [vmem:[%s6251_s3 + $0xb78] sm:$0xff] %v1449_v63 }
 0x36e   :  { %v1458_v45 = vadd.f32 %v2153_v14, %v924_v32  ;;  %v1459_v46 = vadd.f32 %v2157_v16, %v925_v33 }
 0x374   :  { %v392_v10 = vld [vmem:[%s6250_s0 + $0xbd0] sm:$0xff]  ;;  %v393_v11 = vld [vmem:[%s6250_s0 + $0xbd8] sm:$0xff]  ;;  %v394_v12 = vld [vmem:[%s6250_s0 + $0xbe0] sm:$0xff] }
 0x375   :  { %v395_v25 = vld [vmem:[%s6250_s0 + $0xbe8] sm:$0xff]  ;;  %v396_v26 = vld [vmem:[%s6250_s0 + $0xbf0] sm:$0xff]  ;;  %v397_v27 = vld [vmem:[%s6250_s0 + $0xbf8] sm:$0xff]  ;;  %v926_v34 = vmul.f32 %v2168_v20, %v392_v10  ;;  %v927_v35 = vmul.f32 %v2172_v22, %v393_v11  ;;  %v928_v38 = vmul.f32 %v2151_v13, %v394_v12 }
 0x376   :  { %1962 = vst [vmem:[%s6251_s3 + $0xb80] sm:$0xff] %v1450_v17  ;;  %1963 = vst [vmem:[%s6251_s3 + $0xb88] sm:$0xff] %v1451_v18  ;;  %v929_v39 = vmul.f32 %v2155_v15, %v395_v25  ;;  %v930_v40 = vmul.f32 %v2168_v20, %v396_v26  ;;  %v931_v41 = vmul.f32 %v2172_v22, %v397_v27 }
 0x377   :  { %1964 = vst [vmem:[%s6251_s3 + $0xb90] sm:$0xff] %v1452_v19  ;;  %1965 = vst [vmem:[%s6251_s3 + $0xb98] sm:$0xff] %v1453_v24  ;;  %v1460_v47 = vadd.f32 %v2170_v21, %v926_v34  ;;  %v1461_v48 = vadd.f32 %v2174_v23, %v927_v35  ;;  %v1462_v52 = vadd.f32 %v2153_v14, %v928_v38 }
 0x378   :  { %v1463_v53 = vadd.f32 %v2157_v16, %v929_v39  ;;  %v1464_v54 = vadd.f32 %v2170_v21, %v930_v40  ;;  %v1465_v55 = vadd.f32 %v2174_v23, %v931_v41 }
 0x37e   :  { %v398_v36 = vld [vmem:[%s6250_s0 + $0xc00] sm:$0xff]  ;;  %v399_v37 = vld [vmem:[%s6250_s0 + $0xc08] sm:$0xff] }
 0x37f   :  { %1966 = vst [vmem:[%s6251_s3 + $0xba0] sm:$0xff] %v1454_v28  ;;  %1967 = vst [vmem:[%s6251_s3 + $0xba8] sm:$0xff] %v1455_v29  ;;  %v932_v56 = vmul.f32 %v2151_v13, %v398_v36  ;;  %v933_v57 = vmul.f32 %v2155_v15, %v399_v37 }
 0x380   :  { %1968 = vst [vmem:[%s6251_s3 + $0xbb0] sm:$0xff] %v1456_v30  ;;  %1969 = vst [vmem:[%s6251_s3 + $0xbb8] sm:$0xff] %v1457_v31 }
 0x381   :  { %v1466_v5 = vadd.f32 %v2153_v14, %v932_v56  ;;  %v1467_v6 = vadd.f32 %v2157_v16, %v933_v57 }
 0x387   :  { %v400_v42 = vld [vmem:[%s6250_s0 + $0xc10] sm:$0xff]  ;;  %v401_v43 = vld [vmem:[%s6250_s0 + $0xc18] sm:$0xff]  ;;  %v402_v44 = vld [vmem:[%s6250_s0 + $0xc20] sm:$0xff] }
 0x388   :  { %v403_v49 = vld [vmem:[%s6250_s0 + $0xc28] sm:$0xff]  ;;  %v404_v50 = vld [vmem:[%s6250_s0 + $0xc30] sm:$0xff]  ;;  %v405_v51 = vld [vmem:[%s6250_s0 + $0xc38] sm:$0xff]  ;;  %v934_v58 = vmul.f32 %v2168_v20, %v400_v42  ;;  %v935_v59 = vmul.f32 %v2172_v22, %v401_v43  ;;  %v936_v62 = vmul.f32 %v2151_v13, %v402_v44 }
 0x389   :  { %1970 = vst [vmem:[%s6251_s3 + $0xbc0] sm:$0xff] %v1458_v45  ;;  %1971 = vst [vmem:[%s6251_s3 + $0xbc8] sm:$0xff] %v1459_v46  ;;  %v937_v63 = vmul.f32 %v2155_v15, %v403_v49  ;;  %v938_v0 = vmul.f32 %v2168_v20, %v404_v50  ;;  %v939_v1 = vmul.f32 %v2172_v22, %v405_v51 }
 0x38a   :  { %1972 = vst [vmem:[%s6251_s3 + $0xbd0] sm:$0xff] %v1460_v47  ;;  %1973 = vst [vmem:[%s6251_s3 + $0xbd8] sm:$0xff] %v1461_v48  ;;  %v1468_v7 = vadd.f32 %v2170_v21, %v934_v58  ;;  %v1469_v8 = vadd.f32 %v2174_v23, %v935_v59  ;;  %v1470_v12 = vadd.f32 %v2153_v14, %v936_v62 }
 0x38b   :  { %v1471_v17 = vadd.f32 %v2157_v16, %v937_v63  ;;  %v1472_v18 = vadd.f32 %v2170_v21, %v938_v0  ;;  %v1473_v19 = vadd.f32 %v2174_v23, %v939_v1 }
 0x391   :  { %v406_v60 = vld [vmem:[%s6250_s0 + $0xc40] sm:$0xff]  ;;  %v407_v61 = vld [vmem:[%s6250_s0 + $0xc48] sm:$0xff] }
 0x392   :  { %1974 = vst [vmem:[%s6251_s3 + $0xbe0] sm:$0xff] %v1462_v52  ;;  %1975 = vst [vmem:[%s6251_s3 + $0xbe8] sm:$0xff] %v1463_v53  ;;  %v940_v24 = vmul.f32 %v2151_v13, %v406_v60  ;;  %v941_v25 = vmul.f32 %v2155_v15, %v407_v61 }
 0x393   :  { %1976 = vst [vmem:[%s6251_s3 + $0xbf0] sm:$0xff] %v1464_v54  ;;  %1977 = vst [vmem:[%s6251_s3 + $0xbf8] sm:$0xff] %v1465_v55 }
 0x394   :  { %v1474_v37 = vadd.f32 %v2153_v14, %v940_v24  ;;  %v1475_v38 = vadd.f32 %v2157_v16, %v941_v25 }
 0x39a   :  { %v408_v2 = vld [vmem:[%s6250_s0 + $0xc50] sm:$0xff]  ;;  %v409_v3 = vld [vmem:[%s6250_s0 + $0xc58] sm:$0xff]  ;;  %v410_v4 = vld [vmem:[%s6250_s0 + $0xc60] sm:$0xff] }
 0x39b   :  { %v411_v9 = vld [vmem:[%s6250_s0 + $0xc68] sm:$0xff]  ;;  %v412_v10 = vld [vmem:[%s6250_s0 + $0xc70] sm:$0xff]  ;;  %v413_v11 = vld [vmem:[%s6250_s0 + $0xc78] sm:$0xff]  ;;  %v942_v26 = vmul.f32 %v2168_v20, %v408_v2  ;;  %v943_v27 = vmul.f32 %v2172_v22, %v409_v3  ;;  %v944_v30 = vmul.f32 %v2151_v13, %v410_v4 }
 0x39c   :  { %1978 = vst [vmem:[%s6251_s3 + $0xc00] sm:$0xff] %v1466_v5  ;;  %1979 = vst [vmem:[%s6251_s3 + $0xc08] sm:$0xff] %v1467_v6  ;;  %v945_v31 = vmul.f32 %v2155_v15, %v411_v9  ;;  %v946_v32 = vmul.f32 %v2168_v20, %v412_v10  ;;  %v947_v33 = vmul.f32 %v2172_v22, %v413_v11 }
 0x39d   :  { %1980 = vst [vmem:[%s6251_s3 + $0xc10] sm:$0xff] %v1468_v7  ;;  %1981 = vst [vmem:[%s6251_s3 + $0xc18] sm:$0xff] %v1469_v8  ;;  %v1476_v39 = vadd.f32 %v2170_v21, %v942_v26  ;;  %v1477_v40 = vadd.f32 %v2174_v23, %v943_v27  ;;  %v1478_v44 = vadd.f32 %v2153_v14, %v944_v30 }
 0x39e   :  { %v1479_v45 = vadd.f32 %v2157_v16, %v945_v31  ;;  %v1480_v46 = vadd.f32 %v2170_v21, %v946_v32  ;;  %v1481_v47 = vadd.f32 %v2174_v23, %v947_v33 }
 0x3a4   :  { %v414_v28 = vld [vmem:[%s6250_s0 + $0xc80] sm:$0xff]  ;;  %v415_v29 = vld [vmem:[%s6250_s0 + $0xc88] sm:$0xff] }
 0x3a5   :  { %1982 = vst [vmem:[%s6251_s3 + $0xc20] sm:$0xff] %v1470_v12  ;;  %1983 = vst [vmem:[%s6251_s3 + $0xc28] sm:$0xff] %v1471_v17  ;;  %v948_v48 = vmul.f32 %v2151_v13, %v414_v28  ;;  %v949_v49 = vmul.f32 %v2155_v15, %v415_v29 }
 0x3a6   :  { %1984 = vst [vmem:[%s6251_s3 + $0xc30] sm:$0xff] %v1472_v18  ;;  %1985 = vst [vmem:[%s6251_s3 + $0xc38] sm:$0xff] %v1473_v19 }
 0x3a7   :  { %v1482_v61 = vadd.f32 %v2153_v14, %v948_v48  ;;  %v1483_v62 = vadd.f32 %v2157_v16, %v949_v49 }
 0x3ad   :  { %v416_v34 = vld [vmem:[%s6250_s0 + $0xc90] sm:$0xff]  ;;  %v417_v35 = vld [vmem:[%s6250_s0 + $0xc98] sm:$0xff]  ;;  %v418_v36 = vld [vmem:[%s6250_s0 + $0xca0] sm:$0xff] }
 0x3ae   :  { %v419_v41 = vld [vmem:[%s6250_s0 + $0xca8] sm:$0xff]  ;;  %v420_v42 = vld [vmem:[%s6250_s0 + $0xcb0] sm:$0xff]  ;;  %v421_v43 = vld [vmem:[%s6250_s0 + $0xcb8] sm:$0xff]  ;;  %v950_v50 = vmul.f32 %v2168_v20, %v416_v34  ;;  %v951_v51 = vmul.f32 %v2172_v22, %v417_v35  ;;  %v952_v54 = vmul.f32 %v2151_v13, %v418_v36 }
 0x3af   :  { %1986 = vst [vmem:[%s6251_s3 + $0xc40] sm:$0xff] %v1474_v37  ;;  %1987 = vst [vmem:[%s6251_s3 + $0xc48] sm:$0xff] %v1475_v38  ;;  %v953_v55 = vmul.f32 %v2155_v15, %v419_v41  ;;  %v954_v56 = vmul.f32 %v2168_v20, %v420_v42  ;;  %v955_v57 = vmul.f32 %v2172_v22, %v421_v43 }
 0x3b0   :  { %1988 = vst [vmem:[%s6251_s3 + $0xc50] sm:$0xff] %v1476_v39  ;;  %1989 = vst [vmem:[%s6251_s3 + $0xc58] sm:$0xff] %v1477_v40  ;;  %v1484_v63 = vadd.f32 %v2170_v21, %v950_v50  ;;  %v1485_v0 = vadd.f32 %v2174_v23, %v951_v51  ;;  %v1486_v4 = vadd.f32 %v2153_v14, %v952_v54 }
 0x3b1   :  { %v1487_v5 = vadd.f32 %v2157_v16, %v953_v55  ;;  %v1488_v6 = vadd.f32 %v2170_v21, %v954_v56  ;;  %v1489_v7 = vadd.f32 %v2174_v23, %v955_v57 }
 0x3b7   :  { %v422_v52 = vld [vmem:[%s6250_s0 + $0xcc0] sm:$0xff]  ;;  %v423_v53 = vld [vmem:[%s6250_s0 + $0xcc8] sm:$0xff] }
 0x3b8   :  { %1990 = vst [vmem:[%s6251_s3 + $0xc60] sm:$0xff] %v1478_v44  ;;  %1991 = vst [vmem:[%s6251_s3 + $0xc68] sm:$0xff] %v1479_v45  ;;  %v956_v8 = vmul.f32 %v2151_v13, %v422_v52  ;;  %v957_v9 = vmul.f32 %v2155_v15, %v423_v53 }
 0x3b9   :  { %1992 = vst [vmem:[%s6251_s3 + $0xc70] sm:$0xff] %v1480_v46  ;;  %1993 = vst [vmem:[%s6251_s3 + $0xc78] sm:$0xff] %v1481_v47 }
 0x3ba   :  { %v1490_v29 = vadd.f32 %v2153_v14, %v956_v8  ;;  %v1491_v30 = vadd.f32 %v2157_v16, %v957_v9 }
 0x3c0   :  { %v424_v58 = vld [vmem:[%s6250_s0 + $0xcd0] sm:$0xff]  ;;  %v425_v59 = vld [vmem:[%s6250_s0 + $0xcd8] sm:$0xff]  ;;  %v426_v60 = vld [vmem:[%s6250_s0 + $0xce0] sm:$0xff] }
 0x3c1   :  { %v427_v1 = vld [vmem:[%s6250_s0 + $0xce8] sm:$0xff]  ;;  %v428_v2 = vld [vmem:[%s6250_s0 + $0xcf0] sm:$0xff]  ;;  %v429_v3 = vld [vmem:[%s6250_s0 + $0xcf8] sm:$0xff]  ;;  %v958_v10 = vmul.f32 %v2168_v20, %v424_v58  ;;  %v959_v11 = vmul.f32 %v2172_v22, %v425_v59  ;;  %v960_v18 = vmul.f32 %v2151_v13, %v426_v60 }
 0x3c2   :  { %1994 = vst [vmem:[%s6251_s3 + $0xc80] sm:$0xff] %v1482_v61  ;;  %1995 = vst [vmem:[%s6251_s3 + $0xc88] sm:$0xff] %v1483_v62  ;;  %v961_v19 = vmul.f32 %v2155_v15, %v427_v1  ;;  %v962_v24 = vmul.f32 %v2168_v20, %v428_v2  ;;  %v963_v25 = vmul.f32 %v2172_v22, %v429_v3 }
 0x3c3   :  { %1996 = vst [vmem:[%s6251_s3 + $0xc90] sm:$0xff] %v1484_v63  ;;  %1997 = vst [vmem:[%s6251_s3 + $0xc98] sm:$0xff] %v1485_v0  ;;  %v1492_v31 = vadd.f32 %v2170_v21, %v958_v10  ;;  %v1493_v32 = vadd.f32 %v2174_v23, %v959_v11  ;;  %v1494_v36 = vadd.f32 %v2153_v14, %v960_v18 }
 0x3c4   :  { %v1495_v37 = vadd.f32 %v2157_v16, %v961_v19  ;;  %v1496_v38 = vadd.f32 %v2170_v21, %v962_v24  ;;  %v1497_v39 = vadd.f32 %v2174_v23, %v963_v25 }
 0x3ca   :  { %v430_v12 = vld [vmem:[%s6250_s0 + $0xd00] sm:$0xff]  ;;  %v431_v17 = vld [vmem:[%s6250_s0 + $0xd08] sm:$0xff] }
 0x3cb   :  { %1998 = vst [vmem:[%s6251_s3 + $0xca0] sm:$0xff] %v1486_v4  ;;  %1999 = vst [vmem:[%s6251_s3 + $0xca8] sm:$0xff] %v1487_v5  ;;  %v964_v40 = vmul.f32 %v2151_v13, %v430_v12  ;;  %v965_v41 = vmul.f32 %v2155_v15, %v431_v17 }
 0x3cc   :  { %2000 = vst [vmem:[%s6251_s3 + $0xcb0] sm:$0xff] %v1488_v6  ;;  %2001 = vst [vmem:[%s6251_s3 + $0xcb8] sm:$0xff] %v1489_v7 }
 0x3cd   :  { %v1498_v53 = vadd.f32 %v2153_v14, %v964_v40  ;;  %v1499_v54 = vadd.f32 %v2157_v16, %v965_v41 }
 0x3d3   :  { %v432_v26 = vld [vmem:[%s6250_s0 + $0xd10] sm:$0xff]  ;;  %v433_v27 = vld [vmem:[%s6250_s0 + $0xd18] sm:$0xff]  ;;  %v434_v28 = vld [vmem:[%s6250_s0 + $0xd20] sm:$0xff] }
 0x3d4   :  { %v435_v33 = vld [vmem:[%s6250_s0 + $0xd28] sm:$0xff]  ;;  %v436_v34 = vld [vmem:[%s6250_s0 + $0xd30] sm:$0xff]  ;;  %v437_v35 = vld [vmem:[%s6250_s0 + $0xd38] sm:$0xff]  ;;  %v966_v42 = vmul.f32 %v2168_v20, %v432_v26  ;;  %v967_v43 = vmul.f32 %v2172_v22, %v433_v27  ;;  %v968_v46 = vmul.f32 %v2151_v13, %v434_v28 }
 0x3d5   :  { %2002 = vst [vmem:[%s6251_s3 + $0xcc0] sm:$0xff] %v1490_v29  ;;  %2003 = vst [vmem:[%s6251_s3 + $0xcc8] sm:$0xff] %v1491_v30  ;;  %v969_v47 = vmul.f32 %v2155_v15, %v435_v33  ;;  %v970_v48 = vmul.f32 %v2168_v20, %v436_v34  ;;  %v971_v49 = vmul.f32 %v2172_v22, %v437_v35 }
 0x3d6   :  { %2004 = vst [vmem:[%s6251_s3 + $0xcd0] sm:$0xff] %v1492_v31  ;;  %2005 = vst [vmem:[%s6251_s3 + $0xcd8] sm:$0xff] %v1493_v32  ;;  %v1500_v55 = vadd.f32 %v2170_v21, %v966_v42  ;;  %v1501_v56 = vadd.f32 %v2174_v23, %v967_v43  ;;  %v1502_v60 = vadd.f32 %v2153_v14, %v968_v46 }
 0x3d7   :  { %v1503_v61 = vadd.f32 %v2157_v16, %v969_v47  ;;  %v1504_v62 = vadd.f32 %v2170_v21, %v970_v48  ;;  %v1505_v63 = vadd.f32 %v2174_v23, %v971_v49 }
 0x3dd   :  { %v438_v44 = vld [vmem:[%s6250_s0 + $0xd40] sm:$0xff]  ;;  %v439_v45 = vld [vmem:[%s6250_s0 + $0xd48] sm:$0xff] }
 0x3de   :  { %2006 = vst [vmem:[%s6251_s3 + $0xce0] sm:$0xff] %v1494_v36  ;;  %2007 = vst [vmem:[%s6251_s3 + $0xce8] sm:$0xff] %v1495_v37  ;;  %v972_v0 = vmul.f32 %v2151_v13, %v438_v44  ;;  %v973_v1 = vmul.f32 %v2155_v15, %v439_v45 }
 0x3df   :  { %2008 = vst [vmem:[%s6251_s3 + $0xcf0] sm:$0xff] %v1496_v38  ;;  %2009 = vst [vmem:[%s6251_s3 + $0xcf8] sm:$0xff] %v1497_v39 }
 0x3e0   :  { %v1506_v17 = vadd.f32 %v2153_v14, %v972_v0  ;;  %v1507_v18 = vadd.f32 %v2157_v16, %v973_v1 }
 0x3e6   :  { %v440_v50 = vld [vmem:[%s6250_s0 + $0xd50] sm:$0xff]  ;;  %v441_v51 = vld [vmem:[%s6250_s0 + $0xd58] sm:$0xff]  ;;  %v442_v52 = vld [vmem:[%s6250_s0 + $0xd60] sm:$0xff] }
 0x3e7   :  { %v443_v57 = vld [vmem:[%s6250_s0 + $0xd68] sm:$0xff]  ;;  %v444_v58 = vld [vmem:[%s6250_s0 + $0xd70] sm:$0xff]  ;;  %v445_v59 = vld [vmem:[%s6250_s0 + $0xd78] sm:$0xff]  ;;  %v974_v2 = vmul.f32 %v2168_v20, %v440_v50  ;;  %v975_v3 = vmul.f32 %v2172_v22, %v441_v51  ;;  %v976_v6 = vmul.f32 %v2151_v13, %v442_v52 }
 0x3e8   :  { %2010 = vst [vmem:[%s6251_s3 + $0xd00] sm:$0xff] %v1498_v53  ;;  %2011 = vst [vmem:[%s6251_s3 + $0xd08] sm:$0xff] %v1499_v54  ;;  %v977_v7 = vmul.f32 %v2155_v15, %v443_v57  ;;  %v978_v8 = vmul.f32 %v2168_v20, %v444_v58  ;;  %v979_v9 = vmul.f32 %v2172_v22, %v445_v59 }
 0x3e9   :  { %2012 = vst [vmem:[%s6251_s3 + $0xd10] sm:$0xff] %v1500_v55  ;;  %2013 = vst [vmem:[%s6251_s3 + $0xd18] sm:$0xff] %v1501_v56  ;;  %v1508_v19 = vadd.f32 %v2170_v21, %v974_v2  ;;  %v1509_v24 = vadd.f32 %v2174_v23, %v975_v3  ;;  %v1510_v28 = vadd.f32 %v2153_v14, %v976_v6 }
 0x3ea   :  { %v1511_v29 = vadd.f32 %v2157_v16, %v977_v7  ;;  %v1512_v30 = vadd.f32 %v2170_v21, %v978_v8  ;;  %v1513_v31 = vadd.f32 %v2174_v23, %v979_v9 }
 0x3f0   :  { %v446_v4 = vld [vmem:[%s6250_s0 + $0xd80] sm:$0xff]  ;;  %v447_v5 = vld [vmem:[%s6250_s0 + $0xd88] sm:$0xff] }
 0x3f1   :  { %2014 = vst [vmem:[%s6251_s3 + $0xd20] sm:$0xff] %v1502_v60  ;;  %2015 = vst [vmem:[%s6251_s3 + $0xd28] sm:$0xff] %v1503_v61  ;;  %v980_v32 = vmul.f32 %v2151_v13, %v446_v4  ;;  %v981_v33 = vmul.f32 %v2155_v15, %v447_v5 }
 0x3f2   :  { %2016 = vst [vmem:[%s6251_s3 + $0xd30] sm:$0xff] %v1504_v62  ;;  %2017 = vst [vmem:[%s6251_s3 + $0xd38] sm:$0xff] %v1505_v63 }
 0x3f3   :  { %v1514_v45 = vadd.f32 %v2153_v14, %v980_v32  ;;  %v1515_v46 = vadd.f32 %v2157_v16, %v981_v33 }
 0x3f9   :  { %v448_v10 = vld [vmem:[%s6250_s0 + $0xd90] sm:$0xff]  ;;  %v449_v11 = vld [vmem:[%s6250_s0 + $0xd98] sm:$0xff]  ;;  %v450_v12 = vld [vmem:[%s6250_s0 + $0xda0] sm:$0xff] }
 0x3fa   :  { %v451_v25 = vld [vmem:[%s6250_s0 + $0xda8] sm:$0xff]  ;;  %v452_v26 = vld [vmem:[%s6250_s0 + $0xdb0] sm:$0xff]  ;;  %v453_v27 = vld [vmem:[%s6250_s0 + $0xdb8] sm:$0xff]  ;;  %v982_v34 = vmul.f32 %v2168_v20, %v448_v10  ;;  %v983_v35 = vmul.f32 %v2172_v22, %v449_v11  ;;  %v984_v38 = vmul.f32 %v2151_v13, %v450_v12 }
 0x3fb   :  { %2018 = vst [vmem:[%s6251_s3 + $0xd40] sm:$0xff] %v1506_v17  ;;  %2019 = vst [vmem:[%s6251_s3 + $0xd48] sm:$0xff] %v1507_v18  ;;  %v985_v39 = vmul.f32 %v2155_v15, %v451_v25  ;;  %v986_v40 = vmul.f32 %v2168_v20, %v452_v26  ;;  %v987_v41 = vmul.f32 %v2172_v22, %v453_v27 }
 0x3fc   :  { %2020 = vst [vmem:[%s6251_s3 + $0xd50] sm:$0xff] %v1508_v19  ;;  %2021 = vst [vmem:[%s6251_s3 + $0xd58] sm:$0xff] %v1509_v24  ;;  %v1516_v47 = vadd.f32 %v2170_v21, %v982_v34  ;;  %v1517_v48 = vadd.f32 %v2174_v23, %v983_v35  ;;  %v1518_v52 = vadd.f32 %v2153_v14, %v984_v38 }
 0x3fd   :  { %v1519_v53 = vadd.f32 %v2157_v16, %v985_v39  ;;  %v1520_v54 = vadd.f32 %v2170_v21, %v986_v40  ;;  %v1521_v55 = vadd.f32 %v2174_v23, %v987_v41 }
 0x403   :  { %v454_v36 = vld [vmem:[%s6250_s0 + $0xdc0] sm:$0xff]  ;;  %v455_v37 = vld [vmem:[%s6250_s0 + $0xdc8] sm:$0xff] }
 0x404   :  { %2022 = vst [vmem:[%s6251_s3 + $0xd60] sm:$0xff] %v1510_v28  ;;  %2023 = vst [vmem:[%s6251_s3 + $0xd68] sm:$0xff] %v1511_v29  ;;  %v988_v56 = vmul.f32 %v2151_v13, %v454_v36  ;;  %v989_v57 = vmul.f32 %v2155_v15, %v455_v37 }
 0x405   :  { %2024 = vst [vmem:[%s6251_s3 + $0xd70] sm:$0xff] %v1512_v30  ;;  %2025 = vst [vmem:[%s6251_s3 + $0xd78] sm:$0xff] %v1513_v31 }
 0x406   :  { %v1522_v5 = vadd.f32 %v2153_v14, %v988_v56  ;;  %v1523_v6 = vadd.f32 %v2157_v16, %v989_v57 }
 0x40c   :  { %v456_v42 = vld [vmem:[%s6250_s0 + $0xdd0] sm:$0xff]  ;;  %v457_v43 = vld [vmem:[%s6250_s0 + $0xdd8] sm:$0xff]  ;;  %v458_v44 = vld [vmem:[%s6250_s0 + $0xde0] sm:$0xff] }
 0x40d   :  { %v459_v49 = vld [vmem:[%s6250_s0 + $0xde8] sm:$0xff]  ;;  %v460_v50 = vld [vmem:[%s6250_s0 + $0xdf0] sm:$0xff]  ;;  %v461_v51 = vld [vmem:[%s6250_s0 + $0xdf8] sm:$0xff]  ;;  %v990_v58 = vmul.f32 %v2168_v20, %v456_v42  ;;  %v991_v59 = vmul.f32 %v2172_v22, %v457_v43  ;;  %v992_v62 = vmul.f32 %v2151_v13, %v458_v44 }
 0x40e   :  { %2026 = vst [vmem:[%s6251_s3 + $0xd80] sm:$0xff] %v1514_v45  ;;  %2027 = vst [vmem:[%s6251_s3 + $0xd88] sm:$0xff] %v1515_v46  ;;  %v993_v63 = vmul.f32 %v2155_v15, %v459_v49  ;;  %v994_v0 = vmul.f32 %v2168_v20, %v460_v50  ;;  %v995_v1 = vmul.f32 %v2172_v22, %v461_v51 }
 0x40f   :  { %2028 = vst [vmem:[%s6251_s3 + $0xd90] sm:$0xff] %v1516_v47  ;;  %2029 = vst [vmem:[%s6251_s3 + $0xd98] sm:$0xff] %v1517_v48  ;;  %v1524_v7 = vadd.f32 %v2170_v21, %v990_v58  ;;  %v1525_v8 = vadd.f32 %v2174_v23, %v991_v59  ;;  %v1526_v12 = vadd.f32 %v2153_v14, %v992_v62 }
 0x410   :  { %v1527_v17 = vadd.f32 %v2157_v16, %v993_v63  ;;  %v1528_v18 = vadd.f32 %v2170_v21, %v994_v0  ;;  %v1529_v19 = vadd.f32 %v2174_v23, %v995_v1 }
 0x416   :  { %v462_v60 = vld [vmem:[%s6250_s0 + $0xe00] sm:$0xff]  ;;  %v463_v61 = vld [vmem:[%s6250_s0 + $0xe08] sm:$0xff] }
 0x417   :  { %2030 = vst [vmem:[%s6251_s3 + $0xda0] sm:$0xff] %v1518_v52  ;;  %2031 = vst [vmem:[%s6251_s3 + $0xda8] sm:$0xff] %v1519_v53  ;;  %v996_v24 = vmul.f32 %v2151_v13, %v462_v60  ;;  %v997_v25 = vmul.f32 %v2155_v15, %v463_v61 }
 0x418   :  { %2032 = vst [vmem:[%s6251_s3 + $0xdb0] sm:$0xff] %v1520_v54  ;;  %2033 = vst [vmem:[%s6251_s3 + $0xdb8] sm:$0xff] %v1521_v55 }
 0x419   :  { %v1530_v37 = vadd.f32 %v2153_v14, %v996_v24  ;;  %v1531_v38 = vadd.f32 %v2157_v16, %v997_v25 }
 0x41f   :  { %v464_v2 = vld [vmem:[%s6250_s0 + $0xe10] sm:$0xff]  ;;  %v465_v3 = vld [vmem:[%s6250_s0 + $0xe18] sm:$0xff]  ;;  %v466_v4 = vld [vmem:[%s6250_s0 + $0xe20] sm:$0xff] }
 0x420   :  { %v467_v9 = vld [vmem:[%s6250_s0 + $0xe28] sm:$0xff]  ;;  %v468_v10 = vld [vmem:[%s6250_s0 + $0xe30] sm:$0xff]  ;;  %v469_v11 = vld [vmem:[%s6250_s0 + $0xe38] sm:$0xff]  ;;  %v998_v26 = vmul.f32 %v2168_v20, %v464_v2  ;;  %v999_v27 = vmul.f32 %v2172_v22, %v465_v3  ;;  %v1000_v30 = vmul.f32 %v2151_v13, %v466_v4 }
 0x421   :  { %2034 = vst [vmem:[%s6251_s3 + $0xdc0] sm:$0xff] %v1522_v5  ;;  %2035 = vst [vmem:[%s6251_s3 + $0xdc8] sm:$0xff] %v1523_v6  ;;  %v1001_v31 = vmul.f32 %v2155_v15, %v467_v9  ;;  %v1002_v32 = vmul.f32 %v2168_v20, %v468_v10  ;;  %v1003_v33 = vmul.f32 %v2172_v22, %v469_v11 }
 0x422   :  { %2036 = vst [vmem:[%s6251_s3 + $0xdd0] sm:$0xff] %v1524_v7  ;;  %2037 = vst [vmem:[%s6251_s3 + $0xdd8] sm:$0xff] %v1525_v8  ;;  %v1532_v39 = vadd.f32 %v2170_v21, %v998_v26  ;;  %v1533_v40 = vadd.f32 %v2174_v23, %v999_v27  ;;  %v1534_v44 = vadd.f32 %v2153_v14, %v1000_v30 }
 0x423   :  { %v1535_v45 = vadd.f32 %v2157_v16, %v1001_v31  ;;  %v1536_v46 = vadd.f32 %v2170_v21, %v1002_v32  ;;  %v1537_v47 = vadd.f32 %v2174_v23, %v1003_v33 }
 0x429   :  { %v470_v28 = vld [vmem:[%s6250_s0 + $0xe40] sm:$0xff]  ;;  %v471_v29 = vld [vmem:[%s6250_s0 + $0xe48] sm:$0xff] }
 0x42a   :  { %2038 = vst [vmem:[%s6251_s3 + $0xde0] sm:$0xff] %v1526_v12  ;;  %2039 = vst [vmem:[%s6251_s3 + $0xde8] sm:$0xff] %v1527_v17  ;;  %v1004_v48 = vmul.f32 %v2151_v13, %v470_v28  ;;  %v1005_v49 = vmul.f32 %v2155_v15, %v471_v29 }
 0x42b   :  { %2040 = vst [vmem:[%s6251_s3 + $0xdf0] sm:$0xff] %v1528_v18  ;;  %2041 = vst [vmem:[%s6251_s3 + $0xdf8] sm:$0xff] %v1529_v19 }
 0x42c   :  { %v1538_v61 = vadd.f32 %v2153_v14, %v1004_v48  ;;  %v1539_v62 = vadd.f32 %v2157_v16, %v1005_v49 }
 0x432   :  { %v472_v34 = vld [vmem:[%s6250_s0 + $0xe50] sm:$0xff]  ;;  %v473_v35 = vld [vmem:[%s6250_s0 + $0xe58] sm:$0xff]  ;;  %v474_v36 = vld [vmem:[%s6250_s0 + $0xe60] sm:$0xff] }
 0x433   :  { %v475_v41 = vld [vmem:[%s6250_s0 + $0xe68] sm:$0xff]  ;;  %v476_v42 = vld [vmem:[%s6250_s0 + $0xe70] sm:$0xff]  ;;  %v477_v43 = vld [vmem:[%s6250_s0 + $0xe78] sm:$0xff]  ;;  %v1006_v50 = vmul.f32 %v2168_v20, %v472_v34  ;;  %v1007_v51 = vmul.f32 %v2172_v22, %v473_v35  ;;  %v1008_v54 = vmul.f32 %v2151_v13, %v474_v36 }
 0x434   :  { %2042 = vst [vmem:[%s6251_s3 + $0xe00] sm:$0xff] %v1530_v37  ;;  %2043 = vst [vmem:[%s6251_s3 + $0xe08] sm:$0xff] %v1531_v38  ;;  %v1009_v55 = vmul.f32 %v2155_v15, %v475_v41  ;;  %v1010_v56 = vmul.f32 %v2168_v20, %v476_v42  ;;  %v1011_v57 = vmul.f32 %v2172_v22, %v477_v43 }
 0x435   :  { %2044 = vst [vmem:[%s6251_s3 + $0xe10] sm:$0xff] %v1532_v39  ;;  %2045 = vst [vmem:[%s6251_s3 + $0xe18] sm:$0xff] %v1533_v40  ;;  %v1540_v63 = vadd.f32 %v2170_v21, %v1006_v50  ;;  %v1541_v0 = vadd.f32 %v2174_v23, %v1007_v51  ;;  %v1542_v4 = vadd.f32 %v2153_v14, %v1008_v54 }
 0x436   :  { %v1543_v5 = vadd.f32 %v2157_v16, %v1009_v55  ;;  %v1544_v6 = vadd.f32 %v2170_v21, %v1010_v56  ;;  %v1545_v7 = vadd.f32 %v2174_v23, %v1011_v57 }
 0x43c   :  { %v478_v52 = vld [vmem:[%s6250_s0 + $0xe80] sm:$0xff]  ;;  %v479_v53 = vld [vmem:[%s6250_s0 + $0xe88] sm:$0xff] }
 0x43d   :  { %2046 = vst [vmem:[%s6251_s3 + $0xe20] sm:$0xff] %v1534_v44  ;;  %2047 = vst [vmem:[%s6251_s3 + $0xe28] sm:$0xff] %v1535_v45  ;;  %v1012_v8 = vmul.f32 %v2151_v13, %v478_v52  ;;  %v1013_v9 = vmul.f32 %v2155_v15, %v479_v53 }
 0x43e   :  { %2048 = vst [vmem:[%s6251_s3 + $0xe30] sm:$0xff] %v1536_v46  ;;  %2049 = vst [vmem:[%s6251_s3 + $0xe38] sm:$0xff] %v1537_v47 }
 0x43f   :  { %v1546_v29 = vadd.f32 %v2153_v14, %v1012_v8  ;;  %v1547_v30 = vadd.f32 %v2157_v16, %v1013_v9 }
 0x445   :  { %v480_v58 = vld [vmem:[%s6250_s0 + $0xe90] sm:$0xff]  ;;  %v481_v59 = vld [vmem:[%s6250_s0 + $0xe98] sm:$0xff]  ;;  %v482_v60 = vld [vmem:[%s6250_s0 + $0xea0] sm:$0xff] }
 0x446   :  { %v483_v1 = vld [vmem:[%s6250_s0 + $0xea8] sm:$0xff]  ;;  %v484_v2 = vld [vmem:[%s6250_s0 + $0xeb0] sm:$0xff]  ;;  %v485_v3 = vld [vmem:[%s6250_s0 + $0xeb8] sm:$0xff]  ;;  %v1014_v10 = vmul.f32 %v2168_v20, %v480_v58  ;;  %v1015_v11 = vmul.f32 %v2172_v22, %v481_v59  ;;  %v1016_v18 = vmul.f32 %v2151_v13, %v482_v60 }
 0x447   :  { %2050 = vst [vmem:[%s6251_s3 + $0xe40] sm:$0xff] %v1538_v61  ;;  %2051 = vst [vmem:[%s6251_s3 + $0xe48] sm:$0xff] %v1539_v62  ;;  %v1017_v19 = vmul.f32 %v2155_v15, %v483_v1  ;;  %v1018_v24 = vmul.f32 %v2168_v20, %v484_v2  ;;  %v1019_v25 = vmul.f32 %v2172_v22, %v485_v3 }
 0x448   :  { %2052 = vst [vmem:[%s6251_s3 + $0xe50] sm:$0xff] %v1540_v63  ;;  %2053 = vst [vmem:[%s6251_s3 + $0xe58] sm:$0xff] %v1541_v0  ;;  %v1548_v31 = vadd.f32 %v2170_v21, %v1014_v10  ;;  %v1549_v32 = vadd.f32 %v2174_v23, %v1015_v11  ;;  %v1550_v36 = vadd.f32 %v2153_v14, %v1016_v18 }
 0x449   :  { %v1551_v37 = vadd.f32 %v2157_v16, %v1017_v19  ;;  %v1552_v38 = vadd.f32 %v2170_v21, %v1018_v24  ;;  %v1553_v39 = vadd.f32 %v2174_v23, %v1019_v25 }
 0x44f   :  { %v486_v12 = vld [vmem:[%s6250_s0 + $0xec0] sm:$0xff]  ;;  %v487_v17 = vld [vmem:[%s6250_s0 + $0xec8] sm:$0xff] }
 0x450   :  { %2054 = vst [vmem:[%s6251_s3 + $0xe60] sm:$0xff] %v1542_v4  ;;  %2055 = vst [vmem:[%s6251_s3 + $0xe68] sm:$0xff] %v1543_v5  ;;  %v1020_v40 = vmul.f32 %v2151_v13, %v486_v12  ;;  %v1021_v41 = vmul.f32 %v2155_v15, %v487_v17 }
 0x451   :  { %2056 = vst [vmem:[%s6251_s3 + $0xe70] sm:$0xff] %v1544_v6  ;;  %2057 = vst [vmem:[%s6251_s3 + $0xe78] sm:$0xff] %v1545_v7 }
 0x452   :  { %v1554_v53 = vadd.f32 %v2153_v14, %v1020_v40  ;;  %v1555_v54 = vadd.f32 %v2157_v16, %v1021_v41 }
 0x458   :  { %v488_v26 = vld [vmem:[%s6250_s0 + $0xed0] sm:$0xff]  ;;  %v489_v27 = vld [vmem:[%s6250_s0 + $0xed8] sm:$0xff]  ;;  %v490_v28 = vld [vmem:[%s6250_s0 + $0xee0] sm:$0xff] }
 0x459   :  { %v491_v33 = vld [vmem:[%s6250_s0 + $0xee8] sm:$0xff]  ;;  %v492_v34 = vld [vmem:[%s6250_s0 + $0xef0] sm:$0xff]  ;;  %v493_v35 = vld [vmem:[%s6250_s0 + $0xef8] sm:$0xff]  ;;  %v1022_v42 = vmul.f32 %v2168_v20, %v488_v26  ;;  %v1023_v43 = vmul.f32 %v2172_v22, %v489_v27  ;;  %v1024_v46 = vmul.f32 %v2151_v13, %v490_v28 }
 0x45a   :  { %2058 = vst [vmem:[%s6251_s3 + $0xe80] sm:$0xff] %v1546_v29  ;;  %2059 = vst [vmem:[%s6251_s3 + $0xe88] sm:$0xff] %v1547_v30  ;;  %v1025_v47 = vmul.f32 %v2155_v15, %v491_v33  ;;  %v1026_v48 = vmul.f32 %v2168_v20, %v492_v34  ;;  %v1027_v49 = vmul.f32 %v2172_v22, %v493_v35 }
 0x45b   :  { %2060 = vst [vmem:[%s6251_s3 + $0xe90] sm:$0xff] %v1548_v31  ;;  %2061 = vst [vmem:[%s6251_s3 + $0xe98] sm:$0xff] %v1549_v32  ;;  %v1556_v55 = vadd.f32 %v2170_v21, %v1022_v42  ;;  %v1557_v56 = vadd.f32 %v2174_v23, %v1023_v43  ;;  %v1558_v60 = vadd.f32 %v2153_v14, %v1024_v46 }
 0x45c   :  { %v1559_v61 = vadd.f32 %v2157_v16, %v1025_v47  ;;  %v1560_v62 = vadd.f32 %v2170_v21, %v1026_v48  ;;  %v1561_v63 = vadd.f32 %v2174_v23, %v1027_v49 }
 0x462   :  { %v494_v44 = vld [vmem:[%s6250_s0 + $0xf00] sm:$0xff]  ;;  %v495_v45 = vld [vmem:[%s6250_s0 + $0xf08] sm:$0xff] }
 0x463   :  { %2062 = vst [vmem:[%s6251_s3 + $0xea0] sm:$0xff] %v1550_v36  ;;  %2063 = vst [vmem:[%s6251_s3 + $0xea8] sm:$0xff] %v1551_v37  ;;  %v1028_v0 = vmul.f32 %v2151_v13, %v494_v44  ;;  %v1029_v1 = vmul.f32 %v2155_v15, %v495_v45 }
 0x464   :  { %2064 = vst [vmem:[%s6251_s3 + $0xeb0] sm:$0xff] %v1552_v38  ;;  %2065 = vst [vmem:[%s6251_s3 + $0xeb8] sm:$0xff] %v1553_v39 }
 0x465   :  { %v1562_v17 = vadd.f32 %v2153_v14, %v1028_v0  ;;  %v1563_v18 = vadd.f32 %v2157_v16, %v1029_v1 }
 0x46b   :  { %v496_v50 = vld [vmem:[%s6250_s0 + $0xf10] sm:$0xff]  ;;  %v497_v51 = vld [vmem:[%s6250_s0 + $0xf18] sm:$0xff]  ;;  %v498_v52 = vld [vmem:[%s6250_s0 + $0xf20] sm:$0xff] }
 0x46c   :  { %v499_v57 = vld [vmem:[%s6250_s0 + $0xf28] sm:$0xff]  ;;  %v500_v58 = vld [vmem:[%s6250_s0 + $0xf30] sm:$0xff]  ;;  %v501_v59 = vld [vmem:[%s6250_s0 + $0xf38] sm:$0xff]  ;;  %v1030_v2 = vmul.f32 %v2168_v20, %v496_v50  ;;  %v1031_v3 = vmul.f32 %v2172_v22, %v497_v51  ;;  %v1032_v6 = vmul.f32 %v2151_v13, %v498_v52 }
 0x46d   :  { %2066 = vst [vmem:[%s6251_s3 + $0xec0] sm:$0xff] %v1554_v53  ;;  %2067 = vst [vmem:[%s6251_s3 + $0xec8] sm:$0xff] %v1555_v54  ;;  %v1033_v7 = vmul.f32 %v2155_v15, %v499_v57  ;;  %v1034_v8 = vmul.f32 %v2168_v20, %v500_v58  ;;  %v1035_v9 = vmul.f32 %v2172_v22, %v501_v59 }
 0x46e   :  { %2068 = vst [vmem:[%s6251_s3 + $0xed0] sm:$0xff] %v1556_v55  ;;  %2069 = vst [vmem:[%s6251_s3 + $0xed8] sm:$0xff] %v1557_v56  ;;  %v1564_v19 = vadd.f32 %v2170_v21, %v1030_v2  ;;  %v1565_v24 = vadd.f32 %v2174_v23, %v1031_v3  ;;  %v1566_v28 = vadd.f32 %v2153_v14, %v1032_v6 }
 0x46f   :  { %v1567_v29 = vadd.f32 %v2157_v16, %v1033_v7  ;;  %v1568_v30 = vadd.f32 %v2170_v21, %v1034_v8  ;;  %v1569_v31 = vadd.f32 %v2174_v23, %v1035_v9 }
 0x475   :  { %v502_v4 = vld [vmem:[%s6250_s0 + $0xf40] sm:$0xff]  ;;  %v503_v5 = vld [vmem:[%s6250_s0 + $0xf48] sm:$0xff] }
 0x476   :  { %2070 = vst [vmem:[%s6251_s3 + $0xee0] sm:$0xff] %v1558_v60  ;;  %2071 = vst [vmem:[%s6251_s3 + $0xee8] sm:$0xff] %v1559_v61  ;;  %v1036_v32 = vmul.f32 %v2151_v13, %v502_v4  ;;  %v1037_v33 = vmul.f32 %v2155_v15, %v503_v5 }
 0x477   :  { %2072 = vst [vmem:[%s6251_s3 + $0xef0] sm:$0xff] %v1560_v62  ;;  %2073 = vst [vmem:[%s6251_s3 + $0xef8] sm:$0xff] %v1561_v63 }
 0x478   :  { %v1570_v45 = vadd.f32 %v2153_v14, %v1036_v32  ;;  %v1571_v46 = vadd.f32 %v2157_v16, %v1037_v33 }
 0x47e   :  { %v504_v10 = vld [vmem:[%s6250_s0 + $0xf50] sm:$0xff]  ;;  %v505_v11 = vld [vmem:[%s6250_s0 + $0xf58] sm:$0xff]  ;;  %v506_v12 = vld [vmem:[%s6250_s0 + $0xf60] sm:$0xff] }
 0x47f   :  { %v507_v25 = vld [vmem:[%s6250_s0 + $0xf68] sm:$0xff]  ;;  %v508_v26 = vld [vmem:[%s6250_s0 + $0xf70] sm:$0xff]  ;;  %v509_v27 = vld [vmem:[%s6250_s0 + $0xf78] sm:$0xff]  ;;  %v1038_v34 = vmul.f32 %v2168_v20, %v504_v10  ;;  %v1039_v35 = vmul.f32 %v2172_v22, %v505_v11  ;;  %v1040_v38 = vmul.f32 %v2151_v13, %v506_v12 }
 0x480   :  { %2074 = vst [vmem:[%s6251_s3 + $0xf00] sm:$0xff] %v1562_v17  ;;  %2075 = vst [vmem:[%s6251_s3 + $0xf08] sm:$0xff] %v1563_v18  ;;  %v1041_v39 = vmul.f32 %v2155_v15, %v507_v25  ;;  %v1042_v40 = vmul.f32 %v2168_v20, %v508_v26  ;;  %v1043_v41 = vmul.f32 %v2172_v22, %v509_v27 }
 0x481   :  { %2076 = vst [vmem:[%s6251_s3 + $0xf10] sm:$0xff] %v1564_v19  ;;  %2077 = vst [vmem:[%s6251_s3 + $0xf18] sm:$0xff] %v1565_v24  ;;  %v1572_v47 = vadd.f32 %v2170_v21, %v1038_v34  ;;  %v1573_v48 = vadd.f32 %v2174_v23, %v1039_v35  ;;  %v1574_v52 = vadd.f32 %v2153_v14, %v1040_v38 }
 0x482   :  { %v1575_v53 = vadd.f32 %v2157_v16, %v1041_v39  ;;  %v1576_v54 = vadd.f32 %v2170_v21, %v1042_v40  ;;  %v1577_v55 = vadd.f32 %v2174_v23, %v1043_v41 }
 0x488   :  { %v510_v36 = vld [vmem:[%s6250_s0 + $0xf80] sm:$0xff]  ;;  %v511_v37 = vld [vmem:[%s6250_s0 + $0xf88] sm:$0xff] }
 0x489   :  { %2078 = vst [vmem:[%s6251_s3 + $0xf20] sm:$0xff] %v1566_v28  ;;  %2079 = vst [vmem:[%s6251_s3 + $0xf28] sm:$0xff] %v1567_v29  ;;  %v1044_v56 = vmul.f32 %v2151_v13, %v510_v36  ;;  %v1045_v57 = vmul.f32 %v2155_v15, %v511_v37 }
 0x48a   :  { %2080 = vst [vmem:[%s6251_s3 + $0xf30] sm:$0xff] %v1568_v30  ;;  %2081 = vst [vmem:[%s6251_s3 + $0xf38] sm:$0xff] %v1569_v31 }
 0x48b   :  { %v1578_v5 = vadd.f32 %v2153_v14, %v1044_v56  ;;  %v1579_v6 = vadd.f32 %v2157_v16, %v1045_v57 }
 0x491   :  { %v512_v42 = vld [vmem:[%s6250_s0 + $0xf90] sm:$0xff]  ;;  %v513_v43 = vld [vmem:[%s6250_s0 + $0xf98] sm:$0xff]  ;;  %v514_v44 = vld [vmem:[%s6250_s0 + $0xfa0] sm:$0xff] }
 0x492   :  { %v515_v49 = vld [vmem:[%s6250_s0 + $0xfa8] sm:$0xff]  ;;  %v516_v50 = vld [vmem:[%s6250_s0 + $0xfb0] sm:$0xff]  ;;  %v517_v51 = vld [vmem:[%s6250_s0 + $0xfb8] sm:$0xff]  ;;  %v1046_v58 = vmul.f32 %v2168_v20, %v512_v42  ;;  %v1047_v59 = vmul.f32 %v2172_v22, %v513_v43  ;;  %v1048_v62 = vmul.f32 %v2151_v13, %v514_v44 }
 0x493   :  { %2082 = vst [vmem:[%s6251_s3 + $0xf40] sm:$0xff] %v1570_v45  ;;  %2083 = vst [vmem:[%s6251_s3 + $0xf48] sm:$0xff] %v1571_v46  ;;  %v1049_v63 = vmul.f32 %v2155_v15, %v515_v49  ;;  %v1050_v0 = vmul.f32 %v2168_v20, %v516_v50  ;;  %v1051_v1 = vmul.f32 %v2172_v22, %v517_v51 }
 0x494   :  { %2084 = vst [vmem:[%s6251_s3 + $0xf50] sm:$0xff] %v1572_v47  ;;  %2085 = vst [vmem:[%s6251_s3 + $0xf58] sm:$0xff] %v1573_v48  ;;  %v1580_v7 = vadd.f32 %v2170_v21, %v1046_v58  ;;  %v1581_v8 = vadd.f32 %v2174_v23, %v1047_v59  ;;  %v1582_v12 = vadd.f32 %v2153_v14, %v1048_v62 }
 0x495   :  { %v1583_v17 = vadd.f32 %v2157_v16, %v1049_v63  ;;  %v1584_v18 = vadd.f32 %v2170_v21, %v1050_v0  ;;  %v1585_v19 = vadd.f32 %v2174_v23, %v1051_v1 }
 0x49b   :  { %v518_v60 = vld [vmem:[%s6250_s0 + $0xfc0] sm:$0xff]  ;;  %v519_v61 = vld [vmem:[%s6250_s0 + $0xfc8] sm:$0xff] }
 0x49c   :  { %2086 = vst [vmem:[%s6251_s3 + $0xf60] sm:$0xff] %v1574_v52  ;;  %2087 = vst [vmem:[%s6251_s3 + $0xf68] sm:$0xff] %v1575_v53  ;;  %v1052_v24 = vmul.f32 %v2151_v13, %v518_v60  ;;  %v1053_v25 = vmul.f32 %v2155_v15, %v519_v61 }
 0x49d   :  { %2088 = vst [vmem:[%s6251_s3 + $0xf70] sm:$0xff] %v1576_v54  ;;  %2089 = vst [vmem:[%s6251_s3 + $0xf78] sm:$0xff] %v1577_v55 }
 0x49e   :  { %v1586_v32 = vadd.f32 %v2153_v14, %v1052_v24  ;;  %v1587_v33 = vadd.f32 %v2157_v16, %v1053_v25 }
 0x4a4   :  { %v520_v2 = vld [vmem:[%s6250_s0 + $0xfd0] sm:$0xff]  ;;  %v521_v3 = vld [vmem:[%s6250_s0 + $0xfd8] sm:$0xff]  ;;  %v522_v4 = vld [vmem:[%s6250_s0 + $0xfe0] sm:$0xff] }
 0x4a5   :  { %v523_v9 = vld [vmem:[%s6250_s0 + $0xfe8] sm:$0xff]  ;;  %v524_v10 = vld [vmem:[%s6250_s0 + $0xff0] sm:$0xff]  ;;  %v525_v11 = vld [vmem:[%s6250_s0 + $0xff8] sm:$0xff]  ;;  %v1054_v26 = vmul.f32 %v2168_v20, %v520_v2  ;;  %v1055_v27 = vmul.f32 %v2172_v22, %v521_v3  ;;  %v1056_v28 = vmul.f32 %v2151_v13, %v522_v4 }
 0x4a6   :  { %2090 = vst [vmem:[%s6251_s3 + $0xf80] sm:$0xff] %v1578_v5  ;;  %2091 = vst [vmem:[%s6251_s3 + $0xf88] sm:$0xff] %v1579_v6  ;;  %v1057_v29 = vmul.f32 %v2155_v15, %v523_v9  ;;  %v1058_v30 = vmul.f32 %v2168_v20, %v524_v10  ;;  %v1059_v31 = vmul.f32 %v2172_v22, %v525_v11 }
 0x4a7   :  { %2092 = vst [vmem:[%s6251_s3 + $0xf90] sm:$0xff] %v1580_v7  ;;  %2093 = vst [vmem:[%s6251_s3 + $0xf98] sm:$0xff] %v1581_v8  ;;  %v1588_v34 = vadd.f32 %v2170_v21, %v1054_v26  ;;  %v1589_v35 = vadd.f32 %v2174_v23, %v1055_v27  ;;  %v1590_v36 = vadd.f32 %v2153_v14, %v1056_v28 }
 0x4a8   :  { %2094 = vst [vmem:[%s6251_s3 + $0xfa0] sm:$0xff] %v1582_v12  ;;  %2095 = vst [vmem:[%s6251_s3 + $0xfa8] sm:$0xff] %v1583_v17  ;;  %v1591_v37 = vadd.f32 %v2157_v16, %v1057_v29  ;;  %v1592_v13 = vadd.f32 %v2170_v21, %v1058_v30  ;;  %v1593_v15 = vadd.f32 %v2174_v23, %v1059_v31 }
 0x4a9   :  { %2096 = vst [vmem:[%s6251_s3 + $0xfb0] sm:$0xff] %v1584_v18  ;;  %2097 = vst [vmem:[%s6251_s3 + $0xfb8] sm:$0xff] %v1585_v19 }
 0x4aa   :  { %2098 = vst [vmem:[%s6251_s3 + $0xfc0] sm:$0xff] %v1586_v32  ;;  %2099 = vst [vmem:[%s6251_s3 + $0xfc8] sm:$0xff] %v1587_v33 }
 0x4ab   :  { %2100 = vst [vmem:[%s6251_s3 + $0xfd0] sm:$0xff] %v1588_v34  ;;  %2101 = vst [vmem:[%s6251_s3 + $0xfd8] sm:$0xff] %v1589_v35 }
 0x4ac   :  { %2102 = vst [vmem:[%s6251_s3 + $0xfe0] sm:$0xff] %v1590_v36  ;;  %2103 = vst [vmem:[%s6251_s3 + $0xfe8] sm:$0xff] %v1591_v37 }
 0x4ad   :  { %2104 = vst [vmem:[%s6251_s3 + $0xff0] sm:$0xff] %v1592_v13  ;;  %2105 = vst [vmem:[%s6251_s3 + $0xff8] sm:$0xff] %v1593_v15 }

// kernel: _lambda_.2
= control target key start
LH: loop header
LB: loop body
LE: loop exit
PB: predicated region body
PF: predicated region fallthrough
CT: control target
= control target key end

     0   :  { %v6405_v3 = vmov 0.0   ;;  %s11292_s2 = inlined_call_operand.vmem [shape: f32[128,512], index: 2, kind: input, shape index: {}]   ;;  %s11293_s4 = inlined_call_operand.vmem [shape: f32[128,128], index: 4, kind: input, shape index: {}]   ;;  %s11294_s0 = inlined_call_operand.vmem [shape: f32[32,16,128], index: 0, kind: input, shape index: {}]   ;;  %s11295_s3 = inlined_call_operand.vmem [shape: f32[1,512], index: 3, kind: input, shape index: {}]   ;;  %s11296_s6 = inlined_call_operand.vmem [shape: f32[32,2,16,512], index: 6, kind: output, shape index: {0}]   ;;  %s11297_s1 = inlined_call_operand.vmem [shape: f32[32,2,16,256], index: 1, kind: input, shape index: {}]   ;;  %s11298_s5 = inlined_call_operand.vmem [shape: f32[1,128], index: 5, kind: input, shape index: {}]   ;;  %s11299_s7 = inlined_call_operand.vmem [shape: f32[1,2,128], index: 7, kind: output, shape index: {1}]   ;;  %s11300_s8 = inlined_call_operand.vmem [shape: f32[1,2,128], index: 8, kind: output, shape index: {2}]  }
   0x1   :  { %v27_v0 = vld [vmem:[%s11292_s2 + $0x8] sm:$0xff]  ;;  %v29_v2 = vld [vmem:[%s11292_s2 + $0x18] sm:$0xff]  ;;  %240 = vmatprep.mubr.f32.mxu0 %v6405_v3  ;;  %689 = vmatprep.mubr.f32.mxu1 %v6405_v3  ;;  %v26_v6 = vld [vmem:[%s11292_s2] sm:$0xff] }
   0x2   :  { %v31_v1 = vld [vmem:[%s11292_s2 + $0x28] sm:$0xff]  ;;  %v33_v5 = vld [vmem:[%s11292_s2 + $0x38] sm:$0xff]  ;;  %v30_v7 = vld [vmem:[%s11292_s2 + $0x20] sm:$0xff] }
   0x3   :  { %v6273_v4 = vpack.c.bf16 %v31_v1, %v27_v0  ;;  %v6305_v8 = vpack.c.bf16 %v33_v5, %v29_v2  ;;  %v6275_v9 = vpack.c.bf16 %v30_v7, %v26_v6  ;;  %v28_v10 = vld [vmem:[%s11292_s2 + $0x10] sm:$0xff]  ;;  %v35_v12 = vld [vmem:[%s11292_s2 + $0x48] sm:$0xff]  ;;  %v37_v15 = vld [vmem:[%s11292_s2 + $0x58] sm:$0xff] }
   0x4   :  { %v32_v11 = vld [vmem:[%s11292_s2 + $0x30] sm:$0xff]  ;;  %v39_v14 = vld [vmem:[%s11292_s2 + $0x68] sm:$0xff]  ;;  %v41_v16 = vld [vmem:[%s11292_s2 + $0x78] sm:$0xff] }
   0x5   :  { %6274 = vmatprep.subr.bf16.mxu0 %v6273_v4  ;;  %v6307_v13 = vpack.c.bf16 %v32_v11, %v28_v10  ;;  %6306 = vmatprep.subr.bf16.mxu1 %v6305_v8  ;;  %v6277_v17 = vpack.c.bf16 %v39_v14, %v35_v12  ;;  %v6309_v18 = vpack.c.bf16 %v41_v16, %v37_v15  ;;  %v34_v19 = vld [vmem:[%s11292_s2 + $0x40] sm:$0xff]  ;;  %v36_v21 = vld [vmem:[%s11292_s2 + $0x50] sm:$0xff]  ;;  %v43_v24 = vld [vmem:[%s11292_s2 + $0x88] sm:$0xff] }
   0x6   :  { %6276 = vmatpush1.bf16.msra.mxu0 %v6275_v9  ;;  %v38_v20 = vld [vmem:[%s11292_s2 + $0x60] sm:$0xff]  ;;  %v40_v23 = vld [vmem:[%s11292_s2 + $0x70] sm:$0xff]  ;;  %v47_v25 = vld [vmem:[%s11292_s2 + $0xa8] sm:$0xff] }
   0x7   :  { %6308 = vmatpush1.bf16.msra.mxu1 %v6307_v13  ;;  %v6279_v22 = vpack.c.bf16 %v38_v20, %v34_v19  ;;  %6278 = vmatprep.subr.bf16.mxu0 %v6277_v17  ;;  %v6311_v26 = vpack.c.bf16 %v40_v23, %v36_v21  ;;  %v6281_v27 = vpack.c.bf16 %v47_v25, %v43_v24  ;;  %v45_v28 = vld [vmem:[%s11292_s2 + $0x98] sm:$0xff]  ;;  %v42_v30 = vld [vmem:[%s11292_s2 + $0x80] sm:$0xff]  ;;  %v44_v33 = vld [vmem:[%s11292_s2 + $0x90] sm:$0xff] }
   0x8   :  { %6310 = vmatprep.subr.bf16.mxu1 %v6309_v18  ;;  %v49_v29 = vld [vmem:[%s11292_s2 + $0xb8] sm:$0xff]  ;;  %v46_v32 = vld [vmem:[%s11292_s2 + $0xa0] sm:$0xff]  ;;  %v48_v34 = vld [vmem:[%s11292_s2 + $0xb0] sm:$0xff] }
   0x9   :  { %v6313_v31 = vpack.c.bf16 %v49_v29, %v45_v28  ;;  %v6283_v35 = vpack.c.bf16 %v46_v32, %v42_v30  ;;  %v51_v36 = vld [vmem:[%s11292_s2 + $0xc8] sm:$0xff]  ;;  %v53_v38 = vld [vmem:[%s11292_s2 + $0xd8] sm:$0xff]  ;;  %v6315_v39 = vpack.c.bf16 %v48_v34, %v44_v33  ;;  %v50_v42 = vld [vmem:[%s11292_s2 + $0xc0] sm:$0xff] }
   0xa   :  { %6280 = vmatpush1.bf16.msra.mxu0 %v6279_v22  ;;  %v55_v37 = vld [vmem:[%s11292_s2 + $0xe8] sm:$0xff]  ;;  %v57_v41 = vld [vmem:[%s11292_s2 + $0xf8] sm:$0xff]  ;;  %v54_v43 = vld [vmem:[%s11292_s2 + $0xe0] sm:$0xff] }
   0xb   :  { %6312 = vmatpush1.bf16.msra.mxu1 %v6311_v26  ;;  %6282 = vmatprep.subr.bf16.mxu0 %v6281_v27  ;;  %v6285_v40 = vpack.c.bf16 %v55_v37, %v51_v36  ;;  %v6317_v44 = vpack.c.bf16 %v57_v41, %v53_v38  ;;  %v52_v45 = vld [vmem:[%s11292_s2 + $0xd0] sm:$0xff]  ;;  %v59_v47 = vld [vmem:[%s11292_s2 + $0x108] sm:$0xff]  ;;  %v61_v49 = vld [vmem:[%s11292_s2 + $0x118] sm:$0xff]  ;;  %v6287_v51 = vpack.c.bf16 %v54_v43, %v50_v42 }
   0xc   :  { %6314 = vmatprep.subr.bf16.mxu1 %v6313_v31  ;;  %v56_v46 = vld [vmem:[%s11292_s2 + $0xf0] sm:$0xff]  ;;  %v63_v48 = vld [vmem:[%s11292_s2 + $0x128] sm:$0xff]  ;;  %v65_v50 = vld [vmem:[%s11292_s2 + $0x138] sm:$0xff] }
   0xd   :  { %v6319_v52 = vpack.c.bf16 %v56_v46, %v52_v45  ;;  %v6289_v53 = vpack.c.bf16 %v63_v48, %v59_v47  ;;  %v58_v54 = vld [vmem:[%s11292_s2 + $0x100] sm:$0xff]  ;;  %v60_v56 = vld [vmem:[%s11292_s2 + $0x110] sm:$0xff]  ;;  %v6321_v57 = vpack.c.bf16 %v65_v50, %v61_v49  ;;  %v67_v59 = vld [vmem:[%s11292_s2 + $0x148] sm:$0xff] }
   0xe   :  { %6284 = vmatpush1.bf16.msra.mxu0 %v6283_v35  ;;  %v62_v55 = vld [vmem:[%s11292_s2 + $0x120] sm:$0xff]  ;;  %v64_v58 = vld [vmem:[%s11292_s2 + $0x130] sm:$0xff]  ;;  %v71_v60 = vld [vmem:[%s11292_s2 + $0x168] sm:$0xff] }
   0xf   :  { %6316 = vmatpush1.bf16.msra.mxu1 %v6315_v39  ;;  %6286 = vmatprep.subr.bf16.mxu0 %v6285_v40  ;;  %v69_v61 = vld [vmem:[%s11292_s2 + $0x158] sm:$0xff]  ;;  %v6291_v63 = vpack.c.bf16 %v62_v55, %v58_v54  ;;  %v6323_v0 = vpack.c.bf16 %v64_v58, %v60_v56  ;;  %v6293_v1 = vpack.c.bf16 %v71_v60, %v67_v59  ;;  %v66_v2 = vld [vmem:[%s11292_s2 + $0x140] sm:$0xff]  ;;  %v68_v5 = vld [vmem:[%s11292_s2 + $0x150] sm:$0xff] }
  0x10   :  { %6318 = vmatprep.subr.bf16.mxu1 %v6317_v44  ;;  %v73_v62 = vld [vmem:[%s11292_s2 + $0x178] sm:$0xff]  ;;  %v70_v4 = vld [vmem:[%s11292_s2 + $0x160] sm:$0xff]  ;;  %v72_v7 = vld [vmem:[%s11292_s2 + $0x170] sm:$0xff] }
  0x11   :  { %v6325_v6 = vpack.c.bf16 %v73_v62, %v69_v61  ;;  %v75_v8 = vld [vmem:[%s11292_s2 + $0x188] sm:$0xff]  ;;  %v77_v10 = vld [vmem:[%s11292_s2 + $0x198] sm:$0xff]  ;;  %v6295_v12 = vpack.c.bf16 %v70_v4, %v66_v2  ;;  %v6327_v13 = vpack.c.bf16 %v72_v7, %v68_v5  ;;  %v74_v15 = vld [vmem:[%s11292_s2 + $0x180] sm:$0xff] }
  0x12   :  { %6288 = vmatpush1.bf16.msra.mxu0 %v6287_v51  ;;  %v79_v9 = vld [vmem:[%s11292_s2 + $0x1a8] sm:$0xff]  ;;  %v81_v11 = vld [vmem:[%s11292_s2 + $0x1b8] sm:$0xff]  ;;  %v78_v16 = vld [vmem:[%s11292_s2 + $0x1a0] sm:$0xff] }
  0x13   :  { %6320 = vmatpush1.bf16.msra.mxu1 %v6319_v52  ;;  %6290 = vmatprep.subr.bf16.mxu0 %v6289_v53  ;;  %v6297_v14 = vpack.c.bf16 %v79_v9, %v75_v8  ;;  %v76_v17 = vld [vmem:[%s11292_s2 + $0x190] sm:$0xff]  ;;  %v6329_v18 = vpack.c.bf16 %v81_v11, %v77_v10  ;;  %v83_v20 = vld [vmem:[%s11292_s2 + $0x1c8] sm:$0xff]  ;;  %v85_v22 = vld [vmem:[%s11292_s2 + $0x1d8] sm:$0xff]  ;;  %v6299_v24 = vpack.c.bf16 %v78_v16, %v74_v15 }
  0x14   :  { %6322 = vmatprep.subr.bf16.mxu1 %v6321_v57  ;;  %v80_v19 = vld [vmem:[%s11292_s2 + $0x1b0] sm:$0xff]  ;;  %v87_v21 = vld [vmem:[%s11292_s2 + $0x1e8] sm:$0xff]  ;;  %v89_v23 = vld [vmem:[%s11292_s2 + $0x1f8] sm:$0xff] }
  0x15   :  { %v6331_v25 = vpack.c.bf16 %v80_v19, %v76_v17  ;;  %v6301_v26 = vpack.c.bf16 %v87_v21, %v83_v20  ;;  %v82_v27 = vld [vmem:[%s11292_s2 + $0x1c0] sm:$0xff]  ;;  %v84_v29 = vld [vmem:[%s11292_s2 + $0x1d0] sm:$0xff]  ;;  %v6333_v30 = vpack.c.bf16 %v89_v23, %v85_v22  ;;  %v1587_v33 = vld [vmem:[%s11293_s4 + $0x8] sm:$0xff] }
  0x16   :  { %6292 = vmatpush1.bf16.msra.mxu0 %v6291_v63  ;;  %v86_v28 = vld [vmem:[%s11292_s2 + $0x1e0] sm:$0xff]  ;;  %v88_v31 = vld [vmem:[%s11292_s2 + $0x1f0] sm:$0xff]  ;;  %v1589_v38 = vld [vmem:[%s11293_s4 + $0x18] sm:$0xff] }
  0x17   :  { %6324 = vmatpush1.bf16.msra.mxu1 %v6323_v0  ;;  %6294 = vmatprep.subr.bf16.mxu0 %v6293_v1  ;;  %v1586_v32 = vld [vmem:[%s11293_s4] sm:$0xff]  ;;  %v6303_v34 = vpack.c.bf16 %v86_v28, %v82_v27  ;;  %v6335_v35 = vpack.c.bf16 %v88_v31, %v84_v29  ;;  %v1588_v37 = vld [vmem:[%s11293_s4 + $0x10] sm:$0xff]  ;;  %v1591_v42 = vld [vmem:[%s11293_s4 + $0x28] sm:$0xff] }
  0x18   :  { %6326 = vmatprep.subr.bf16.mxu1 %v6325_v6  ;;  %v6337_v36 = vpack.c.bf16 %v1587_v33, %v1586_v32  ;;  %v90_v39 = vld [vmem:[%s11294_s0] sm:$0xff]  ;;  %v6341_v40 = vpack.c.bf16 %v1589_v38, %v1588_v37  ;;  %v91_v43 = vld [vmem:[%s11294_s0 + $0x8] sm:$0xff]  ;;  %v1592_v45 = vld [vmem:[%s11293_s4 + $0x30] sm:$0xff] }
  0x19   :  { %v1590_v41 = vld [vmem:[%s11293_s4 + $0x20] sm:$0xff]  ;;  %v1593_v46 = vld [vmem:[%s11293_s4 + $0x38] sm:$0xff]  ;;  %v92_v47 = vld [vmem:[%s11294_s0 + $0x10] sm:$0xff] }
  0x1a   :  { %6296 = vmatpush1.bf16.msra.mxu0 %v6295_v12  ;;  %v6345_v44 = vpack.c.bf16 %v1591_v42, %v1590_v41  ;;  %v6349_v48 = vpack.c.bf16 %v1593_v46, %v1592_v45  ;;  %v1594_v49 = vld [vmem:[%s11293_s4 + $0x40] sm:$0xff]  ;;  %v1595_v50 = vld [vmem:[%s11293_s4 + $0x48] sm:$0xff]  ;;  %v93_v51 = vld [vmem:[%s11294_s0 + $0x18] sm:$0xff]  ;;  %v156_v45 = vlaneseq }
  0x1b   :  { %6328 = vmatpush1.bf16.msra.mxu1 %v6327_v13  ;;  %6298 = vmatprep.subr.bf16.mxu0 %v6297_v14  ;;  %v6353_v52 = vpack.c.bf16 %v1595_v50, %v1594_v49  ;;  %v94_v53 = vld [vmem:[%s11294_s0 + $0x20] sm:$0xff]  ;;  %v95_v54 = vld [vmem:[%s11294_s0 + $0x28] sm:$0xff]  ;;  %v96_v55 = vld [vmem:[%s11294_s0 + $0x30] sm:$0xff] }
  0x1c   :  { %6330 = vmatprep.subr.bf16.mxu1 %v6329_v18  ;;  %v97_v56 = vld [vmem:[%s11294_s0 + $0x38] sm:$0xff]  ;;  %v98_v57 = vld [vmem:[%s11294_s0 + $0x40] sm:$0xff]  ;;  %v99_v58 = vld [vmem:[%s11294_s0 + $0x48] sm:$0xff] }
  0x1d   :  { %v1596_v59 = vld [vmem:[%s11293_s4 + $0x50] sm:$0xff]  ;;  %v1597_v60 = vld [vmem:[%s11293_s4 + $0x58] sm:$0xff]  ;;  %v102_v0 = vld [vmem:[%s11294_s0 + $0x60] sm:$0xff] }
  0x1e   :  { %6300 = vmatpush1.bf16.msra.mxu0 %v6299_v24  ;;  %v6357_v61 = vpack.c.bf16 %v1597_v60, %v1596_v59  ;;  %v100_v62 = vld [vmem:[%s11294_s0 + $0x50] sm:$0xff]  ;;  %v101_v63 = vld [vmem:[%s11294_s0 + $0x58] sm:$0xff]  ;;  %v103_v1 = vld [vmem:[%s11294_s0 + $0x68] sm:$0xff] }
  0x1f   :  { %6332 = vmatpush1.bf16.msra.mxu1 %v6331_v25  ;;  %6302 = vmatprep.subr.bf16.mxu0 %v6301_v26  ;;  %v104_v2 = vld [vmem:[%s11294_s0 + $0x70] sm:$0xff]  ;;  %v105_v4 = vld [vmem:[%s11294_s0 + $0x78] sm:$0xff]  ;;  %v106_v5 = vld [vmem:[%s11294_s0 + $0x80] sm:$0xff] }
  0x20   :  { %6334 = vmatprep.subr.bf16.mxu1 %v6333_v30  ;;  %v107_v6 = vld [vmem:[%s11294_s0 + $0x88] sm:$0xff]  ;;  %v1598_v7 = vld [vmem:[%s11293_s4 + $0x60] sm:$0xff]  ;;  %v108_v10 = vld [vmem:[%s11294_s0 + $0x90] sm:$0xff] }
  0x21   :  { %v1599_v8 = vld [vmem:[%s11293_s4 + $0x68] sm:$0xff]  ;;  %v109_v11 = vld [vmem:[%s11294_s0 + $0x98] sm:$0xff]  ;;  %v110_v12 = vld [vmem:[%s11294_s0 + $0xa0] sm:$0xff] }
  0x22   :  { %6304 = vmatpush1.bf16.msra.mxu0 %v6303_v34  ;;  %v6361_v9 = vpack.c.bf16 %v1599_v8, %v1598_v7  ;;  %v111_v13 = vld [vmem:[%s11294_s0 + $0xa8] sm:$0xff]  ;;  %v112_v14 = vld [vmem:[%s11294_s0 + $0xb0] sm:$0xff]  ;;  %v113_v15 = vld [vmem:[%s11294_s0 + $0xb8] sm:$0xff] }
  0x23   :  { %6336 = vmatpush1.bf16.msra.mxu1 %v6335_v35  ;;  %6338 = vmatprep.subr.bf16.mxu0 %v6337_v36  ;;  %v114_v16 = vld [vmem:[%s11294_s0 + $0xc0] sm:$0xff]  ;;  %v115_v17 = vld [vmem:[%s11294_s0 + $0xc8] sm:$0xff]  ;;  %v116_v18 = vld [vmem:[%s11294_s0 + $0xd0] sm:$0xff] }
  0x24   :  { %6370 = vmatprep.subr.bf16.mxu1 %v6337_v36  ;;  %v117_v19 = vld [vmem:[%s11294_s0 + $0xd8] sm:$0xff]  ;;  %v1600_v20 = vld [vmem:[%s11293_s4 + $0x70] sm:$0xff]  ;;  %v118_v23 = vld [vmem:[%s11294_s0 + $0xe0] sm:$0xff] }
  0x25   :  { %241 = vmatmul.mubr.f32.vlgmr.msra.gmra.mrb[0].mxu0 %v90_v39  ;;  %v1601_v21 = vld [vmem:[%s11293_s4 + $0x78] sm:$0xff]  ;;  %v119_v24 = vld [vmem:[%s11294_s0 + $0xe8] sm:$0xff]  ;;  %v120_v25 = vld [vmem:[%s11294_s0 + $0xf0] sm:$0xff] }
  0x26   :  { %690 = vmatmul.mubr.f32.vlgmr.msra.gmra.mrb[0].mxu1 %v90_v39  ;;  %6340 = vmatpush3.bf16.msra.mxu0 %v6337_v36  ;;  %v6365_v22 = vpack.c.bf16 %v1601_v21, %v1600_v20  ;;  %v121_v26 = vld [vmem:[%s11294_s0 + $0xf8] sm:$0xff]  ;;  %v122_v27 = vld [vmem:[%s11294_s0 + $0x100] sm:$0xff]  ;;  %v123_v28 = vld [vmem:[%s11294_s0 + $0x108] sm:$0xff] }
  0x27   :  { %6372 = vmatpush3.bf16.msra.mxu1 %v6337_v36  ;;  %246 = vmatprep.mubr.f32.mxu0 %v6405_v3  ;;  %v124_v29 = vld [vmem:[%s11294_s0 + $0x110] sm:$0xff]  ;;  %v125_v30 = vld [vmem:[%s11294_s0 + $0x118] sm:$0xff]  ;;  %v126_v31 = vld [vmem:[%s11294_s0 + $0x120] sm:$0xff] }
  0x28   :  { %695 = vmatprep.mubr.f32.mxu1 %v6405_v3  ;;  %6342 = vmatprep.subr.bf16.mxu0 %v6341_v40  ;;  %v127_v32 = vld [vmem:[%s11294_s0 + $0x128] sm:$0xff]  ;;  %v128_v33 = vld [vmem:[%s11294_s0 + $0x130] sm:$0xff]  ;;  %v129_v34 = vld [vmem:[%s11294_s0 + $0x138] sm:$0xff] }
  0x29   :  { %247 = vmatmul.mubr.f32.gmra.mrb[2].mxu0 %v91_v43  ;;  %6374 = vmatprep.subr.bf16.mxu1 %v6341_v40  ;;  %v130_v35 = vld [vmem:[%s11294_s0 + $0x140] sm:$0xff]  ;;  %v131_v36 = vld [vmem:[%s11294_s0 + $0x148] sm:$0xff]  ;;  %v132_v37 = vld [vmem:[%s11294_s0 + $0x150] sm:$0xff] }
  0x2a   :  { %696 = vmatmul.mubr.f32.gmra.mrb[2].mxu1 %v91_v43  ;;  %252 = vmatprep.mubr.f32.mxu0 %v6405_v3  ;;  %v133_v38 = vld [vmem:[%s11294_s0 + $0x158] sm:$0xff]  ;;  %v134_v39 = vld [vmem:[%s11294_s0 + $0x160] sm:$0xff]  ;;  %v136_v41 = vld [vmem:[%s11294_s0 + $0x170] sm:$0xff] }
  0x2b   :  { %701 = vmatprep.mubr.f32.mxu1 %v6405_v3  ;;  %6344 = vmatpush3.bf16.msra.mxu0 %v6341_v40  ;;  %v137_v42 = vld [vmem:[%s11294_s0 + $0x178] sm:$0xff]  ;;  %v138_v43 = vld [vmem:[%s11294_s0 + $0x180] sm:$0xff]  ;;  %v140_v46 = vld [vmem:[%s11294_s0 + $0x190] sm:$0xff] }
  0x2c   :  { %6376 = vmatpush3.bf16.msra.mxu1 %v6341_v40  ;;  %6346 = vmatprep.subr.bf16.mxu0 %v6345_v44  ;;  %v135_v40 = vld [vmem:[%s11294_s0 + $0x168] sm:$0xff]  ;;  %v142_v50 = vld [vmem:[%s11294_s0 + $0x1a0] sm:$0xff] }
  0x2d   :  { %253 = vmatmul.mubr.f32.gmra.mrb[4].mxu0 %v92_v47  ;;  %6378 = vmatprep.subr.bf16.mxu1 %v6345_v44 }
  0x2e   :  { %702 = vmatmul.mubr.f32.gmra.mrb[4].mxu1 %v92_v47  ;;  %258 = vmatprep.mubr.f32.mxu0 %v6405_v3  ;;  %v157_v47 = vshrl.u32 %v156_v45, 7 }
  0x2f   :  { %707 = vmatprep.mubr.f32.mxu1 %v6405_v3  ;;  %6348 = vmatpush3.bf16.msra.mxu0 %v6345_v44 }
  0x30   :  { %6380 = vmatpush3.bf16.msra.mxu1 %v6345_v44  ;;  %6350 = vmatprep.subr.bf16.mxu0 %v6349_v48  ;;  %v139_v44 = vld [vmem:[%s11294_s0 + $0x188] sm:$0xff]  ;;  %v158_v49 = vsub.s32 0, %v157_v47 }
  0x31   :  { %259 = vmatmul.mubr.f32.gmra.mrb[6].mxu0 %v93_v51  ;;  %6382 = vmatprep.subr.bf16.mxu1 %v6349_v48 }
  0x32   :  { %708 = vmatmul.mubr.f32.gmra.mrb[6].mxu1 %v93_v51  ;;  %264 = vmatprep.mubr.f32.mxu0 %v6405_v3  ;;  %v154_v51 = vld [vmem:[%s11295_s3] sm:$0xf] }
  0x33   :  { %713 = vmatprep.mubr.f32.mxu1 %v6405_v3  ;;  %6352 = vmatpush3.bf16.msra.mxu0 %v6349_v48 }
  0x34   :  { %6384 = vmatpush3.bf16.msra.mxu1 %v6349_v48  ;;  %6354 = vmatprep.subr.bf16.mxu0 %v6353_v52  ;;  %v141_v48 = vld [vmem:[%s11294_s0 + $0x198] sm:$0xff] }
  0x35   :  { %265 = vmatmul.mubr.f32.gmra.mrb[8].mxu0 %v94_v53  ;;  %6386 = vmatprep.subr.bf16.mxu1 %v6353_v52 }
  0x36   :  { %714 = vmatmul.mubr.f32.gmra.mrb[8].mxu1 %v94_v53  ;;  %270 = vmatprep.mubr.f32.mxu0 %v6405_v3  ;;  %v162_v53 = vsub.s32 1, %v157_v47 }
  0x37   :  { %719 = vmatprep.mubr.f32.mxu1 %v6405_v3  ;;  %6356 = vmatpush3.bf16.msra.mxu0 %v6353_v52 }
  0x38   :  { %6388 = vmatpush3.bf16.msra.mxu1 %v6353_v52  ;;  %6358 = vmatprep.subr.bf16.mxu0 %v6357_v61  ;;  %v166_v52 = vsub.s32 2, %v157_v47 }
  0x39   :  { %271 = vmatmul.mubr.f32.gmra.mrb[10].mxu0 %v95_v54  ;;  %6390 = vmatprep.subr.bf16.mxu1 %v6357_v61 }
  0x3a   :  { %720 = vmatmul.mubr.f32.gmra.mrb[10].mxu1 %v95_v54  ;;  %276 = vmatprep.mubr.f32.mxu0 %v6405_v3  ;;  %v170_v54 = vsub.s32 3, %v157_v47 }
  0x3b   :  { %725 = vmatprep.mubr.f32.mxu1 %v6405_v3  ;;  %6360 = vmatpush3.bf16.msra.mxu0 %v6357_v61 }
  0x3c   :  { %6392 = vmatpush3.bf16.msra.mxu1 %v6357_v61  ;;  %6362 = vmatprep.subr.bf16.mxu0 %v6361_v9  ;;  %v6970_v59 = vrot.slane %v154_v51, %v170_v54 }
  0x3d   :  { %277 = vmatmul.mubr.f32.gmra.mrb[12].mxu0 %v96_v55  ;;  %6394 = vmatprep.subr.bf16.mxu1 %v6361_v9 }
  0x3e   :  { %726 = vmatmul.mubr.f32.gmra.mrb[12].mxu1 %v96_v55  ;;  %282 = vmatprep.mubr.f32.mxu0 %v6405_v3  ;;  %v6959_v55 = vrot.slane %v154_v51, %v158_v49 }
  0x3f   :  { %731 = vmatprep.mubr.f32.mxu1 %v6405_v3  ;;  %6364 = vmatpush3.bf16.msra.mxu0 %v6361_v9 }
  0x40   :  { %6396 = vmatpush3.bf16.msra.mxu1 %v6361_v9  ;;  %6366 = vmatprep.subr.bf16.mxu0 %v6365_v22 }
  0x41   :  { %283 = vmatmul.mubr.f32.gmra.mrb[14].mxu0 %v97_v56  ;;  %6398 = vmatprep.subr.bf16.mxu1 %v6365_v22 }
  0x42   :  { %732 = vmatmul.mubr.f32.gmra.mrb[14].mxu1 %v97_v56  ;;  %288 = vmatprep.mubr.f32.mxu0 %v6405_v3  ;;  %v6962_v56 = vrot.slane %v154_v51, %v166_v52 }
  0x43   :  { %737 = vmatprep.mubr.f32.mxu1 %v6405_v3  ;;  %6368 = vmatpush3.bf16.msra.mxu0 %v6365_v22 }
  0x44   :  { %6400 = vmatpush3.bf16.msra.mxu1 %v6365_v22 }
  0x45   :  { %289 = vmatmul.mubr.f32.gmra.mrb[16].mxu0 %v98_v57 }
  0x46   :  { %738 = vmatmul.mubr.f32.gmra.mrb[16].mxu1 %v98_v57  ;;  %294 = vmatprep.mubr.f32.mxu0 %v6405_v3  ;;  %v6964_v57 = vrot.slane %v154_v51, %v162_v53 }
  0x47   :  { %743 = vmatprep.mubr.f32.mxu1 %v6405_v3 }
  0x49   :  { %295 = vmatmul.mubr.f32.gmra.mrb[18].mxu0 %v99_v58 }
  0x4a   :  { %744 = vmatmul.mubr.f32.gmra.mrb[18].mxu1 %v99_v58  ;;  %300 = vmatprep.mubr.f32.mxu0 %v6405_v3  ;;  %v143_v58 = vld [vmem:[%s11294_s0 + $0x1a8] sm:$0xff] }
  0x4b   :  { %749 = vmatprep.mubr.f32.mxu1 %v6405_v3 }
  0x4d   :  { %301 = vmatmul.mubr.f32.gmra.mrb[20].mxu0 %v100_v62 }
  0x4e   :  { %750 = vmatmul.mubr.f32.gmra.mrb[20].mxu1 %v100_v62  ;;  %306 = vmatprep.mubr.f32.mxu0 %v6405_v3 }
  0x4f   :  { %755 = vmatprep.mubr.f32.mxu1 %v6405_v3 }
  0x51   :  { %307 = vmatmul.mubr.f32.gmra.mrb[22].mxu0 %v101_v63 }
  0x52   :  { %756 = vmatmul.mubr.f32.gmra.mrb[22].mxu1 %v101_v63  ;;  %312 = vmatprep.mubr.f32.mxu0 %v6405_v3 }
  0x53   :  { %761 = vmatprep.mubr.f32.mxu1 %v6405_v3 }
  0x55   :  { %313 = vmatmul.mubr.f32.gmra.mrb[24].mxu0 %v102_v0 }
  0x56   :  { %762 = vmatmul.mubr.f32.gmra.mrb[24].mxu1 %v102_v0  ;;  %318 = vmatprep.mubr.f32.mxu0 %v6405_v3 }
  0x57   :  { %767 = vmatprep.mubr.f32.mxu1 %v6405_v3 }
  0x59   :  { %319 = vmatmul.mubr.f32.gmra.mrb[26].mxu0 %v103_v1 }
  0x5a   :  { %768 = vmatmul.mubr.f32.gmra.mrb[26].mxu1 %v103_v1  ;;  %324 = vmatprep.mubr.f32.mxu0 %v6405_v3 }
  0x5b   :  { %773 = vmatprep.mubr.f32.mxu1 %v6405_v3 }
  0x5d   :  { %325 = vmatmul.mubr.f32.gmra.mrb[28].mxu0 %v104_v2 }
  0x5e   :  { %774 = vmatmul.mubr.f32.gmra.mrb[28].mxu1 %v104_v2  ;;  %330 = vmatprep.mubr.f32.mxu0 %v6405_v3 }
  0x5f   :  { %779 = vmatprep.mubr.f32.mxu1 %v6405_v3 }
  0x61   :  { %331 = vmatmul.mubr.f32.gmra.mrb[30].mxu0 %v105_v4 }
  0x62   :  { %780 = vmatmul.mubr.f32.gmra.mrb[30].mxu1 %v105_v4  ;;  %336 = vmatprep.mubr.f32.mxu0 %v6405_v3  ;;  %v144_v4 = vld [vmem:[%s11294_s0 + $0x1b0] sm:$0xff] }
  0x63   :  { %785 = vmatprep.mubr.f32.mxu1 %v6405_v3 }
  0x65   :  { %337 = vmatmul.mubr.f32.gmra.mrb[32].mxu0 %v106_v5 }
  0x66   :  { %786 = vmatmul.mubr.f32.gmra.mrb[32].mxu1 %v106_v5  ;;  %342 = vmatprep.mubr.f32.mxu0 %v6405_v3 }
  0x67   :  { %791 = vmatprep.mubr.f32.mxu1 %v6405_v3 }
  0x69   :  { %343 = vmatmul.mubr.f32.gmra.mrb[34].mxu0 %v107_v6 }
  0x6a   :  { %792 = vmatmul.mubr.f32.gmra.mrb[34].mxu1 %v107_v6  ;;  %348 = vmatprep.mubr.f32.mxu0 %v6405_v3 }
  0x6b   :  { %797 = vmatprep.mubr.f32.mxu1 %v6405_v3 }
  0x6d   :  { %349 = vmatmul.mubr.f32.gmra.mrb[36].mxu0 %v108_v10 }
  0x6e   :  { %798 = vmatmul.mubr.f32.gmra.mrb[36].mxu1 %v108_v10  ;;  %354 = vmatprep.mubr.f32.mxu0 %v6405_v3 }
  0x6f   :  { %803 = vmatprep.mubr.f32.mxu1 %v6405_v3 }
  0x71   :  { %355 = vmatmul.mubr.f32.gmra.mrb[38].mxu0 %v109_v11 }
  0x72   :  { %804 = vmatmul.mubr.f32.gmra.mrb[38].mxu1 %v109_v11  ;;  %360 = vmatprep.mubr.f32.mxu0 %v6405_v3 }
  0x73   :  { %809 = vmatprep.mubr.f32.mxu1 %v6405_v3 }
  0x75   :  { %361 = vmatmul.mubr.f32.gmra.mrb[40].mxu0 %v110_v12 }
  0x76   :  { %810 = vmatmul.mubr.f32.gmra.mrb[40].mxu1 %v110_v12  ;;  %366 = vmatprep.mubr.f32.mxu0 %v6405_v3 }
  0x77   :  { %815 = vmatprep.mubr.f32.mxu1 %v6405_v3 }
  0x79   :  { %367 = vmatmul.mubr.f32.gmra.mrb[42].mxu0 %v111_v13 }
  0x7a   :  { %816 = vmatmul.mubr.f32.gmra.mrb[42].mxu1 %v111_v13  ;;  %372 = vmatprep.mubr.f32.mxu0 %v6405_v3 }
  0x7b   :  { %821 = vmatprep.mubr.f32.mxu1 %v6405_v3 }
  0x7d   :  { %373 = vmatmul.mubr.f32.gmra.mrb[44].mxu0 %v112_v14 }
  0x7e   :  { %822 = vmatmul.mubr.f32.gmra.mrb[44].mxu1 %v112_v14  ;;  %378 = vmatprep.mubr.f32.mxu0 %v6405_v3 }
  0x7f   :  { %827 = vmatprep.mubr.f32.mxu1 %v6405_v3 }
  0x81   :  { %379 = vmatmul.mubr.f32.gmra.mrb[46].mxu0 %v113_v15 }
  0x82   :  { %828 = vmatmul.mubr.f32.gmra.mrb[46].mxu1 %v113_v15  ;;  %384 = vmatprep.mubr.f32.mxu0 %v6405_v3 }
  0x83   :  { %833 = vmatprep.mubr.f32.mxu1 %v6405_v3 }
  0x85   :  { %385 = vmatmul.mubr.f32.gmra.mrb[48].mxu0 %v114_v16 }
  0x86   :  { %834 = vmatmul.mubr.f32.gmra.mrb[48].mxu1 %v114_v16  ;;  %390 = vmatprep.mubr.f32.mxu0 %v6405_v3 }
  0x87   :  { %839 = vmatprep.mubr.f32.mxu1 %v6405_v3 }
  0x89   :  { %391 = vmatmul.mubr.f32.gmra.mrb[50].mxu0 %v115_v17 }
  0x8a   :  { %840 = vmatmul.mubr.f32.gmra.mrb[50].mxu1 %v115_v17  ;;  %396 = vmatprep.mubr.f32.mxu0 %v6405_v3  ;;  %v145_v17 = vld [vmem:[%s11294_s0 + $0x1b8] sm:$0xff] }
  0x8b   :  { %845 = vmatprep.mubr.f32.mxu1 %v6405_v3 }
  0x8d   :  { %397 = vmatmul.mubr.f32.gmra.mrb[52].mxu0 %v116_v18 }
  0x8e   :  { %846 = vmatmul.mubr.f32.gmra.mrb[52].mxu1 %v116_v18  ;;  %402 = vmatprep.mubr.f32.mxu0 %v6405_v3 }
  0x8f   :  { %851 = vmatprep.mubr.f32.mxu1 %v6405_v3 }
  0x91   :  { %403 = vmatmul.mubr.f32.gmra.mrb[54].mxu0 %v117_v19 }
  0x92   :  { %852 = vmatmul.mubr.f32.gmra.mrb[54].mxu1 %v117_v19  ;;  %408 = vmatprep.mubr.f32.mxu0 %v6405_v3 }
  0x93   :  { %857 = vmatprep.mubr.f32.mxu1 %v6405_v3 }
  0x95   :  { %409 = vmatmul.mubr.f32.gmra.mrb[56].mxu0 %v118_v23 }
  0x96   :  { %858 = vmatmul.mubr.f32.gmra.mrb[56].mxu1 %v118_v23  ;;  %414 = vmatprep.mubr.f32.mxu0 %v6405_v3 }
  0x97   :  { %863 = vmatprep.mubr.f32.mxu1 %v6405_v3 }
  0x99   :  { %415 = vmatmul.mubr.f32.gmra.mrb[58].mxu0 %v119_v24 }
  0x9a   :  { %864 = vmatmul.mubr.f32.gmra.mrb[58].mxu1 %v119_v24  ;;  %420 = vmatprep.mubr.f32.mxu0 %v6405_v3 }
  0x9b   :  { %869 = vmatprep.mubr.f32.mxu1 %v6405_v3 }
  0x9d   :  { %421 = vmatmul.mubr.f32.gmra.mrb[60].mxu0 %v120_v25 }
  0x9e   :  { %870 = vmatmul.mubr.f32.gmra.mrb[60].mxu1 %v120_v25  ;;  %426 = vmatprep.mubr.f32.mxu0 %v6405_v3 }
  0x9f   :  { %875 = vmatprep.mubr.f32.mxu1 %v6405_v3 }
  0xa1   :  { %427 = vmatmul.mubr.f32.gmra.mrb[62].mxu0 %v121_v26 }
  0xa2   :  { %876 = vmatmul.mubr.f32.gmra.mrb[62].mxu1 %v121_v26  ;;  %432 = vmatprep.mubr.f32.mxu0 %v6405_v3 }
  0xa3   :  { %881 = vmatprep.mubr.f32.mxu1 %v6405_v3 }
  0xa5   :  { %433 = vmatmul.mubr.f32.gmra.mrb[64].mxu0 %v122_v27 }
  0xa6   :  { %882 = vmatmul.mubr.f32.gmra.mrb[64].mxu1 %v122_v27  ;;  %438 = vmatprep.mubr.f32.mxu0 %v6405_v3 }
  0xa7   :  { %887 = vmatprep.mubr.f32.mxu1 %v6405_v3 }
  0xa9   :  { %439 = vmatmul.mubr.f32.gmra.mrb[66].mxu0 %v123_v28 }
  0xaa   :  { %888 = vmatmul.mubr.f32.gmra.mrb[66].mxu1 %v123_v28  ;;  %444 = vmatprep.mubr.f32.mxu0 %v6405_v3 }
  0xab   :  { %893 = vmatprep.mubr.f32.mxu1 %v6405_v3 }
  0xad   :  { %445 = vmatmul.mubr.f32.gmra.mrb[68].mxu0 %v124_v29 }
  0xae   :  { %894 = vmatmul.mubr.f32.gmra.mrb[68].mxu1 %v124_v29  ;;  %450 = vmatprep.mubr.f32.mxu0 %v6405_v3 }
  0xaf   :  { %899 = vmatprep.mubr.f32.mxu1 %v6405_v3 }
  0xb1   :  { %451 = vmatmul.mubr.f32.gmra.mrb[70].mxu0 %v125_v30 }
  0xb2   :  { %900 = vmatmul.mubr.f32.gmra.mrb[70].mxu1 %v125_v30  ;;  %456 = vmatprep.mubr.f32.mxu0 %v6405_v3 }
  0xb3   :  { %905 = vmatprep.mubr.f32.mxu1 %v6405_v3 }
  0xb5   :  { %457 = vmatmul.mubr.f32.gmra.mrb[72].mxu0 %v126_v31 }
  0xb6   :  { %906 = vmatmul.mubr.f32.gmra.mrb[72].mxu1 %v126_v31  ;;  %462 = vmatprep.mubr.f32.mxu0 %v6405_v3 }
  0xb7   :  { %911 = vmatprep.mubr.f32.mxu1 %v6405_v3 }
  0xb9   :  { %463 = vmatmul.mubr.f32.gmra.mrb[74].mxu0 %v127_v32 }
  0xba   :  { %912 = vmatmul.mubr.f32.gmra.mrb[74].mxu1 %v127_v32  ;;  %468 = vmatprep.mubr.f32.mxu0 %v6405_v3 }
  0xbb   :  { %917 = vmatprep.mubr.f32.mxu1 %v6405_v3 }
  0xbd   :  { %469 = vmatmul.mubr.f32.gmra.mrb[76].mxu0 %v128_v33 }
  0xbe   :  { %918 = vmatmul.mubr.f32.gmra.mrb[76].mxu1 %v128_v33  ;;  %474 = vmatprep.mubr.f32.mxu0 %v6405_v3 }
  0xbf   :  { %923 = vmatprep.mubr.f32.mxu1 %v6405_v3 }
  0xc1   :  { %475 = vmatmul.mubr.f32.gmra.mrb[78].mxu0 %v129_v34 }
  0xc2   :  { %924 = vmatmul.mubr.f32.gmra.mrb[78].mxu1 %v129_v34  ;;  %480 = vmatprep.mubr.f32.mxu0 %v6405_v3 }
  0xc3   :  { %929 = vmatprep.mubr.f32.mxu1 %v6405_v3 }
  0xc5   :  { %481 = vmatmul.mubr.f32.gmra.mrb[80].mxu0 %v130_v35 }
  0xc6   :  { %930 = vmatmul.mubr.f32.gmra.mrb[80].mxu1 %v130_v35  ;;  %486 = vmatprep.mubr.f32.mxu0 %v6405_v3 }
  0xc7   :  { %935 = vmatprep.mubr.f32.mxu1 %v6405_v3 }
  0xc9   :  { %487 = vmatmul.mubr.f32.gmra.mrb[82].mxu0 %v131_v36 }
  0xca   :  { %936 = vmatmul.mubr.f32.gmra.mrb[82].mxu1 %v131_v36  ;;  %492 = vmatprep.mubr.f32.mxu0 %v6405_v3 }
  0xcb   :  { %941 = vmatprep.mubr.f32.mxu1 %v6405_v3 }
  0xcd   :  { %493 = vmatmul.mubr.f32.gmra.mrb[84].mxu0 %v132_v37 }
  0xce   :  { %942 = vmatmul.mubr.f32.gmra.mrb[84].mxu1 %v132_v37  ;;  %498 = vmatprep.mubr.f32.mxu0 %v6405_v3 }
  0xcf   :  { %947 = vmatprep.mubr.f32.mxu1 %v6405_v3 }
  0xd1   :  { %499 = vmatmul.mubr.f32.gmra.mrb[86].mxu0 %v133_v38 }
  0xd2   :  { %948 = vmatmul.mubr.f32.gmra.mrb[86].mxu1 %v133_v38  ;;  %504 = vmatprep.mubr.f32.mxu0 %v6405_v3  ;;  %v146_v38 = vld [vmem:[%s11294_s0 + $0x1c0] sm:$0xff] }
  0xd3   :  { %953 = vmatprep.mubr.f32.mxu1 %v6405_v3 }
  0xd5   :  { %505 = vmatmul.mubr.f32.gmra.mrb[88].mxu0 %v134_v39 }
  0xd6   :  { %954 = vmatmul.mubr.f32.gmra.mrb[88].mxu1 %v134_v39  ;;  %510 = vmatprep.mubr.f32.mxu0 %v6405_v3 }
  0xd7   :  { %959 = vmatprep.mubr.f32.mxu1 %v6405_v3 }
  0xd9   :  { %511 = vmatmul.mubr.f32.gmra.mrb[90].mxu0 %v135_v40 }
  0xda   :  { %960 = vmatmul.mubr.f32.gmra.mrb[90].mxu1 %v135_v40  ;;  %516 = vmatprep.mubr.f32.mxu0 %v6405_v3 }
  0xdb   :  { %965 = vmatprep.mubr.f32.mxu1 %v6405_v3 }
  0xdd   :  { %517 = vmatmul.mubr.f32.gmra.mrb[92].mxu0 %v136_v41 }
  0xde   :  { %966 = vmatmul.mubr.f32.gmra.mrb[92].mxu1 %v136_v41  ;;  %522 = vmatprep.mubr.f32.mxu0 %v6405_v3 }
  0xdf   :  { %971 = vmatprep.mubr.f32.mxu1 %v6405_v3 }
  0xe1   :  { %523 = vmatmul.mubr.f32.gmra.mrb[94].mxu0 %v137_v42 }
  0xe2   :  { %972 = vmatmul.mubr.f32.gmra.mrb[94].mxu1 %v137_v42  ;;  %528 = vmatprep.mubr.f32.mxu0 %v6405_v3 }
  0xe3   :  { %977 = vmatprep.mubr.f32.mxu1 %v6405_v3 }
  0xe5   :  { %529 = vmatmul.mubr.f32.gmra.mrb[96].mxu0 %v138_v43 }
  0xe6   :  { %978 = vmatmul.mubr.f32.gmra.mrb[96].mxu1 %v138_v43  ;;  %534 = vmatprep.mubr.f32.mxu0 %v6405_v3 }
  0xe7   :  { %983 = vmatprep.mubr.f32.mxu1 %v6405_v3 }
  0xe9   :  { %535 = vmatmul.mubr.f32.gmra.mrb[98].mxu0 %v139_v44 }
  0xea   :  { %984 = vmatmul.mubr.f32.gmra.mrb[98].mxu1 %v139_v44  ;;  %540 = vmatprep.mubr.f32.mxu0 %v6405_v3 }
  0xeb   :  { %989 = vmatprep.mubr.f32.mxu1 %v6405_v3 }
  0xed   :  { %541 = vmatmul.mubr.f32.gmra.mrb[100].mxu0 %v140_v46 }
  0xee   :  { %990 = vmatmul.mubr.f32.gmra.mrb[100].mxu1 %v140_v46  ;;  %546 = vmatprep.mubr.f32.mxu0 %v6405_v3 }
  0xef   :  { %995 = vmatprep.mubr.f32.mxu1 %v6405_v3 }
  0xf1   :  { %547 = vmatmul.mubr.f32.gmra.mrb[102].mxu0 %v141_v48 }
  0xf2   :  { %996 = vmatmul.mubr.f32.gmra.mrb[102].mxu1 %v141_v48  ;;  %552 = vmatprep.mubr.f32.mxu0 %v6405_v3 }
  0xf3   :  { %1001 = vmatprep.mubr.f32.mxu1 %v6405_v3 }
  0xf5   :  { %553 = vmatmul.mubr.f32.gmra.mrb[104].mxu0 %v142_v50 }
  0xf6   :  { %1002 = vmatmul.mubr.f32.gmra.mrb[104].mxu1 %v142_v50  ;;  %558 = vmatprep.mubr.f32.mxu0 %v6405_v3 }
  0xf7   :  { %1007 = vmatprep.mubr.f32.mxu1 %v6405_v3 }
  0xf8   :  { %v242_v60 = vpop.f32.mrb[0].mxu0 }
  0xf9   :  { %v243_v61 = vadd.f32 %v242_v60, %v6959_v55  ;;  %v691_v62 = vpop.f32.mrb[0].mxu1  ;;  %v244_v63 = vpop.f32.mrb[1].mxu0  ;;  %559 = vmatmul.mubr.f32.gmra.mrb[106].mxu0 %v143_v58 }
  0xfa   :  { %v692_v0 = vadd.f32 %v691_v62, %v6962_v56  ;;  %v245_v1 = vadd.f32 %v244_v63, %v6964_v57  ;;  %v693_v2 = vpop.f32.mrb[1].mxu1  ;;  %1008 = vmatmul.mubr.f32.gmra.mrb[106].mxu1 %v143_v58  ;;  %564 = vmatprep.mubr.f32.mxu0 %v6405_v3  ;;  %v147_v63 = vld [vmem:[%s11294_s0 + $0x1c8] sm:$0xff] }
  0xfb   :  { %v1074_v5 = vmax.f32 %v243_v61, 0.0  ;;  %v694_v6 = vadd.f32 %v693_v2, %v6970_v59  ;;  %1013 = vmatprep.mubr.f32.mxu1 %v6405_v3 }
  0xfc   :  { %v1076_v7 = vmax.f32 %v692_v0, 0.0  ;;  %v1075_v8 = vmax.f32 %v245_v1, 0.0  ;;  %v248_v9 = vpop.f32.mrb[2].mxu0 }
  0xfd   :  { %3275 = vst [vmem:[%s11296_s6] sm:$0xff] %v1074_v5  ;;  %v1077_v10 = vmax.f32 %v694_v6, 0.0  ;;  %v249_v11 = vadd.f32 %v248_v9, %v6959_v55  ;;  %v697_v12 = vpop.f32.mrb[2].mxu1  ;;  %v250_v13 = vpop.f32.mrb[3].mxu0  ;;  %565 = vmatmul.mubr.f32.gmra.mrb[108].mxu0 %v144_v4  ;;  %v4064_v18 = vmul.f32 %v1074_v5, %v1074_v5 }
  0xfe   :  { %5409 = vst [vmem:[%s11296_s6 + $0x40] sm:$0xff] %v1076_v7  ;;  %3339 = vst [vmem:[%s11296_s6 + $0x10] sm:$0xff] %v1075_v8  ;;  %v698_v14 = vadd.f32 %v697_v12, %v6962_v56  ;;  %v251_v15 = vadd.f32 %v250_v13, %v6964_v57  ;;  %v699_v16 = vpop.f32.mrb[3].mxu1  ;;  %1014 = vmatmul.mubr.f32.gmra.mrb[108].mxu1 %v144_v4  ;;  %v4066_v19 = vmul.f32 %v1076_v7, %v1076_v7 }
  0xff   :  { %5473 = vst [vmem:[%s11296_s6 + $0x50] sm:$0xff] %v1077_v10  ;;  %v1078_v20 = vmax.f32 %v249_v11, 0.0  ;;  %v700_v21 = vadd.f32 %v699_v16, %v6970_v59  ;;  %570 = vmatprep.mubr.f32.mxu0 %v6405_v3  ;;  %1019 = vmatprep.mubr.f32.mxu1 %v6405_v3  ;;  %v4065_v22 = vmul.f32 %v1075_v8, %v1075_v8 }
 0x100   :  { %v4067_v23 = vmul.f32 %v1077_v10, %v1077_v10  ;;  %v1080_v24 = vmax.f32 %v698_v14, 0.0  ;;  %v1079_v25 = vmax.f32 %v251_v15, 0.0  ;;  %v254_v26 = vpop.f32.mrb[4].mxu0 }
 0x101   :  { %3276 = vst [vmem:[%s11296_s6 + $0x20] sm:$0xff] %v1078_v20  ;;  %v3788_v27 = vadd.f32 %v1078_v20, %v1074_v5  ;;  %v4068_v28 = vmul.f32 %v1078_v20, %v1078_v20  ;;  %v1081_v29 = vmax.f32 %v700_v21, 0.0  ;;  %v255_v30 = vadd.f32 %v254_v26, %v6959_v55  ;;  %v703_v31 = vpop.f32.mrb[4].mxu1  ;;  %v256_v32 = vpop.f32.mrb[5].mxu0  ;;  %571 = vmatmul.mubr.f32.gmra.mrb[110].mxu0 %v145_v17  ;;  %v148_v21 = vld [vmem:[%s11294_s0 + $0x1d0] sm:$0xff] }
 0x102   :  { %5410 = vst [vmem:[%s11296_s6 + $0x60] sm:$0xff] %v1080_v24  ;;  %v3926_v33 = vadd.f32 %v1080_v24, %v1076_v7  ;;  %v4070_v34 = vmul.f32 %v1080_v24, %v1080_v24  ;;  %3340 = vst [vmem:[%s11296_s6 + $0x30] sm:$0xff] %v1079_v25  ;;  %v3857_v35 = vadd.f32 %v1079_v25, %v1075_v8  ;;  %v705_v37 = vpop.f32.mrb[5].mxu1  ;;  %1020 = vmatmul.mubr.f32.gmra.mrb[110].mxu1 %v145_v17 }
 0x103   :  { %v4069_v36 = vmul.f32 %v1079_v25, %v1079_v25  ;;  %v4320_v39 = vadd.f32 %v4068_v28, %v4064_v18  ;;  %5474 = vst [vmem:[%s11296_s6 + $0x70] sm:$0xff] %v1081_v29  ;;  %v3995_v40 = vadd.f32 %v1081_v29, %v1077_v10  ;;  %v4071_v41 = vmul.f32 %v1081_v29, %v1081_v29 }
 0x104   :  { %v1082_v42 = vmax.f32 %v255_v30, 0.0  ;;  %576 = vmatprep.mubr.f32.mxu0 %v6405_v3  ;;  %1025 = vmatprep.mubr.f32.mxu1 %v6405_v3  ;;  %v4458_v43 = vadd.f32 %v4070_v34, %v4066_v19  ;;  %v704_v45 = vadd.f32 %v703_v31, %v6962_v56  ;;  %v257_v46 = vadd.f32 %v256_v32, %v6964_v57  ;;  %v260_v47 = vpop.f32.mrb[6].mxu0 }
 0x105   :  { %v4389_v44 = vadd.f32 %v4069_v36, %v4065_v22  ;;  %v4527_v48 = vadd.f32 %v4071_v41, %v4067_v23  ;;  %v706_v51 = vadd.f32 %v705_v37, %v6970_v59  ;;  %v709_v52 = vpop.f32.mrb[6].mxu1  ;;  %v262_v53 = vpop.f32.mrb[7].mxu0  ;;  %577 = vmatmul.mubr.f32.gmra.mrb[112].mxu0 %v146_v38  ;;  %v261_v60 = vadd.f32 %v260_v47, %v6959_v55 }
 0x106   :  { %3277 = vst [vmem:[%s11296_s6 + $0x80] sm:$0xff] %v1082_v42  ;;  %v3789_v49 = vadd.f32 %v3788_v27, %v1082_v42  ;;  %v4072_v50 = vmul.f32 %v1082_v42, %v1082_v42  ;;  %v1084_v54 = vmax.f32 %v704_v45, 0.0  ;;  %v1083_v58 = vmax.f32 %v257_v46, 0.0  ;;  %v711_v62 = vpop.f32.mrb[7].mxu1  ;;  %1026 = vmatmul.mubr.f32.gmra.mrb[112].mxu1 %v146_v38  ;;  %582 = vmatprep.mubr.f32.mxu0 %v6405_v3  ;;  %v149_v42 = vld [vmem:[%s11294_s0 + $0x1d8] sm:$0xff] }
 0x107   :  { %v710_v61 = vadd.f32 %v709_v52, %v6962_v56  ;;  %v1085_v1 = vmax.f32 %v706_v51, 0.0  ;;  %v263_v2 = vadd.f32 %v262_v53, %v6964_v57  ;;  %v712_v4 = vadd.f32 %v711_v62, %v6970_v59  ;;  %1031 = vmatprep.mubr.f32.mxu1 %v6405_v3 }
 0x108   :  { %v4321_v0 = vadd.f32 %v4320_v39, %v4072_v50  ;;  %5411 = vst [vmem:[%s11296_s6 + $0xc0] sm:$0xff] %v1084_v54  ;;  %v3927_v5 = vadd.f32 %v3926_v33, %v1084_v54  ;;  %v4074_v6 = vmul.f32 %v1084_v54, %v1084_v54  ;;  %3341 = vst [vmem:[%s11296_s6 + $0x90] sm:$0xff] %v1083_v58  ;;  %v266_v9 = vpop.f32.mrb[8].mxu0  ;;  %v1086_v12 = vmax.f32 %v261_v60, 0.0 }
 0x109   :  { %v3858_v7 = vadd.f32 %v3857_v35, %v1083_v58  ;;  %v4073_v8 = vmul.f32 %v1083_v58, %v1083_v58  ;;  %5475 = vst [vmem:[%s11296_s6 + $0xd0] sm:$0xff] %v1085_v1  ;;  %v3996_v10 = vadd.f32 %v3995_v40, %v1085_v1  ;;  %v4075_v11 = vmul.f32 %v1085_v1, %v1085_v1  ;;  %v715_v14 = vpop.f32.mrb[8].mxu1  ;;  %v268_v15 = vpop.f32.mrb[9].mxu0 }
 0x10a   :  { %v1088_v13 = vmax.f32 %v710_v61, 0.0  ;;  %583 = vmatmul.mubr.f32.gmra.mrb[114].mxu0 %v147_v63  ;;  %v4459_v16 = vadd.f32 %v4458_v43, %v4074_v6  ;;  %v1087_v18 = vmax.f32 %v263_v2, 0.0  ;;  %v1089_v19 = vmax.f32 %v712_v4, 0.0  ;;  %v717_v20 = vpop.f32.mrb[9].mxu1  ;;  %1032 = vmatmul.mubr.f32.gmra.mrb[114].mxu1 %v147_v63  ;;  %3278 = vst [vmem:[%s11296_s6 + $0xa0] sm:$0xff] %v1086_v12  ;;  %v150_v4 = vld [vmem:[%s11294_s0 + $0x1e0] sm:$0xff] }
 0x10b   :  { %v4390_v17 = vadd.f32 %v4389_v44, %v4073_v8  ;;  %588 = vmatprep.mubr.f32.mxu0 %v6405_v3  ;;  %v4528_v22 = vadd.f32 %v4527_v48, %v4075_v11  ;;  %v3790_v23 = vadd.f32 %v3789_v49, %v1086_v12  ;;  %v4076_v24 = vmul.f32 %v1086_v12, %v1086_v12 }
 0x10c   :  { %5412 = vst [vmem:[%s11296_s6 + $0xe0] sm:$0xff] %v1088_v13  ;;  %v3928_v25 = vadd.f32 %v3927_v5, %v1088_v13  ;;  %1037 = vmatprep.mubr.f32.mxu1 %v6405_v3  ;;  %v4078_v26 = vmul.f32 %v1088_v13, %v1088_v13  ;;  %3342 = vst [vmem:[%s11296_s6 + $0xb0] sm:$0xff] %v1087_v18  ;;  %v3859_v27 = vadd.f32 %v3858_v7, %v1087_v18  ;;  %v272_v30 = vpop.f32.mrb[10].mxu0 }
 0x10d   :  { %v4077_v28 = vmul.f32 %v1087_v18, %v1087_v18  ;;  %5476 = vst [vmem:[%s11296_s6 + $0xf0] sm:$0xff] %v1089_v19  ;;  %v3997_v29 = vadd.f32 %v3996_v10, %v1089_v19  ;;  %v4322_v31 = vadd.f32 %v4321_v0, %v4076_v24  ;;  %v4079_v32 = vmul.f32 %v1089_v19, %v1089_v19  ;;  %v721_v35 = vpop.f32.mrb[10].mxu1  ;;  %v274_v36 = vpop.f32.mrb[11].mxu0 }
 0x10e   :  { %v267_v33 = vadd.f32 %v266_v9, %v6959_v55  ;;  %v716_v34 = vadd.f32 %v715_v14, %v6962_v56  ;;  %589 = vmatmul.mubr.f32.gmra.mrb[116].mxu0 %v148_v21  ;;  %v4460_v37 = vadd.f32 %v4459_v16, %v4078_v26  ;;  %v269_v39 = vadd.f32 %v268_v15, %v6964_v57  ;;  %v723_v41 = vpop.f32.mrb[11].mxu1 }
 0x10f   :  { %v4391_v38 = vadd.f32 %v4390_v17, %v4077_v28  ;;  %v718_v40 = vadd.f32 %v717_v20, %v6970_v59  ;;  %1038 = vmatmul.mubr.f32.gmra.mrb[116].mxu1 %v148_v21  ;;  %v4529_v43 = vadd.f32 %v4528_v22, %v4079_v32  ;;  %v273_v46 = vadd.f32 %v272_v30, %v6959_v55 }
 0x110   :  { %v1090_v44 = vmax.f32 %v267_v33, 0.0  ;;  %v1092_v45 = vmax.f32 %v716_v34, 0.0  ;;  %594 = vmatprep.mubr.f32.mxu0 %v6405_v3  ;;  %1043 = vmatprep.mubr.f32.mxu1 %v6405_v3  ;;  %v1091_v47 = vmax.f32 %v269_v39, 0.0  ;;  %v722_v49 = vadd.f32 %v721_v35, %v6962_v56  ;;  %v278_v51 = vpop.f32.mrb[12].mxu0 }
 0x111   :  { %v1093_v48 = vmax.f32 %v718_v40, 0.0  ;;  %v275_v50 = vadd.f32 %v274_v36, %v6964_v57  ;;  %v727_v60 = vpop.f32.mrb[12].mxu1  ;;  %v280_v61 = vpop.f32.mrb[13].mxu0  ;;  %v1094_v7 = vmax.f32 %v273_v46, 0.0  ;;  %v724_v12 = vadd.f32 %v723_v41, %v6970_v59  ;;  %v152_v46 = vld [vmem:[%s11294_s0 + $0x1f0] sm:$0xff] }
 0x112   :  { %3279 = vst [vmem:[%s11296_s6 + $0x100] sm:$0xff] %v1090_v44  ;;  %v3791_v52 = vadd.f32 %v3790_v23, %v1090_v44  ;;  %v4080_v53 = vmul.f32 %v1090_v44, %v1090_v44  ;;  %5413 = vst [vmem:[%s11296_s6 + $0x140] sm:$0xff] %v1092_v45  ;;  %v3929_v54 = vadd.f32 %v3928_v25, %v1092_v45  ;;  %595 = vmatmul.mubr.f32.gmra.mrb[118].mxu0 %v149_v42  ;;  %v729_v2 = vpop.f32.mrb[13].mxu1  ;;  %v151_v25 = vld [vmem:[%s11294_s0 + $0x1e8] sm:$0xff] }
 0x113   :  { %v4082_v58 = vmul.f32 %v1092_v45, %v1092_v45  ;;  %3343 = vst [vmem:[%s11296_s6 + $0x110] sm:$0xff] %v1091_v47  ;;  %v3860_v62 = vadd.f32 %v3859_v27, %v1091_v47  ;;  %v4081_v63 = vmul.f32 %v1091_v47, %v1091_v47  ;;  %5477 = vst [vmem:[%s11296_s6 + $0x150] sm:$0xff] %v1093_v48  ;;  %1044 = vmatmul.mubr.f32.gmra.mrb[118].mxu1 %v149_v42 }
 0x114   :  { %v3998_v0 = vadd.f32 %v3997_v29, %v1093_v48  ;;  %v4083_v1 = vmul.f32 %v1093_v48, %v1093_v48  ;;  %v4323_v5 = vadd.f32 %v4322_v31, %v4080_v53  ;;  %v1096_v8 = vmax.f32 %v722_v49, 0.0  ;;  %600 = vmatprep.mubr.f32.mxu0 %v6405_v3  ;;  %1049 = vmatprep.mubr.f32.mxu1 %v6405_v3  ;;  %v284_v13 = vpop.f32.mrb[14].mxu0 }
 0x115   :  { %v4461_v6 = vadd.f32 %v4460_v37, %v4082_v58  ;;  %v4392_v9 = vadd.f32 %v4391_v38, %v4081_v63  ;;  %v1095_v11 = vmax.f32 %v275_v50, 0.0  ;;  %3280 = vst [vmem:[%s11296_s6 + $0x120] sm:$0xff] %v1094_v7  ;;  %v3792_v14 = vadd.f32 %v3791_v52, %v1094_v7  ;;  %v733_v18 = vpop.f32.mrb[14].mxu1  ;;  %v286_v19 = vpop.f32.mrb[15].mxu0 }
 0x116   :  { %v4530_v10 = vadd.f32 %v4529_v43, %v4083_v1  ;;  %v4084_v15 = vmul.f32 %v1094_v7, %v1094_v7  ;;  %5414 = vst [vmem:[%s11296_s6 + $0x160] sm:$0xff] %v1096_v8  ;;  %v3930_v16 = vadd.f32 %v3929_v54, %v1096_v8  ;;  %v4086_v17 = vmul.f32 %v1096_v8, %v1096_v8  ;;  %v735_v24 = vpop.f32.mrb[15].mxu1  ;;  %v153_v8 = vld [vmem:[%s11294_s0 + $0x1f8] sm:$0xff] }
 0x117   :  { %601 = vmatmul.mubr.f32.gmra.mrb[120].mxu0 %v150_v4  ;;  %3344 = vst [vmem:[%s11296_s6 + $0x130] sm:$0xff] %v1095_v11  ;;  %v3861_v20 = vadd.f32 %v3860_v62, %v1095_v11  ;;  %v4085_v21 = vmul.f32 %v1095_v11, %v1095_v11  ;;  %v1097_v22 = vmax.f32 %v724_v12, 0.0  ;;  %v279_v23 = vadd.f32 %v278_v51, %v6959_v55 }
 0x118   :  { %1050 = vmatmul.mubr.f32.gmra.mrb[120].mxu1 %v150_v4  ;;  %606 = vmatprep.mubr.f32.mxu0 %v6405_v3  ;;  %v4324_v26 = vadd.f32 %v4323_v5, %v4084_v15  ;;  %v4462_v27 = vadd.f32 %v4461_v6, %v4086_v17  ;;  %v728_v28 = vadd.f32 %v727_v60, %v6962_v56  ;;  %v290_v34 = vpop.f32.mrb[16].mxu0 }
 0x119   :  { %v281_v29 = vadd.f32 %v280_v61, %v6964_v57  ;;  %1055 = vmatprep.mubr.f32.mxu1 %v6405_v3  ;;  %v4393_v30 = vadd.f32 %v4392_v9, %v4085_v21  ;;  %5478 = vst [vmem:[%s11296_s6 + $0x170] sm:$0xff] %v1097_v22  ;;  %v3999_v31 = vadd.f32 %v3998_v0, %v1097_v22  ;;  %v1098_v33 = vmax.f32 %v279_v23, 0.0  ;;  %v739_v39 = vpop.f32.mrb[16].mxu1  ;;  %v7113_v40 = vpop.f32.mrb[17].mxu0 }
 0x11a   :  { %v4087_v32 = vmul.f32 %v1097_v22, %v1097_v22  ;;  %v1100_v35 = vmax.f32 %v728_v28, 0.0  ;;  %v730_v37 = vadd.f32 %v729_v2, %v6970_v59  ;;  %v285_v38 = vadd.f32 %v284_v13, %v6959_v55  ;;  %v7119_v45 = vpop.f32.mrb[17].mxu1  ;;  %v1330_v13 = vld [vmem:[%s11297_s1] sm:$0xff] }
 0x11b   :  { %v1099_v36 = vmax.f32 %v281_v29, 0.0  ;;  %607 = vmatmul.mubr.f32.gmra.mrb[122].mxu0 %v151_v25  ;;  %3281 = vst [vmem:[%s11296_s6 + $0x180] sm:$0xff] %v1098_v33  ;;  %v3793_v42 = vadd.f32 %v3792_v14, %v1098_v33  ;;  %v4088_v43 = vmul.f32 %v1098_v33, %v1098_v33  ;;  %v734_v44 = vadd.f32 %v733_v18, %v6962_v56 }
 0x11c   :  { %v4531_v41 = vadd.f32 %v4530_v10, %v4087_v32  ;;  %1056 = vmatmul.mubr.f32.gmra.mrb[122].mxu1 %v151_v25  ;;  %5415 = vst [vmem:[%s11296_s6 + $0x1c0] sm:$0xff] %v1100_v35  ;;  %v3931_v47 = vadd.f32 %v3930_v16, %v1100_v35  ;;  %v4090_v48 = vmul.f32 %v1100_v35, %v1100_v35  ;;  %v1101_v52 = vmax.f32 %v730_v37, 0.0  ;;  %v296_v58 = vpop.f32.mrb[18].mxu0  ;;  %v1333_v35 = vld [vmem:[%s11297_s1 + $0x18] sm:$0xff] }
 0x11d   :  { %3345 = vst [vmem:[%s11296_s6 + $0x190] sm:$0xff] %v1099_v36  ;;  %v3862_v49 = vadd.f32 %v3861_v20, %v1099_v36  ;;  %v4089_v50 = vmul.f32 %v1099_v36, %v1099_v36  ;;  %612 = vmatprep.mubr.f32.mxu0 %v6405_v3  ;;  %v4325_v51 = vadd.f32 %v4324_v26, %v4088_v43  ;;  %v1102_v53 = vmax.f32 %v285_v38, 0.0  ;;  %v745_v0 = vpop.f32.mrb[18].mxu1  ;;  %v7134_v1 = vpop.f32.mrb[19].mxu0  ;;  %v1334_v36 = vld [vmem:[%s11297_s1 + $0x20] sm:$0xff] }
 0x11e   :  { %v1104_v54 = vmax.f32 %v734_v44, 0.0  ;;  %1061 = vmatprep.mubr.f32.mxu1 %v6405_v3  ;;  %v4463_v60 = vadd.f32 %v4462_v27, %v4090_v48  ;;  %v287_v62 = vadd.f32 %v286_v19, %v6964_v57  ;;  %v736_v63 = vadd.f32 %v735_v24, %v6970_v59  ;;  %5479 = vst [vmem:[%s11296_s6 + $0x1d0] sm:$0xff] %v1101_v52  ;;  %v747_v7 = vpop.f32.mrb[19].mxu1  ;;  %v1331_v19 = vld [vmem:[%s11297_s1 + $0x8] sm:$0xff] }
 0x11f   :  { %v4394_v61 = vadd.f32 %v4393_v30, %v4089_v50  ;;  %613 = vmatmul.mubr.f32.gmra.mrb[124].mxu0 %v152_v46  ;;  %v4000_v2 = vadd.f32 %v3999_v31, %v1101_v52  ;;  %v4091_v4 = vmul.f32 %v1101_v52, %v1101_v52  ;;  %3282 = vst [vmem:[%s11296_s6 + $0x1a0] sm:$0xff] %v1102_v53  ;;  %v1332_v30 = vld [vmem:[%s11297_s1 + $0x10] sm:$0xff] }
 0x120   :  { %v3794_v5 = vadd.f32 %v3793_v42, %v1102_v53  ;;  %v4092_v6 = vmul.f32 %v1102_v53, %v1102_v53  ;;  %5416 = vst [vmem:[%s11296_s6 + $0x1e0] sm:$0xff] %v1104_v54  ;;  %1062 = vmatmul.mubr.f32.gmra.mrb[124].mxu1 %v152_v46  ;;  %v3932_v9 = vadd.f32 %v3931_v47, %v1104_v54  ;;  %v1103_v11 = vmax.f32 %v287_v62, 0.0  ;;  %v7155_v18 = vpop.f32.mrb[20].mxu0  ;;  %v1335_v42 = vld [vmem:[%s11297_s1 + $0x28] sm:$0xff] }
 0x121   :  { %v4094_v10 = vmul.f32 %v1104_v54, %v1104_v54  ;;  %v1105_v12 = vmax.f32 %v736_v63, 0.0  ;;  %618 = vmatprep.mubr.f32.mxu0 %v6405_v3  ;;  %1067 = vmatprep.mubr.f32.mxu1 %v6405_v3  ;;  %v4532_v14 = vadd.f32 %v4531_v41, %v4091_v4  ;;  %v291_v16 = vadd.f32 %v290_v34, %v6959_v55  ;;  %v7166_v23 = vpop.f32.mrb[20].mxu1  ;;  %v7168_v24 = vpop.f32.mrb[21].mxu0  ;;  %v1336_v54 = vld [vmem:[%s11297_s1 + $0x30] sm:$0xff]  ;;  %v1337_v63 = vld [vmem:[%s11297_s1 + $0x38] sm:$0xff] }
 0x122   :  { %v4326_v15 = vadd.f32 %v4325_v51, %v4092_v6  ;;  %v740_v17 = vadd.f32 %v739_v39, %v6962_v56  ;;  %3346 = vst [vmem:[%s11296_s6 + $0x1b0] sm:$0xff] %v1103_v11  ;;  %v3863_v3 = vadd.f32 %v3862_v49, %v1103_v11  ;;  %v4093_v21 = vmul.f32 %v1103_v11, %v1103_v11  ;;  %v7172_v29 = vpop.f32.mrb[21].mxu1  ;;  %v1338_v6 = vld [vmem:[%s11297_s1 + $0x40] sm:$0xff] }
 0x123   :  { %v4464_v20 = vadd.f32 %v4463_v60, %v4094_v10  ;;  %5480 = vst [vmem:[%s11296_s6 + $0x1f0] sm:$0xff] %v1105_v12  ;;  %v4001_v22 = vadd.f32 %v4000_v2, %v1105_v12  ;;  %619 = vmatmul.mubr.f32.gmra.mrb[126].mxu0 %v153_v8  ;;  %v4095_v25 = vmul.f32 %v1105_v12, %v1105_v12  ;;  %v1106_v26 = vmax.f32 %v291_v16, 0.0 }
 0x124   :  { %v1108_v27 = vmax.f32 %v740_v17, 0.0  ;;  %v293_v28 = vadd.f32 %v7113_v40, %v6964_v57  ;;  %1068 = vmatmul.mubr.f32.gmra.mrb[126].mxu1 %v153_v8  ;;  %5857 = vmatprep.mubr.f32.mxu0 %v1330_v13  ;;  %v4395_v31 = vadd.f32 %v4394_v61, %v4093_v21  ;;  %v742_v32 = vadd.f32 %v7119_v45, %v6970_v59  ;;  %v7193_v41 = vpop.f32.mrb[22].mxu0  ;;  %v1339_v13 = vld [vmem:[%s11297_s1 + $0x48] sm:$0xff] }
 0x125   :  { %v297_v33 = vadd.f32 %v296_v58, %v6959_v55  ;;  %v746_v34 = vadd.f32 %v745_v0, %v6962_v56  ;;  %6081 = vmatprep.mubr.f32.mxu1 %v1331_v19  ;;  %v4533_v37 = vadd.f32 %v4532_v14, %v4095_v25  ;;  %3283 = vst [vmem:[%s11296_s6 + $0x200] sm:$0xff] %v1106_v26  ;;  %v757_v47 = vpop.f32.mrb[22].mxu1  ;;  %v7198_v48 = vpop.f32.mrb[23].mxu0 }
 0x126   :  { %v3795_v38 = vadd.f32 %v3794_v5, %v1106_v26  ;;  %v4096_v39 = vmul.f32 %v1106_v26, %v1106_v26  ;;  %5417 = vst [vmem:[%s11296_s6 + $0x240] sm:$0xff] %v1108_v27  ;;  %v3933_v40 = vadd.f32 %v3932_v9, %v1108_v27  ;;  %v4098_v43 = vmul.f32 %v1108_v27, %v1108_v27  ;;  %v7203_v53 = vpop.f32.mrb[23].mxu1 }
 0x127   :  { %v1107_v44 = vmax.f32 %v293_v28, 0.0  ;;  %v1109_v45 = vmax.f32 %v742_v32, 0.0  ;;  %v1110_v46 = vmax.f32 %v297_v33, 0.0  ;;  %5858 = vmatmul.mubr.f32.vlgmr.msra.gmra.mrb[128].mxu0 %v1332_v30  ;;  %v1112_v50 = vmax.f32 %v746_v34, 0.0  ;;  %v1343_v32 = vld [vmem:[%s11297_s1 + $0x68] sm:$0xff] }
 0x128   :  { %v4327_v49 = vadd.f32 %v4326_v15, %v4096_v39  ;;  %v299_v51 = vadd.f32 %v7134_v1, %v6964_v57  ;;  %v748_v52 = vadd.f32 %v747_v7, %v6970_v59  ;;  %6082 = vmatmul.mubr.f32.vlgmr.msra.gmra.mrb[128].mxu1 %v1333_v35  ;;  %5860 = vmatprep.mubr.f32.mxu0 %v1334_v36  ;;  %v7223_v5 = vpop.f32.mrb[24].mxu0 }
 0x129   :  { %v4465_v58 = vadd.f32 %v4464_v20, %v4098_v43  ;;  %3347 = vst [vmem:[%s11296_s6 + $0x210] sm:$0xff] %v1107_v44  ;;  %v3864_v60 = vadd.f32 %v3863_v3, %v1107_v44  ;;  %v4097_v61 = vmul.f32 %v1107_v44, %v1107_v44  ;;  %5481 = vst [vmem:[%s11296_s6 + $0x250] sm:$0xff] %v1109_v45  ;;  %6084 = vmatprep.mubr.f32.mxu1 %v1335_v42  ;;  %v7228_v11 = vpop.f32.mrb[24].mxu1  ;;  %v7230_v12 = vpop.f32.mrb[25].mxu0  ;;  %v1340_v20 = vld [vmem:[%s11297_s1 + $0x50] sm:$0xff] }
 0x12a   :  { %v4002_v62 = vadd.f32 %v4001_v22, %v1109_v45  ;;  %3284 = vst [vmem:[%s11296_s6 + $0x220] sm:$0xff] %v1110_v46  ;;  %v4099_v0 = vmul.f32 %v1109_v45, %v1109_v45  ;;  %v3796_v1 = vadd.f32 %v3795_v38, %v1110_v46  ;;  %v4100_v2 = vmul.f32 %v1110_v46, %v1110_v46  ;;  %v7239_v19 = vpop.f32.mrb[25].mxu1  ;;  %v1344_v42 = vld [vmem:[%s11297_s1 + $0x70] sm:$0xff] }
 0x12b   :  { %5418 = vst [vmem:[%s11296_s6 + $0x260] sm:$0xff] %v1112_v50  ;;  %v3934_v4 = vadd.f32 %v3933_v40, %v1112_v50  ;;  %v4396_v7 = vadd.f32 %v4395_v31, %v4097_v61  ;;  %v4102_v8 = vmul.f32 %v1112_v50, %v1112_v50  ;;  %v1111_v9 = vmax.f32 %v299_v51, 0.0  ;;  %5861 = vmatmul.mubr.f32.gmra.mrb[130].mxu0 %v1336_v54  ;;  %v1342_v31 = vld [vmem:[%s11297_s1 + $0x60] sm:$0xff] }
 0x12c   :  { %v1113_v10 = vmax.f32 %v748_v52, 0.0  ;;  %v4534_v14 = vadd.f32 %v4533_v37, %v4099_v0  ;;  %v4328_v15 = vadd.f32 %v4327_v49, %v4100_v2  ;;  %v303_v16 = vadd.f32 %v7155_v18, %v6959_v55  ;;  %6085 = vmatmul.mubr.f32.gmra.mrb[130].mxu1 %v1337_v63  ;;  %5863 = vmatprep.mubr.f32.mxu0 %v1338_v6  ;;  %v7255_v30 = vpop.f32.mrb[26].mxu0 }
 0x12d   :  { %v752_v17 = vadd.f32 %v7166_v23, %v6962_v56  ;;  %v4466_v3 = vadd.f32 %v4465_v58, %v4102_v8  ;;  %3348 = vst [vmem:[%s11296_s6 + $0x230] sm:$0xff] %v1111_v9  ;;  %v3865_v21 = vadd.f32 %v3864_v60, %v1111_v9  ;;  %v4101_v22 = vmul.f32 %v1111_v9, %v1111_v9  ;;  %v1341_v23 = vld [vmem:[%s11297_s1 + $0x58] sm:$0xff]  ;;  %v7268_v36 = vpop.f32.mrb[26].mxu1  ;;  %v7270_v37 = vpop.f32.mrb[27].mxu0  ;;  %v1346_v58 = vld [vmem:[%s11297_s1 + $0x80] sm:$0xff]  ;;  %v1347_v60 = vld [vmem:[%s11297_s1 + $0x88] sm:$0xff] }
 0x12e   :  { %5482 = vst [vmem:[%s11296_s6 + $0x270] sm:$0xff] %v1113_v10  ;;  %v4003_v18 = vadd.f32 %v4002_v62, %v1113_v10  ;;  %v4103_v25 = vmul.f32 %v1113_v10, %v1113_v10  ;;  %v1114_v26 = vmax.f32 %v303_v16, 0.0  ;;  %v305_v28 = vadd.f32 %v7168_v24, %v6964_v57  ;;  %6087 = vmatprep.mubr.f32.mxu1 %v1339_v13  ;;  %v1348_v8 = vld [vmem:[%s11297_s1 + $0x90] sm:$0xff]  ;;  %v1350_v16 = vld [vmem:[%s11297_s1 + $0xa0] sm:$0xff] }
 0x12f   :  { %v1116_v27 = vmax.f32 %v752_v17, 0.0  ;;  %v4397_v33 = vadd.f32 %v4396_v7, %v4101_v22  ;;  %v754_v34 = vadd.f32 %v7172_v29, %v6970_v59  ;;  %v309_v35 = vadd.f32 %v7193_v41, %v6959_v55  ;;  %5864 = vmatmul.mubr.f32.gmra.mrb[132].mxu0 %v1340_v20  ;;  %v7278_v41 = vpop.f32.mrb[27].mxu1 }
 0x130   :  { %v758_v24 = vadd.f32 %v757_v47, %v6962_v56  ;;  %v4535_v38 = vadd.f32 %v4534_v14, %v4103_v25  ;;  %3285 = vst [vmem:[%s11296_s6 + $0x280] sm:$0xff] %v1114_v26  ;;  %v3797_v39 = vadd.f32 %v3796_v1, %v1114_v26  ;;  %v4104_v40 = vmul.f32 %v1114_v26, %v1114_v26  ;;  %v1345_v47 = vld [vmem:[%s11297_s1 + $0x78] sm:$0xff]  ;;  %v7290_v54 = vpop.f32.mrb[28].mxu0 }
 0x131   :  { %5419 = vst [vmem:[%s11296_s6 + $0x2c0] sm:$0xff] %v1116_v27  ;;  %v3935_v29 = vadd.f32 %v3934_v4, %v1116_v27  ;;  %6088 = vmatmul.mubr.f32.gmra.mrb[132].mxu1 %v1341_v23  ;;  %v4106_v43 = vmul.f32 %v1116_v27, %v1116_v27  ;;  %v1115_v44 = vmax.f32 %v305_v28, 0.0  ;;  %v1117_v45 = vmax.f32 %v754_v34, 0.0  ;;  %5866 = vmatprep.mubr.f32.mxu0 %v1342_v31  ;;  %v7307_v63 = vpop.f32.mrb[28].mxu1  ;;  %v7309_v0 = vpop.f32.mrb[29].mxu0 }
 0x132   :  { %v1118_v46 = vmax.f32 %v309_v35, 0.0  ;;  %6090 = vmatprep.mubr.f32.mxu1 %v1343_v32  ;;  %v4329_v49 = vadd.f32 %v4328_v15, %v4104_v40  ;;  %v1120_v50 = vmax.f32 %v758_v24, 0.0  ;;  %v311_v51 = vadd.f32 %v7198_v48, %v6964_v57  ;;  %v7314_v7 = vpop.f32.mrb[29].mxu1  ;;  %v1349_v15 = vld [vmem:[%s11297_s1 + $0x98] sm:$0xff]  ;;  %v1352_v35 = vld [vmem:[%s11297_s1 + $0xb0] sm:$0xff] }
 0x133   :  { %v760_v52 = vadd.f32 %v7203_v53, %v6970_v59  ;;  %v4467_v61 = vadd.f32 %v4466_v3, %v4106_v43  ;;  %3349 = vst [vmem:[%s11296_s6 + $0x290] sm:$0xff] %v1115_v44  ;;  %v3866_v62 = vadd.f32 %v3865_v21, %v1115_v44  ;;  %v4105_v48 = vmul.f32 %v1115_v44, %v1115_v44  ;;  %v1355_v44 = vld [vmem:[%s11297_s1 + $0xc8] sm:$0xff] }
 0x134   :  { %5483 = vst [vmem:[%s11296_s6 + $0x2d0] sm:$0xff] %v1117_v45  ;;  %v4004_v53 = vadd.f32 %v4003_v18, %v1117_v45  ;;  %3286 = vst [vmem:[%s11296_s6 + $0x2a0] sm:$0xff] %v1118_v46  ;;  %5867 = vmatmul.mubr.f32.gmra.mrb[134].mxu0 %v1344_v42  ;;  %v4107_v1 = vmul.f32 %v1117_v45, %v1117_v45  ;;  %v3798_v2 = vadd.f32 %v3797_v39, %v1118_v46  ;;  %v7329_v22 = vpop.f32.mrb[30].mxu0  ;;  %v1351_v18 = vld [vmem:[%s11297_s1 + $0xa8] sm:$0xff] }
 0x135   :  { %v4108_v4 = vmul.f32 %v1118_v46, %v1118_v46  ;;  %5420 = vst [vmem:[%s11296_s6 + $0x2e0] sm:$0xff] %v1120_v50  ;;  %v3936_v6 = vadd.f32 %v3935_v29, %v1120_v50  ;;  %6091 = vmatmul.mubr.f32.gmra.mrb[134].mxu1 %v1345_v47  ;;  %v4398_v9 = vadd.f32 %v4397_v33, %v4105_v48  ;;  %v1119_v13 = vmax.f32 %v311_v51, 0.0  ;;  %v7340_v27 = vpop.f32.mrb[30].mxu1  ;;  %v1354_v29 = vld [vmem:[%s11297_s1 + $0xc0] sm:$0xff]  ;;  %v1356_v48 = vld [vmem:[%s11297_s1 + $0xd0] sm:$0xff] }
 0x136   :  { %v4110_v10 = vmul.f32 %v1120_v50, %v1120_v50  ;;  %v1121_v14 = vmax.f32 %v760_v52, 0.0  ;;  %5869 = vmatprep.mubr.f32.mxu0 %v1346_v58  ;;  %6093 = vmatprep.mubr.f32.mxu1 %v1347_v60  ;;  %v4536_v17 = vadd.f32 %v4535_v38, %v4107_v1  ;;  %v315_v3 = vadd.f32 %v7223_v5, %v6959_v55  ;;  %v7346_v34 = vpop.f32.mrb[31].mxu1 }
 0x137   :  { %v4330_v20 = vadd.f32 %v4329_v49, %v4108_v4  ;;  %v764_v21 = vadd.f32 %v7228_v11, %v6962_v56  ;;  %3350 = vst [vmem:[%s11296_s6 + $0x2b0] sm:$0xff] %v1119_v13  ;;  %v3867_v25 = vadd.f32 %v3866_v62, %v1119_v13  ;;  %v4109_v26 = vmul.f32 %v1119_v13, %v1119_v13  ;;  %v7342_v11 = vpop.f32.mrb[31].mxu0  ;;  %v1358_v13 = vld [vmem:[%s11297_s1 + $0xe0] sm:$0xff] }
 0x138   :  { %v4468_v23 = vadd.f32 %v4467_v61, %v4110_v10  ;;  %5484 = vst [vmem:[%s11296_s6 + $0x2f0] sm:$0xff] %v1121_v14  ;;  %v4005_v5 = vadd.f32 %v4004_v53, %v1121_v14  ;;  %5870 = vmatmul.mubr.f32.gmra.mrb[136].mxu0 %v1348_v8  ;;  %v4111_v28 = vmul.f32 %v1121_v14, %v1121_v14  ;;  %v1122_v31 = vmax.f32 %v315_v3, 0.0 }
 0x139   :  { %v1124_v32 = vmax.f32 %v764_v21, 0.0  ;;  %v317_v33 = vadd.f32 %v7230_v12, %v6964_v57  ;;  %6094 = vmatmul.mubr.f32.gmra.mrb[136].mxu1 %v1349_v15  ;;  %5872 = vmatprep.mubr.f32.mxu0 %v1350_v16  ;;  %v4399_v24 = vadd.f32 %v4398_v9, %v4109_v26  ;;  %v766_v38 = vadd.f32 %v7239_v19, %v6970_v59  ;;  %v1353_v12 = vld [vmem:[%s11297_s1 + $0xb8] sm:$0xff]  ;;  %v7374_v50 = vpop.f32.mrb[32].mxu1  ;;  %v1359_v21 = vld [vmem:[%s11297_s1 + $0xe8] sm:$0xff] }
 0x13a   :  { %v321_v39 = vadd.f32 %v7255_v30, %v6959_v55  ;;  %v770_v40 = vadd.f32 %v7268_v36, %v6962_v56  ;;  %6096 = vmatprep.mubr.f32.mxu1 %v1351_v18  ;;  %v4537_v42 = vadd.f32 %v4536_v17, %v4111_v28  ;;  %3287 = vst [vmem:[%s11296_s6 + $0x300] sm:$0xff] %v1122_v31  ;;  %v7369_v36 = vpop.f32.mrb[32].mxu0  ;;  %v7382_v62 = vpop.f32.mrb[33].mxu1  ;;  %v1360_v28 = vld [vmem:[%s11297_s1 + $0xf0] sm:$0xff] }
 0x13b   :  { %v3799_v19 = vadd.f32 %v3798_v2, %v1122_v31  ;;  %v4112_v43 = vmul.f32 %v1122_v31, %v1122_v31  ;;  %5421 = vst [vmem:[%s11296_s6 + $0x340] sm:$0xff] %v1124_v32  ;;  %v3937_v30 = vadd.f32 %v3936_v6, %v1124_v32  ;;  %v4114_v45 = vmul.f32 %v1124_v32, %v1124_v32  ;;  %v7376_v51 = vpop.f32.mrb[33].mxu0 }
 0x13c   :  { %v1123_v46 = vmax.f32 %v317_v33, 0.0  ;;  %v1125_v47 = vmax.f32 %v766_v38, 0.0  ;;  %v1126_v49 = vmax.f32 %v321_v39, 0.0  ;;  %5873 = vmatmul.mubr.f32.gmra.mrb[138].mxu0 %v1352_v35  ;;  %v1128_v58 = vmax.f32 %v770_v40, 0.0  ;;  %v7402_v10 = vpop.f32.mrb[34].mxu0 }
 0x13d   :  { %v4331_v52 = vadd.f32 %v4330_v20, %v4112_v43  ;;  %v323_v60 = vadd.f32 %v7270_v37, %v6964_v57  ;;  %v772_v61 = vadd.f32 %v7278_v41, %v6970_v59  ;;  %6097 = vmatmul.mubr.f32.gmra.mrb[138].mxu1 %v1353_v12  ;;  %5875 = vmatprep.mubr.f32.mxu0 %v1354_v29  ;;  %v1357_v41 = vld [vmem:[%s11297_s1 + $0xd8] sm:$0xff]  ;;  %v7407_v20 = vpop.f32.mrb[34].mxu1  ;;  %v7409_v3 = vpop.f32.mrb[35].mxu0  ;;  %v1362_v12 = vld [vmem:[%s11297_s1 + $0x100] sm:$0xff]  ;;  %v1363_v29 = vld [vmem:[%s11297_s1 + $0x108] sm:$0xff] }
 0x13e   :  { %v4469_v53 = vadd.f32 %v4468_v23, %v4114_v45  ;;  %3351 = vst [vmem:[%s11296_s6 + $0x310] sm:$0xff] %v1123_v46  ;;  %v3868_v1 = vadd.f32 %v3867_v25, %v1123_v46  ;;  %v4113_v2 = vmul.f32 %v1123_v46, %v1123_v46  ;;  %5485 = vst [vmem:[%s11296_s6 + $0x350] sm:$0xff] %v1125_v47  ;;  %6099 = vmatprep.mubr.f32.mxu1 %v1355_v44 }
 0x13f   :  { %v4006_v37 = vadd.f32 %v4005_v5, %v1125_v47  ;;  %3288 = vst [vmem:[%s11296_s6 + $0x320] sm:$0xff] %v1126_v49  ;;  %v4115_v4 = vmul.f32 %v1125_v47, %v1125_v47  ;;  %v3800_v6 = vadd.f32 %v3799_v19, %v1126_v49  ;;  %v4116_v8 = vmul.f32 %v1126_v49, %v1126_v49  ;;  %v7418_v5 = vpop.f32.mrb[35].mxu1 }
 0x140   :  { %5422 = vst [vmem:[%s11296_s6 + $0x360] sm:$0xff] %v1128_v58  ;;  %v3938_v9 = vadd.f32 %v3937_v30, %v1128_v58  ;;  %v4400_v14 = vadd.f32 %v4399_v24, %v4113_v2  ;;  %v4118_v15 = vmul.f32 %v1128_v58, %v1128_v58  ;;  %v1127_v16 = vmax.f32 %v323_v60, 0.0  ;;  %5876 = vmatmul.mubr.f32.gmra.mrb[140].mxu0 %v1356_v48  ;;  %v7434_v40 = vpop.f32.mrb[36].mxu0 }
 0x141   :  { %v1129_v17 = vmax.f32 %v772_v61, 0.0  ;;  %v4538_v18 = vadd.f32 %v4537_v42, %v4115_v4  ;;  %v4332_v23 = vadd.f32 %v4331_v52, %v4116_v8  ;;  %v327_v25 = vadd.f32 %v7290_v54, %v6959_v55  ;;  %6100 = vmatmul.mubr.f32.gmra.mrb[140].mxu1 %v1357_v41  ;;  %5878 = vmatprep.mubr.f32.mxu0 %v1358_v13  ;;  %v7448_v30 = vpop.f32.mrb[36].mxu1  ;;  %v7450_v44 = vpop.f32.mrb[37].mxu0  ;;  %v1365_v61 = vld [vmem:[%s11297_s1 + $0x118] sm:$0xff]  ;;  %v1366_v41 = vld [vmem:[%s11297_s1 + $0x120] sm:$0xff]  ;;  %v1367_v4 = vld [vmem:[%s11297_s1 + $0x128] sm:$0xff] }
 0x142   :  { %v776_v26 = vadd.f32 %v7307_v63, %v6962_v56  ;;  %v4470_v31 = vadd.f32 %v4469_v53, %v4118_v15  ;;  %3352 = vst [vmem:[%s11296_s6 + $0x330] sm:$0xff] %v1127_v16  ;;  %v3869_v32 = vadd.f32 %v3868_v1, %v1127_v16  ;;  %v4117_v33 = vmul.f32 %v1127_v16, %v1127_v16  ;;  %v1361_v63 = vld [vmem:[%s11297_s1 + $0xf8] sm:$0xff] }
 0x143   :  { %5486 = vst [vmem:[%s11296_s6 + $0x370] sm:$0xff] %v1129_v17  ;;  %v4007_v54 = vadd.f32 %v4006_v37, %v1129_v17  ;;  %v4119_v35 = vmul.f32 %v1129_v17, %v1129_v17  ;;  %v1130_v24 = vmax.f32 %v327_v25, 0.0  ;;  %v329_v39 = vadd.f32 %v7309_v0, %v6964_v57  ;;  %6102 = vmatprep.mubr.f32.mxu1 %v1359_v21 }
 0x144   :  { %v1132_v38 = vmax.f32 %v776_v26, 0.0  ;;  %v4401_v42 = vadd.f32 %v4400_v14, %v4117_v33  ;;  %v778_v19 = vadd.f32 %v7314_v7, %v6970_v59  ;;  %v333_v43 = vadd.f32 %v7329_v22, %v6959_v55  ;;  %5879 = vmatmul.mubr.f32.gmra.mrb[142].mxu0 %v1360_v28  ;;  %v7458_v22 = vpop.f32.mrb[37].mxu1  ;;  %v7470_v37 = vpop.f32.mrb[38].mxu0 }
 0x145   :  { %v782_v0 = vadd.f32 %v7340_v27, %v6962_v56  ;;  %v4539_v45 = vadd.f32 %v4538_v18, %v4119_v35  ;;  %3289 = vst [vmem:[%s11296_s6 + $0x380] sm:$0xff] %v1130_v24  ;;  %v3801_v46 = vadd.f32 %v3800_v6, %v1130_v24  ;;  %v4120_v47 = vmul.f32 %v1130_v24, %v1130_v24  ;;  %v1364_v27 = vld [vmem:[%s11297_s1 + $0x110] sm:$0xff]  ;;  %v7489_v13 = vpop.f32.mrb[39].mxu0 }
 0x146   :  { %5423 = vst [vmem:[%s11296_s6 + $0x3c0] sm:$0xff] %v1132_v38  ;;  %v3939_v7 = vadd.f32 %v3938_v9, %v1132_v38  ;;  %6103 = vmatmul.mubr.f32.gmra.mrb[142].mxu1 %v1361_v63  ;;  %v4122_v49 = vmul.f32 %v1132_v38, %v1132_v38  ;;  %v1131_v52 = vmax.f32 %v329_v39, 0.0  ;;  %v1133_v58 = vmax.f32 %v778_v19, 0.0  ;;  %5881 = vmatprep.mubr.f32.mxu0 %v1362_v12  ;;  %v7487_v9 = vpop.f32.mrb[38].mxu1  ;;  %v1368_v18 = vld [vmem:[%s11297_s1 + $0x130] sm:$0xff]  ;;  %v1371_v38 = vld [vmem:[%s11297_s1 + $0x148] sm:$0xff] }
 0x147   :  { %v1134_v60 = vmax.f32 %v333_v43, 0.0  ;;  %6105 = vmatprep.mubr.f32.mxu1 %v1363_v29  ;;  %v4333_v48 = vadd.f32 %v4332_v23, %v4120_v47  ;;  %v1136_v53 = vmax.f32 %v782_v0, 0.0  ;;  %v335_v1 = vadd.f32 %v7342_v11, %v6964_v57  ;;  %v7494_v21 = vpop.f32.mrb[39].mxu1  ;;  %v1372_v47 = vld [vmem:[%s11297_s1 + $0x150] sm:$0xff] }
 0x148   :  { %v784_v2 = vadd.f32 %v7346_v34, %v6970_v59  ;;  %v4471_v6 = vadd.f32 %v4470_v31, %v4122_v49  ;;  %3353 = vst [vmem:[%s11296_s6 + $0x390] sm:$0xff] %v1131_v52  ;;  %v3870_v8 = vadd.f32 %v3869_v32, %v1131_v52  ;;  %v4121_v11 = vmul.f32 %v1131_v52, %v1131_v52  ;;  %v1369_v31 = vld [vmem:[%s11297_s1 + $0x138] sm:$0xff]  ;;  %v1370_v32 = vld [vmem:[%s11297_s1 + $0x140] sm:$0xff]  ;;  %v7509_v24 = vpop.f32.mrb[40].mxu0 }
 0x149   :  { %5487 = vst [vmem:[%s11296_s6 + $0x3d0] sm:$0xff] %v1133_v58  ;;  %v4008_v34 = vadd.f32 %v4007_v54, %v1133_v58  ;;  %3290 = vst [vmem:[%s11296_s6 + $0x3a0] sm:$0xff] %v1134_v60  ;;  %5882 = vmatmul.mubr.f32.gmra.mrb[144].mxu0 %v1364_v27  ;;  %v4123_v14 = vmul.f32 %v1133_v58, %v1133_v58  ;;  %v3802_v15 = vadd.f32 %v3801_v46, %v1134_v60  ;;  %v1374_v58 = vld [vmem:[%s11297_s1 + $0x160] sm:$0xff] }
 0x14a   :  { %v4124_v16 = vmul.f32 %v1134_v60, %v1134_v60  ;;  %5424 = vst [vmem:[%s11296_s6 + $0x3e0] sm:$0xff] %v1136_v53  ;;  %v3940_v17 = vadd.f32 %v3939_v7, %v1136_v53  ;;  %6106 = vmatmul.mubr.f32.gmra.mrb[144].mxu1 %v1365_v61  ;;  %v4402_v23 = vadd.f32 %v4401_v42, %v4121_v11  ;;  %v1135_v26 = vmax.f32 %v335_v1, 0.0  ;;  %v7520_v42 = vpop.f32.mrb[40].mxu1 }
 0x14b   :  { %v4126_v25 = vmul.f32 %v1136_v53, %v1136_v53  ;;  %v1137_v28 = vmax.f32 %v784_v2, 0.0  ;;  %5884 = vmatprep.mubr.f32.mxu0 %v1366_v41  ;;  %6108 = vmatprep.mubr.f32.mxu1 %v1367_v4  ;;  %v4540_v33 = vadd.f32 %v4539_v45, %v4123_v14  ;;  %v339_v63 = vadd.f32 %v7369_v36, %v6959_v55  ;;  %v7526_v46 = vpop.f32.mrb[41].mxu1 }
 0x14c   :  { %v4334_v54 = vadd.f32 %v4333_v48, %v4124_v16  ;;  %v788_v35 = vadd.f32 %v7374_v50, %v6962_v56  ;;  %3354 = vst [vmem:[%s11296_s6 + $0x3b0] sm:$0xff] %v1135_v26  ;;  %v3871_v12 = vadd.f32 %v3870_v8, %v1135_v26  ;;  %v4125_v29 = vmul.f32 %v1135_v26, %v1135_v26  ;;  %v7522_v50 = vpop.f32.mrb[41].mxu0  ;;  %v1375_v48 = vld [vmem:[%s11297_s1 + $0x168] sm:$0xff]  ;;  %v1376_v16 = vld [vmem:[%s11297_s1 + $0x170] sm:$0xff] }
 0x14d   :  { %v4472_v39 = vadd.f32 %v4471_v6, %v4126_v25  ;;  %5488 = vst [vmem:[%s11296_s6 + $0x3f0] sm:$0xff] %v1137_v28  ;;  %v4009_v36 = vadd.f32 %v4008_v34, %v1137_v28  ;;  %5885 = vmatmul.mubr.f32.gmra.mrb[146].mxu0 %v1368_v18  ;;  %v4127_v19 = vmul.f32 %v1137_v28, %v1137_v28  ;;  %v1138_v43 = vmax.f32 %v339_v63, 0.0  ;;  %v7554_v4 = vpop.f32.mrb[42].mxu1 }
 0x14e   :  { %v1140_v0 = vmax.f32 %v788_v35, 0.0  ;;  %v341_v45 = vadd.f32 %v7376_v51, %v6964_v57  ;;  %6109 = vmatmul.mubr.f32.gmra.mrb[146].mxu1 %v1369_v31  ;;  %5887 = vmatprep.mubr.f32.mxu0 %v1370_v32  ;;  %v4403_v7 = vadd.f32 %v4402_v23, %v4125_v29  ;;  %v790_v27 = vadd.f32 %v7382_v62, %v6970_v59  ;;  %v1373_v51 = vld [vmem:[%s11297_s1 + $0x158] sm:$0xff]  ;;  %v1379_v29 = vld [vmem:[%s11297_s1 + $0x188] sm:$0xff] }
 0x14f   :  { %v345_v49 = vadd.f32 %v7402_v10, %v6959_v55  ;;  %v794_v52 = vadd.f32 %v7407_v20, %v6962_v56  ;;  %6111 = vmatprep.mubr.f32.mxu1 %v1371_v38  ;;  %v4541_v60 = vadd.f32 %v4540_v33, %v4127_v19  ;;  %3291 = vst [vmem:[%s11296_s6 + $0x400] sm:$0xff] %v1138_v43  ;;  %v7549_v20 = vpop.f32.mrb[42].mxu0  ;;  %v1378_v33 = vld [vmem:[%s11297_s1 + $0x180] sm:$0xff] }
 0x150   :  { %v3803_v62 = vadd.f32 %v3802_v15, %v1138_v43  ;;  %v4128_v61 = vmul.f32 %v1138_v43, %v1138_v43  ;;  %5425 = vst [vmem:[%s11296_s6 + $0x440] sm:$0xff] %v1140_v0  ;;  %v3941_v10 = vadd.f32 %v3940_v17, %v1140_v0  ;;  %v4130_v53 = vmul.f32 %v1140_v0, %v1140_v0  ;;  %v7556_v6 = vpop.f32.mrb[43].mxu0  ;;  %v7562_v15 = vpop.f32.mrb[43].mxu1 }
 0x151   :  { %v1139_v1 = vmax.f32 %v341_v45, 0.0  ;;  %v1141_v2 = vmax.f32 %v790_v27, 0.0  ;;  %v1142_v41 = vmax.f32 %v345_v49, 0.0  ;;  %5888 = vmatmul.mubr.f32.gmra.mrb[148].mxu0 %v1372_v47  ;;  %v1144_v11 = vmax.f32 %v794_v52, 0.0  ;;  %v7582_v32 = vpop.f32.mrb[44].mxu0  ;;  %v1380_v47 = vld [vmem:[%s11297_s1 + $0x190] sm:$0xff] }
 0x152   :  { %v4335_v8 = vadd.f32 %v4334_v54, %v4128_v61  ;;  %v347_v34 = vadd.f32 %v7409_v3, %v6964_v57  ;;  %v796_v14 = vadd.f32 %v7418_v5, %v6970_v59  ;;  %6112 = vmatmul.mubr.f32.gmra.mrb[148].mxu1 %v1373_v51  ;;  %5890 = vmatprep.mubr.f32.mxu0 %v1374_v58  ;;  %v1377_v5 = vld [vmem:[%s11297_s1 + $0x178] sm:$0xff]  ;;  %v1382_v61 = vld [vmem:[%s11297_s1 + $0x1a0] sm:$0xff] }
 0x153   :  { %v4473_v17 = vadd.f32 %v4472_v39, %v4130_v53  ;;  %3355 = vst [vmem:[%s11296_s6 + $0x410] sm:$0xff] %v1139_v1  ;;  %v3872_v18 = vadd.f32 %v3871_v12, %v1139_v1  ;;  %v4129_v23 = vmul.f32 %v1139_v1, %v1139_v1  ;;  %5489 = vst [vmem:[%s11296_s6 + $0x450] sm:$0xff] %v1141_v2  ;;  %6114 = vmatprep.mubr.f32.mxu1 %v1375_v48  ;;  %v7587_v39 = vpop.f32.mrb[44].mxu1  ;;  %v7589_v12 = vpop.f32.mrb[45].mxu0 }
 0x154   :  { %v4010_v3 = vadd.f32 %v4009_v36, %v1141_v2  ;;  %3292 = vst [vmem:[%s11296_s6 + $0x420] sm:$0xff] %v1142_v41  ;;  %v4131_v25 = vmul.f32 %v1141_v2, %v1141_v2  ;;  %v3804_v26 = vadd.f32 %v3803_v62, %v1142_v41  ;;  %v4132_v28 = vmul.f32 %v1142_v41, %v1142_v41  ;;  %v7598_v45 = vpop.f32.mrb[45].mxu1  ;;  %v7614_v62 = vpop.f32.mrb[46].mxu0 }
 0x155   :  { %5426 = vst [vmem:[%s11296_s6 + $0x460] sm:$0xff] %v1144_v11  ;;  %v3942_v31 = vadd.f32 %v3941_v10, %v1144_v11  ;;  %v4404_v54 = vadd.f32 %v4403_v7, %v4129_v23  ;;  %v4134_v63 = vmul.f32 %v1144_v11, %v1144_v11  ;;  %v1143_v35 = vmax.f32 %v347_v34, 0.0  ;;  %5891 = vmatmul.mubr.f32.gmra.mrb[150].mxu0 %v1376_v16  ;;  %v1383_v10 = vld [vmem:[%s11297_s1 + $0x1a8] sm:$0xff]  ;;  %v7628_v2 = vpop.f32.mrb[46].mxu1  ;;  %v7630_v41 = vpop.f32.mrb[47].mxu0  ;;  %v1385_v23 = vld [vmem:[%s11297_s1 + $0x1b8] sm:$0xff] }
 0x156   :  { %v1145_v38 = vmax.f32 %v796_v14, 0.0  ;;  %v4542_v36 = vadd.f32 %v4541_v60, %v4131_v25  ;;  %v4336_v19 = vadd.f32 %v4335_v8, %v4132_v28  ;;  %v351_v43 = vadd.f32 %v7434_v40, %v6959_v55  ;;  %6115 = vmatmul.mubr.f32.gmra.mrb[150].mxu1 %v1377_v5  ;;  %5893 = vmatprep.mubr.f32.mxu0 %v1378_v33  ;;  %v1387_v33 = vld [vmem:[%s11297_s1 + $0x1c8] sm:$0xff] }
 0x157   :  { %v800_v0 = vadd.f32 %v7448_v30, %v6962_v56  ;;  %v4474_v7 = vadd.f32 %v4473_v17, %v4134_v63  ;;  %3356 = vst [vmem:[%s11296_s6 + $0x430] sm:$0xff] %v1143_v35  ;;  %v3873_v27 = vadd.f32 %v3872_v18, %v1143_v35  ;;  %v4133_v49 = vmul.f32 %v1143_v35, %v1143_v35  ;;  %v1381_v30 = vld [vmem:[%s11297_s1 + $0x198] sm:$0xff] }
 0x158   :  { %5490 = vst [vmem:[%s11296_s6 + $0x470] sm:$0xff] %v1145_v38  ;;  %v4011_v40 = vadd.f32 %v4010_v3, %v1145_v38  ;;  %v4135_v52 = vmul.f32 %v1145_v38, %v1145_v38  ;;  %v1146_v51 = vmax.f32 %v351_v43, 0.0  ;;  %v353_v60 = vadd.f32 %v7450_v44, %v6964_v57  ;;  %6117 = vmatprep.mubr.f32.mxu1 %v1379_v29  ;;  %v7650_v28 = vpop.f32.mrb[48].mxu0 }
 0x159   :  { %v1148_v58 = vmax.f32 %v800_v0, 0.0  ;;  %v4405_v48 = vadd.f32 %v4404_v54, %v4133_v49  ;;  %v802_v53 = vadd.f32 %v7458_v22, %v6970_v59  ;;  %v357_v1 = vadd.f32 %v7470_v37, %v6959_v55  ;;  %5894 = vmatmul.mubr.f32.gmra.mrb[152].mxu0 %v1380_v47  ;;  %v7638_v37 = vpop.f32.mrb[47].mxu1  ;;  %v7669_v38 = vpop.f32.mrb[49].mxu0  ;;  %v1388_v47 = vld [vmem:[%s11297_s1 + $0x1d0] sm:$0xff] }
 0x15a   :  { %v806_v44 = vadd.f32 %v7487_v9, %v6962_v56  ;;  %v4543_v8 = vadd.f32 %v4542_v36, %v4135_v52  ;;  %3293 = vst [vmem:[%s11296_s6 + $0x480] sm:$0xff] %v1146_v51  ;;  %v3805_v11 = vadd.f32 %v3804_v26, %v1146_v51  ;;  %v4136_v34 = vmul.f32 %v1146_v51, %v1146_v51  ;;  %v1384_v9 = vld [vmem:[%s11297_s1 + $0x1b0] sm:$0xff]  ;;  %v7667_v35 = vpop.f32.mrb[48].mxu1  ;;  %v1390_v52 = vld [vmem:[%s11297_s1 + $0x1e0] sm:$0xff] }
 0x15b   :  { %5427 = vst [vmem:[%s11296_s6 + $0x4c0] sm:$0xff] %v1148_v58  ;;  %v3943_v22 = vadd.f32 %v3942_v31, %v1148_v58  ;;  %6118 = vmatmul.mubr.f32.gmra.mrb[152].mxu1 %v1381_v30  ;;  %v4138_v14 = vmul.f32 %v1148_v58, %v1148_v58  ;;  %v1147_v16 = vmax.f32 %v353_v60, 0.0  ;;  %v1149_v17 = vmax.f32 %v802_v53, 0.0  ;;  %5896 = vmatprep.mubr.f32.mxu0 %v1382_v61  ;;  %v1386_v31 = vld [vmem:[%s11297_s1 + $0x1c0] sm:$0xff]  ;;  %v7674_v0 = vpop.f32.mrb[49].mxu1  ;;  %v1389_v30 = vld [vmem:[%s11297_s1 + $0x1d8] sm:$0xff] }
 0x15c   :  { %v1150_v18 = vmax.f32 %v357_v1, 0.0  ;;  %6120 = vmatprep.mubr.f32.mxu1 %v1383_v10  ;;  %v4337_v3 = vadd.f32 %v4336_v19, %v4136_v34  ;;  %v1152_v5 = vmax.f32 %v806_v44, 0.0  ;;  %v359_v25 = vadd.f32 %v7489_v13, %v6964_v57  ;;  %v7689_v10 = vpop.f32.mrb[50].mxu0 }
 0x15d   :  { %v808_v26 = vadd.f32 %v7494_v21, %v6970_v59  ;;  %v4475_v54 = vadd.f32 %v4474_v7, %v4138_v14  ;;  %3357 = vst [vmem:[%s11296_s6 + $0x490] sm:$0xff] %v1147_v16  ;;  %v3874_v63 = vadd.f32 %v3873_v27, %v1147_v16  ;;  %v4137_v13 = vmul.f32 %v1147_v16, %v1147_v16  ;;  %v1392_v16 = vld [vmem:[%s11297_s1 + $0x1f0] sm:$0xff] }
 0x15e   :  { %5491 = vst [vmem:[%s11296_s6 + $0x4d0] sm:$0xff] %v1149_v17  ;;  %v4012_v21 = vadd.f32 %v4011_v40, %v1149_v17  ;;  %3294 = vst [vmem:[%s11296_s6 + $0x4a0] sm:$0xff] %v1150_v18  ;;  %5897 = vmatmul.mubr.f32.gmra.mrb[154].mxu0 %v1384_v9  ;;  %v4139_v29 = vmul.f32 %v1149_v17, %v1149_v17  ;;  %v3806_v36 = vadd.f32 %v3805_v11, %v1150_v18 }
 0x15f   :  { %v4140_v19 = vmul.f32 %v1150_v18, %v1150_v18  ;;  %5428 = vst [vmem:[%s11296_s6 + $0x4e0] sm:$0xff] %v1152_v5  ;;  %v3944_v43 = vadd.f32 %v3943_v22, %v1152_v5  ;;  %6121 = vmatmul.mubr.f32.gmra.mrb[154].mxu1 %v1385_v23  ;;  %v4406_v7 = vadd.f32 %v4405_v48, %v4137_v13  ;;  %v1151_v49 = vmax.f32 %v359_v25, 0.0  ;;  %v1391_v48 = vld [vmem:[%s11297_s1 + $0x1e8] sm:$0xff] }
 0x160   :  { %v4142_v27 = vmul.f32 %v1152_v5, %v1152_v5  ;;  %v1153_v40 = vmax.f32 %v808_v26, 0.0  ;;  %5899 = vmatprep.mubr.f32.mxu0 %v1386_v31  ;;  %6123 = vmatprep.mubr.f32.mxu1 %v1387_v33  ;;  %v4544_v51 = vadd.f32 %v4543_v8, %v4139_v29  ;;  %v363_v60 = vadd.f32 %v7509_v24, %v6959_v55  ;;  %v7700_v8 = vpop.f32.mrb[50].mxu1  ;;  %v1394_v5 = vld [vmem:[%s11297_s1 + $0x200] sm:$0xff]  ;;  %v1395_v31 = vld [vmem:[%s11297_s1 + $0x208] sm:$0xff] }
 0x161   :  { %v4338_v58 = vadd.f32 %v4337_v3, %v4140_v19  ;;  %v812_v61 = vadd.f32 %v7520_v42, %v6962_v56  ;;  %3358 = vst [vmem:[%s11296_s6 + $0x4b0] sm:$0xff] %v1151_v49  ;;  %v3875_v1 = vadd.f32 %v3874_v63, %v1151_v49  ;;  %v4141_v44 = vmul.f32 %v1151_v49, %v1151_v49  ;;  %v7702_v42 = vpop.f32.mrb[51].mxu0  ;;  %v7706_v14 = vpop.f32.mrb[51].mxu1 }
 0x162   :  { %v4476_v53 = vadd.f32 %v4475_v54, %v4142_v27  ;;  %5492 = vst [vmem:[%s11296_s6 + $0x4f0] sm:$0xff] %v1153_v40  ;;  %v4013_v24 = vadd.f32 %v4012_v21, %v1153_v40  ;;  %5900 = vmatmul.mubr.f32.gmra.mrb[156].mxu0 %v1388_v47  ;;  %v4143_v11 = vmul.f32 %v1153_v40, %v1153_v40  ;;  %v1154_v34 = vmax.f32 %v363_v60, 0.0  ;;  %v7734_v21 = vpop.f32.mrb[52].mxu1  ;;  %v1396_v27 = vld [vmem:[%s11297_s1 + $0x210] sm:$0xff] }
 0x163   :  { %v1156_v22 = vmax.f32 %v812_v61, 0.0  ;;  %v365_v9 = vadd.f32 %v7522_v50, %v6964_v57  ;;  %6124 = vmatmul.mubr.f32.gmra.mrb[156].mxu1 %v1389_v30  ;;  %5902 = vmatprep.mubr.f32.mxu0 %v1390_v52  ;;  %v4407_v17 = vadd.f32 %v4406_v7, %v4141_v44  ;;  %v814_v18 = vadd.f32 %v7526_v46, %v6970_v59  ;;  %v1393_v50 = vld [vmem:[%s11297_s1 + $0x1f8] sm:$0xff]  ;;  %v7742_v7 = vpop.f32.mrb[53].mxu1 }
 0x164   :  { %v369_v23 = vadd.f32 %v7549_v20, %v6959_v55  ;;  %v818_v3 = vadd.f32 %v7554_v4, %v6962_v56  ;;  %6126 = vmatprep.mubr.f32.mxu1 %v1391_v48  ;;  %v4545_v25 = vadd.f32 %v4544_v51, %v4143_v11  ;;  %3295 = vst [vmem:[%s11296_s6 + $0x500] sm:$0xff] %v1154_v34  ;;  %v7729_v4 = vpop.f32.mrb[52].mxu0  ;;  %v1398_v48 = vld [vmem:[%s11297_s1 + $0x220] sm:$0xff] }
 0x165   :  { %v3807_v46 = vadd.f32 %v3806_v36, %v1154_v34  ;;  %v4144_v26 = vmul.f32 %v1154_v34, %v1154_v34  ;;  %5429 = vst [vmem:[%s11296_s6 + $0x540] sm:$0xff] %v1156_v22  ;;  %v3945_v20 = vadd.f32 %v3944_v43, %v1156_v22  ;;  %v4146_v33 = vmul.f32 %v1156_v22, %v1156_v22  ;;  %v7736_v29 = vpop.f32.mrb[53].mxu0  ;;  %v7767_v11 = vpop.f32.mrb[54].mxu1  ;;  %v1399_v22 = vld [vmem:[%s11297_s1 + $0x228] sm:$0xff] }
 0x166   :  { %v1155_v54 = vmax.f32 %v365_v9, 0.0  ;;  %v1157_v63 = vmax.f32 %v814_v18, 0.0  ;;  %v1158_v13 = vmax.f32 %v369_v23, 0.0  ;;  %5903 = vmatmul.mubr.f32.gmra.mrb[158].mxu0 %v1392_v16  ;;  %v1160_v19 = vmax.f32 %v818_v3, 0.0  ;;  %v7762_v61 = vpop.f32.mrb[54].mxu0  ;;  %v7778_v23 = vpop.f32.mrb[55].mxu1 }
 0x167   :  { %v4339_v36 = vadd.f32 %v4338_v58, %v4144_v26  ;;  %v371_v43 = vadd.f32 %v7556_v6, %v6964_v57  ;;  %v820_v47 = vadd.f32 %v7562_v15, %v6970_v59  ;;  %6127 = vmatmul.mubr.f32.gmra.mrb[158].mxu1 %v1393_v50  ;;  %5905 = vmatprep.mubr.f32.mxu0 %v1394_v5  ;;  %v1397_v15 = vld [vmem:[%s11297_s1 + $0x218] sm:$0xff]  ;;  %v7769_v34 = vpop.f32.mrb[55].mxu0  ;;  %v1400_v3 = vld [vmem:[%s11297_s1 + $0x230] sm:$0xff] }
 0x168   :  { %v4477_v49 = vadd.f32 %v4476_v53, %v4146_v33  ;;  %3359 = vst [vmem:[%s11296_s6 + $0x510] sm:$0xff] %v1155_v54  ;;  %v3876_v40 = vadd.f32 %v3875_v1, %v1155_v54  ;;  %v4145_v30 = vmul.f32 %v1155_v54, %v1155_v54  ;;  %5493 = vst [vmem:[%s11296_s6 + $0x550] sm:$0xff] %v1157_v63  ;;  %6129 = vmatprep.mubr.f32.mxu1 %v1395_v31  ;;  %v7794_v33 = vpop.f32.mrb[56].mxu0  ;;  %v1402_v54 = vld [vmem:[%s11297_s1 + $0x240] sm:$0xff] }
 0x169   :  { %v4014_v6 = vadd.f32 %v4013_v24, %v1157_v63  ;;  %3296 = vst [vmem:[%s11296_s6 + $0x520] sm:$0xff] %v1158_v13  ;;  %v4147_v52 = vmul.f32 %v1157_v63, %v1157_v63  ;;  %v3808_v51 = vadd.f32 %v3807_v46, %v1158_v13  ;;  %v4148_v58 = vmul.f32 %v1158_v13, %v1158_v13  ;;  %v1403_v63 = vld [vmem:[%s11297_s1 + $0x248] sm:$0xff] }
 0x16a   :  { %5430 = vst [vmem:[%s11296_s6 + $0x560] sm:$0xff] %v1160_v19  ;;  %v3946_v60 = vadd.f32 %v3945_v20, %v1160_v19  ;;  %v4408_v53 = vadd.f32 %v4407_v17, %v4145_v30  ;;  %v4150_v1 = vmul.f32 %v1160_v19, %v1160_v19  ;;  %v1159_v44 = vmax.f32 %v371_v43, 0.0  ;;  %5906 = vmatmul.mubr.f32.gmra.mrb[160].mxu0 %v1396_v27  ;;  %v7808_v43 = vpop.f32.mrb[56].mxu1 }
 0x16b   :  { %v1161_v24 = vmax.f32 %v820_v47, 0.0  ;;  %v4546_v9 = vadd.f32 %v4545_v25, %v4147_v52  ;;  %v4340_v16 = vadd.f32 %v4339_v36, %v4148_v58  ;;  %v375_v18 = vadd.f32 %v7582_v32, %v6959_v55  ;;  %6130 = vmatmul.mubr.f32.gmra.mrb[160].mxu1 %v1397_v15  ;;  %5908 = vmatprep.mubr.f32.mxu0 %v1398_v48  ;;  %v7810_v47 = vpop.f32.mrb[57].mxu0 }
 0x16c   :  { %v824_v17 = vadd.f32 %v7587_v39, %v6962_v56  ;;  %v4478_v50 = vadd.f32 %v4477_v49, %v4150_v1  ;;  %3360 = vst [vmem:[%s11296_s6 + $0x530] sm:$0xff] %v1159_v44  ;;  %v3877_v5 = vadd.f32 %v3876_v40, %v1159_v44  ;;  %v4149_v25 = vmul.f32 %v1159_v44, %v1159_v44  ;;  %v1401_v39 = vld [vmem:[%s11297_s1 + $0x238] sm:$0xff]  ;;  %v7830_v1 = vpop.f32.mrb[58].mxu0  ;;  %v1406_v44 = vld [vmem:[%s11297_s1 + $0x260] sm:$0xff] }
 0x16d   :  { %5494 = vst [vmem:[%s11296_s6 + $0x570] sm:$0xff] %v1161_v24  ;;  %v4015_v32 = vadd.f32 %v4014_v6, %v1161_v24  ;;  %v4151_v46 = vmul.f32 %v1161_v24, %v1161_v24  ;;  %v1162_v26 = vmax.f32 %v375_v18, 0.0  ;;  %v377_v31 = vadd.f32 %v7589_v12, %v6964_v57  ;;  %6132 = vmatprep.mubr.f32.mxu1 %v1399_v22  ;;  %v1407_v24 = vld [vmem:[%s11297_s1 + $0x268] sm:$0xff]  ;;  %v7849_v18 = vpop.f32.mrb[59].mxu0 }
 0x16e   :  { %v1164_v20 = vmax.f32 %v824_v17, 0.0  ;;  %v4409_v13 = vadd.f32 %v4408_v53, %v4149_v25  ;;  %v826_v36 = vadd.f32 %v7598_v45, %v6970_v59  ;;  %v381_v19 = vadd.f32 %v7614_v62, %v6959_v55  ;;  %5909 = vmatmul.mubr.f32.gmra.mrb[162].mxu0 %v1400_v3  ;;  %v7818_v62 = vpop.f32.mrb[57].mxu1 }
 0x16f   :  { %v830_v12 = vadd.f32 %v7628_v2, %v6962_v56  ;;  %v4547_v27 = vadd.f32 %v4546_v9, %v4151_v46  ;;  %3297 = vst [vmem:[%s11296_s6 + $0x580] sm:$0xff] %v1162_v26  ;;  %v3809_v49 = vadd.f32 %v3808_v51, %v1162_v26  ;;  %v4152_v40 = vmul.f32 %v1162_v26, %v1162_v26  ;;  %v1404_v2 = vld [vmem:[%s11297_s1 + $0x250] sm:$0xff]  ;;  %v1405_v51 = vld [vmem:[%s11297_s1 + $0x258] sm:$0xff] }
 0x170   :  { %5431 = vst [vmem:[%s11296_s6 + $0x5c0] sm:$0xff] %v1164_v20  ;;  %v3947_v45 = vadd.f32 %v3946_v60, %v1164_v20  ;;  %6133 = vmatmul.mubr.f32.gmra.mrb[162].mxu1 %v1401_v39  ;;  %v4154_v30 = vmul.f32 %v1164_v20, %v1164_v20  ;;  %v1163_v6 = vmax.f32 %v377_v31, 0.0  ;;  %v1165_v15 = vmax.f32 %v826_v36, 0.0  ;;  %5911 = vmatprep.mubr.f32.mxu0 %v1402_v54  ;;  %v1409_v31 = vld [vmem:[%s11297_s1 + $0x278] sm:$0xff]  ;;  %v1410_v54 = vld [vmem:[%s11297_s1 + $0x280] sm:$0xff] }
 0x171   :  { %v1166_v52 = vmax.f32 %v381_v19, 0.0  ;;  %6135 = vmatprep.mubr.f32.mxu1 %v1403_v63  ;;  %v4341_v58 = vadd.f32 %v4340_v16, %v4152_v40  ;;  %v1168_v48 = vmax.f32 %v830_v12, 0.0  ;;  %v383_v60 = vadd.f32 %v7630_v41, %v6964_v57  ;;  %v7847_v16 = vpop.f32.mrb[58].mxu1  ;;  %v7869_v12 = vpop.f32.mrb[60].mxu0 }
 0x172   :  { %v832_v53 = vadd.f32 %v7638_v37, %v6970_v59  ;;  %v4479_v22 = vadd.f32 %v4478_v50, %v4154_v30  ;;  %3361 = vst [vmem:[%s11296_s6 + $0x590] sm:$0xff] %v1163_v6  ;;  %v3878_v9 = vadd.f32 %v3877_v5, %v1163_v6  ;;  %v4153_v41 = vmul.f32 %v1163_v6, %v1163_v6  ;;  %v7854_v25 = vpop.f32.mrb[59].mxu1 }
 0x173   :  { %5495 = vst [vmem:[%s11296_s6 + $0x5d0] sm:$0xff] %v1165_v15  ;;  %v4016_v37 = vadd.f32 %v4015_v32, %v1165_v15  ;;  %3298 = vst [vmem:[%s11296_s6 + $0x5a0] sm:$0xff] %v1166_v52  ;;  %5912 = vmatmul.mubr.f32.gmra.mrb[164].mxu0 %v1404_v2  ;;  %v4155_v17 = vmul.f32 %v1165_v15, %v1165_v15  ;;  %v3810_v3 = vadd.f32 %v3809_v49, %v1166_v52  ;;  %v1408_v32 = vld [vmem:[%s11297_s1 + $0x270] sm:$0xff]  ;;  %v1411_v49 = vld [vmem:[%s11297_s1 + $0x288] sm:$0xff]  ;;  %v7880_v2 = vpop.f32.mrb[60].mxu1 }
 0x174   :  { %v4156_v50 = vmul.f32 %v1166_v52, %v1166_v52  ;;  %5432 = vst [vmem:[%s11296_s6 + $0x5e0] sm:$0xff] %v1168_v48  ;;  %v3948_v5 = vadd.f32 %v3947_v45, %v1168_v48  ;;  %6136 = vmatmul.mubr.f32.gmra.mrb[164].mxu1 %v1405_v51  ;;  %v4410_v39 = vadd.f32 %v4409_v13, %v4153_v41  ;;  %v1167_v26 = vmax.f32 %v383_v60, 0.0  ;;  %v7886_v51 = vpop.f32.mrb[61].mxu1  ;;  %v1415_v41 = vld [vmem:[%s11297_s1 + $0x2a8] sm:$0xff] }
 0x175   :  { %v4158_v46 = vmul.f32 %v1168_v48, %v1168_v48  ;;  %v1169_v20 = vmax.f32 %v832_v53, 0.0  ;;  %5914 = vmatprep.mubr.f32.mxu0 %v1406_v44  ;;  %6138 = vmatprep.mubr.f32.mxu1 %v1407_v24  ;;  %v4548_v63 = vadd.f32 %v4547_v27, %v4155_v17  ;;  %v387_v19 = vadd.f32 %v7650_v28, %v6959_v55  ;;  %v1414_v24 = vld [vmem:[%s11297_s1 + $0x2a0] sm:$0xff] }
 0x176   :  { %v4342_v36 = vadd.f32 %v4341_v58, %v4156_v50  ;;  %v836_v13 = vadd.f32 %v7667_v35, %v6962_v56  ;;  %3362 = vst [vmem:[%s11296_s6 + $0x5b0] sm:$0xff] %v1167_v26  ;;  %v3879_v45 = vadd.f32 %v3878_v9, %v1167_v26  ;;  %v4157_v27 = vmul.f32 %v1167_v26, %v1167_v26  ;;  %v7882_v35 = vpop.f32.mrb[61].mxu0  ;;  %v1412_v58 = vld [vmem:[%s11297_s1 + $0x290] sm:$0xff] }
 0x177   :  { %v4480_v40 = vadd.f32 %v4479_v22, %v4158_v46  ;;  %5496 = vst [vmem:[%s11296_s6 + $0x5f0] sm:$0xff] %v1169_v20  ;;  %v4017_v28 = vadd.f32 %v4016_v37, %v1169_v20  ;;  %5915 = vmatmul.mubr.f32.gmra.mrb[166].mxu0 %v1408_v32  ;;  %v4159_v30 = vmul.f32 %v1169_v20, %v1169_v20  ;;  %v1170_v6 = vmax.f32 %v387_v19, 0.0 }
 0x178   :  { %v1172_v15 = vmax.f32 %v836_v13, 0.0  ;;  %v389_v52 = vadd.f32 %v7669_v38, %v6964_v57  ;;  %6139 = vmatmul.mubr.f32.gmra.mrb[166].mxu1 %v1409_v31  ;;  %5917 = vmatprep.mubr.f32.mxu0 %v1410_v54  ;;  %v4411_v48 = vadd.f32 %v4410_v39, %v4157_v27  ;;  %v838_v60 = vadd.f32 %v7674_v0, %v6970_v59  ;;  %v1413_v38 = vld [vmem:[%s11297_s1 + $0x298] sm:$0xff]  ;;  %v7914_v39 = vpop.f32.mrb[62].mxu1  ;;  %v1416_v54 = vld [vmem:[%s11297_s1 + $0x2b0] sm:$0xff] }
 0x179   :  { %v393_v53 = vadd.f32 %v7689_v10, %v6959_v55  ;;  %v842_v44 = vadd.f32 %v7700_v8, %v6962_v56  ;;  %6141 = vmatprep.mubr.f32.mxu1 %v1411_v49  ;;  %v4549_v22 = vadd.f32 %v4548_v63, %v4159_v30  ;;  %3299 = vst [vmem:[%s11296_s6 + $0x600] sm:$0xff] %v1170_v6  ;;  %v7909_v8 = vpop.f32.mrb[62].mxu0  ;;  %v7922_v31 = vpop.f32.mrb[63].mxu1 }
 0x17a   :  { %v3811_v0 = vadd.f32 %v3810_v3, %v1170_v6  ;;  %v4160_v9 = vmul.f32 %v1170_v6, %v1170_v6  ;;  %5433 = vst [vmem:[%s11296_s6 + $0x640] sm:$0xff] %v1172_v15  ;;  %v3949_v10 = vadd.f32 %v3948_v5, %v1172_v15  ;;  %v4162_v37 = vmul.f32 %v1172_v15, %v1172_v15  ;;  %v7916_v46 = vpop.f32.mrb[63].mxu0 }
 0x17b   :  { %v1171_v17 = vmax.f32 %v389_v52, 0.0  ;;  %v1173_v50 = vmax.f32 %v838_v60, 0.0  ;;  %v1174_v32 = vmax.f32 %v393_v53, 0.0  ;;  %5918 = vmatmul.mubr.f32.gmra.mrb[168].mxu0 %v1412_v58  ;;  %v1176_v26 = vmax.f32 %v842_v44, 0.0  ;;  %v7942_v27 = vpop.f32.mrb[64].mxu0  ;;  %v7947_v58 = vpop.f32.mrb[64].mxu1 }
 0x17c   :  { %v4343_v3 = vadd.f32 %v4342_v36, %v4160_v9  ;;  %v395_v5 = vadd.f32 %v7702_v42, %v6964_v57  ;;  %v844_v20 = vadd.f32 %v7706_v14, %v6970_v59  ;;  %6142 = vmatmul.mubr.f32.gmra.mrb[168].mxu1 %v1413_v38  ;;  %5920 = vmatprep.mubr.f32.mxu0 %v1414_v24  ;;  %v1417_v14 = vld [vmem:[%s11297_s1 + $0x2b8] sm:$0xff]  ;;  %v7949_v60 = vpop.f32.mrb[65].mxu0  ;;  %v1419_v53 = vld [vmem:[%s11297_s1 + $0x2c8] sm:$0xff]  ;;  %v1420_v9 = vld [vmem:[%s11297_s1 + $0x2d0] sm:$0xff] }
 0x17d   :  { %v4481_v63 = vadd.f32 %v4480_v40, %v4162_v37  ;;  %3363 = vst [vmem:[%s11296_s6 + $0x610] sm:$0xff] %v1171_v17  ;;  %v3880_v36 = vadd.f32 %v3879_v45, %v1171_v17  ;;  %v4161_v19 = vmul.f32 %v1171_v17, %v1171_v17  ;;  %5497 = vst [vmem:[%s11296_s6 + $0x650] sm:$0xff] %v1173_v50  ;;  %6144 = vmatprep.mubr.f32.mxu1 %v1415_v41 }
 0x17e   :  { %v4018_v42 = vadd.f32 %v4017_v28, %v1173_v50  ;;  %3300 = vst [vmem:[%s11296_s6 + $0x620] sm:$0xff] %v1174_v32  ;;  %v4163_v13 = vmul.f32 %v1173_v50, %v1173_v50  ;;  %v3812_v49 = vadd.f32 %v3811_v0, %v1174_v32  ;;  %v4164_v40 = vmul.f32 %v1174_v32, %v1174_v32  ;;  %v1418_v28 = vld [vmem:[%s11297_s1 + $0x2c0] sm:$0xff]  ;;  %v7958_v0 = vpop.f32.mrb[65].mxu1 }
 0x17f   :  { %5434 = vst [vmem:[%s11296_s6 + $0x660] sm:$0xff] %v1176_v26  ;;  %v3950_v45 = vadd.f32 %v3949_v10, %v1176_v26  ;;  %v4412_v30 = vadd.f32 %v4411_v48, %v4161_v19  ;;  %v4166_v6 = vmul.f32 %v1176_v26, %v1176_v26  ;;  %v1175_v15 = vmax.f32 %v395_v5, 0.0  ;;  %5921 = vmatmul.mubr.f32.gmra.mrb[170].mxu0 %v1416_v54  ;;  %v1422_v26 = vld [vmem:[%s11297_s1 + $0x2e0] sm:$0xff]  ;;  %v1423_v5 = vld [vmem:[%s11297_s1 + $0x2e8] sm:$0xff] }
 0x180   :  { %v1177_v52 = vmax.f32 %v844_v20, 0.0  ;;  %v4550_v44 = vadd.f32 %v4549_v22, %v4163_v13  ;;  %v4344_v38 = vadd.f32 %v4343_v3, %v4164_v40  ;;  %v399_v24 = vadd.f32 %v7729_v4, %v6959_v55  ;;  %6145 = vmatmul.mubr.f32.gmra.mrb[170].mxu1 %v1417_v14  ;;  %5923 = vmatprep.mubr.f32.mxu0 %v1418_v28  ;;  %v7974_v3 = vpop.f32.mrb[66].mxu0 }
 0x181   :  { %v848_v48 = vadd.f32 %v7734_v21, %v6962_v56  ;;  %v4482_v10 = vadd.f32 %v4481_v63, %v4166_v6  ;;  %3364 = vst [vmem:[%s11296_s6 + $0x630] sm:$0xff] %v1175_v15  ;;  %v3881_v22 = vadd.f32 %v3880_v36, %v1175_v15  ;;  %v4165_v41 = vmul.f32 %v1175_v15, %v1175_v15  ;;  %v1421_v21 = vld [vmem:[%s11297_s1 + $0x2d8] sm:$0xff]  ;;  %v7988_v36 = vpop.f32.mrb[66].mxu1  ;;  %v7990_v19 = vpop.f32.mrb[67].mxu0 }
 0x182   :  { %5498 = vst [vmem:[%s11296_s6 + $0x670] sm:$0xff] %v1177_v52  ;;  %v4019_v4 = vadd.f32 %v4018_v42, %v1177_v52  ;;  %v4167_v37 = vmul.f32 %v1177_v52, %v1177_v52  ;;  %v1178_v17 = vmax.f32 %v399_v24, 0.0  ;;  %v401_v32 = vadd.f32 %v7736_v29, %v6964_v57  ;;  %6147 = vmatprep.mubr.f32.mxu1 %v1419_v53  ;;  %v1426_v24 = vld [vmem:[%s11297_s1 + $0x300] sm:$0xff] }
 0x183   :  { %v1180_v50 = vmax.f32 %v848_v48, 0.0  ;;  %v4413_v20 = vadd.f32 %v4412_v30, %v4165_v41  ;;  %v850_v54 = vadd.f32 %v7742_v7, %v6970_v59  ;;  %v405_v63 = vadd.f32 %v7762_v61, %v6959_v55  ;;  %5924 = vmatmul.mubr.f32.gmra.mrb[172].mxu0 %v1420_v9  ;;  %v7998_v61 = vpop.f32.mrb[67].mxu1  ;;  %v1427_v48 = vld [vmem:[%s11297_s1 + $0x308] sm:$0xff] }
 0x184   :  { %v854_v29 = vadd.f32 %v7767_v11, %v6962_v56  ;;  %v4551_v42 = vadd.f32 %v4550_v44, %v4167_v37  ;;  %3301 = vst [vmem:[%s11296_s6 + $0x680] sm:$0xff] %v1178_v17  ;;  %v3813_v14 = vadd.f32 %v3812_v49, %v1178_v17  ;;  %v4168_v13 = vmul.f32 %v1178_v17, %v1178_v17  ;;  %v1424_v11 = vld [vmem:[%s11297_s1 + $0x2f0] sm:$0xff]  ;;  %v1425_v49 = vld [vmem:[%s11297_s1 + $0x2f8] sm:$0xff]  ;;  %v8010_v44 = vpop.f32.mrb[68].mxu0  ;;  %v8027_v41 = vpop.f32.mrb[68].mxu1 }
 0x185   :  { %5435 = vst [vmem:[%s11296_s6 + $0x6c0] sm:$0xff] %v1180_v50  ;;  %v3951_v7 = vadd.f32 %v3950_v45, %v1180_v50  ;;  %6148 = vmatmul.mubr.f32.gmra.mrb[172].mxu1 %v1421_v21  ;;  %v4170_v40 = vmul.f32 %v1180_v50, %v1180_v50  ;;  %v1179_v28 = vmax.f32 %v401_v32, 0.0  ;;  %v1181_v30 = vmax.f32 %v850_v54, 0.0  ;;  %5926 = vmatprep.mubr.f32.mxu0 %v1422_v26  ;;  %v8029_v21 = vpop.f32.mrb[69].mxu0  ;;  %v8034_v50 = vpop.f32.mrb[69].mxu1 }
 0x186   :  { %v1182_v6 = vmax.f32 %v405_v63, 0.0  ;;  %6150 = vmatprep.mubr.f32.mxu1 %v1423_v5  ;;  %v4345_v15 = vadd.f32 %v4344_v38, %v4168_v13  ;;  %v1184_v52 = vmax.f32 %v854_v29, 0.0  ;;  %v407_v45 = vadd.f32 %v7769_v34, %v6964_v57  ;;  %v1429_v63 = vld [vmem:[%s11297_s1 + $0x318] sm:$0xff]  ;;  %v1430_v29 = vld [vmem:[%s11297_s1 + $0x320] sm:$0xff] }
 0x187   :  { %v856_v53 = vadd.f32 %v7778_v23, %v6970_v59  ;;  %v4483_v9 = vadd.f32 %v4482_v10, %v4170_v40  ;;  %3365 = vst [vmem:[%s11296_s6 + $0x690] sm:$0xff] %v1179_v28  ;;  %v3882_v38 = vadd.f32 %v3881_v22, %v1179_v28  ;;  %v4169_v34 = vmul.f32 %v1179_v28, %v1179_v28  ;;  %v1431_v40 = vld [vmem:[%s11297_s1 + $0x328] sm:$0xff] }
 0x188   :  { %5499 = vst [vmem:[%s11296_s6 + $0x6d0] sm:$0xff] %v1181_v30  ;;  %v4020_v23 = vadd.f32 %v4019_v4, %v1181_v30  ;;  %3302 = vst [vmem:[%s11296_s6 + $0x6a0] sm:$0xff] %v1182_v6  ;;  %5927 = vmatmul.mubr.f32.gmra.mrb[174].mxu0 %v1424_v11  ;;  %v4171_v10 = vmul.f32 %v1181_v30, %v1181_v30  ;;  %v3814_v37 = vadd.f32 %v3813_v14, %v1182_v6  ;;  %v1428_v4 = vld [vmem:[%s11297_s1 + $0x310] sm:$0xff]  ;;  %v8049_v11 = vpop.f32.mrb[70].mxu0 }
 0x189   :  { %v4172_v17 = vmul.f32 %v1182_v6, %v1182_v6  ;;  %5436 = vst [vmem:[%s11296_s6 + $0x6e0] sm:$0xff] %v1184_v52  ;;  %v3952_v22 = vadd.f32 %v3951_v7, %v1184_v52  ;;  %6151 = vmatmul.mubr.f32.gmra.mrb[174].mxu1 %v1425_v49  ;;  %v4414_v32 = vadd.f32 %v4413_v20, %v4169_v34  ;;  %v1183_v5 = vmax.f32 %v407_v45, 0.0  ;;  %v8060_v6 = vpop.f32.mrb[70].mxu1 }
 0x18a   :  { %v4174_v26 = vmul.f32 %v1184_v52, %v1184_v52  ;;  %v1185_v54 = vmax.f32 %v856_v53, 0.0  ;;  %5929 = vmatprep.mubr.f32.mxu0 %v1426_v24  ;;  %6153 = vmatprep.mubr.f32.mxu1 %v1427_v48  ;;  %v4552_v14 = vadd.f32 %v4551_v42, %v4171_v10  ;;  %v411_v7 = vadd.f32 %v7794_v33, %v6959_v55  ;;  %v8066_v53 = vpop.f32.mrb[71].mxu1  ;;  %v1432_v24 = vld [vmem:[%s11297_s1 + $0x330] sm:$0xff] }
 0x18b   :  { %v4346_v13 = vadd.f32 %v4345_v15, %v4172_v17  ;;  %v860_v20 = vadd.f32 %v7808_v43, %v6962_v56  ;;  %3366 = vst [vmem:[%s11296_s6 + $0x6b0] sm:$0xff] %v1183_v5  ;;  %v3883_v30 = vadd.f32 %v3882_v38, %v1183_v5  ;;  %v4173_v42 = vmul.f32 %v1183_v5, %v1183_v5  ;;  %v8062_v43 = vpop.f32.mrb[71].mxu0 }
 0x18c   :  { %v4484_v28 = vadd.f32 %v4483_v9, %v4174_v26  ;;  %5500 = vst [vmem:[%s11296_s6 + $0x6f0] sm:$0xff] %v1185_v54  ;;  %v4021_v33 = vadd.f32 %v4020_v23, %v1185_v54  ;;  %5930 = vmatmul.mubr.f32.gmra.mrb[176].mxu0 %v1428_v4  ;;  %v4175_v49 = vmul.f32 %v1185_v54, %v1185_v54  ;;  %v1186_v15 = vmax.f32 %v411_v7, 0.0  ;;  %v1434_v23 = vld [vmem:[%s11297_s1 + $0x340] sm:$0xff]  ;;  %v1435_v4 = vld [vmem:[%s11297_s1 + $0x348] sm:$0xff] }
 0x18d   :  { %v1188_v52 = vmax.f32 %v860_v20, 0.0  ;;  %v413_v45 = vadd.f32 %v7810_v47, %v6964_v57  ;;  %6154 = vmatmul.mubr.f32.gmra.mrb[176].mxu1 %v1429_v63  ;;  %5932 = vmatprep.mubr.f32.mxu0 %v1430_v29  ;;  %v4415_v48 = vadd.f32 %v4414_v32, %v4173_v42  ;;  %v862_v9 = vadd.f32 %v7818_v62, %v6970_v59  ;;  %v1433_v47 = vld [vmem:[%s11297_s1 + $0x338] sm:$0xff]  ;;  %v8094_v63 = vpop.f32.mrb[72].mxu1 }
 0x18e   :  { %v417_v38 = vadd.f32 %v7830_v1, %v6959_v55  ;;  %v866_v34 = vadd.f32 %v7847_v16, %v6962_v56  ;;  %6156 = vmatprep.mubr.f32.mxu1 %v1431_v40  ;;  %v4553_v10 = vadd.f32 %v4552_v14, %v4175_v49  ;;  %3303 = vst [vmem:[%s11296_s6 + $0x700] sm:$0xff] %v1186_v15  ;;  %v8089_v16 = vpop.f32.mrb[72].mxu0  ;;  %v8102_v20 = vpop.f32.mrb[73].mxu1  ;;  %v1436_v40 = vld [vmem:[%s11297_s1 + $0x350] sm:$0xff] }
 0x18f   :  { %v3815_v62 = vadd.f32 %v3814_v37, %v1186_v15  ;;  %v4176_v17 = vmul.f32 %v1186_v15, %v1186_v15  ;;  %5437 = vst [vmem:[%s11296_s6 + $0x740] sm:$0xff] %v1188_v52  ;;  %v3953_v1 = vadd.f32 %v3952_v22, %v1188_v52  ;;  %v4178_v32 = vmul.f32 %v1188_v52, %v1188_v52  ;;  %v8096_v29 = vpop.f32.mrb[73].mxu0 }
 0x190   :  { %v1187_v26 = vmax.f32 %v413_v45, 0.0  ;;  %v1189_v5 = vmax.f32 %v862_v9, 0.0  ;;  %v1190_v54 = vmax.f32 %v417_v38, 0.0  ;;  %5933 = vmatmul.mubr.f32.gmra.mrb[178].mxu0 %v1432_v24  ;;  %v1192_v14 = vmax.f32 %v866_v34, 0.0  ;;  %v8122_v45 = vpop.f32.mrb[74].mxu0 }
 0x191   :  { %v4347_v37 = vadd.f32 %v4346_v13, %v4176_v17  ;;  %v419_v22 = vadd.f32 %v7849_v18, %v6964_v57  ;;  %v868_v7 = vadd.f32 %v7854_v25, %v6970_v59  ;;  %6157 = vmatmul.mubr.f32.gmra.mrb[178].mxu1 %v1433_v47  ;;  %5935 = vmatprep.mubr.f32.mxu0 %v1434_v23  ;;  %v1437_v25 = vld [vmem:[%s11297_s1 + $0x358] sm:$0xff]  ;;  %v8127_v47 = vpop.f32.mrb[74].mxu1  ;;  %v8129_v23 = vpop.f32.mrb[75].mxu0 }
 0x192   :  { %v4485_v42 = vadd.f32 %v4484_v28, %v4178_v32  ;;  %3367 = vst [vmem:[%s11296_s6 + $0x710] sm:$0xff] %v1187_v26  ;;  %v3884_v13 = vadd.f32 %v3883_v30, %v1187_v26  ;;  %v4177_v49 = vmul.f32 %v1187_v26, %v1187_v26  ;;  %5501 = vst [vmem:[%s11296_s6 + $0x750] sm:$0xff] %v1189_v5  ;;  %6159 = vmatprep.mubr.f32.mxu1 %v1435_v4  ;;  %v8138_v32 = vpop.f32.mrb[75].mxu1  ;;  %v1440_v26 = vld [vmem:[%s11297_s1 + $0x370] sm:$0xff] }
 0x193   :  { %v4022_v18 = vadd.f32 %v4021_v33, %v1189_v5  ;;  %3304 = vst [vmem:[%s11296_s6 + $0x720] sm:$0xff] %v1190_v54  ;;  %v4179_v28 = vmul.f32 %v1189_v5, %v1189_v5  ;;  %v3816_v15 = vadd.f32 %v3815_v62, %v1190_v54  ;;  %v4180_v52 = vmul.f32 %v1190_v54, %v1190_v54  ;;  %v1438_v33 = vld [vmem:[%s11297_s1 + $0x360] sm:$0xff]  ;;  %v1439_v62 = vld [vmem:[%s11297_s1 + $0x368] sm:$0xff] }
 0x194   :  { %5438 = vst [vmem:[%s11296_s6 + $0x760] sm:$0xff] %v1192_v14  ;;  %v3954_v30 = vadd.f32 %v3953_v1, %v1192_v14  ;;  %v4416_v24 = vadd.f32 %v4415_v48, %v4177_v49  ;;  %v4182_v9 = vmul.f32 %v1192_v14, %v1192_v14  ;;  %v1191_v38 = vmax.f32 %v419_v22, 0.0  ;;  %5936 = vmatmul.mubr.f32.gmra.mrb[180].mxu0 %v1436_v40  ;;  %v8154_v40 = vpop.f32.mrb[76].mxu0 }
 0x195   :  { %v1193_v34 = vmax.f32 %v868_v7, 0.0  ;;  %v4554_v17 = vadd.f32 %v4553_v10, %v4179_v28  ;;  %v4348_v1 = vadd.f32 %v4347_v37, %v4180_v52  ;;  %v423_v4 = vadd.f32 %v7869_v12, %v6959_v55  ;;  %6160 = vmatmul.mubr.f32.gmra.mrb[180].mxu1 %v1437_v25  ;;  %5938 = vmatprep.mubr.f32.mxu0 %v1438_v33  ;;  %v8168_v28 = vpop.f32.mrb[76].mxu1  ;;  %v8170_v52 = vpop.f32.mrb[77].mxu0 }
 0x196   :  { %v872_v48 = vadd.f32 %v7880_v2, %v6962_v56  ;;  %v4486_v5 = vadd.f32 %v4485_v42, %v4182_v9  ;;  %3368 = vst [vmem:[%s11296_s6 + $0x730] sm:$0xff] %v1191_v38  ;;  %v3885_v10 = vadd.f32 %v3884_v13, %v1191_v38  ;;  %v4181_v54 = vmul.f32 %v1191_v38, %v1191_v38  ;;  %v1441_v2 = vld [vmem:[%s11297_s1 + $0x378] sm:$0xff]  ;;  %v1442_v42 = vld [vmem:[%s11297_s1 + $0x380] sm:$0xff]  ;;  %v1443_v13 = vld [vmem:[%s11297_s1 + $0x388] sm:$0xff] }
 0x197   :  { %5502 = vst [vmem:[%s11296_s6 + $0x770] sm:$0xff] %v1193_v34  ;;  %v4023_v12 = vadd.f32 %v4022_v18, %v1193_v34  ;;  %v4183_v37 = vmul.f32 %v1193_v34, %v1193_v34  ;;  %v1194_v14 = vmax.f32 %v423_v4, 0.0  ;;  %v425_v7 = vadd.f32 %v7882_v35, %v6964_v57  ;;  %6162 = vmatprep.mubr.f32.mxu1 %v1439_v62 }
 0x198   :  { %v1196_v22 = vmax.f32 %v872_v48, 0.0  ;;  %v4417_v49 = vadd.f32 %v4416_v24, %v4181_v54  ;;  %v874_v18 = vadd.f32 %v7886_v51, %v6970_v59  ;;  %v429_v25 = vadd.f32 %v7909_v8, %v6959_v55  ;;  %5939 = vmatmul.mubr.f32.gmra.mrb[182].mxu0 %v1440_v26  ;;  %v8178_v8 = vpop.f32.mrb[77].mxu1  ;;  %v8190_v54 = vpop.f32.mrb[78].mxu0 }
 0x199   :  { %v878_v35 = vadd.f32 %v7914_v39, %v6962_v56  ;;  %v4555_v33 = vadd.f32 %v4554_v17, %v4183_v37  ;;  %3305 = vst [vmem:[%s11296_s6 + $0x780] sm:$0xff] %v1194_v14  ;;  %v3817_v24 = vadd.f32 %v3816_v15, %v1194_v14  ;;  %v4184_v9 = vmul.f32 %v1194_v14, %v1194_v14  ;;  %v1444_v39 = vld [vmem:[%s11297_s1 + $0x390] sm:$0xff]  ;;  %v1445_v15 = vld [vmem:[%s11297_s1 + $0x398] sm:$0xff]  ;;  %v1447_v37 = vld [vmem:[%s11297_s1 + $0x3a8] sm:$0xff] }
 0x19a   :  { %5439 = vst [vmem:[%s11296_s6 + $0x7c0] sm:$0xff] %v1196_v22  ;;  %v3955_v51 = vadd.f32 %v3954_v30, %v1196_v22  ;;  %6163 = vmatmul.mubr.f32.gmra.mrb[182].mxu1 %v1441_v2  ;;  %v4186_v38 = vmul.f32 %v1196_v22, %v1196_v22  ;;  %v1195_v34 = vmax.f32 %v425_v7, 0.0  ;;  %v1197_v62 = vmax.f32 %v874_v18, 0.0  ;;  %5941 = vmatprep.mubr.f32.mxu0 %v1442_v42  ;;  %v1446_v2 = vld [vmem:[%s11297_s1 + $0x3a0] sm:$0xff]  ;;  %v8207_v22 = vpop.f32.mrb[78].mxu1  ;;  %v8209_v7 = vpop.f32.mrb[79].mxu0 }
 0x19b   :  { %v1198_v17 = vmax.f32 %v429_v25, 0.0  ;;  %6165 = vmatprep.mubr.f32.mxu1 %v1443_v13  ;;  %v4349_v4 = vadd.f32 %v4348_v1, %v4184_v9  ;;  %v1200_v48 = vmax.f32 %v878_v35, 0.0  ;;  %v431_v30 = vadd.f32 %v7916_v46, %v6964_v57  ;;  %v8214_v18 = vpop.f32.mrb[79].mxu1 }
 0x19c   :  { %v880_v26 = vadd.f32 %v7922_v31, %v6970_v59  ;;  %v4487_v14 = vadd.f32 %v4486_v5, %v4186_v38  ;;  %3369 = vst [vmem:[%s11296_s6 + $0x790] sm:$0xff] %v1195_v34  ;;  %v3886_v1 = vadd.f32 %v3885_v10, %v1195_v34  ;;  %v4185_v46 = vmul.f32 %v1195_v34, %v1195_v34 }
 0x19d   :  { %5503 = vst [vmem:[%s11296_s6 + $0x7d0] sm:$0xff] %v1197_v62  ;;  %v4024_v31 = vadd.f32 %v4023_v12, %v1197_v62  ;;  %3306 = vst [vmem:[%s11296_s6 + $0x7a0] sm:$0xff] %v1198_v17  ;;  %5942 = vmatmul.mubr.f32.gmra.mrb[184].mxu0 %v1444_v39  ;;  %v4187_v5 = vmul.f32 %v1197_v62, %v1197_v62  ;;  %v3818_v42 = vadd.f32 %v3817_v24, %v1198_v17  ;;  %v1448_v12 = vld [vmem:[%s11297_s1 + $0x3b0] sm:$0xff]  ;;  %v1449_v24 = vld [vmem:[%s11297_s1 + $0x3b8] sm:$0xff] }
 0x19e   :  { %v4188_v13 = vmul.f32 %v1198_v17, %v1198_v17  ;;  %5440 = vst [vmem:[%s11296_s6 + $0x7e0] sm:$0xff] %v1200_v48  ;;  %v3956_v10 = vadd.f32 %v3955_v51, %v1200_v48  ;;  %6166 = vmatmul.mubr.f32.gmra.mrb[184].mxu1 %v1445_v15  ;;  %v4418_v25 = vadd.f32 %v4417_v49, %v4185_v46  ;;  %v1199_v9 = vmax.f32 %v431_v30, 0.0  ;;  %v1450_v51 = vld [vmem:[%s11297_s1 + $0x3c0] sm:$0xff]  ;;  %v8229_v17 = vpop.f32.mrb[80].mxu0  ;;  %v1451_v15 = vld [vmem:[%s11297_s1 + $0x3c8] sm:$0xff] }
 0x19f   :  { %v4190_v35 = vmul.f32 %v1200_v48, %v1200_v48  ;;  %v1201_v38 = vmax.f32 %v880_v26, 0.0  ;;  %5944 = vmatprep.mubr.f32.mxu0 %v1446_v2  ;;  %6168 = vmatprep.mubr.f32.mxu1 %v1447_v37  ;;  %v4556_v39 = vadd.f32 %v4555_v33, %v4187_v5  ;;  %v435_v62 = vadd.f32 %v7942_v27, %v6959_v55 }
 0x1a0   :  { %v4350_v34 = vadd.f32 %v4349_v4, %v4188_v13  ;;  %v884_v49 = vadd.f32 %v7947_v58, %v6962_v56  ;;  %3370 = vst [vmem:[%s11296_s6 + $0x7b0] sm:$0xff] %v1199_v9  ;;  %v3887_v30 = vadd.f32 %v3886_v1, %v1199_v9  ;;  %v4189_v33 = vmul.f32 %v1199_v9, %v1199_v9  ;;  %v8240_v4 = vpop.f32.mrb[80].mxu1  ;;  %v8242_v58 = vpop.f32.mrb[81].mxu0  ;;  %v1452_v1 = vld [vmem:[%s11297_s1 + $0x3d0] sm:$0xff] }
 0x1a1   :  { %v4488_v48 = vadd.f32 %v4487_v14, %v4190_v35  ;;  %5504 = vst [vmem:[%s11296_s6 + $0x7f0] sm:$0xff] %v1201_v38  ;;  %v4025_v27 = vadd.f32 %v4024_v31, %v1201_v38  ;;  %5945 = vmatmul.mubr.f32.gmra.mrb[186].mxu0 %v1448_v12  ;;  %v4191_v26 = vmul.f32 %v1201_v38, %v1201_v38  ;;  %v1202_v2 = vmax.f32 %v435_v62, 0.0  ;;  %v8246_v46 = vpop.f32.mrb[81].mxu1  ;;  %v1454_v35 = vld [vmem:[%s11297_s1 + $0x3e0] sm:$0xff]  ;;  %v1455_v38 = vld [vmem:[%s11297_s1 + $0x3e8] sm:$0xff] }
 0x1a2   :  { %v1204_v37 = vmax.f32 %v884_v49, 0.0  ;;  %v437_v14 = vadd.f32 %v7949_v60, %v6964_v57  ;;  %6169 = vmatmul.mubr.f32.gmra.mrb[186].mxu1 %v1449_v24  ;;  %5947 = vmatprep.mubr.f32.mxu0 %v1450_v51  ;;  %v4419_v31 = vadd.f32 %v4418_v25, %v4189_v33  ;;  %v886_v5 = vadd.f32 %v7958_v0, %v6970_v59  ;;  %v1453_v60 = vld [vmem:[%s11297_s1 + $0x3d8] sm:$0xff]  ;;  %v8274_v49 = vpop.f32.mrb[82].mxu1 }
 0x1a3   :  { %v441_v13 = vadd.f32 %v7974_v3, %v6959_v55  ;;  %v890_v12 = vadd.f32 %v7988_v36, %v6962_v56  ;;  %6171 = vmatprep.mubr.f32.mxu1 %v1451_v15  ;;  %v4557_v9 = vadd.f32 %v4556_v39, %v4191_v26  ;;  %3307 = vst [vmem:[%s11296_s6 + $0x800] sm:$0xff] %v1202_v2  ;;  %v8269_v36 = vpop.f32.mrb[82].mxu0 }
 0x1a4   :  { %v3819_v0 = vadd.f32 %v3818_v42, %v1202_v2  ;;  %v4192_v25 = vmul.f32 %v1202_v2, %v1202_v2  ;;  %5441 = vst [vmem:[%s11296_s6 + $0x840] sm:$0xff] %v1204_v37  ;;  %v3957_v3 = vadd.f32 %v3956_v10, %v1204_v37  ;;  %v4194_v24 = vmul.f32 %v1204_v37, %v1204_v37  ;;  %v8276_v15 = vpop.f32.mrb[83].mxu0  ;;  %v8282_v2 = vpop.f32.mrb[83].mxu1  ;;  %v1456_v37 = vld [vmem:[%s11297_s1 + $0x3f0] sm:$0xff] }
 0x1a5   :  { %v1203_v51 = vmax.f32 %v437_v14, 0.0  ;;  %v1205_v39 = vmax.f32 %v886_v5, 0.0  ;;  %v1206_v62 = vmax.f32 %v441_v13, 0.0  ;;  %5948 = vmatmul.mubr.f32.gmra.mrb[188].mxu0 %v1452_v1  ;;  %v1208_v33 = vmax.f32 %v890_v12, 0.0  ;;  %v8302_v12 = vpop.f32.mrb[84].mxu0 }
 0x1a6   :  { %v4351_v42 = vadd.f32 %v4350_v34, %v4192_v25  ;;  %v443_v10 = vadd.f32 %v7990_v19, %v6964_v57  ;;  %v892_v26 = vadd.f32 %v7998_v61, %v6970_v59  ;;  %6172 = vmatmul.mubr.f32.gmra.mrb[188].mxu1 %v1453_v60  ;;  %5950 = vmatprep.mubr.f32.mxu0 %v1454_v35  ;;  %v1457_v61 = vld [vmem:[%s11297_s1 + $0x3f8] sm:$0xff] }
 0x1a7   :  { %v4489_v14 = vadd.f32 %v4488_v48, %v4194_v24  ;;  %3371 = vst [vmem:[%s11296_s6 + $0x810] sm:$0xff] %v1203_v51  ;;  %v3888_v34 = vadd.f32 %v3887_v30, %v1203_v51  ;;  %v4193_v1 = vmul.f32 %v1203_v51, %v1203_v51  ;;  %5505 = vst [vmem:[%s11296_s6 + $0x850] sm:$0xff] %v1205_v39  ;;  %6174 = vmatprep.mubr.f32.mxu1 %v1455_v38  ;;  %v8307_v24 = vpop.f32.mrb[84].mxu1  ;;  %v8309_v51 = vpop.f32.mrb[85].mxu0 }
 0x1a8   :  { %v4026_v19 = vadd.f32 %v4025_v27, %v1205_v39  ;;  %3308 = vst [vmem:[%s11296_s6 + $0x820] sm:$0xff] %v1206_v62  ;;  %v4195_v48 = vmul.f32 %v1205_v39, %v1205_v39  ;;  %v3820_v5 = vadd.f32 %v3819_v0, %v1206_v62  ;;  %v4196_v13 = vmul.f32 %v1206_v62, %v1206_v62  ;;  %v1458_v27 = vld [vmem:[%s11297_s1 + $0x400] sm:$0xff]  ;;  %v1459_v0 = vld [vmem:[%s11297_s1 + $0x408] sm:$0xff] }
 0x1a9   :  { %5442 = vst [vmem:[%s11296_s6 + $0x860] sm:$0xff] %v1208_v33  ;;  %v3958_v30 = vadd.f32 %v3957_v3, %v1208_v33  ;;  %v4420_v60 = vadd.f32 %v4419_v31, %v4193_v1  ;;  %v4198_v35 = vmul.f32 %v1208_v33, %v1208_v33  ;;  %v1207_v25 = vmax.f32 %v443_v10, 0.0  ;;  %5951 = vmatmul.mubr.f32.gmra.mrb[190].mxu0 %v1456_v37  ;;  %v8318_v33 = vpop.f32.mrb[85].mxu1  ;;  %v1460_v10 = vld [vmem:[%s11297_s1 + $0x410] sm:$0xff] }
 0x1aa   :  { %v1209_v38 = vmax.f32 %v892_v26, 0.0  ;;  %v4558_v3 = vadd.f32 %v4557_v9, %v4195_v48  ;;  %v4352_v39 = vadd.f32 %v4351_v42, %v4196_v13  ;;  %v447_v62 = vadd.f32 %v8010_v44, %v6959_v55  ;;  %6175 = vmatmul.mubr.f32.gmra.mrb[190].mxu1 %v1457_v61  ;;  %5953 = vmatprep.mubr.f32.mxu0 %v1458_v27  ;;  %v8334_v48 = vpop.f32.mrb[86].mxu0 }
 0x1ab   :  { %v896_v31 = vadd.f32 %v8027_v41, %v6962_v56  ;;  %v4490_v26 = vadd.f32 %v4489_v14, %v4198_v35  ;;  %3372 = vst [vmem:[%s11296_s6 + $0x830] sm:$0xff] %v1207_v25  ;;  %v3889_v9 = vadd.f32 %v3888_v34, %v1207_v25  ;;  %v4197_v42 = vmul.f32 %v1207_v25, %v1207_v25  ;;  %v1461_v41 = vld [vmem:[%s11297_s1 + $0x418] sm:$0xff]  ;;  %v1462_v34 = vld [vmem:[%s11297_s1 + $0x420] sm:$0xff]  ;;  %v8348_v25 = vpop.f32.mrb[86].mxu1 }
 0x1ac   :  { %5506 = vst [vmem:[%s11296_s6 + $0x870] sm:$0xff] %v1209_v38  ;;  %v4027_v44 = vadd.f32 %v4026_v19, %v1209_v38  ;;  %v4199_v37 = vmul.f32 %v1209_v38, %v1209_v38  ;;  %v1210_v1 = vmax.f32 %v447_v62, 0.0  ;;  %v449_v14 = vadd.f32 %v8029_v21, %v6964_v57  ;;  %6177 = vmatprep.mubr.f32.mxu1 %v1459_v0  ;;  %v1463_v19 = vld [vmem:[%s11297_s1 + $0x428] sm:$0xff]  ;;  %v8350_v38 = vpop.f32.mrb[87].mxu0 }
 0x1ad   :  { %v1212_v61 = vmax.f32 %v896_v31, 0.0  ;;  %v4421_v13 = vadd.f32 %v4420_v60, %v4197_v42  ;;  %v898_v27 = vadd.f32 %v8034_v50, %v6970_v59  ;;  %v453_v35 = vadd.f32 %v8049_v11, %v6959_v55  ;;  %5954 = vmatmul.mubr.f32.gmra.mrb[192].mxu0 %v1460_v10  ;;  %v8358_v11 = vpop.f32.mrb[87].mxu1 }
 0x1ae   :  { %v902_v21 = vadd.f32 %v8060_v6, %v6962_v56  ;;  %v4559_v0 = vadd.f32 %v4558_v3, %v4199_v37  ;;  %3309 = vst [vmem:[%s11296_s6 + $0x880] sm:$0xff] %v1210_v1  ;;  %v3821_v60 = vadd.f32 %v3820_v5, %v1210_v1  ;;  %v4200_v62 = vmul.f32 %v1210_v1, %v1210_v1  ;;  %v1464_v6 = vld [vmem:[%s11297_s1 + $0x430] sm:$0xff]  ;;  %v1465_v5 = vld [vmem:[%s11297_s1 + $0x438] sm:$0xff] }
 0x1af   :  { %5443 = vst [vmem:[%s11296_s6 + $0x8c0] sm:$0xff] %v1212_v61  ;;  %v3959_v50 = vadd.f32 %v3958_v30, %v1212_v61  ;;  %11301 = vst [vmem:[#allocation2_spill] sm:$0xff] %v8358_v11  ;;  %6178 = vmatmul.mubr.f32.gmra.mrb[192].mxu1 %v1461_v41  ;;  %v4202_v31 = vmul.f32 %v1212_v61, %v1212_v61  ;;  %v1211_v3 = vmax.f32 %v449_v14, 0.0  ;;  %v1213_v10 = vmax.f32 %v898_v27, 0.0  ;;  %v8370_v11 = vpop.f32.mrb[88].mxu0  ;;  %v1466_v61 = vld [vmem:[%s11297_s1 + $0x440] sm:$0xff] }
 0x1b0   :  { %v1214_v42 = vmax.f32 %v453_v35, 0.0  ;;  %5956 = vmatprep.mubr.f32.mxu0 %v1462_v34  ;;  %6180 = vmatprep.mubr.f32.mxu1 %v1463_v19  ;;  %v4353_v37 = vadd.f32 %v4352_v39, %v4200_v62  ;;  %v1216_v1 = vmax.f32 %v902_v21, 0.0  ;;  %v455_v30 = vadd.f32 %v8062_v43, %v6964_v57  ;;  %v1467_v14 = vld [vmem:[%s11297_s1 + $0x448] sm:$0xff]  ;;  %v8387_v19 = vpop.f32.mrb[88].mxu1  ;;  %v8389_v27 = vpop.f32.mrb[89].mxu0 }
 0x1b1   :  { %v904_v41 = vadd.f32 %v8066_v53, %v6970_v59  ;;  %v4491_v34 = vadd.f32 %v4490_v26, %v4202_v31  ;;  %3373 = vst [vmem:[%s11296_s6 + $0x890] sm:$0xff] %v1211_v3  ;;  %v3890_v39 = vadd.f32 %v3889_v9, %v1211_v3  ;;  %v4201_v43 = vmul.f32 %v1211_v3, %v1211_v3  ;;  %v8394_v62 = vpop.f32.mrb[89].mxu1 }
 0x1b2   :  { %5507 = vst [vmem:[%s11296_s6 + $0x8d0] sm:$0xff] %v1213_v10  ;;  %v4028_v53 = vadd.f32 %v4027_v44, %v1213_v10  ;;  %3310 = vst [vmem:[%s11296_s6 + $0x8a0] sm:$0xff] %v1214_v42  ;;  %5957 = vmatmul.mubr.f32.gmra.mrb[194].mxu0 %v1464_v6  ;;  %v4203_v26 = vmul.f32 %v1213_v10, %v1213_v10  ;;  %v3822_v35 = vadd.f32 %v3821_v60, %v1214_v42  ;;  %v1468_v44 = vld [vmem:[%s11297_s1 + $0x450] sm:$0xff]  ;;  %v1469_v60 = vld [vmem:[%s11297_s1 + $0x458] sm:$0xff] }
 0x1b3   :  { %11302 = vst [vmem:[#allocation3_spill] sm:$0xff] %v8387_v19  ;;  %11303 = vst [vmem:[#allocation4_spill] sm:$0xff] %v8389_v27  ;;  %v4204_v21 = vmul.f32 %v1214_v42, %v1214_v42  ;;  %v3960_v9 = vadd.f32 %v3959_v50, %v1216_v1  ;;  %6181 = vmatmul.mubr.f32.gmra.mrb[194].mxu1 %v1465_v5  ;;  %v4422_v31 = vadd.f32 %v4421_v13, %v4201_v43  ;;  %v1470_v50 = vld [vmem:[%s11297_s1 + $0x460] sm:$0xff]  ;;  %v8409_v5 = vpop.f32.mrb[90].mxu0 }
 0x1b4   :  { %5444 = vst [vmem:[%s11296_s6 + $0x8e0] sm:$0xff] %v1216_v1  ;;  %v4206_v3 = vmul.f32 %v1216_v1, %v1216_v1  ;;  %v1215_v19 = vmax.f32 %v455_v30, 0.0  ;;  %v1217_v27 = vmax.f32 %v904_v41, 0.0  ;;  %5959 = vmatprep.mubr.f32.mxu0 %v1466_v61  ;;  %6183 = vmatprep.mubr.f32.mxu1 %v1467_v14  ;;  %v4560_v6 = vadd.f32 %v4559_v0, %v4203_v26  ;;  %v1471_v1 = vld [vmem:[%s11297_s1 + $0x468] sm:$0xff] }
 0x1b5   :  { %v4354_v10 = vadd.f32 %v4353_v37, %v4204_v21  ;;  %v459_v42 = vadd.f32 %v8089_v16, %v6959_v55  ;;  %v908_v13 = vadd.f32 %v8094_v63, %v6962_v56  ;;  %v8420_v37 = vpop.f32.mrb[90].mxu1  ;;  %v8422_v63 = vpop.f32.mrb[91].mxu0  ;;  %v914_v21 = vadd.f32 %v8127_v47, %v6962_v56 }
 0x1b6   :  { %v4492_v30 = vadd.f32 %v4491_v34, %v4206_v3  ;;  %3374 = vst [vmem:[%s11296_s6 + $0x8b0] sm:$0xff] %v1215_v19  ;;  %v3891_v41 = vadd.f32 %v3890_v39, %v1215_v19  ;;  %v4205_v0 = vmul.f32 %v1215_v19, %v1215_v19  ;;  %5508 = vst [vmem:[%s11296_s6 + $0x8f0] sm:$0xff] %v1217_v27  ;;  %5960 = vmatmul.mubr.f32.gmra.mrb[196].mxu0 %v1468_v44  ;;  %v8426_v26 = vpop.f32.mrb[91].mxu1  ;;  %v1472_v39 = vld [vmem:[%s11297_s1 + $0x470] sm:$0xff]  ;;  %v1474_v44 = vld [vmem:[%s11297_s1 + $0x480] sm:$0xff]  ;;  %v8449_v47 = vpop.f32.mrb[92].mxu0 }
 0x1b7   :  { %v4029_v16 = vadd.f32 %v4028_v53, %v1217_v27  ;;  %v4207_v61 = vmul.f32 %v1217_v27, %v1217_v27  ;;  %v1218_v14 = vmax.f32 %v459_v42, 0.0  ;;  %v1220_v43 = vmax.f32 %v908_v13, 0.0  ;;  %6184 = vmatmul.mubr.f32.gmra.mrb[196].mxu1 %v1469_v60  ;;  %5962 = vmatprep.mubr.f32.mxu0 %v1470_v50  ;;  %11304 = vst [vmem:[#allocation5_spill] sm:$0xff] %v8449_v47  ;;  %v1475_v60 = vld [vmem:[%s11297_s1 + $0x488] sm:$0xff] }
 0x1b8   :  { %v461_v34 = vadd.f32 %v8096_v29, %v6964_v57  ;;  %v4423_v53 = vadd.f32 %v4422_v31, %v4205_v0  ;;  %v910_v19 = vadd.f32 %v8102_v20, %v6970_v59  ;;  %v465_v27 = vadd.f32 %v8122_v45, %v6959_v55  ;;  %6186 = vmatprep.mubr.f32.mxu1 %v1471_v1  ;;  %v1473_v29 = vld [vmem:[%s11297_s1 + $0x478] sm:$0xff]  ;;  %v8454_v1 = vpop.f32.mrb[92].mxu1  ;;  %v8456_v0 = vpop.f32.mrb[93].mxu0 }
 0x1b9   :  { %v4561_v3 = vadd.f32 %v4560_v6, %v4207_v61  ;;  %3311 = vst [vmem:[%s11296_s6 + $0x900] sm:$0xff] %v1218_v14  ;;  %v3823_v20 = vadd.f32 %v3822_v35, %v1218_v14  ;;  %v4208_v31 = vmul.f32 %v1218_v14, %v1218_v14  ;;  %5445 = vst [vmem:[%s11296_s6 + $0x940] sm:$0xff] %v1220_v43  ;;  %v1224_v61 = vmax.f32 %v914_v21, 0.0  ;;  %v8462_v47 = vpop.f32.mrb[93].mxu1  ;;  %v8482_v21 = vpop.f32.mrb[94].mxu0 }
 0x1ba   :  { %v3961_v45 = vadd.f32 %v3960_v9, %v1220_v43  ;;  %v4210_v50 = vmul.f32 %v1220_v43, %v1220_v43  ;;  %v1219_v42 = vmax.f32 %v461_v34, 0.0  ;;  %v1221_v6 = vmax.f32 %v910_v19, 0.0  ;;  %5963 = vmatmul.mubr.f32.gmra.mrb[198].mxu0 %v1472_v39  ;;  %v1476_v43 = vld [vmem:[%s11297_s1 + $0x490] sm:$0xff] }
 0x1bb   :  { %v1222_v13 = vmax.f32 %v465_v27, 0.0  ;;  %v4355_v35 = vadd.f32 %v4354_v10, %v4208_v31  ;;  %v467_v9 = vadd.f32 %v8129_v23, %v6964_v57  ;;  %v916_v14 = vadd.f32 %v8138_v32, %v6970_v59  ;;  %6187 = vmatmul.mubr.f32.gmra.mrb[198].mxu1 %v1473_v29  ;;  %5965 = vmatprep.mubr.f32.mxu0 %v1474_v44  ;;  %v1477_v32 = vld [vmem:[%s11297_s1 + $0x498] sm:$0xff] }
 0x1bc   :  { %v4493_v34 = vadd.f32 %v4492_v30, %v4210_v50  ;;  %3375 = vst [vmem:[%s11296_s6 + $0x910] sm:$0xff] %v1219_v42  ;;  %v3892_v10 = vadd.f32 %v3891_v41, %v1219_v42  ;;  %v4209_v39 = vmul.f32 %v1219_v42, %v1219_v42  ;;  %5509 = vst [vmem:[%s11296_s6 + $0x950] sm:$0xff] %v1221_v6  ;;  %6189 = vmatprep.mubr.f32.mxu1 %v1475_v60  ;;  %v8487_v50 = vpop.f32.mrb[94].mxu1  ;;  %v8489_v42 = vpop.f32.mrb[95].mxu0 }
 0x1bd   :  { %v4030_v23 = vadd.f32 %v4029_v16, %v1221_v6  ;;  %3312 = vst [vmem:[%s11296_s6 + $0x920] sm:$0xff] %v1222_v13  ;;  %v4211_v30 = vmul.f32 %v1221_v6, %v1221_v6  ;;  %v3824_v19 = vadd.f32 %v3823_v20, %v1222_v13  ;;  %v4212_v27 = vmul.f32 %v1222_v13, %v1222_v13  ;;  %v1478_v16 = vld [vmem:[%s11297_s1 + $0x4a0] sm:$0xff]  ;;  %v1479_v20 = vld [vmem:[%s11297_s1 + $0x4a8] sm:$0xff] }
 0x1be   :  { %5446 = vst [vmem:[%s11296_s6 + $0x960] sm:$0xff] %v1224_v61  ;;  %v3962_v41 = vadd.f32 %v3961_v45, %v1224_v61  ;;  %v4424_v29 = vadd.f32 %v4423_v53, %v4209_v39  ;;  %v4214_v44 = vmul.f32 %v1224_v61, %v1224_v61  ;;  %v1223_v31 = vmax.f32 %v467_v9, 0.0  ;;  %5966 = vmatmul.mubr.f32.gmra.mrb[200].mxu0 %v1476_v43  ;;  %v8498_v61 = vpop.f32.mrb[95].mxu1  ;;  %v1480_v9 = vld [vmem:[%s11297_s1 + $0x4b0] sm:$0xff] }
 0x1bf   :  { %v1225_v60 = vmax.f32 %v916_v14, 0.0  ;;  %v4562_v45 = vadd.f32 %v4561_v3, %v4211_v30  ;;  %v4356_v6 = vadd.f32 %v4355_v35, %v4212_v27  ;;  %v471_v13 = vadd.f32 %v8154_v40, %v6959_v55  ;;  %6190 = vmatmul.mubr.f32.gmra.mrb[200].mxu1 %v1477_v32  ;;  %5968 = vmatprep.mubr.f32.mxu0 %v1478_v16  ;;  %v8514_v30 = vpop.f32.mrb[96].mxu0 }
 0x1c0   :  { %v920_v53 = vadd.f32 %v8168_v28, %v6962_v56  ;;  %v4494_v14 = vadd.f32 %v4493_v34, %v4214_v44  ;;  %3376 = vst [vmem:[%s11296_s6 + $0x930] sm:$0xff] %v1223_v31  ;;  %v3893_v3 = vadd.f32 %v3892_v10, %v1223_v31  ;;  %v4213_v35 = vmul.f32 %v1223_v31, %v1223_v31  ;;  %v1481_v28 = vld [vmem:[%s11297_s1 + $0x4b8] sm:$0xff]  ;;  %v1482_v10 = vld [vmem:[%s11297_s1 + $0x4c0] sm:$0xff]  ;;  %v8528_v31 = vpop.f32.mrb[96].mxu1 }
 0x1c1   :  { %5510 = vst [vmem:[%s11296_s6 + $0x970] sm:$0xff] %v1225_v60  ;;  %v4031_v40 = vadd.f32 %v4030_v23, %v1225_v60  ;;  %v4215_v43 = vmul.f32 %v1225_v60, %v1225_v60  ;;  %v1226_v39 = vmax.f32 %v471_v13, 0.0  ;;  %v473_v34 = vadd.f32 %v8170_v52, %v6964_v57  ;;  %6192 = vmatprep.mubr.f32.mxu1 %v1479_v20  ;;  %v1483_v23 = vld [vmem:[%s11297_s1 + $0x4c8] sm:$0xff]  ;;  %v8530_v60 = vpop.f32.mrb[97].mxu0 }
 0x1c2   :  { %v1228_v32 = vmax.f32 %v920_v53, 0.0  ;;  %v4425_v27 = vadd.f32 %v4424_v29, %v4213_v35  ;;  %v922_v16 = vadd.f32 %v8178_v8, %v6970_v59  ;;  %v477_v44 = vadd.f32 %v8190_v54, %v6959_v55  ;;  %5969 = vmatmul.mubr.f32.gmra.mrb[202].mxu0 %v1480_v9  ;;  %v8538_v54 = vpop.f32.mrb[97].mxu1 }
 0x1c3   :  { %v926_v52 = vadd.f32 %v8207_v22, %v6962_v56  ;;  %v4563_v20 = vadd.f32 %v4562_v45, %v4215_v43  ;;  %3313 = vst [vmem:[%s11296_s6 + $0x980] sm:$0xff] %v1226_v39  ;;  %v3825_v29 = vadd.f32 %v3824_v19, %v1226_v39  ;;  %v4216_v13 = vmul.f32 %v1226_v39, %v1226_v39  ;;  %v1484_v22 = vld [vmem:[%s11297_s1 + $0x4d0] sm:$0xff]  ;;  %v1485_v19 = vld [vmem:[%s11297_s1 + $0x4d8] sm:$0xff] }
 0x1c4   :  { %5447 = vst [vmem:[%s11296_s6 + $0x9c0] sm:$0xff] %v1228_v32  ;;  %v3963_v8 = vadd.f32 %v3962_v41, %v1228_v32  ;;  %11305 = vst [vmem:[#allocation6_spill] sm:$0xff] %v8538_v54  ;;  %6193 = vmatmul.mubr.f32.gmra.mrb[202].mxu1 %v1481_v28  ;;  %v4218_v53 = vmul.f32 %v1228_v32, %v1228_v32  ;;  %v1227_v45 = vmax.f32 %v473_v34, 0.0  ;;  %v1229_v9 = vmax.f32 %v922_v16, 0.0  ;;  %v8550_v54 = vpop.f32.mrb[98].mxu0  ;;  %v1486_v32 = vld [vmem:[%s11297_s1 + $0x4e0] sm:$0xff] }
 0x1c5   :  { %v1230_v35 = vmax.f32 %v477_v44, 0.0  ;;  %5971 = vmatprep.mubr.f32.mxu0 %v1482_v10  ;;  %6195 = vmatprep.mubr.f32.mxu1 %v1483_v23  ;;  %v4357_v43 = vadd.f32 %v4356_v6, %v4216_v13  ;;  %v1232_v39 = vmax.f32 %v926_v52, 0.0  ;;  %v479_v41 = vadd.f32 %v8209_v7, %v6964_v57  ;;  %v1487_v34 = vld [vmem:[%s11297_s1 + $0x4e8] sm:$0xff]  ;;  %v8567_v23 = vpop.f32.mrb[98].mxu1  ;;  %v8569_v16 = vpop.f32.mrb[99].mxu0 }
 0x1c6   :  { %v928_v28 = vadd.f32 %v8214_v18, %v6970_v59  ;;  %v4495_v10 = vadd.f32 %v4494_v14, %v4218_v53  ;;  %3377 = vst [vmem:[%s11296_s6 + $0x990] sm:$0xff] %v1227_v45  ;;  %v3894_v6 = vadd.f32 %v3893_v3, %v1227_v45  ;;  %v4217_v7 = vmul.f32 %v1227_v45, %v1227_v45  ;;  %v8574_v13 = vpop.f32.mrb[99].mxu1 }
 0x1c7   :  { %5511 = vst [vmem:[%s11296_s6 + $0x9d0] sm:$0xff] %v1229_v9  ;;  %v4032_v18 = vadd.f32 %v4031_v40, %v1229_v9  ;;  %3314 = vst [vmem:[%s11296_s6 + $0x9a0] sm:$0xff] %v1230_v35  ;;  %5972 = vmatmul.mubr.f32.gmra.mrb[204].mxu0 %v1484_v22  ;;  %v4219_v14 = vmul.f32 %v1229_v9, %v1229_v9  ;;  %v3826_v44 = vadd.f32 %v3825_v29, %v1230_v35  ;;  %v1488_v40 = vld [vmem:[%s11297_s1 + $0x4f0] sm:$0xff]  ;;  %v1489_v29 = vld [vmem:[%s11297_s1 + $0x4f8] sm:$0xff] }
 0x1c8   :  { %11306 = vst [vmem:[#allocation7_spill] sm:$0xff] %v8567_v23  ;;  %11307 = vst [vmem:[#allocation8_spill] sm:$0xff] %v8569_v16  ;;  %v4220_v52 = vmul.f32 %v1230_v35, %v1230_v35  ;;  %v3964_v3 = vadd.f32 %v3963_v8, %v1232_v39  ;;  %6196 = vmatmul.mubr.f32.gmra.mrb[204].mxu1 %v1485_v19  ;;  %v4426_v53 = vadd.f32 %v4425_v27, %v4217_v7  ;;  %v1490_v8 = vld [vmem:[%s11297_s1 + $0x500] sm:$0xff]  ;;  %v8589_v19 = vpop.f32.mrb[100].mxu0 }
 0x1c9   :  { %5448 = vst [vmem:[%s11296_s6 + $0x9e0] sm:$0xff] %v1232_v39  ;;  %v4222_v45 = vmul.f32 %v1232_v39, %v1232_v39  ;;  %v1231_v23 = vmax.f32 %v479_v41, 0.0  ;;  %v1233_v16 = vmax.f32 %v928_v28, 0.0  ;;  %5974 = vmatprep.mubr.f32.mxu0 %v1486_v32  ;;  %6198 = vmatprep.mubr.f32.mxu1 %v1487_v34  ;;  %v4564_v22 = vadd.f32 %v4563_v20, %v4219_v14  ;;  %v1491_v39 = vld [vmem:[%s11297_s1 + $0x508] sm:$0xff] }
 0x1ca   :  { %v4358_v9 = vadd.f32 %v4357_v43, %v4220_v52  ;;  %v483_v35 = vadd.f32 %v8229_v17, %v6959_v55  ;;  %v932_v27 = vadd.f32 %v8240_v4, %v6962_v56  ;;  %v8600_v43 = vpop.f32.mrb[100].mxu1  ;;  %v8602_v4 = vpop.f32.mrb[101].mxu0  ;;  %v938_v52 = vadd.f32 %v8274_v49, %v6962_v56 }
 0x1cb   :  { %v4496_v41 = vadd.f32 %v4495_v10, %v4222_v45  ;;  %3378 = vst [vmem:[%s11296_s6 + $0x9b0] sm:$0xff] %v1231_v23  ;;  %v3895_v28 = vadd.f32 %v3894_v6, %v1231_v23  ;;  %v4221_v20 = vmul.f32 %v1231_v23, %v1231_v23  ;;  %5512 = vst [vmem:[%s11296_s6 + $0x9f0] sm:$0xff] %v1233_v16  ;;  %5975 = vmatmul.mubr.f32.gmra.mrb[206].mxu0 %v1488_v40  ;;  %v8606_v14 = vpop.f32.mrb[101].mxu1  ;;  %v1492_v6 = vld [vmem:[%s11297_s1 + $0x510] sm:$0xff]  ;;  %v1494_v40 = vld [vmem:[%s11297_s1 + $0x520] sm:$0xff]  ;;  %v8629_v49 = vpop.f32.mrb[102].mxu0 }
 0x1cc   :  { %v4033_v17 = vadd.f32 %v4032_v18, %v1233_v16  ;;  %v4223_v32 = vmul.f32 %v1233_v16, %v1233_v16  ;;  %v1234_v34 = vmax.f32 %v483_v35, 0.0  ;;  %v1236_v7 = vmax.f32 %v932_v27, 0.0  ;;  %6199 = vmatmul.mubr.f32.gmra.mrb[206].mxu1 %v1489_v29  ;;  %5977 = vmatprep.mubr.f32.mxu0 %v1490_v8  ;;  %11308 = vst [vmem:[#allocation9_spill] sm:$0xff] %v8629_v49  ;;  %v1495_v29 = vld [vmem:[%s11297_s1 + $0x528] sm:$0xff] }
 0x1cd   :  { %v485_v10 = vadd.f32 %v8242_v58, %v6964_v57  ;;  %v4427_v18 = vadd.f32 %v4426_v53, %v4221_v20  ;;  %v934_v23 = vadd.f32 %v8246_v46, %v6970_v59  ;;  %v489_v16 = vadd.f32 %v8269_v36, %v6959_v55  ;;  %6201 = vmatprep.mubr.f32.mxu1 %v1491_v39  ;;  %v1493_v58 = vld [vmem:[%s11297_s1 + $0x518] sm:$0xff]  ;;  %v8634_v39 = vpop.f32.mrb[102].mxu1  ;;  %v8636_v20 = vpop.f32.mrb[103].mxu0 }
 0x1ce   :  { %v4565_v45 = vadd.f32 %v4564_v22, %v4223_v32  ;;  %3315 = vst [vmem:[%s11296_s6 + $0xa00] sm:$0xff] %v1234_v34  ;;  %v3827_v46 = vadd.f32 %v3826_v44, %v1234_v34  ;;  %v4224_v53 = vmul.f32 %v1234_v34, %v1234_v34  ;;  %5449 = vst [vmem:[%s11296_s6 + $0xa40] sm:$0xff] %v1236_v7  ;;  %v1240_v32 = vmax.f32 %v938_v52, 0.0  ;;  %v8642_v49 = vpop.f32.mrb[103].mxu1  ;;  %v8662_v52 = vpop.f32.mrb[104].mxu0 }
 0x1cf   :  { %v3965_v36 = vadd.f32 %v3964_v3, %v1236_v7  ;;  %v4226_v8 = vmul.f32 %v1236_v7, %v1236_v7  ;;  %v1235_v35 = vmax.f32 %v485_v10, 0.0  ;;  %v1237_v22 = vmax.f32 %v934_v23, 0.0  ;;  %5978 = vmatmul.mubr.f32.gmra.mrb[208].mxu0 %v1492_v6  ;;  %v1496_v7 = vld [vmem:[%s11297_s1 + $0x530] sm:$0xff] }
 0x1d0   :  { %v1238_v27 = vmax.f32 %v489_v16, 0.0  ;;  %v4359_v44 = vadd.f32 %v4358_v9, %v4224_v53  ;;  %v491_v3 = vadd.f32 %v8276_v15, %v6964_v57  ;;  %v940_v34 = vadd.f32 %v8282_v2, %v6970_v59  ;;  %6202 = vmatmul.mubr.f32.gmra.mrb[208].mxu1 %v1493_v58  ;;  %5980 = vmatprep.mubr.f32.mxu0 %v1494_v40  ;;  %v1497_v2 = vld [vmem:[%s11297_s1 + $0x538] sm:$0xff] }
 0x1d1   :  { %v4497_v10 = vadd.f32 %v4496_v41, %v4226_v8  ;;  %3379 = vst [vmem:[%s11296_s6 + $0xa10] sm:$0xff] %v1235_v35  ;;  %v3896_v9 = vadd.f32 %v3895_v28, %v1235_v35  ;;  %v4225_v6 = vmul.f32 %v1235_v35, %v1235_v35  ;;  %5513 = vst [vmem:[%s11296_s6 + $0xa50] sm:$0xff] %v1237_v22  ;;  %6204 = vmatprep.mubr.f32.mxu1 %v1495_v29  ;;  %v8667_v8 = vpop.f32.mrb[104].mxu1  ;;  %v8669_v35 = vpop.f32.mrb[105].mxu0 }
 0x1d2   :  { %v4034_v15 = vadd.f32 %v4033_v17, %v1237_v22  ;;  %3316 = vst [vmem:[%s11296_s6 + $0xa20] sm:$0xff] %v1238_v27  ;;  %v4227_v41 = vmul.f32 %v1237_v22, %v1237_v22  ;;  %v3828_v23 = vadd.f32 %v3827_v46, %v1238_v27  ;;  %v4228_v16 = vmul.f32 %v1238_v27, %v1238_v27  ;;  %v1498_v17 = vld [vmem:[%s11297_s1 + $0x540] sm:$0xff]  ;;  %v1499_v46 = vld [vmem:[%s11297_s1 + $0x548] sm:$0xff] }
 0x1d3   :  { %5450 = vst [vmem:[%s11296_s6 + $0xa60] sm:$0xff] %v1240_v32  ;;  %v3966_v28 = vadd.f32 %v3965_v36, %v1240_v32  ;;  %v4428_v58 = vadd.f32 %v4427_v18, %v4225_v6  ;;  %v4230_v40 = vmul.f32 %v1240_v32, %v1240_v32  ;;  %v1239_v53 = vmax.f32 %v491_v3, 0.0  ;;  %5981 = vmatmul.mubr.f32.gmra.mrb[210].mxu0 %v1496_v7  ;;  %v8678_v32 = vpop.f32.mrb[105].mxu1  ;;  %v1500_v3 = vld [vmem:[%s11297_s1 + $0x550] sm:$0xff] }
 0x1d4   :  { %v1241_v29 = vmax.f32 %v940_v34, 0.0  ;;  %v4566_v36 = vadd.f32 %v4565_v45, %v4227_v41  ;;  %v4360_v22 = vadd.f32 %v4359_v44, %v4228_v16  ;;  %v495_v27 = vadd.f32 %v8302_v12, %v6959_v55  ;;  %6205 = vmatmul.mubr.f32.gmra.mrb[210].mxu1 %v1497_v2  ;;  %5983 = vmatprep.mubr.f32.mxu0 %v1498_v17  ;;  %v8694_v41 = vpop.f32.mrb[106].mxu0 }
 0x1d5   :  { %v944_v18 = vadd.f32 %v8307_v24, %v6962_v56  ;;  %v4498_v34 = vadd.f32 %v4497_v10, %v4230_v40  ;;  %3380 = vst [vmem:[%s11296_s6 + $0xa30] sm:$0xff] %v1239_v53  ;;  %v3897_v45 = vadd.f32 %v3896_v9, %v1239_v53  ;;  %v4229_v44 = vmul.f32 %v1239_v53, %v1239_v53  ;;  %v1501_v24 = vld [vmem:[%s11297_s1 + $0x558] sm:$0xff]  ;;  %v1502_v9 = vld [vmem:[%s11297_s1 + $0x560] sm:$0xff]  ;;  %v8708_v53 = vpop.f32.mrb[106].mxu1 }
 0x1d6   :  { %5514 = vst [vmem:[%s11296_s6 + $0xa70] sm:$0xff] %v1241_v29  ;;  %v4035_v12 = vadd.f32 %v4034_v15, %v1241_v29  ;;  %v4231_v7 = vmul.f32 %v1241_v29, %v1241_v29  ;;  %v1242_v6 = vmax.f32 %v495_v27, 0.0  ;;  %v497_v10 = vadd.f32 %v8309_v51, %v6964_v57  ;;  %6207 = vmatprep.mubr.f32.mxu1 %v1499_v46  ;;  %v1503_v15 = vld [vmem:[%s11297_s1 + $0x568] sm:$0xff]  ;;  %v8710_v29 = vpop.f32.mrb[107].mxu0 }
 0x1d7   :  { %v1244_v2 = vmax.f32 %v944_v18, 0.0  ;;  %v4429_v16 = vadd.f32 %v4428_v58, %v4229_v44  ;;  %v946_v17 = vadd.f32 %v8318_v33, %v6970_v59  ;;  %v501_v40 = vadd.f32 %v8334_v48, %v6959_v55  ;;  %11309 = vst [vmem:[#allocation10_spill] sm:$0xff] %v8710_v29  ;;  %5984 = vmatmul.mubr.f32.gmra.mrb[212].mxu0 %v1500_v3  ;;  %v8718_v48 = vpop.f32.mrb[107].mxu1  ;;  %v8730_v29 = vpop.f32.mrb[108].mxu0 }
 0x1d8   :  { %v950_v51 = vadd.f32 %v8348_v25, %v6962_v56  ;;  %v4567_v46 = vadd.f32 %v4566_v36, %v4231_v7  ;;  %3317 = vst [vmem:[%s11296_s6 + $0xa80] sm:$0xff] %v1242_v6  ;;  %v3829_v58 = vadd.f32 %v3828_v23, %v1242_v6  ;;  %v4232_v27 = vmul.f32 %v1242_v6, %v1242_v6  ;;  %v1504_v25 = vld [vmem:[%s11297_s1 + $0x570] sm:$0xff]  ;;  %v1505_v23 = vld [vmem:[%s11297_s1 + $0x578] sm:$0xff] }
 0x1d9   :  { %5451 = vst [vmem:[%s11296_s6 + $0xac0] sm:$0xff] %v1244_v2  ;;  %v3967_v33 = vadd.f32 %v3966_v28, %v1244_v2  ;;  %11310 = vst [vmem:[#allocation11_spill] sm:$0xff] %v8718_v48  ;;  %6208 = vmatmul.mubr.f32.gmra.mrb[212].mxu1 %v1501_v24  ;;  %v4234_v18 = vmul.f32 %v1244_v2, %v1244_v2  ;;  %v1243_v36 = vmax.f32 %v497_v10, 0.0  ;;  %v1245_v3 = vmax.f32 %v946_v17, 0.0  ;;  %v11311_v24 = vld [vmem:[#allocation2_spill] sm:$0xff]  ;;  %v1507_v10 = vld [vmem:[%s11297_s1 + $0x588] sm:$0xff] }
 0x1da   :  { %v1246_v44 = vmax.f32 %v501_v40, 0.0  ;;  %5986 = vmatprep.mubr.f32.mxu0 %v1502_v9  ;;  %6210 = vmatprep.mubr.f32.mxu1 %v1503_v15  ;;  %v4361_v7 = vadd.f32 %v4360_v22, %v4232_v27  ;;  %v1248_v6 = vmax.f32 %v950_v51, 0.0  ;;  %v503_v28 = vadd.f32 %v8350_v38, %v6964_v57  ;;  %v1506_v2 = vld [vmem:[%s11297_s1 + $0x580] sm:$0xff]  ;;  %v8747_v17 = vpop.f32.mrb[108].mxu1  ;;  %v8749_v40 = vpop.f32.mrb[109].mxu0 }
 0x1db   :  { %v952_v48 = vadd.f32 %v11311_v24, %v6970_v59  ;;  %v4499_v9 = vadd.f32 %v4498_v34, %v4234_v18  ;;  %3381 = vst [vmem:[%s11296_s6 + $0xa90] sm:$0xff] %v1243_v36  ;;  %v3898_v22 = vadd.f32 %v3897_v45, %v1243_v36  ;;  %v4233_v38 = vmul.f32 %v1243_v36, %v1243_v36  ;;  %v8754_v18 = vpop.f32.mrb[109].mxu1 }
 0x1dc   :  { %5515 = vst [vmem:[%s11296_s6 + $0xad0] sm:$0xff] %v1245_v3  ;;  %v4036_v15 = vadd.f32 %v4035_v12, %v1245_v3  ;;  %3318 = vst [vmem:[%s11296_s6 + $0xaa0] sm:$0xff] %v1246_v44  ;;  %5987 = vmatmul.mubr.f32.gmra.mrb[214].mxu0 %v1504_v25  ;;  %v4235_v34 = vmul.f32 %v1245_v3, %v1245_v3  ;;  %v3830_v51 = vadd.f32 %v3829_v58, %v1246_v44  ;;  %v1508_v12 = vld [vmem:[%s11297_s1 + $0x590] sm:$0xff]  ;;  %v1509_v58 = vld [vmem:[%s11297_s1 + $0x598] sm:$0xff] }
 0x1dd   :  { %11312 = vst [vmem:[#allocation2_spill] sm:$0xff] %v8747_v17  ;;  %11313 = vst [vmem:[#allocation12_spill] sm:$0xff] %v8749_v40  ;;  %v4236_v27 = vmul.f32 %v1246_v44, %v1246_v44  ;;  %v3968_v45 = vadd.f32 %v3967_v33, %v1248_v6  ;;  %6211 = vmatmul.mubr.f32.gmra.mrb[214].mxu1 %v1505_v23  ;;  %v4430_v36 = vadd.f32 %v4429_v16, %v4233_v38  ;;  %v1510_v33 = vld [vmem:[%s11297_s1 + $0x5a0] sm:$0xff]  ;;  %v11314_v16 = vld [vmem:[#allocation3_spill] sm:$0xff] }
 0x1de   :  { %5452 = vst [vmem:[%s11296_s6 + $0xae0] sm:$0xff] %v1248_v6  ;;  %v4238_v24 = vmul.f32 %v1248_v6, %v1248_v6  ;;  %v1247_v17 = vmax.f32 %v503_v28, 0.0  ;;  %v1249_v40 = vmax.f32 %v952_v48, 0.0  ;;  %5989 = vmatprep.mubr.f32.mxu0 %v1506_v2  ;;  %6213 = vmatprep.mubr.f32.mxu1 %v1507_v10  ;;  %v4568_v25 = vadd.f32 %v4567_v46, %v4235_v34  ;;  %v8769_v6 = vpop.f32.mrb[110].mxu0  ;;  %v1511_v48 = vld [vmem:[%s11297_s1 + $0x5a8] sm:$0xff] }
 0x1df   :  { %v4362_v3 = vadd.f32 %v4361_v7, %v4236_v27  ;;  %v507_v44 = vadd.f32 %v8370_v11, %v6959_v55  ;;  %v956_v23 = vadd.f32 %v11314_v16, %v6962_v56  ;;  %v8780_v7 = vpop.f32.mrb[110].mxu1  ;;  %v8782_v10 = vpop.f32.mrb[111].mxu0 }
 0x1e0   :  { %v4500_v28 = vadd.f32 %v4499_v9, %v4238_v24  ;;  %3382 = vst [vmem:[%s11296_s6 + $0xab0] sm:$0xff] %v1247_v17  ;;  %v3899_v2 = vadd.f32 %v3898_v22, %v1247_v17  ;;  %v4237_v46 = vmul.f32 %v1247_v17, %v1247_v17  ;;  %5516 = vst [vmem:[%s11296_s6 + $0xaf0] sm:$0xff] %v1249_v40  ;;  %5990 = vmatmul.mubr.f32.gmra.mrb[216].mxu0 %v1508_v12  ;;  %v11316_v9 = vld [vmem:[#allocation4_spill] sm:$0xff]  ;;  %v8786_v16 = vpop.f32.mrb[111].mxu1 }
 0x1e1   :  { %v4037_v11 = vadd.f32 %v4036_v15, %v1249_v40  ;;  %11315 = vst [vmem:[#allocation3_spill] sm:$0xff] %v8782_v10  ;;  %v4239_v38 = vmul.f32 %v1249_v40, %v1249_v40  ;;  %v1250_v34 = vmax.f32 %v507_v44, 0.0  ;;  %v1252_v27 = vmax.f32 %v956_v23, 0.0  ;;  %11317 = vst [vmem:[#allocation4_spill] sm:$0xff] %v8786_v16  ;;  %6214 = vmatmul.mubr.f32.gmra.mrb[216].mxu1 %v1509_v58  ;;  %v1512_v22 = vld [vmem:[%s11297_s1 + $0x5b0] sm:$0xff]  ;;  %v1513_v58 = vld [vmem:[%s11297_s1 + $0x5b8] sm:$0xff] }
 0x1e2   :  { %v509_v24 = vadd.f32 %v11316_v9, %v6964_v57  ;;  %5992 = vmatprep.mubr.f32.mxu0 %v1510_v33  ;;  %v4431_v15 = vadd.f32 %v4430_v36, %v4237_v46  ;;  %v958_v17 = vadd.f32 %v8394_v62, %v6970_v59  ;;  %v513_v40 = vadd.f32 %v8409_v5, %v6959_v55  ;;  %v1514_v33 = vld [vmem:[%s11297_s1 + $0x5c0] sm:$0xff]  ;;  %v1515_v23 = vld [vmem:[%s11297_s1 + $0x5c8] sm:$0xff]  ;;  %v8814_v9 = vpop.f32.mrb[112].mxu1 }
 0x1e3   :  { %v962_v12 = vadd.f32 %v8420_v37, %v6962_v56  ;;  %6216 = vmatprep.mubr.f32.mxu1 %v1511_v48  ;;  %v4569_v44 = vadd.f32 %v4568_v25, %v4239_v38  ;;  %3319 = vst [vmem:[%s11296_s6 + $0xb00] sm:$0xff] %v1250_v34  ;;  %v3831_v62 = vadd.f32 %v3830_v51, %v1250_v34  ;;  %5453 = vst [vmem:[%s11296_s6 + $0xb40] sm:$0xff] %v1252_v27  ;;  %v8809_v37 = vpop.f32.mrb[112].mxu0  ;;  %v8822_v10 = vpop.f32.mrb[113].mxu1 }
 0x1e4   :  { %v4240_v36 = vmul.f32 %v1250_v34, %v1250_v34  ;;  %v3969_v5 = vadd.f32 %v3968_v45, %v1252_v27  ;;  %11318 = vst [vmem:[#allocation13_spill] sm:$0xff] %v8809_v37  ;;  %v4242_v48 = vmul.f32 %v1252_v27, %v1252_v27  ;;  %v1251_v46 = vmax.f32 %v509_v24, 0.0  ;;  %v8816_v16 = vpop.f32.mrb[113].mxu0  ;;  %5993 = vmatmul.mubr.f32.gmra.mrb[218].mxu0 %v1512_v22  ;;  %v1516_v27 = vld [vmem:[%s11297_s1 + $0x5d0] sm:$0xff] }
 0x1e5   :  { %v1253_v25 = vmax.f32 %v958_v17, 0.0  ;;  %v1254_v38 = vmax.f32 %v513_v40, 0.0  ;;  %v1256_v34 = vmax.f32 %v962_v12, 0.0  ;;  %v515_v45 = vadd.f32 %v8422_v63, %v6964_v57  ;;  %6217 = vmatmul.mubr.f32.gmra.mrb[218].mxu1 %v1513_v58  ;;  %5995 = vmatprep.mubr.f32.mxu0 %v1514_v33  ;;  %v8842_v12 = vpop.f32.mrb[114].mxu0 }
 0x1e6   :  { %v4363_v51 = vadd.f32 %v4362_v3, %v4240_v36  ;;  %v964_v37 = vadd.f32 %v8426_v26, %v6970_v59  ;;  %v4501_v24 = vadd.f32 %v4500_v28, %v4242_v48  ;;  %3383 = vst [vmem:[%s11296_s6 + $0xb10] sm:$0xff] %v1251_v46  ;;  %v3900_v3 = vadd.f32 %v3899_v2, %v1251_v46  ;;  %v1517_v26 = vld [vmem:[%s11297_s1 + $0x5d8] sm:$0xff]  ;;  %v8847_v48 = vpop.f32.mrb[114].mxu1 }
 0x1e7   :  { %v4241_v22 = vmul.f32 %v1251_v46, %v1251_v46  ;;  %5517 = vst [vmem:[%s11296_s6 + $0xb50] sm:$0xff] %v1253_v25  ;;  %v4038_v63 = vadd.f32 %v4037_v11, %v1253_v25  ;;  %3320 = vst [vmem:[%s11296_s6 + $0xb20] sm:$0xff] %v1254_v38  ;;  %6219 = vmatprep.mubr.f32.mxu1 %v1515_v23  ;;  %v4243_v28 = vmul.f32 %v1253_v25, %v1253_v25  ;;  %v1518_v11 = vld [vmem:[%s11297_s1 + $0x5e0] sm:$0xff]  ;;  %v8849_v46 = vpop.f32.mrb[115].mxu0 }
 0x1e8   :  { %v3832_v17 = vadd.f32 %v3831_v62, %v1254_v38  ;;  %v4244_v40 = vmul.f32 %v1254_v38, %v1254_v38  ;;  %5454 = vst [vmem:[%s11296_s6 + $0xb60] sm:$0xff] %v1256_v34  ;;  %v3970_v2 = vadd.f32 %v3969_v5, %v1256_v34  ;;  %11319 = vst [vmem:[#allocation14_spill] sm:$0xff] %v8842_v12  ;;  %v1255_v36 = vmax.f32 %v515_v45, 0.0  ;;  %v1519_v62 = vld [vmem:[%s11297_s1 + $0x5e8] sm:$0xff]  ;;  %v11320_v38 = vld [vmem:[#allocation5_spill] sm:$0xff] }
 0x1e9   :  { %v4432_v58 = vadd.f32 %v4431_v15, %v4241_v22  ;;  %v4246_v33 = vmul.f32 %v1256_v34, %v1256_v34  ;;  %v1257_v23 = vmax.f32 %v964_v37, 0.0  ;;  %5996 = vmatmul.mubr.f32.gmra.mrb[220].mxu0 %v1516_v27  ;;  %v4570_v5 = vadd.f32 %v4569_v44, %v4243_v28  ;;  %v8858_v34 = vpop.f32.mrb[115].mxu1  ;;  %6220 = vmatmul.mubr.f32.gmra.mrb[220].mxu1 %v1517_v26  ;;  %v1520_v37 = vld [vmem:[%s11297_s1 + $0x5f0] sm:$0xff] }
 0x1ea   :  { %v4364_v25 = vadd.f32 %v4363_v51, %v4244_v40  ;;  %v519_v12 = vadd.f32 %v11320_v38, %v6959_v55  ;;  %v968_v15 = vadd.f32 %v8454_v1, %v6962_v56  ;;  %3384 = vst [vmem:[%s11296_s6 + $0xb30] sm:$0xff] %v1255_v36  ;;  %v3901_v44 = vadd.f32 %v3900_v3, %v1255_v36  ;;  %v1521_v1 = vld [vmem:[%s11297_s1 + $0x5f8] sm:$0xff]  ;;  %v8874_v40 = vpop.f32.mrb[116].mxu0  ;;  %v1522_v3 = vld [vmem:[%s11297_s1 + $0x600] sm:$0xff] }
 0x1eb   :  { %v4502_v45 = vadd.f32 %v4501_v24, %v4246_v33  ;;  %v4245_v51 = vmul.f32 %v1255_v36, %v1255_v36  ;;  %5518 = vst [vmem:[%s11296_s6 + $0xb70] sm:$0xff] %v1257_v23  ;;  %v4039_v27 = vadd.f32 %v4038_v63, %v1257_v23  ;;  %5998 = vmatprep.mubr.f32.mxu0 %v1518_v11  ;;  %v1523_v63 = vld [vmem:[%s11297_s1 + $0x608] sm:$0xff]  ;;  %v8888_v36 = vpop.f32.mrb[116].mxu1 }
 0x1ec   :  { %v4247_v22 = vmul.f32 %v1257_v23, %v1257_v23  ;;  %v1258_v26 = vmax.f32 %v519_v12, 0.0  ;;  %v1260_v28 = vmax.f32 %v968_v15, 0.0  ;;  %v521_v24 = vadd.f32 %v8456_v0, %v6964_v57  ;;  %6222 = vmatprep.mubr.f32.mxu1 %v1519_v62  ;;  %v8890_v23 = vpop.f32.mrb[117].mxu0 }
 0x1ed   :  { %v4433_v11 = vadd.f32 %v4432_v58, %v4245_v51  ;;  %v970_v33 = vadd.f32 %v8462_v47, %v6970_v59  ;;  %v525_v12 = vadd.f32 %v8482_v21, %v6959_v55  ;;  %v974_v0 = vadd.f32 %v8487_v50, %v6962_v56  ;;  %5999 = vmatmul.mubr.f32.gmra.mrb[222].mxu0 %v1520_v37  ;;  %v8898_v21 = vpop.f32.mrb[117].mxu1  ;;  %v1524_v50 = vld [vmem:[%s11297_s1 + $0x610] sm:$0xff] }
 0x1ee   :  { %v4571_v62 = vadd.f32 %v4570_v5, %v4247_v22  ;;  %3321 = vst [vmem:[%s11296_s6 + $0xb80] sm:$0xff] %v1258_v26  ;;  %v3833_v58 = vadd.f32 %v3832_v17, %v1258_v26  ;;  %v4248_v38 = vmul.f32 %v1258_v26, %v1258_v26  ;;  %5455 = vst [vmem:[%s11296_s6 + $0xbc0] sm:$0xff] %v1260_v28  ;;  %6223 = vmatmul.mubr.f32.gmra.mrb[222].mxu1 %v1521_v1  ;;  %v1525_v17 = vld [vmem:[%s11297_s1 + $0x618] sm:$0xff] }
 0x1ef   :  { %v3971_v47 = vadd.f32 %v3970_v2, %v1260_v28  ;;  %11321 = vst [vmem:[#allocation5_spill] sm:$0xff] %v8898_v21  ;;  %v4250_v15 = vmul.f32 %v1260_v28, %v1260_v28  ;;  %v1259_v5 = vmax.f32 %v521_v24, 0.0  ;;  %v1261_v37 = vmax.f32 %v970_v33, 0.0  ;;  %6001 = vmatprep.mubr.f32.mxu0 %v1522_v3  ;;  %6225 = vmatprep.mubr.f32.mxu1 %v1523_v63  ;;  %v8910_v21 = vpop.f32.mrb[118].mxu0  ;;  %v1526_v28 = vld [vmem:[%s11297_s1 + $0x620] sm:$0xff]  ;;  %v1527_v24 = vld [vmem:[%s11297_s1 + $0x628] sm:$0xff] }
 0x1f0   :  { %v1262_v51 = vmax.f32 %v525_v12, 0.0  ;;  %v4365_v22 = vadd.f32 %v4364_v25, %v4248_v38  ;;  %v1264_v26 = vmax.f32 %v974_v0, 0.0  ;;  %v527_v2 = vadd.f32 %v8489_v42, %v6964_v57  ;;  %v8927_v63 = vpop.f32.mrb[118].mxu1  ;;  %v8929_v33 = vpop.f32.mrb[119].mxu0 }
 0x1f1   :  { %v976_v1 = vadd.f32 %v8498_v61, %v6970_v59  ;;  %v4503_v3 = vadd.f32 %v4502_v45, %v4250_v15  ;;  %3385 = vst [vmem:[%s11296_s6 + $0xb90] sm:$0xff] %v1259_v5  ;;  %v3902_v25 = vadd.f32 %v3901_v44, %v1259_v5  ;;  %v4249_v42 = vmul.f32 %v1259_v5, %v1259_v5  ;;  %v8934_v38 = vpop.f32.mrb[119].mxu1 }
 0x1f2   :  { %5519 = vst [vmem:[%s11296_s6 + $0xbd0] sm:$0xff] %v1261_v37  ;;  %v4040_v61 = vadd.f32 %v4039_v27, %v1261_v37  ;;  %3322 = vst [vmem:[%s11296_s6 + $0xba0] sm:$0xff] %v1262_v51  ;;  %6002 = vmatmul.mubr.f32.gmra.mrb[224].mxu0 %v1524_v50  ;;  %v4251_v45 = vmul.f32 %v1261_v37, %v1261_v37  ;;  %v3834_v12 = vadd.f32 %v3833_v58, %v1262_v51  ;;  %v1528_v27 = vld [vmem:[%s11297_s1 + $0x630] sm:$0xff]  ;;  %v1529_v58 = vld [vmem:[%s11297_s1 + $0x638] sm:$0xff] }
 0x1f3   :  { %11322 = vst [vmem:[#allocation15_spill] sm:$0xff] %v8927_v63  ;;  %11323 = vst [vmem:[#allocation16_spill] sm:$0xff] %v8929_v33  ;;  %v4252_v0 = vmul.f32 %v1262_v51, %v1262_v51  ;;  %v3972_v44 = vadd.f32 %v3971_v47, %v1264_v26  ;;  %6226 = vmatmul.mubr.f32.gmra.mrb[224].mxu1 %v1525_v17  ;;  %v4434_v15 = vadd.f32 %v4433_v11, %v4249_v42  ;;  %v1530_v47 = vld [vmem:[%s11297_s1 + $0x640] sm:$0xff]  ;;  %v8949_v17 = vpop.f32.mrb[120].mxu0 }
 0x1f4   :  { %5456 = vst [vmem:[%s11296_s6 + $0xbe0] sm:$0xff] %v1264_v26  ;;  %v4254_v5 = vmul.f32 %v1264_v26, %v1264_v26  ;;  %v1263_v63 = vmax.f32 %v527_v2, 0.0  ;;  %v1265_v33 = vmax.f32 %v976_v1, 0.0  ;;  %6004 = vmatprep.mubr.f32.mxu0 %v1526_v28  ;;  %6228 = vmatprep.mubr.f32.mxu1 %v1527_v24  ;;  %v4572_v50 = vadd.f32 %v4571_v62, %v4251_v45  ;;  %v1531_v26 = vld [vmem:[%s11297_s1 + $0x648] sm:$0xff] }
 0x1f5   :  { %v4366_v37 = vadd.f32 %v4365_v22, %v4252_v0  ;;  %v531_v51 = vadd.f32 %v8514_v30, %v6959_v55  ;;  %v980_v11 = vadd.f32 %v8528_v31, %v6962_v56  ;;  %v8960_v22 = vpop.f32.mrb[120].mxu1  ;;  %v8962_v31 = vpop.f32.mrb[121].mxu0 }
 0x1f6   :  { %v4504_v2 = vadd.f32 %v4503_v3, %v4254_v5  ;;  %3386 = vst [vmem:[%s11296_s6 + $0xbb0] sm:$0xff] %v1263_v63  ;;  %v3903_v1 = vadd.f32 %v3902_v25, %v1263_v63  ;;  %v4253_v62 = vmul.f32 %v1263_v63, %v1263_v63  ;;  %5520 = vst [vmem:[%s11296_s6 + $0xbf0] sm:$0xff] %v1265_v33  ;;  %6005 = vmatmul.mubr.f32.gmra.mrb[226].mxu0 %v1528_v27  ;;  %v8966_v45 = vpop.f32.mrb[121].mxu1  ;;  %v1532_v25 = vld [vmem:[%s11297_s1 + $0x650] sm:$0xff]  ;;  %v11327_v63 = vld [vmem:[#allocation6_spill] sm:$0xff] }
 0x1f7   :  { %v4041_v30 = vadd.f32 %v4040_v61, %v1265_v33  ;;  %11324 = vst [vmem:[#allocation17_spill] sm:$0xff] %v8960_v22  ;;  %11325 = vst [vmem:[#allocation18_spill] sm:$0xff] %v8962_v31  ;;  %v4255_v28 = vmul.f32 %v1265_v33, %v1265_v33  ;;  %v1266_v24 = vmax.f32 %v531_v51, 0.0  ;;  %v1268_v42 = vmax.f32 %v980_v11, 0.0  ;;  %6229 = vmatmul.mubr.f32.gmra.mrb[226].mxu1 %v1529_v58  ;;  %v11328_v27 = vld [vmem:[#allocation7_spill] sm:$0xff]  ;;  %v1534_v58 = vld [vmem:[%s11297_s1 + $0x660] sm:$0xff] }
 0x1f8   :  { %v533_v3 = vadd.f32 %v8530_v60, %v6964_v57  ;;  %11326 = vst [vmem:[#allocation19_spill] sm:$0xff] %v8966_v45  ;;  %6007 = vmatprep.mubr.f32.mxu0 %v1530_v47  ;;  %v4435_v61 = vadd.f32 %v4434_v15, %v4253_v62  ;;  %v982_v0 = vadd.f32 %v11327_v63, %v6970_v59  ;;  %v1533_v60 = vld [vmem:[%s11297_s1 + $0x658] sm:$0xff]  ;;  %v8989_v11 = vpop.f32.mrb[122].mxu0  ;;  %v11330_v31 = vld [vmem:[#allocation8_spill] sm:$0xff] }
 0x1f9   :  { %v537_v33 = vadd.f32 %v8550_v54, %v6959_v55  ;;  %v986_v5 = vadd.f32 %v11328_v27, %v6962_v56  ;;  %6231 = vmatprep.mubr.f32.mxu1 %v1531_v26  ;;  %v4573_v47 = vadd.f32 %v4572_v50, %v4255_v28  ;;  %3323 = vst [vmem:[%s11296_s6 + $0xc00] sm:$0xff] %v1266_v24  ;;  %5457 = vst [vmem:[%s11296_s6 + $0xc40] sm:$0xff] %v1268_v42  ;;  %v1535_v26 = vld [vmem:[%s11297_s1 + $0x668] sm:$0xff]  ;;  %v8994_v27 = vpop.f32.mrb[122].mxu1  ;;  %v8996_v45 = vpop.f32.mrb[123].mxu0 }
 0x1fa   :  { %v3835_v15 = vadd.f32 %v3834_v12, %v1266_v24  ;;  %v4256_v51 = vmul.f32 %v1266_v24, %v1266_v24  ;;  %v3973_v54 = vadd.f32 %v3972_v44, %v1268_v42  ;;  %11329 = vst [vmem:[#allocation6_spill] sm:$0xff] %v8989_v11  ;;  %v4258_v62 = vmul.f32 %v1268_v42, %v1268_v42  ;;  %v9002_v22 = vpop.f32.mrb[123].mxu1  ;;  %v1536_v42 = vld [vmem:[%s11297_s1 + $0x670] sm:$0xff] }
 0x1fb   :  { %v1267_v63 = vmax.f32 %v533_v3, 0.0  ;;  %v1269_v50 = vmax.f32 %v982_v0, 0.0  ;;  %v1270_v28 = vmax.f32 %v537_v33, 0.0  ;;  %6008 = vmatmul.mubr.f32.gmra.mrb[228].mxu0 %v1532_v25  ;;  %v1272_v24 = vmax.f32 %v986_v5, 0.0  ;;  %6232 = vmatmul.mubr.f32.gmra.mrb[228].mxu1 %v1533_v60  ;;  %v9022_v5 = vpop.f32.mrb[124].mxu0 }
 0x1fc   :  { %v4367_v12 = vadd.f32 %v4366_v37, %v4256_v51  ;;  %v539_v44 = vadd.f32 %v11330_v31, %v6964_v57  ;;  %v988_v11 = vadd.f32 %v8574_v13, %v6970_v59  ;;  %6010 = vmatprep.mubr.f32.mxu0 %v1534_v58  ;;  %v4505_v3 = vadd.f32 %v4504_v2, %v4258_v62  ;;  %v1537_v2 = vld [vmem:[%s11297_s1 + $0x678] sm:$0xff]  ;;  %v9027_v62 = vpop.f32.mrb[124].mxu1 }
 0x1fd   :  { %3387 = vst [vmem:[%s11296_s6 + $0xc10] sm:$0xff] %v1267_v63  ;;  %v3904_v37 = vadd.f32 %v3903_v1, %v1267_v63  ;;  %v4257_v25 = vmul.f32 %v1267_v63, %v1267_v63  ;;  %5521 = vst [vmem:[%s11296_s6 + $0xc50] sm:$0xff] %v1269_v50  ;;  %v4042_v13 = vadd.f32 %v4041_v30, %v1269_v50  ;;  %6234 = vmatprep.mubr.f32.mxu1 %v1535_v26  ;;  %v1538_v30 = vld [vmem:[%s11297_s1 + $0x680] sm:$0xff]  ;;  %v9029_v63 = vpop.f32.mrb[125].mxu0 }
 0x1fe   :  { %3324 = vst [vmem:[%s11296_s6 + $0xc20] sm:$0xff] %v1270_v28  ;;  %v4259_v31 = vmul.f32 %v1269_v50, %v1269_v50  ;;  %v3836_v0 = vadd.f32 %v3835_v15, %v1270_v28  ;;  %v4260_v33 = vmul.f32 %v1270_v28, %v1270_v28  ;;  %5458 = vst [vmem:[%s11296_s6 + $0xc60] sm:$0xff] %v1272_v24  ;;  %v1271_v51 = vmax.f32 %v539_v44, 0.0  ;;  %v1539_v15 = vld [vmem:[%s11297_s1 + $0x688] sm:$0xff] }
 0x1ff   :  { %v3974_v1 = vadd.f32 %v3973_v54, %v1272_v24  ;;  %v4436_v60 = vadd.f32 %v4435_v61, %v4257_v25  ;;  %v4262_v58 = vmul.f32 %v1272_v24, %v1272_v24  ;;  %v1273_v26 = vmax.f32 %v988_v11, 0.0  ;;  %6011 = vmatmul.mubr.f32.gmra.mrb[230].mxu0 %v1536_v42  ;;  %v9038_v24 = vpop.f32.mrb[125].mxu1  ;;  %6235 = vmatmul.mubr.f32.gmra.mrb[230].mxu1 %v1537_v2  ;;  %v1540_v11 = vld [vmem:[%s11297_s1 + $0x690] sm:$0xff] }
 0x200   :  { %v4574_v54 = vadd.f32 %v4573_v47, %v4259_v31  ;;  %v4368_v50 = vadd.f32 %v4367_v12, %v4260_v33  ;;  %v543_v28 = vadd.f32 %v8589_v19, %v6959_v55  ;;  %v992_v61 = vadd.f32 %v8600_v43, %v6962_v56  ;;  %3388 = vst [vmem:[%s11296_s6 + $0xc30] sm:$0xff] %v1271_v51  ;;  %v1541_v43 = vld [vmem:[%s11297_s1 + $0x698] sm:$0xff]  ;;  %v9054_v31 = vpop.f32.mrb[126].mxu0 }
 0x201   :  { %v4506_v44 = vadd.f32 %v4505_v3, %v4262_v58  ;;  %v3905_v47 = vadd.f32 %v3904_v37, %v1271_v51  ;;  %v4261_v12 = vmul.f32 %v1271_v51, %v1271_v51  ;;  %5522 = vst [vmem:[%s11296_s6 + $0xc70] sm:$0xff] %v1273_v26  ;;  %v4043_v19 = vadd.f32 %v4042_v13, %v1273_v26  ;;  %v1542_v37 = vld [vmem:[%s11297_s1 + $0x6a0] sm:$0xff]  ;;  %v1543_v13 = vld [vmem:[%s11297_s1 + $0x6a8] sm:$0xff]  ;;  %v11331_v58 = vld [vmem:[#allocation9_spill] sm:$0xff] }
 0x202   :  { %6013 = vmatprep.mubr.f32.mxu0 %v1538_v30  ;;  %v4263_v42 = vmul.f32 %v1273_v26, %v1273_v26  ;;  %v1274_v25 = vmax.f32 %v543_v28, 0.0  ;;  %v1276_v2 = vmax.f32 %v992_v61, 0.0  ;;  %v545_v3 = vadd.f32 %v8602_v4, %v6964_v57  ;;  %6237 = vmatprep.mubr.f32.mxu1 %v1539_v15  ;;  %v9068_v26 = vpop.f32.mrb[126].mxu1  ;;  %v9070_v15 = vpop.f32.mrb[127].mxu0 }
 0x203   :  { %v4437_v33 = vadd.f32 %v4436_v60, %v4261_v12  ;;  %v994_v30 = vadd.f32 %v8606_v14, %v6970_v59  ;;  %v549_v51 = vadd.f32 %v11331_v58, %v6959_v55  ;;  %v998_v4 = vadd.f32 %v8634_v39, %v6962_v56  ;;  %11332 = vst [vmem:[#allocation7_spill] sm:$0xff] %v9070_v15  ;;  %v9078_v12 = vpop.f32.mrb[127].mxu1  ;;  %v1544_v39 = vld [vmem:[%s11297_s1 + $0x6b0] sm:$0xff] }
 0x204   :  { %6014 = vmatmul.mubr.f32.gmra.mrb[232].mxu0 %v1540_v11  ;;  %v4575_v28 = vadd.f32 %v4574_v54, %v4263_v42  ;;  %3325 = vst [vmem:[%s11296_s6 + $0xc80] sm:$0xff] %v1274_v25  ;;  %v3837_v60 = vadd.f32 %v3836_v0, %v1274_v25  ;;  %v4264_v61 = vmul.f32 %v1274_v25, %v1274_v25  ;;  %5459 = vst [vmem:[%s11296_s6 + $0xcc0] sm:$0xff] %v1276_v2  ;;  %v1545_v0 = vld [vmem:[%s11297_s1 + $0x6b8] sm:$0xff] }
 0x205   :  { %v3975_v14 = vadd.f32 %v3974_v1, %v1276_v2  ;;  %11333 = vst [vmem:[#allocation8_spill] sm:$0xff] %v9078_v12  ;;  %6238 = vmatmul.mubr.f32.gmra.mrb[232].mxu1 %v1541_v43  ;;  %v4266_v11 = vmul.f32 %v1276_v2, %v1276_v2  ;;  %v1275_v54 = vmax.f32 %v545_v3, 0.0  ;;  %v1277_v42 = vmax.f32 %v994_v30, 0.0  ;;  %6016 = vmatprep.mubr.f32.mxu0 %v1542_v37  ;;  %v9090_v12 = vpop.f32.mrb[128].mxu0  ;;  %v1546_v2 = vld [vmem:[%s11297_s1 + $0x6c0] sm:$0xff]  ;;  %v1547_v3 = vld [vmem:[%s11297_s1 + $0x6c8] sm:$0xff] }
 0x206   :  { %v1278_v58 = vmax.f32 %v549_v51, 0.0  ;;  %6240 = vmatprep.mubr.f32.mxu1 %v1543_v13  ;;  %v4369_v25 = vadd.f32 %v4368_v50, %v4264_v61  ;;  %v1280_v15 = vmax.f32 %v998_v4, 0.0  ;;  %v551_v1 = vadd.f32 %v8636_v20, %v6964_v57  ;;  %v9107_v13 = vpop.f32.mrb[128].mxu1  ;;  %v9109_v30 = vpop.f32.mrb[129].mxu0 }
 0x207   :  { %v1000_v43 = vadd.f32 %v8642_v49, %v6970_v59  ;;  %v4507_v37 = vadd.f32 %v4506_v44, %v4266_v11  ;;  %3389 = vst [vmem:[%s11296_s6 + $0xc90] sm:$0xff] %v1275_v54  ;;  %v3906_v50 = vadd.f32 %v3905_v47, %v1275_v54  ;;  %v4265_v20 = vmul.f32 %v1275_v54, %v1275_v54  ;;  %v9114_v61 = vpop.f32.mrb[129].mxu1 }
 0x208   :  { %5523 = vst [vmem:[%s11296_s6 + $0xcd0] sm:$0xff] %v1277_v42  ;;  %v4044_v49 = vadd.f32 %v4043_v19, %v1277_v42  ;;  %3326 = vst [vmem:[%s11296_s6 + $0xca0] sm:$0xff] %v1278_v58  ;;  %6017 = vmatmul.mubr.f32.gmra.mrb[234].mxu0 %v1544_v39  ;;  %v4267_v44 = vmul.f32 %v1277_v42, %v1277_v42  ;;  %v3838_v51 = vadd.f32 %v3837_v60, %v1278_v58  ;;  %v1548_v19 = vld [vmem:[%s11297_s1 + $0x6d0] sm:$0xff]  ;;  %v1549_v60 = vld [vmem:[%s11297_s1 + $0x6d8] sm:$0xff] }
 0x209   :  { %11334 = vst [vmem:[#allocation9_spill] sm:$0xff] %v9107_v13  ;;  %11335 = vst [vmem:[#allocation20_spill] sm:$0xff] %v9109_v30  ;;  %v4268_v4 = vmul.f32 %v1278_v58, %v1278_v58  ;;  %v3976_v47 = vadd.f32 %v3975_v14, %v1280_v15  ;;  %6241 = vmatmul.mubr.f32.gmra.mrb[234].mxu1 %v1545_v0  ;;  %v4438_v11 = vadd.f32 %v4437_v33, %v4265_v20  ;;  %v1550_v14 = vld [vmem:[%s11297_s1 + $0x6e0] sm:$0xff]  ;;  %v1551_v0 = vld [vmem:[%s11297_s1 + $0x6e8] sm:$0xff] }
 0x20a   :  { %5460 = vst [vmem:[%s11296_s6 + $0xce0] sm:$0xff] %v1280_v15  ;;  %v4270_v54 = vmul.f32 %v1280_v15, %v1280_v15  ;;  %v1279_v13 = vmax.f32 %v551_v1, 0.0  ;;  %v1281_v30 = vmax.f32 %v1000_v43, 0.0  ;;  %6019 = vmatprep.mubr.f32.mxu0 %v1546_v2  ;;  %6243 = vmatprep.mubr.f32.mxu1 %v1547_v3  ;;  %v4576_v39 = vadd.f32 %v4575_v28, %v4267_v44  ;;  %v9129_v15 = vpop.f32.mrb[130].mxu0 }
 0x20b   :  { %v4370_v42 = vadd.f32 %v4369_v25, %v4268_v4  ;;  %v555_v58 = vadd.f32 %v8662_v52, %v6959_v55  ;;  %v1004_v33 = vadd.f32 %v8667_v8, %v6962_v56  ;;  %v9140_v25 = vpop.f32.mrb[130].mxu1  ;;  %v9142_v8 = vpop.f32.mrb[131].mxu0  ;;  %v1010_v4 = vadd.f32 %v8708_v53, %v6962_v56 }
 0x20c   :  { %v4508_v1 = vadd.f32 %v4507_v37, %v4270_v54  ;;  %3390 = vst [vmem:[%s11296_s6 + $0xcb0] sm:$0xff] %v1279_v13  ;;  %v3907_v43 = vadd.f32 %v3906_v50, %v1279_v13  ;;  %v4269_v28 = vmul.f32 %v1279_v13, %v1279_v13  ;;  %5524 = vst [vmem:[%s11296_s6 + $0xcf0] sm:$0xff] %v1281_v30  ;;  %6020 = vmatmul.mubr.f32.gmra.mrb[236].mxu0 %v1548_v19  ;;  %v9146_v44 = vpop.f32.mrb[131].mxu1  ;;  %v1552_v50 = vld [vmem:[%s11297_s1 + $0x6f0] sm:$0xff]  ;;  %v1554_v19 = vld [vmem:[%s11297_s1 + $0x700] sm:$0xff]  ;;  %v9169_v53 = vpop.f32.mrb[132].mxu0 }
 0x20d   :  { %v4045_v52 = vadd.f32 %v4044_v49, %v1281_v30  ;;  %11336 = vst [vmem:[#allocation21_spill] sm:$0xff] %v9142_v8  ;;  %v4271_v2 = vmul.f32 %v1281_v30, %v1281_v30  ;;  %v1282_v3 = vmax.f32 %v555_v58, 0.0  ;;  %v1284_v20 = vmax.f32 %v1004_v33, 0.0  ;;  %11337 = vst [vmem:[#allocation22_spill] sm:$0xff] %v9146_v44  ;;  %6244 = vmatmul.mubr.f32.gmra.mrb[236].mxu1 %v1549_v60  ;;  %v1555_v60 = vld [vmem:[%s11297_s1 + $0x708] sm:$0xff] }
 0x20e   :  { %v557_v37 = vadd.f32 %v8669_v35, %v6964_v57  ;;  %6022 = vmatprep.mubr.f32.mxu0 %v1550_v14  ;;  %v4439_v49 = vadd.f32 %v4438_v11, %v4269_v28  ;;  %v1006_v13 = vadd.f32 %v8678_v32, %v6970_v59  ;;  %v561_v30 = vadd.f32 %v8694_v41, %v6959_v55  ;;  %v1553_v35 = vld [vmem:[%s11297_s1 + $0x6f8] sm:$0xff]  ;;  %v9176_v28 = vpop.f32.mrb[133].mxu0 }
 0x20f   :  { %6246 = vmatprep.mubr.f32.mxu1 %v1551_v0  ;;  %v4577_v54 = vadd.f32 %v4576_v39, %v4271_v2  ;;  %3327 = vst [vmem:[%s11296_s6 + $0xd00] sm:$0xff] %v1282_v3  ;;  %v3839_v32 = vadd.f32 %v3838_v51, %v1282_v3  ;;  %v4272_v11 = vmul.f32 %v1282_v3, %v1282_v3  ;;  %5461 = vst [vmem:[%s11296_s6 + $0xd40] sm:$0xff] %v1284_v20  ;;  %v9174_v0 = vpop.f32.mrb[132].mxu1  ;;  %v11339_v3 = vld [vmem:[#allocation10_spill] sm:$0xff] }
 0x210   :  { %v3977_v41 = vadd.f32 %v3976_v47, %v1284_v20  ;;  %11338 = vst [vmem:[#allocation23_spill] sm:$0xff] %v9169_v53  ;;  %v4274_v14 = vmul.f32 %v1284_v20, %v1284_v20  ;;  %v1283_v58 = vmax.f32 %v557_v37, 0.0  ;;  %v1285_v39 = vmax.f32 %v1006_v13, 0.0  ;;  %6023 = vmatmul.mubr.f32.gmra.mrb[238].mxu0 %v1552_v50  ;;  %v11340_v53 = vld [vmem:[#allocation11_spill] sm:$0xff]  ;;  %v9182_v8 = vpop.f32.mrb[133].mxu1  ;;  %v1556_v20 = vld [vmem:[%s11297_s1 + $0x710] sm:$0xff] }
 0x211   :  { %v1286_v33 = vmax.f32 %v561_v30, 0.0  ;;  %v4371_v51 = vadd.f32 %v4370_v42, %v4272_v11  ;;  %v1288_v2 = vmax.f32 %v1010_v4, 0.0  ;;  %v563_v47 = vadd.f32 %v11339_v3, %v6964_v57  ;;  %6247 = vmatmul.mubr.f32.gmra.mrb[238].mxu1 %v1553_v35  ;;  %6025 = vmatprep.mubr.f32.mxu0 %v1554_v19  ;;  %v9202_v19 = vpop.f32.mrb[134].mxu0 }
 0x212   :  { %v1012_v44 = vadd.f32 %v11340_v53, %v6970_v59  ;;  %v4509_v37 = vadd.f32 %v4508_v1, %v4274_v14  ;;  %3391 = vst [vmem:[%s11296_s6 + $0xd10] sm:$0xff] %v1283_v58  ;;  %v3908_v42 = vadd.f32 %v3907_v43, %v1283_v58  ;;  %v4273_v50 = vmul.f32 %v1283_v58, %v1283_v58  ;;  %v1557_v1 = vld [vmem:[%s11297_s1 + $0x718] sm:$0xff]  ;;  %v9207_v58 = vpop.f32.mrb[134].mxu1 }
 0x213   :  { %5525 = vst [vmem:[%s11296_s6 + $0xd50] sm:$0xff] %v1285_v39  ;;  %v4046_v13 = vadd.f32 %v4045_v52, %v1285_v39  ;;  %3328 = vst [vmem:[%s11296_s6 + $0xd20] sm:$0xff] %v1286_v33  ;;  %6249 = vmatprep.mubr.f32.mxu1 %v1555_v60  ;;  %v4275_v30 = vmul.f32 %v1285_v39, %v1285_v39  ;;  %v3840_v4 = vadd.f32 %v3839_v32, %v1286_v33  ;;  %v1558_v52 = vld [vmem:[%s11297_s1 + $0x720] sm:$0xff]  ;;  %v9209_v39 = vpop.f32.mrb[135].mxu0  ;;  %v1559_v32 = vld [vmem:[%s11297_s1 + $0x728] sm:$0xff] }
 0x214   :  { %v4276_v35 = vmul.f32 %v1286_v33, %v1286_v33  ;;  %5462 = vst [vmem:[%s11296_s6 + $0xd60] sm:$0xff] %v1288_v2  ;;  %v3978_v43 = vadd.f32 %v3977_v41, %v1288_v2  ;;  %11341 = vst [vmem:[#allocation10_spill] sm:$0xff] %v9202_v19  ;;  %v4440_v11 = vadd.f32 %v4439_v49, %v4273_v50  ;;  %v1287_v60 = vmax.f32 %v563_v47, 0.0  ;;  %v11342_v19 = vld [vmem:[#allocation2_spill] sm:$0xff] }
 0x215   :  { %v4278_v53 = vmul.f32 %v1288_v2, %v1288_v2  ;;  %v1289_v14 = vmax.f32 %v1012_v44, 0.0  ;;  %6026 = vmatmul.mubr.f32.gmra.mrb[240].mxu0 %v1556_v20  ;;  %v4578_v41 = vadd.f32 %v4577_v54, %v4275_v30  ;;  %v567_v3 = vadd.f32 %v8730_v29, %v6959_v55  ;;  %v9218_v2 = vpop.f32.mrb[135].mxu1  ;;  %6250 = vmatmul.mubr.f32.gmra.mrb[240].mxu1 %v1557_v1  ;;  %v1560_v44 = vld [vmem:[%s11297_s1 + $0x730] sm:$0xff]  ;;  %v1561_v20 = vld [vmem:[%s11297_s1 + $0x738] sm:$0xff] }
 0x216   :  { %v4372_v33 = vadd.f32 %v4371_v51, %v4276_v35  ;;  %v1016_v49 = vadd.f32 %v11342_v19, %v6962_v56  ;;  %3392 = vst [vmem:[%s11296_s6 + $0xd30] sm:$0xff] %v1287_v60  ;;  %v3909_v54 = vadd.f32 %v3908_v42, %v1287_v60  ;;  %v4277_v51 = vmul.f32 %v1287_v60, %v1287_v60  ;;  %v9234_v19 = vpop.f32.mrb[136].mxu0  ;;  %v1562_v42 = vld [vmem:[%s11297_s1 + $0x740] sm:$0xff] }
 0x217   :  { %v4510_v47 = vadd.f32 %v4509_v37, %v4278_v53  ;;  %5526 = vst [vmem:[%s11296_s6 + $0xd70] sm:$0xff] %v1289_v14  ;;  %v4047_v29 = vadd.f32 %v4046_v13, %v1289_v14  ;;  %6028 = vmatprep.mubr.f32.mxu0 %v1558_v52  ;;  %v4279_v50 = vmul.f32 %v1289_v14, %v1289_v14  ;;  %v1290_v1 = vmax.f32 %v567_v3, 0.0  ;;  %v11343_v37 = vld [vmem:[#allocation12_spill] sm:$0xff]  ;;  %v1563_v13 = vld [vmem:[%s11297_s1 + $0x748] sm:$0xff]  ;;  %v9248_v3 = vpop.f32.mrb[136].mxu1 }
 0x218   :  { %v1292_v30 = vmax.f32 %v1016_v49, 0.0  ;;  %v569_v35 = vadd.f32 %v11343_v37, %v6964_v57  ;;  %11344 = vst [vmem:[#allocation11_spill] sm:$0xff] %v9234_v19  ;;  %6252 = vmatprep.mubr.f32.mxu1 %v1559_v32  ;;  %v4441_v52 = vadd.f32 %v4440_v11, %v4277_v51  ;;  %v1018_v53 = vadd.f32 %v8754_v18, %v6970_v59  ;;  %v9250_v32 = vpop.f32.mrb[137].mxu0 }
 0x219   :  { %v573_v60 = vadd.f32 %v8769_v6, %v6959_v55  ;;  %v1022_v14 = vadd.f32 %v8780_v7, %v6962_v56  ;;  %11345 = vst [vmem:[#allocation2_spill] sm:$0xff] %v9248_v3  ;;  %11346 = vst [vmem:[#allocation12_spill] sm:$0xff] %v9250_v32  ;;  %6029 = vmatmul.mubr.f32.gmra.mrb[242].mxu0 %v1560_v44  ;;  %v4579_v49 = vadd.f32 %v4578_v41, %v4279_v50  ;;  %v9258_v6 = vpop.f32.mrb[137].mxu1  ;;  %v1564_v7 = vld [vmem:[%s11297_s1 + $0x750] sm:$0xff]  ;;  %v9270_v19 = vpop.f32.mrb[138].mxu0 }
 0x21a   :  { %3329 = vst [vmem:[%s11296_s6 + $0xd80] sm:$0xff] %v1290_v1  ;;  %v3841_v11 = vadd.f32 %v3840_v4, %v1290_v1  ;;  %v4280_v51 = vmul.f32 %v1290_v1, %v1290_v1  ;;  %5463 = vst [vmem:[%s11296_s6 + $0xdc0] sm:$0xff] %v1292_v30  ;;  %v3979_v18 = vadd.f32 %v3978_v43, %v1292_v30  ;;  %6253 = vmatmul.mubr.f32.gmra.mrb[242].mxu1 %v1561_v20  ;;  %v1565_v4 = vld [vmem:[%s11297_s1 + $0x758] sm:$0xff]  ;;  %v11348_v43 = vld [vmem:[#allocation3_spill] sm:$0xff] }
 0x21b   :  { %11347 = vst [vmem:[#allocation24_spill] sm:$0xff] %v9258_v6  ;;  %v4282_v44 = vmul.f32 %v1292_v30, %v1292_v30  ;;  %v1291_v41 = vmax.f32 %v569_v35, 0.0  ;;  %v1293_v50 = vmax.f32 %v1018_v53, 0.0  ;;  %v1294_v37 = vmax.f32 %v573_v60, 0.0  ;;  %6031 = vmatprep.mubr.f32.mxu0 %v1562_v42  ;;  %6255 = vmatprep.mubr.f32.mxu1 %v1563_v13  ;;  %v11349_v20 = vld [vmem:[#allocation4_spill] sm:$0xff]  ;;  %v1566_v30 = vld [vmem:[%s11297_s1 + $0x760] sm:$0xff] }
 0x21c   :  { %v4373_v1 = vadd.f32 %v4372_v33, %v4280_v51  ;;  %v1296_v32 = vmax.f32 %v1022_v14, 0.0  ;;  %v575_v6 = vadd.f32 %v11348_v43, %v6964_v57  ;;  %v1024_v3 = vadd.f32 %v11349_v20, %v6970_v59  ;;  %v1567_v35 = vld [vmem:[%s11297_s1 + $0x768] sm:$0xff]  ;;  %v9287_v60 = vpop.f32.mrb[138].mxu1  ;;  %v9289_v14 = vpop.f32.mrb[139].mxu0 }
 0x21d   :  { %v4511_v42 = vadd.f32 %v4510_v47, %v4282_v44  ;;  %3393 = vst [vmem:[%s11296_s6 + $0xd90] sm:$0xff] %v1291_v41  ;;  %v3910_v33 = vadd.f32 %v3909_v54, %v1291_v41  ;;  %v4281_v13 = vmul.f32 %v1291_v41, %v1291_v41  ;;  %5527 = vst [vmem:[%s11296_s6 + $0xdd0] sm:$0xff] %v1293_v50  ;;  %6032 = vmatmul.mubr.f32.gmra.mrb[244].mxu0 %v1564_v7  ;;  %v9294_v41 = vpop.f32.mrb[139].mxu1 }
 0x21e   :  { %v4048_v53 = vadd.f32 %v4047_v29, %v1293_v50  ;;  %3330 = vst [vmem:[%s11296_s6 + $0xda0] sm:$0xff] %v1294_v37  ;;  %11350 = vst [vmem:[#allocation3_spill] sm:$0xff] %v9287_v60  ;;  %v4283_v47 = vmul.f32 %v1293_v50, %v1293_v50  ;;  %v3842_v51 = vadd.f32 %v3841_v11, %v1294_v37  ;;  %6256 = vmatmul.mubr.f32.gmra.mrb[244].mxu1 %v1565_v4  ;;  %v1568_v29 = vld [vmem:[%s11297_s1 + $0x770] sm:$0xff]  ;;  %v1569_v11 = vld [vmem:[%s11297_s1 + $0x778] sm:$0xff] }
 0x21f   :  { %11351 = vst [vmem:[#allocation4_spill] sm:$0xff] %v9289_v14  ;;  %v4284_v44 = vmul.f32 %v1294_v37, %v1294_v37  ;;  %5464 = vst [vmem:[%s11296_s6 + $0xde0] sm:$0xff] %v1296_v32  ;;  %v3980_v54 = vadd.f32 %v3979_v18, %v1296_v32  ;;  %v4442_v43 = vadd.f32 %v4441_v52, %v4281_v13  ;;  %v1295_v60 = vmax.f32 %v575_v6, 0.0  ;;  %v1570_v18 = vld [vmem:[%s11297_s1 + $0x780] sm:$0xff]  ;;  %v11352_v37 = vld [vmem:[#allocation13_spill] sm:$0xff] }
 0x220   :  { %v4286_v20 = vmul.f32 %v1296_v32, %v1296_v32  ;;  %v1297_v14 = vmax.f32 %v1024_v3, 0.0  ;;  %6034 = vmatprep.mubr.f32.mxu0 %v1566_v30  ;;  %6258 = vmatprep.mubr.f32.mxu1 %v1567_v35  ;;  %v4580_v7 = vadd.f32 %v4579_v49, %v4283_v47  ;;  %v579_v4 = vadd.f32 %v11352_v37, %v6959_v55  ;;  %v9309_v32 = vpop.f32.mrb[140].mxu0  ;;  %v1571_v3 = vld [vmem:[%s11297_s1 + $0x788] sm:$0xff]  ;;  %v9320_v35 = vpop.f32.mrb[140].mxu1 }
 0x221   :  { %v4374_v50 = vadd.f32 %v4373_v1, %v4284_v44  ;;  %v1028_v52 = vadd.f32 %v8814_v9, %v6962_v56  ;;  %3394 = vst [vmem:[%s11296_s6 + $0xdb0] sm:$0xff] %v1295_v60  ;;  %v3911_v30 = vadd.f32 %v3910_v33, %v1295_v60  ;;  %v4285_v49 = vmul.f32 %v1295_v60, %v1295_v60  ;;  %v9322_v9 = vpop.f32.mrb[141].mxu0  ;;  %v1572_v33 = vld [vmem:[%s11297_s1 + $0x790] sm:$0xff] }
 0x222   :  { %v4512_v6 = vadd.f32 %v4511_v42, %v4286_v20  ;;  %5528 = vst [vmem:[%s11296_s6 + $0xdf0] sm:$0xff] %v1297_v14  ;;  %v4049_v1 = vadd.f32 %v4048_v53, %v1297_v14  ;;  %11353 = vst [vmem:[#allocation13_spill] sm:$0xff] %v9322_v9  ;;  %6035 = vmatmul.mubr.f32.gmra.mrb[246].mxu0 %v1568_v29  ;;  %v4287_v13 = vmul.f32 %v1297_v14, %v1297_v14  ;;  %v9326_v20 = vpop.f32.mrb[141].mxu1  ;;  %v11355_v29 = vld [vmem:[#allocation14_spill] sm:$0xff] }
 0x223   :  { %v1298_v47 = vmax.f32 %v579_v4, 0.0  ;;  %v1300_v44 = vmax.f32 %v1028_v52, 0.0  ;;  %v581_v42 = vadd.f32 %v8816_v16, %v6964_v57  ;;  %11354 = vst [vmem:[#allocation25_spill] sm:$0xff] %v9326_v20  ;;  %6259 = vmatmul.mubr.f32.gmra.mrb[246].mxu1 %v1569_v11  ;;  %6037 = vmatprep.mubr.f32.mxu0 %v1570_v18  ;;  %v4443_v53 = vadd.f32 %v4442_v43, %v4285_v49  ;;  %v1573_v16 = vld [vmem:[%s11297_s1 + $0x798] sm:$0xff]  ;;  %v1574_v11 = vld [vmem:[%s11297_s1 + $0x7a0] sm:$0xff]  ;;  %v9349_v4 = vpop.f32.mrb[142].mxu0 }
 0x224   :  { %v1030_v60 = vadd.f32 %v8822_v10, %v6970_v59  ;;  %v585_v14 = vadd.f32 %v11355_v29, %v6959_v55  ;;  %v1034_v37 = vadd.f32 %v8847_v48, %v6962_v56  ;;  %6261 = vmatprep.mubr.f32.mxu1 %v1571_v3  ;;  %v4581_v18 = vadd.f32 %v4580_v7, %v4287_v13  ;;  %v1575_v52 = vld [vmem:[%s11297_s1 + $0x7a8] sm:$0xff]  ;;  %v9354_v29 = vpop.f32.mrb[142].mxu1  ;;  %v9356_v20 = vpop.f32.mrb[143].mxu0 }
 0x225   :  { %3331 = vst [vmem:[%s11296_s6 + $0xe00] sm:$0xff] %v1298_v47  ;;  %v3843_v10 = vadd.f32 %v3842_v51, %v1298_v47  ;;  %v4288_v43 = vmul.f32 %v1298_v47, %v1298_v47  ;;  %5465 = vst [vmem:[%s11296_s6 + $0xe40] sm:$0xff] %v1300_v44  ;;  %v3981_v48 = vadd.f32 %v3980_v54, %v1300_v44  ;;  %v1299_v49 = vmax.f32 %v581_v42, 0.0  ;;  %v9362_v9 = vpop.f32.mrb[143].mxu1 }
 0x226   :  { %11356 = vst [vmem:[#allocation14_spill] sm:$0xff] %v9349_v4  ;;  %v4290_v3 = vmul.f32 %v1300_v44, %v1300_v44  ;;  %v1301_v7 = vmax.f32 %v1030_v60, 0.0  ;;  %v1302_v13 = vmax.f32 %v585_v14, 0.0  ;;  %6038 = vmatmul.mubr.f32.gmra.mrb[248].mxu0 %v1572_v33  ;;  %v1304_v47 = vmax.f32 %v1034_v37, 0.0  ;;  %v1576_v44 = vld [vmem:[%s11297_s1 + $0x7b0] sm:$0xff]  ;;  %v9382_v37 = vpop.f32.mrb[144].mxu0 }
 0x227   :  { %v4375_v51 = vadd.f32 %v4374_v50, %v4288_v43  ;;  %v587_v54 = vadd.f32 %v8849_v46, %v6964_v57  ;;  %v1036_v4 = vadd.f32 %v8858_v34, %v6970_v59  ;;  %6262 = vmatmul.mubr.f32.gmra.mrb[248].mxu1 %v1573_v16  ;;  %6040 = vmatprep.mubr.f32.mxu0 %v1574_v11  ;;  %v1577_v34 = vld [vmem:[%s11297_s1 + $0x7b8] sm:$0xff] }
 0x228   :  { %v4513_v42 = vadd.f32 %v4512_v6, %v4290_v3  ;;  %3395 = vst [vmem:[%s11296_s6 + $0xe10] sm:$0xff] %v1299_v49  ;;  %v3912_v50 = vadd.f32 %v3911_v30, %v1299_v49  ;;  %v4289_v33 = vmul.f32 %v1299_v49, %v1299_v49  ;;  %5529 = vst [vmem:[%s11296_s6 + $0xe50] sm:$0xff] %v1301_v7  ;;  %6264 = vmatprep.mubr.f32.mxu1 %v1575_v52  ;;  %v9387_v3 = vpop.f32.mrb[144].mxu1  ;;  %v9389_v49 = vpop.f32.mrb[145].mxu0 }
 0x229   :  { %v4050_v46 = vadd.f32 %v4049_v1, %v1301_v7  ;;  %3332 = vst [vmem:[%s11296_s6 + $0xe20] sm:$0xff] %v1302_v13  ;;  %v4291_v6 = vmul.f32 %v1301_v7, %v1301_v7  ;;  %v3844_v60 = vadd.f32 %v3843_v10, %v1302_v13  ;;  %v4292_v14 = vmul.f32 %v1302_v13, %v1302_v13  ;;  %v1578_v1 = vld [vmem:[%s11297_s1 + $0x7c0] sm:$0xff]  ;;  %v1579_v10 = vld [vmem:[%s11297_s1 + $0x7c8] sm:$0xff] }
 0x22a   :  { %5466 = vst [vmem:[%s11296_s6 + $0xe60] sm:$0xff] %v1304_v47  ;;  %v3982_v30 = vadd.f32 %v3981_v48, %v1304_v47  ;;  %v4444_v16 = vadd.f32 %v4443_v53, %v4289_v33  ;;  %v4294_v11 = vmul.f32 %v1304_v47, %v1304_v47  ;;  %v1303_v43 = vmax.f32 %v587_v54, 0.0  ;;  %6041 = vmatmul.mubr.f32.gmra.mrb[250].mxu0 %v1576_v44  ;;  %v9398_v47 = vpop.f32.mrb[145].mxu1 }
 0x22b   :  { %v1305_v52 = vmax.f32 %v1036_v4, 0.0  ;;  %v4582_v48 = vadd.f32 %v4581_v18, %v4291_v6  ;;  %v4376_v7 = vadd.f32 %v4375_v51, %v4292_v14  ;;  %v591_v13 = vadd.f32 %v8874_v40, %v6959_v55  ;;  %6265 = vmatmul.mubr.f32.gmra.mrb[250].mxu1 %v1577_v34  ;;  %v1580_v4 = vld [vmem:[%s11297_s1 + $0x7d0] sm:$0xff]  ;;  %6043 = vmatprep.mubr.f32.mxu0 %v1578_v1  ;;  %v9414_v6 = vpop.f32.mrb[146].mxu0  ;;  %v11358_v1 = vld [vmem:[#allocation5_spill] sm:$0xff] }
 0x22c   :  { %v1040_v53 = vadd.f32 %v8888_v36, %v6962_v56  ;;  %v4514_v54 = vadd.f32 %v4513_v42, %v4294_v11  ;;  %3396 = vst [vmem:[%s11296_s6 + $0xe30] sm:$0xff] %v1303_v43  ;;  %v3913_v18 = vadd.f32 %v3912_v50, %v1303_v43  ;;  %v4293_v51 = vmul.f32 %v1303_v43, %v1303_v43  ;;  %v1581_v36 = vld [vmem:[%s11297_s1 + $0x7d8] sm:$0xff]  ;;  %v1582_v50 = vld [vmem:[%s11297_s1 + $0x7e0] sm:$0xff] }
 0x22d   :  { %5530 = vst [vmem:[%s11296_s6 + $0xe70] sm:$0xff] %v1305_v52  ;;  %v4051_v40 = vadd.f32 %v4050_v46, %v1305_v52  ;;  %v4295_v44 = vmul.f32 %v1305_v52, %v1305_v52  ;;  %v1306_v33 = vmax.f32 %v591_v13, 0.0  ;;  %v593_v42 = vadd.f32 %v8890_v23, %v6964_v57  ;;  %11357 = vst [vmem:[#allocation26_spill] sm:$0xff] %v9414_v6  ;;  %v1583_v46 = vld [vmem:[%s11297_s1 + $0x7e8] sm:$0xff]  ;;  %v9428_v13 = vpop.f32.mrb[146].mxu1 }
 0x22e   :  { %v1308_v34 = vmax.f32 %v1040_v53, 0.0  ;;  %6267 = vmatprep.mubr.f32.mxu1 %v1579_v10  ;;  %v4445_v14 = vadd.f32 %v4444_v16, %v4293_v51  ;;  %v1042_v11 = vadd.f32 %v11358_v1, %v6970_v59  ;;  %v597_v43 = vadd.f32 %v8910_v21, %v6959_v55  ;;  %v11359_v23 = vld [vmem:[#allocation15_spill] sm:$0xff]  ;;  %11360 = vst [vmem:[#allocation5_spill] sm:$0xff] %v9428_v13  ;;  %v9430_v10 = vpop.f32.mrb[147].mxu0  ;;  %v9438_v1 = vpop.f32.mrb[147].mxu1 }
 0x22f   :  { %v1046_v52 = vadd.f32 %v11359_v23, %v6962_v56  ;;  %11361 = vst [vmem:[#allocation15_spill] sm:$0xff] %v9430_v10  ;;  %6044 = vmatmul.mubr.f32.gmra.mrb[252].mxu0 %v1580_v4  ;;  %v4583_v53 = vadd.f32 %v4582_v48, %v4295_v44  ;;  %3333 = vst [vmem:[%s11296_s6 + $0xe80] sm:$0xff] %v1306_v33  ;;  %v3845_v16 = vadd.f32 %v3844_v60, %v1306_v33  ;;  %v1584_v23 = vld [vmem:[%s11297_s1 + $0x7f0] sm:$0xff]  ;;  %v1585_v60 = vld [vmem:[%s11297_s1 + $0x7f8] sm:$0xff]  ;;  %v9450_v6 = vpop.f32.mrb[148].mxu0 }
 0x230   :  { %v4296_v51 = vmul.f32 %v1306_v33, %v1306_v33  ;;  %5467 = vst [vmem:[%s11296_s6 + $0xec0] sm:$0xff] %v1308_v34  ;;  %v3983_v21 = vadd.f32 %v3982_v30, %v1308_v34  ;;  %11362 = vst [vmem:[#allocation27_spill] sm:$0xff] %v9438_v1  ;;  %6268 = vmatmul.mubr.f32.gmra.mrb[252].mxu1 %v1581_v36  ;;  %v4298_v4 = vmul.f32 %v1308_v34, %v1308_v34  ;;  %v11363_v30 = vld [vmem:[#allocation16_spill] sm:$0xff] }
 0x231   :  { %v1307_v48 = vmax.f32 %v593_v42, 0.0  ;;  %v1309_v44 = vmax.f32 %v1042_v11, 0.0  ;;  %v1310_v10 = vmax.f32 %v597_v43, 0.0  ;;  %6046 = vmatprep.mubr.f32.mxu0 %v1582_v50  ;;  %6270 = vmatprep.mubr.f32.mxu1 %v1583_v46  ;;  %v1312_v13 = vmax.f32 %v1046_v52, 0.0  ;;  %v9461_v46 = vpop.f32.mrb[148].mxu1 }
 0x232   :  { %v4377_v33 = vadd.f32 %v4376_v7, %v4296_v51  ;;  %v599_v1 = vadd.f32 %v11363_v30, %v6964_v57  ;;  %v1048_v36 = vadd.f32 %v8934_v38, %v6970_v59  ;;  %v4515_v34 = vadd.f32 %v4514_v54, %v4298_v4  ;;  %11364 = vst [vmem:[#allocation16_spill] sm:$0xff] %v9461_v46  ;;  %v9463_v38 = vpop.f32.mrb[149].mxu0  ;;  %v9468_v52 = vpop.f32.mrb[149].mxu1 }
 0x233   :  { %3397 = vst [vmem:[%s11296_s6 + $0xe90] sm:$0xff] %v1307_v48  ;;  %v3914_v42 = vadd.f32 %v3913_v18, %v1307_v48  ;;  %v4297_v50 = vmul.f32 %v1307_v48, %v1307_v48  ;;  %5531 = vst [vmem:[%s11296_s6 + $0xed0] sm:$0xff] %v1309_v44  ;;  %v4052_v7 = vadd.f32 %v4051_v40, %v1309_v44  ;;  %6047 = vmatmul.mubr.f32.gmra.mrb[254].mxu0 %v1584_v23 }
 0x234   :  { %3334 = vst [vmem:[%s11296_s6 + $0xea0] sm:$0xff] %v1310_v10  ;;  %11365 = vst [vmem:[#allocation28_spill] sm:$0xff] %v9463_v38  ;;  %v4299_v54 = vmul.f32 %v1309_v44, %v1309_v44  ;;  %v3846_v11 = vadd.f32 %v3845_v16, %v1310_v10  ;;  %v4300_v43 = vmul.f32 %v1310_v10, %v1310_v10  ;;  %6271 = vmatmul.mubr.f32.gmra.mrb[254].mxu1 %v1585_v60  ;;  %v11366_v16 = vld [vmem:[#allocation17_spill] sm:$0xff]  ;;  %v9474_v44 = vpop.f32.mrb[150].mxu0 }
 0x235   :  { %5468 = vst [vmem:[%s11296_s6 + $0xee0] sm:$0xff] %v1312_v13  ;;  %v3984_v18 = vadd.f32 %v3983_v21, %v1312_v13  ;;  %v4446_v40 = vadd.f32 %v4445_v14, %v4297_v50  ;;  %v4302_v51 = vmul.f32 %v1312_v13, %v1312_v13  ;;  %v1311_v4 = vmax.f32 %v599_v1, 0.0 }
 0x236   :  { %v1313_v48 = vmax.f32 %v1048_v36, 0.0  ;;  %v4584_v30 = vadd.f32 %v4583_v53, %v4299_v54  ;;  %v4378_v46 = vadd.f32 %v4377_v33, %v4300_v43  ;;  %v603_v23 = vadd.f32 %v8949_v17, %v6959_v55  ;;  %v9482_v53 = vpop.f32.mrb[150].mxu1  ;;  %v9484_v17 = vpop.f32.mrb[151].mxu0  ;;  %v11368_v36 = vld [vmem:[#allocation18_spill] sm:$0xff] }
 0x237   :  { %v1052_v10 = vadd.f32 %v11366_v16, %v6962_v56  ;;  %v4516_v38 = vadd.f32 %v4515_v34, %v4302_v51  ;;  %3398 = vst [vmem:[%s11296_s6 + $0xeb0] sm:$0xff] %v1311_v4  ;;  %v3915_v21 = vadd.f32 %v3914_v42, %v1311_v4  ;;  %v4301_v14 = vmul.f32 %v1311_v4, %v1311_v4  ;;  %v9488_v50 = vpop.f32.mrb[151].mxu1  ;;  %v11370_v42 = vld [vmem:[#allocation19_spill] sm:$0xff]  ;;  %v11371_v51 = vld [vmem:[#allocation6_spill] sm:$0xff] }
 0x238   :  { %5532 = vst [vmem:[%s11296_s6 + $0xef0] sm:$0xff] %v1313_v48  ;;  %v4053_v13 = vadd.f32 %v4052_v7, %v1313_v48  ;;  %11367 = vst [vmem:[#allocation17_spill] sm:$0xff] %v9484_v17  ;;  %v4303_v1 = vmul.f32 %v1313_v48, %v1313_v48  ;;  %v1314_v60 = vmax.f32 %v603_v23, 0.0  ;;  %v605_v34 = vadd.f32 %v11368_v36, %v6964_v57 }
 0x239   :  { %v1316_v33 = vmax.f32 %v1052_v10, 0.0  ;;  %11369 = vst [vmem:[#allocation18_spill] sm:$0xff] %v9488_v50  ;;  %v4447_v54 = vadd.f32 %v4446_v40, %v4301_v14  ;;  %v1054_v43 = vadd.f32 %v11370_v42, %v6970_v59  ;;  %v609_v4 = vadd.f32 %v11371_v51, %v6959_v55  ;;  %v9502_v10 = vpop.f32.mrb[152].mxu0  ;;  %v9504_v50 = vpop.f32.mrb[152].mxu1 }
 0x23a   :  { %v1058_v7 = vadd.f32 %v8994_v27, %v6962_v56  ;;  %v4585_v16 = vadd.f32 %v4584_v30, %v4303_v1  ;;  %3335 = vst [vmem:[%s11296_s6 + $0xf00] sm:$0xff] %v1314_v60  ;;  %v3847_v48 = vadd.f32 %v3846_v11, %v1314_v60  ;;  %v4304_v23 = vmul.f32 %v1314_v60, %v1314_v60  ;;  %v9506_v27 = vpop.f32.mrb[153].mxu0  ;;  %v9512_v17 = vpop.f32.mrb[153].mxu1 }
 0x23b   :  { %5469 = vst [vmem:[%s11296_s6 + $0xf40] sm:$0xff] %v1316_v33  ;;  %v3985_v40 = vadd.f32 %v3984_v18, %v1316_v33  ;;  %v4306_v14 = vmul.f32 %v1316_v33, %v1316_v33  ;;  %v1315_v36 = vmax.f32 %v605_v34, 0.0  ;;  %v1317_v42 = vmax.f32 %v1054_v43, 0.0  ;;  %11372 = vst [vmem:[#allocation19_spill] sm:$0xff] %v9506_v27 }
 0x23c   :  { %v1318_v51 = vmax.f32 %v609_v4, 0.0  ;;  %v4379_v30 = vadd.f32 %v4378_v46, %v4304_v23  ;;  %v1320_v1 = vmax.f32 %v1058_v7, 0.0  ;;  %v611_v11 = vadd.f32 %v8996_v45, %v6964_v57  ;;  %11373 = vst [vmem:[#allocation6_spill] sm:$0xff] %v9512_v17  ;;  %v9526_v4 = vpop.f32.mrb[154].mxu0 }
 0x23d   :  { %v1060_v60 = vadd.f32 %v9002_v22, %v6970_v59  ;;  %v4517_v18 = vadd.f32 %v4516_v38, %v4306_v14  ;;  %3399 = vst [vmem:[%s11296_s6 + $0xf10] sm:$0xff] %v1315_v36  ;;  %v3916_v33 = vadd.f32 %v3915_v21, %v1315_v36  ;;  %v4305_v34 = vmul.f32 %v1315_v36, %v1315_v36  ;;  %v9528_v36 = vpop.f32.mrb[154].mxu1 }
 0x23e   :  { %5533 = vst [vmem:[%s11296_s6 + $0xf50] sm:$0xff] %v1317_v42  ;;  %v4054_v46 = vadd.f32 %v4053_v13, %v1317_v42  ;;  %3336 = vst [vmem:[%s11296_s6 + $0xf20] sm:$0xff] %v1318_v51  ;;  %v4307_v45 = vmul.f32 %v1317_v42, %v1317_v42  ;;  %v3848_v22 = vadd.f32 %v3847_v48, %v1318_v51  ;;  %v1319_v23 = vmax.f32 %v611_v11, 0.0  ;;  %v9530_v13 = vpop.f32.mrb[155].mxu0 }
 0x23f   :  { %v4308_v43 = vmul.f32 %v1318_v51, %v1318_v51  ;;  %5470 = vst [vmem:[%s11296_s6 + $0xf60] sm:$0xff] %v1320_v1  ;;  %v3986_v38 = vadd.f32 %v3985_v40, %v1320_v1  ;;  %v4448_v21 = vadd.f32 %v4447_v54, %v4305_v34  ;;  %v4310_v7 = vmul.f32 %v1320_v1, %v1320_v1  ;;  %v9536_v51 = vpop.f32.mrb[155].mxu1 }
 0x240   :  { %v1321_v14 = vmax.f32 %v1060_v60, 0.0  ;;  %v4586_v17 = vadd.f32 %v4585_v16, %v4307_v45  ;;  %v615_v48 = vadd.f32 %v9022_v5, %v6959_v55  ;;  %v1064_v42 = vadd.f32 %v9027_v62, %v6962_v56  ;;  %3400 = vst [vmem:[%s11296_s6 + $0xf30] sm:$0xff] %v1319_v23  ;;  %v9546_v60 = vpop.f32.mrb[156].mxu0 }
 0x241   :  { %v4380_v27 = vadd.f32 %v4379_v30, %v4308_v43  ;;  %v4518_v40 = vadd.f32 %v4517_v18, %v4310_v7  ;;  %v3917_v54 = vadd.f32 %v3916_v33, %v1319_v23  ;;  %v4309_v1 = vmul.f32 %v1319_v23, %v1319_v23  ;;  %v9554_v43 = vpop.f32.mrb[156].mxu1 }
 0x242   :  { %5534 = vst [vmem:[%s11296_s6 + $0xf70] sm:$0xff] %v1321_v14  ;;  %v4055_v16 = vadd.f32 %v4054_v46, %v1321_v14  ;;  %v4311_v30 = vmul.f32 %v1321_v14, %v1321_v14  ;;  %v1322_v11 = vmax.f32 %v615_v48, 0.0  ;;  %v1324_v5 = vmax.f32 %v1064_v42, 0.0  ;;  %v9556_v46 = vpop.f32.mrb[157].mxu0 }
 0x243   :  { %v617_v62 = vadd.f32 %v9029_v63, %v6964_v57  ;;  %v4449_v18 = vadd.f32 %v4448_v21, %v4309_v1  ;;  %v1066_v34 = vadd.f32 %v9038_v24, %v6970_v59  ;;  %v621_v33 = vadd.f32 %v9054_v31, %v6959_v55  ;;  %v9564_v55 = vpop.f32.mrb[157].mxu1  ;;  %v11376_v1 = vld [vmem:[#allocation8_spill] sm:$0xff] }
 0x244   :  { %v1070_v45 = vadd.f32 %v9068_v26, %v6962_v56  ;;  %v4587_v7 = vadd.f32 %v4586_v17, %v4311_v30  ;;  %3337 = vst [vmem:[%s11296_s6 + $0xf80] sm:$0xff] %v1322_v11  ;;  %v3849_v63 = vadd.f32 %v3848_v22, %v1322_v11  ;;  %v4312_v21 = vmul.f32 %v1322_v11, %v1322_v11  ;;  %v11375_v17 = vld [vmem:[#allocation7_spill] sm:$0xff]  ;;  %v9570_v30 = vpop.f32.mrb[158].mxu0 }
 0x245   :  { %5471 = vst [vmem:[%s11296_s6 + $0xfc0] sm:$0xff] %v1324_v5  ;;  %v3987_v24 = vadd.f32 %v3986_v38, %v1324_v5  ;;  %11374 = vst [vmem:[#allocation29_spill] sm:$0xff] %v9564_v55  ;;  %v4314_v31 = vmul.f32 %v1324_v5, %v1324_v5  ;;  %v1323_v56 = vmax.f32 %v617_v62, 0.0  ;;  %v1325_v26 = vmax.f32 %v1066_v34, 0.0 }
 0x246   :  { %v1326_v23 = vmax.f32 %v621_v33, 0.0  ;;  %v4381_v14 = vadd.f32 %v4380_v27, %v4312_v21  ;;  %v1328_v48 = vmax.f32 %v1070_v45, 0.0  ;;  %v623_v42 = vadd.f32 %v11375_v17, %v6964_v57  ;;  %11377 = vst [vmem:[#allocation7_spill] sm:$0xff] %v9570_v30  ;;  %v9581_v57 = vpop.f32.mrb[158].mxu1 }
 0x247   :  { %v1072_v22 = vadd.f32 %v11376_v1, %v6970_v59  ;;  %v4519_v11 = vadd.f32 %v4518_v40, %v4314_v31  ;;  %3401 = vst [vmem:[%s11296_s6 + $0xf90] sm:$0xff] %v1323_v56  ;;  %v3918_v38 = vadd.f32 %v3917_v54, %v1323_v56  ;;  %v4313_v5 = vmul.f32 %v1323_v56, %v1323_v56  ;;  %v9583_v59 = vpop.f32.mrb[159].mxu0  ;;  %v9588_v33 = vpop.f32.mrb[159].mxu1 }
 0x248   :  { %5535 = vst [vmem:[%s11296_s6 + $0xfd0] sm:$0xff] %v1325_v26  ;;  %v4056_v27 = vadd.f32 %v4055_v16, %v1325_v26  ;;  %3338 = vst [vmem:[%s11296_s6 + $0xfa0] sm:$0xff] %v1326_v23  ;;  %v4315_v40 = vmul.f32 %v1325_v26, %v1325_v26  ;;  %v3850_v62 = vadd.f32 %v3849_v63, %v1326_v23  ;;  %v1327_v21 = vmax.f32 %v623_v42, 0.0  ;;  %v9590_v30 = vpop.f32.mrb[160].mxu0 }
 0x249   :  { %11378 = vst [vmem:[#allocation8_spill] sm:$0xff] %v9581_v57  ;;  %11379 = vst [vmem:[#allocation30_spill] sm:$0xff] %v9583_v59  ;;  %v4316_v34 = vmul.f32 %v1326_v23, %v1326_v23  ;;  %v3988_v54 = vadd.f32 %v3987_v24, %v1328_v48  ;;  %v4450_v45 = vadd.f32 %v4449_v18, %v4313_v5  ;;  %v1329_v31 = vmax.f32 %v1072_v22, 0.0  ;;  %v9598_v24 = vpop.f32.mrb[160].mxu1 }
 0x24a   :  { %5472 = vst [vmem:[%s11296_s6 + $0xfe0] sm:$0xff] %v1328_v48  ;;  %11380 = vst [vmem:[#allocation31_spill] sm:$0xff] %v9588_v33  ;;  %v4318_v16 = vmul.f32 %v1328_v48, %v1328_v48  ;;  %v4588_v56 = vadd.f32 %v4587_v7, %v4315_v40  ;;  %v3851_v17 = vrot.slane %v3850_v62, 4  ;;  %v3919_v63 = vadd.f32 %v3918_v38, %v1327_v21  ;;  %v9600_v7 = vpop.f32.mrb[161].mxu0 }
 0x24b   :  { %v4382_v1 = vadd.f32 %v4381_v14, %v4316_v34  ;;  %v3989_v57 = vrot.slane %v3988_v54, 4  ;;  %11381 = vst [vmem:[#allocation32_spill] sm:$0xff] %v9590_v30  ;;  %3402 = vst [vmem:[%s11296_s6 + $0xfb0] sm:$0xff] %v1327_v21  ;;  %v4317_v23 = vmul.f32 %v1327_v21, %v1327_v21  ;;  %v4057_v18 = vadd.f32 %v4056_v27, %v1329_v31  ;;  %v9604_v59 = vpop.f32.mrb[162].mxu0 }
 0x24c   :  { %v4520_v26 = vadd.f32 %v4519_v11, %v4318_v16  ;;  %5536 = vst [vmem:[%s11296_s6 + $0xff0] sm:$0xff] %v1329_v31  ;;  %11382 = vst [vmem:[#allocation33_spill] sm:$0xff] %v9598_v24  ;;  %v3852_v14 = vadd.f32 %v3851_v17, %v3850_v62  ;;  %v4319_v22 = vmul.f32 %v1329_v31, %v1329_v31  ;;  %v9602_v11 = vpop.f32.mrb[161].mxu1  ;;  %v3920_v40 = vrot.slane %v3919_v63, 4 }
 0x24d   :  { %11383 = vst [vmem:[#allocation34_spill] sm:$0xff] %v9600_v7  ;;  %v4383_v48 = vrot.slane %v4382_v1, 4  ;;  %v3990_v42 = vadd.f32 %v3989_v57, %v3988_v54  ;;  %11384 = vst [vmem:[#allocation35_spill] sm:$0xff] %v9602_v11  ;;  %v4451_v34 = vadd.f32 %v4450_v45, %v4317_v23  ;;  %v4058_v38 = vrot.slane %v4057_v18, 4  ;;  %v9606_v62 = vpop.f32.mrb[162].mxu1  ;;  %v9608_v57 = vpop.f32.mrb[163].mxu0 }
 0x24e   :  { %v4521_v5 = vrot.slane %v4520_v26, 4  ;;  %v3853_v16 = vrot.slane %v3852_v14, 2  ;;  %v4589_v33 = vadd.f32 %v4588_v56, %v4319_v22  ;;  %11385 = vst [vmem:[#allocation36_spill] sm:$0xff] %v9604_v59  ;;  %v3921_v24 = vadd.f32 %v3920_v40, %v3919_v63  ;;  %11386 = vst [vmem:[#allocation37_spill] sm:$0xff] %v9608_v57  ;;  %v9610_v45 = vpop.f32.mrb[163].mxu1 }
 0x24f   :  { %v4384_v21 = vadd.f32 %v4383_v48, %v4382_v1  ;;  %v3991_v30 = vrot.slane %v3990_v42, 2  ;;  %v4452_v55 = vrot.slane %v4451_v34, 4  ;;  %v4059_v7 = vadd.f32 %v4058_v38, %v4057_v18 }
 0x250   :  { %v4522_v27 = vadd.f32 %v4521_v5, %v4520_v26  ;;  %v3854_v54 = vadd.f32 %v3853_v16, %v3852_v14  ;;  %v4590_v11 = vrot.slane %v4589_v33, 4  ;;  %v3922_v1 = vrot.slane %v3921_v24, 2  ;;  %v9612_v5 = vpop.f32.mrb[164].mxu0  ;;  %v9619_v14 = vpop.f32.mrb[164].mxu1 }
 0x251   :  { %v4385_v31 = vrot.slane %v4384_v21, 2  ;;  %v3992_v17 = vadd.f32 %v3991_v30, %v3990_v42  ;;  %v4453_v48 = vadd.f32 %v4452_v55, %v4451_v34  ;;  %v4060_v56 = vrot.slane %v4059_v7, 2  ;;  %11387 = vst [vmem:[#allocation38_spill] sm:$0xff] %v9612_v5  ;;  %v9617_v30 = vld [vmem:[%s11298_s5] ss:$0 sm:$0xff]  ;;  %11388 = vst [vmem:[#allocation39_spill] sm:$0xff] %v9619_v14 }
 0x252   :  { %v4523_v23 = vrot.slane %v4522_v27, 2  ;;  %v3855_v22 = vrot.slane %v3854_v54, 1  ;;  %v4591_v63 = vadd.f32 %v4590_v11, %v4589_v33  ;;  %v3923_v40 = vadd.f32 %v3922_v1, %v3921_v24  ;;  %v9621_v42 = vpop.f32.mrb[165].mxu0  ;;  %v9623_v33 = vpop.f32.mrb[165].mxu1 }
 0x253   :  { %v4386_v59 = vadd.f32 %v4385_v31, %v4384_v21  ;;  %v3993_v26 = vrot.slane %v3992_v17, 1  ;;  %v4454_v38 = vrot.slane %v4453_v48, 2  ;;  %v4061_v57 = vadd.f32 %v4060_v56, %v4059_v7  ;;  %11389 = vst [vmem:[#allocation40_spill] sm:$0xff] %v9621_v42  ;;  %11390 = vst [vmem:[#allocation41_spill] sm:$0xff] %v9623_v33  ;;  %v11391_v56 = vld [vmem:[#allocation9_spill] sm:$0xff]  ;;  %v9629_v5 = vpop.f32.mrb[166].mxu0 }
 0x254   :  { %v4524_v18 = vadd.f32 %v4523_v23, %v4522_v27  ;;  %v3856_v55 = vadd.f32 %v3855_v22, %v3854_v54  ;;  %v4592_v21 = vrot.slane %v4591_v63, 2  ;;  %v3924_v27 = vrot.slane %v3923_v40, 1  ;;  %v9631_v42 = vpop.f32.mrb[166].mxu1  ;;  %v9633_v33 = vpop.f32.mrb[167].mxu0 }
 0x255   :  { %v4387_v34 = vrot.slane %v4386_v59, 1  ;;  %v3994_v16 = vadd.f32 %v3993_v26, %v3992_v17  ;;  %v4455_v24 = vadd.f32 %v4454_v38, %v4453_v48  ;;  %v4062_v31 = vrot.slane %v4061_v57, 1 }
 0x256   :  { %v4525_v11 = vrot.slane %v4524_v18, 1  ;;  %v4593_v23 = vadd.f32 %v4592_v21, %v4591_v63  ;;  %v1681_v1 = vadd.f32 %v9090_v12, %v9617_v30  ;;  %v2514_v14 = vadd.f32 %v11391_v56, %v9617_v30  ;;  %v11392_v63 = vld [vmem:[#allocation20_spill] sm:$0xff]  ;;  %v9637_v12 = vpop.f32.mrb[167].mxu1 }
 0x257   :  { %v4388_v7 = vadd.f32 %v4387_v34, %v4386_v59  ;;  %v3925_v22 = vadd.f32 %v3924_v27, %v3923_v40  ;;  %v4456_v17 = vrot.slane %v4455_v24, 1  ;;  %v4063_v26 = vadd.f32 %v4062_v31, %v4061_v57 }
 0x258   :  { %v4526_v54 = vadd.f32 %v4525_v11, %v4524_v18  ;;  %v4594_v48 = vrot.slane %v4593_v23, 1  ;;  %v2315_v38 = vmax.f32 %v1681_v1, 0.0  ;;  %v3148_v59 = vmax.f32 %v2514_v14, 0.0 }
 0x259   :  { %v1676_v34 = vadd.f32 %v9617_v30, %v11392_v63  ;;  %v4457_v21 = vadd.f32 %v4456_v17, %v4455_v24  ;;  %v4596_v56 = vadd.f32 %v3925_v22, %v3856_v55  ;;  %v2509_v18 = vadd.f32 %v9617_v30, %v9114_v61  ;;  %v9649_v24 = vpop.f32.mrb[168].mxu0  ;;  %v9651_v22 = vpop.f32.mrb[168].mxu1  ;;  %v11394_v63 = vld [vmem:[#allocation21_spill] sm:$0xff] }
 0x25a   :  { %v1691_v57 = vadd.f32 %v9129_v15, %v9617_v30  ;;  %v4595_v40 = vadd.f32 %v4594_v48, %v4593_v23  ;;  %3533 = vst [vmem:[%s11296_s6 + $0x28] sm:$0xff] %v2315_v38  ;;  %v4872_v11 = vmul.f32 %v2315_v38, %v2315_v38  ;;  %3661 = vst [vmem:[%s11296_s6 + $0x38] sm:$0xff] %v3148_v59  ;;  %v9653_v15 = vpop.f32.mrb[169].mxu0 }
 0x25b   :  { %v5133_v14 = vmul.f32 %v3148_v59, %v3148_v59  ;;  %v2314_v27 = vmax.f32 %v1676_v34, 0.0  ;;  %v4599_v55 = vadd.f32 %v4457_v21, %v4388_v7  ;;  %v4597_v31 = vadd.f32 %v4596_v56, %v3994_v16  ;;  %11393 = vst [vmem:[#allocation9_spill] sm:$0xff] %v9653_v15  ;;  %v9662_v7 = vpop.f32.mrb[169].mxu1  ;;  %v9670_v15 = vpop.f32.mrb[170].mxu0 }
 0x25c   :  { %v3147_v61 = vmax.f32 %v2509_v18, 0.0  ;;  %v2317_v1 = vmax.f32 %v1691_v57, 0.0  ;;  %v2524_v48 = vadd.f32 %v9140_v25, %v9617_v30  ;;  %v1686_v34 = vadd.f32 %v9617_v30, %v11394_v63  ;;  %11395 = vst [vmem:[#allocation20_spill] sm:$0xff] %v9662_v7  ;;  %11396 = vst [vmem:[#allocation21_spill] sm:$0xff] %v9670_v15 }
 0x25d   :  { %3532 = vst [vmem:[%s11296_s6 + $0x8] sm:$0xff] %v2314_v27  ;;  %v4604_v23 = vadd.f32 %v2315_v38, %v2314_v27  ;;  %v4871_v17 = vmul.f32 %v2314_v27, %v2314_v27  ;;  %v4598_v16 = vadd.f32 %v4597_v31, %v4063_v26  ;;  %v4600_v21 = vadd.f32 %v4599_v55, %v4526_v54  ;;  %v11397_v26 = vld [vmem:[#allocation22_spill] sm:$0xff]  ;;  %v11398_v55 = vld [vmem:[#allocation23_spill] sm:$0xff] }
 0x25e   :  { %3660 = vst [vmem:[%s11296_s6 + $0x18] sm:$0xff] %v3147_v61  ;;  %v4737_v56 = vadd.f32 %v3148_v59, %v3147_v61  ;;  %v5132_v18 = vmul.f32 %v3147_v61, %v3147_v61  ;;  %3535 = vst [vmem:[%s11296_s6 + $0x68] sm:$0xff] %v2317_v1  ;;  %v4874_v57 = vmul.f32 %v2317_v1, %v2317_v1  ;;  %v3150_v25 = vmax.f32 %v2524_v48, 0.0  ;;  %v9679_v61 = vpop.f32.mrb[170].mxu1 }
 0x25f   :  { %v4999_v38 = vadd.f32 %v4872_v11, %v4871_v17  ;;  %v2316_v27 = vmax.f32 %v1686_v34, 0.0  ;;  %v4601_v63 = vadd.f32 %v4600_v21, %v4595_v40  ;;  %4602 = vst [vmem:[%s11299_s7] sm:$0x1] %v4598_v16  ;;  %v2519_v59 = vadd.f32 %v9617_v30, %v11397_v26  ;;  %11399 = vst [vmem:[#allocation22_spill] sm:$0xff] %v9679_v61  ;;  %v9681_v11 = vpop.f32.mrb[171].mxu0  ;;  %v9691_v34 = vpop.f32.mrb[171].mxu1 }
 0x260   :  { %v5260_v54 = vadd.f32 %v5133_v14, %v5132_v18  ;;  %v1701_v31 = vadd.f32 %v11398_v55, %v9617_v30  ;;  %11400 = vst [vmem:[#allocation23_spill] sm:$0xff] %v9681_v11  ;;  %3663 = vst [vmem:[%s11296_s6 + $0x78] sm:$0xff] %v3150_v25  ;;  %v5135_v40 = vmul.f32 %v3150_v25, %v3150_v25  ;;  %v11402_v11 = vld [vmem:[#allocation10_spill] sm:$0xff]  ;;  %v9702_v61 = vpop.f32.mrb[172].mxu0 }
 0x261   :  { %3534 = vst [vmem:[%s11296_s6 + $0x48] sm:$0xff] %v2316_v27  ;;  %v4605_v14 = vadd.f32 %v4604_v23, %v2316_v27  ;;  %v4873_v17 = vmul.f32 %v2316_v27, %v2316_v27  ;;  %v2534_v48 = vadd.f32 %v9174_v0, %v9617_v30  ;;  %11401 = vst [vmem:[#allocation42_spill] sm:$0xff] %v9691_v34  ;;  %v3149_v16 = vmax.f32 %v2519_v59, 0.0 }
 0x262   :  { %4603 = vst [vmem:[%s11299_s7 + $0x1] sm:$0x1] %v4601_v63  ;;  %v2319_v21 = vmax.f32 %v1701_v31, 0.0  ;;  %v1696_v18 = vadd.f32 %v9617_v30, %v9176_v28  ;;  %v2529_v26 = vadd.f32 %v9617_v30, %v9182_v8  ;;  %v1711_v0 = vadd.f32 %v11402_v11, %v9617_v30  ;;  %11403 = vst [vmem:[#allocation10_spill] sm:$0xff] %v9702_v61 }
 0x263   :  { %v4606_v55 = vadd.f32 %v4605_v14, %v2317_v1  ;;  %v5000_v23 = vadd.f32 %v4999_v38, %v4873_v17  ;;  %v3152_v27 = vmax.f32 %v2534_v48, 0.0  ;;  %3662 = vst [vmem:[%s11296_s6 + $0x58] sm:$0xff] %v3149_v16  ;;  %v4738_v63 = vadd.f32 %v4737_v56, %v3149_v16  ;;  %v9710_v1 = vpop.f32.mrb[172].mxu1  ;;  %v9712_v38 = vpop.f32.mrb[173].mxu0 }
 0x264   :  { %v5134_v59 = vmul.f32 %v3149_v16, %v3149_v16  ;;  %3537 = vst [vmem:[%s11296_s6 + $0xa8] sm:$0xff] %v2319_v21  ;;  %v4876_v28 = vmul.f32 %v2319_v21, %v2319_v21  ;;  %v2318_v8 = vmax.f32 %v1696_v18, 0.0  ;;  %11404 = vst [vmem:[#allocation43_spill] sm:$0xff] %v9710_v1  ;;  %v3151_v14 = vmax.f32 %v2529_v26, 0.0  ;;  %v9717_v56 = vpop.f32.mrb[173].mxu1 }
 0x265   :  { %11405 = vst [vmem:[#allocation44_spill] sm:$0xff] %v9712_v38  ;;  %v5001_v31 = vadd.f32 %v5000_v23, %v4874_v57  ;;  %3665 = vst [vmem:[%s11296_s6 + $0xb8] sm:$0xff] %v3152_v27  ;;  %v5137_v11 = vmul.f32 %v3152_v27, %v3152_v27  ;;  %v2321_v17 = vmax.f32 %v1711_v0, 0.0  ;;  %v4739_v48 = vadd.f32 %v4738_v63, %v3150_v25  ;;  %v9732_v23 = vpop.f32.mrb[174].mxu0 }
 0x266   :  { %11406 = vst [vmem:[#allocation45_spill] sm:$0xff] %v9717_v56  ;;  %v5261_v16 = vadd.f32 %v5260_v54, %v5134_v59  ;;  %3536 = vst [vmem:[%s11296_s6 + $0x88] sm:$0xff] %v2318_v8  ;;  %v4607_v18 = vadd.f32 %v4606_v55, %v2318_v8  ;;  %v4875_v1 = vmul.f32 %v2318_v8, %v2318_v8  ;;  %v9734_v8 = vpop.f32.mrb[174].mxu1  ;;  %v9736_v56 = vpop.f32.mrb[175].mxu0 }
 0x267   :  { %3664 = vst [vmem:[%s11296_s6 + $0x98] sm:$0xff] %v3151_v14  ;;  %v5136_v57 = vmul.f32 %v3151_v14, %v3151_v14  ;;  %3539 = vst [vmem:[%s11296_s6 + $0xe8] sm:$0xff] %v2321_v17  ;;  %v4878_v26 = vmul.f32 %v2321_v17, %v2321_v17  ;;  %v2544_v25 = vadd.f32 %v9207_v58, %v9617_v30  ;;  %v11408_v58 = vld [vmem:[#allocation11_spill] sm:$0xff]  ;;  %v9742_v7 = vpop.f32.mrb[175].mxu1 }
 0x268   :  { %v1706_v54 = vadd.f32 %v9617_v30, %v9209_v39  ;;  %11407 = vst [vmem:[#allocation46_spill] sm:$0xff] %v9732_v23  ;;  %v5262_v55 = vadd.f32 %v5261_v16, %v5135_v40  ;;  %v4608_v0 = vadd.f32 %v4607_v18, %v2319_v21  ;;  %v5002_v63 = vadd.f32 %v5001_v31, %v4875_v1  ;;  %v11409_v21 = vld [vmem:[#allocation2_spill] sm:$0xff]  ;;  %v9752_v16 = vpop.f32.mrb[176].mxu0 }
 0x269   :  { %v4740_v59 = vadd.f32 %v4739_v48, %v3151_v14  ;;  %v3154_v38 = vmax.f32 %v2544_v25, 0.0  ;;  %v2539_v34 = vadd.f32 %v9617_v30, %v9218_v2  ;;  %v1721_v15 = vadd.f32 %v11408_v58, %v9617_v30  ;;  %v11413_v58 = vld [vmem:[#allocation24_spill] sm:$0xff] }
 0x26a   :  { %v2320_v61 = vmax.f32 %v1706_v54, 0.0  ;;  %v5003_v39 = vadd.f32 %v5002_v63, %v4876_v28  ;;  %v5263_v40 = vadd.f32 %v5262_v55, %v5136_v57  ;;  %v2554_v1 = vadd.f32 %v11409_v21, %v9617_v30  ;;  %v11410_v57 = vld [vmem:[#allocation12_spill] sm:$0xff]  ;;  %v9756_v54 = vpop.f32.mrb[176].mxu1  ;;  %v9758_v55 = vpop.f32.mrb[177].mxu0 }
 0x26b   :  { %v4741_v23 = vadd.f32 %v4740_v59, %v3152_v27  ;;  %3667 = vst [vmem:[%s11296_s6 + $0xf8] sm:$0xff] %v3154_v38  ;;  %v5139_v31 = vmul.f32 %v3154_v38, %v3154_v38  ;;  %v3153_v48 = vmax.f32 %v2539_v34, 0.0  ;;  %v2323_v27 = vmax.f32 %v1721_v15, 0.0  ;;  %11411 = vst [vmem:[#allocation11_spill] sm:$0xff] %v9758_v55 }
 0x26c   :  { %3538 = vst [vmem:[%s11296_s6 + $0xc8] sm:$0xff] %v2320_v61  ;;  %v4609_v2 = vadd.f32 %v4608_v0, %v2320_v61  ;;  %v4877_v14 = vmul.f32 %v2320_v61, %v2320_v61  ;;  %v5264_v28 = vadd.f32 %v5263_v40, %v5137_v11  ;;  %v3156_v18 = vmax.f32 %v2554_v1, 0.0  ;;  %v9763_v0 = vpop.f32.mrb[177].mxu1 }
 0x26d   :  { %v1716_v25 = vadd.f32 %v9617_v30, %v11410_v57  ;;  %3666 = vst [vmem:[%s11296_s6 + $0xd8] sm:$0xff] %v3153_v48  ;;  %v4742_v61 = vadd.f32 %v4741_v23, %v3153_v48  ;;  %v5138_v34 = vmul.f32 %v3153_v48, %v3153_v48  ;;  %11412 = vst [vmem:[#allocation2_spill] sm:$0xff] %v9763_v0  ;;  %v9782_v55 = vpop.f32.mrb[178].mxu1 }
 0x26e   :  { %v4610_v63 = vadd.f32 %v4609_v2, %v2321_v17  ;;  %v5004_v59 = vadd.f32 %v5003_v39, %v4877_v14  ;;  %3541 = vst [vmem:[%s11296_s6 + $0x128] sm:$0xff] %v2323_v27  ;;  %v4880_v15 = vmul.f32 %v2323_v27, %v2323_v27  ;;  %3669 = vst [vmem:[%s11296_s6 + $0x138] sm:$0xff] %v3156_v18  ;;  %v9775_v2 = vpop.f32.mrb[178].mxu0 }
 0x26f   :  { %v5141_v11 = vmul.f32 %v3156_v18, %v3156_v18  ;;  %v2322_v17 = vmax.f32 %v1716_v25, 0.0  ;;  %v2549_v39 = vadd.f32 %v9617_v30, %v11413_v58  ;;  %v4743_v21 = vadd.f32 %v4742_v61, %v3154_v38  ;;  %v11414_v25 = vld [vmem:[#allocation3_spill] sm:$0xff] }
 0x270   :  { %v5005_v40 = vadd.f32 %v5004_v59, %v4878_v26  ;;  %v5265_v23 = vadd.f32 %v5264_v28, %v5138_v34  ;;  %v1731_v1 = vadd.f32 %v9270_v19, %v9617_v30  ;;  %v2564_v0 = vadd.f32 %v11414_v25, %v9617_v30  ;;  %v9784_v26 = vpop.f32.mrb[179].mxu0  ;;  %v11416_v59 = vld [vmem:[#allocation4_spill] sm:$0xff]  ;;  %v9790_v34 = vpop.f32.mrb[179].mxu1 }
 0x271   :  { %3540 = vst [vmem:[%s11296_s6 + $0x108] sm:$0xff] %v2322_v17  ;;  %v4611_v14 = vadd.f32 %v4610_v63, %v2322_v17  ;;  %v4879_v48 = vmul.f32 %v2322_v17, %v2322_v17  ;;  %v3155_v57 = vmax.f32 %v2549_v39, 0.0  ;;  %11415 = vst [vmem:[#allocation12_spill] sm:$0xff] %v9784_v26  ;;  %v1726_v19 = vadd.f32 %v9617_v30, %v11416_v59  ;;  %v9798_v59 = vpop.f32.mrb[180].mxu0 }
 0x272   :  { %v5266_v38 = vadd.f32 %v5265_v23, %v5139_v31  ;;  %v2325_v28 = vmax.f32 %v1731_v1, 0.0  ;;  %v2559_v61 = vadd.f32 %v9617_v30, %v9294_v41  ;;  %11417 = vst [vmem:[#allocation24_spill] sm:$0xff] %v9790_v34  ;;  %v3158_v23 = vmax.f32 %v2564_v0, 0.0  ;;  %11418 = vst [vmem:[#allocation3_spill] sm:$0xff] %v9798_v59 }
 0x273   :  { %v4612_v63 = vadd.f32 %v4611_v14, %v2323_v27  ;;  %v5006_v17 = vadd.f32 %v5005_v40, %v4879_v48  ;;  %3668 = vst [vmem:[%s11296_s6 + $0x118] sm:$0xff] %v3155_v57  ;;  %v4744_v58 = vadd.f32 %v4743_v21, %v3155_v57  ;;  %v5140_v39 = vmul.f32 %v3155_v57, %v3155_v57  ;;  %v9802_v14 = vpop.f32.mrb[180].mxu1  ;;  %v9804_v21 = vpop.f32.mrb[181].mxu0 }
 0x274   :  { %3543 = vst [vmem:[%s11296_s6 + $0x168] sm:$0xff] %v2325_v28  ;;  %v4882_v31 = vmul.f32 %v2325_v28, %v2325_v28  ;;  %v2324_v1 = vmax.f32 %v1726_v19, 0.0  ;;  %v3157_v25 = vmax.f32 %v2559_v61, 0.0  ;;  %v1741_v40 = vadd.f32 %v9309_v32, %v9617_v30  ;;  %11419 = vst [vmem:[#allocation4_spill] sm:$0xff] %v9802_v14  ;;  %v9823_v14 = vpop.f32.mrb[182].mxu0 }
 0x275   :  { %v5007_v41 = vadd.f32 %v5006_v17, %v4880_v15  ;;  %v4745_v34 = vadd.f32 %v4744_v58, %v3156_v18  ;;  %v5267_v27 = vadd.f32 %v5266_v38, %v5140_v39  ;;  %11420 = vst [vmem:[#allocation47_spill] sm:$0xff] %v9804_v21  ;;  %3671 = vst [vmem:[%s11296_s6 + $0x178] sm:$0xff] %v3158_v23  ;;  %v9815_v18 = vpop.f32.mrb[181].mxu1  ;;  %v11421_v39 = vld [vmem:[#allocation13_spill] sm:$0xff] }
 0x276   :  { %v5143_v48 = vmul.f32 %v3158_v23, %v3158_v23  ;;  %3542 = vst [vmem:[%s11296_s6 + $0x148] sm:$0xff] %v2324_v1  ;;  %v4613_v0 = vadd.f32 %v4612_v63, %v2324_v1  ;;  %v4881_v15 = vmul.f32 %v2324_v1, %v2324_v1  ;;  %3670 = vst [vmem:[%s11296_s6 + $0x158] sm:$0xff] %v3157_v25  ;;  %v2327_v19 = vmax.f32 %v1741_v40, 0.0  ;;  %v11422_v63 = vld [vmem:[#allocation25_spill] sm:$0xff]  ;;  %v11424_v40 = vld [vmem:[#allocation14_spill] sm:$0xff] }
 0x277   :  { %v5142_v32 = vmul.f32 %v3157_v25, %v3157_v25  ;;  %v5268_v57 = vadd.f32 %v5267_v27, %v5141_v11  ;;  %v4746_v38 = vadd.f32 %v4745_v34, %v3157_v25  ;;  %v2574_v61 = vadd.f32 %v9320_v35, %v9617_v30  ;;  %v9828_v25 = vpop.f32.mrb[182].mxu1  ;;  %v9830_v35 = vpop.f32.mrb[183].mxu0 }
 0x278   :  { %v4614_v17 = vadd.f32 %v4613_v0, %v2325_v28  ;;  %v5008_v58 = vadd.f32 %v5007_v41, %v4881_v15  ;;  %v1736_v21 = vadd.f32 %v9617_v30, %v11421_v39  ;;  %v2569_v1 = vadd.f32 %v9617_v30, %v11422_v63  ;;  %3545 = vst [vmem:[%s11296_s6 + $0x1a8] sm:$0xff] %v2327_v19  ;;  %v9834_v15 = vpop.f32.mrb[183].mxu1 }
 0x279   :  { %v4747_v59 = vadd.f32 %v4746_v38, %v3158_v23  ;;  %v5269_v26 = vadd.f32 %v5268_v57, %v5142_v32  ;;  %v4884_v11 = vmul.f32 %v2327_v19, %v2327_v19  ;;  %v3160_v34 = vmax.f32 %v2574_v61, 0.0  ;;  %11423 = vst [vmem:[#allocation13_spill] sm:$0xff] %v9830_v35  ;;  %11425 = vst [vmem:[#allocation25_spill] sm:$0xff] %v9834_v15  ;;  %v9849_v61 = vpop.f32.mrb[184].mxu0  ;;  %v9853_v63 = vpop.f32.mrb[184].mxu1 }
 0x27a   :  { %v5009_v28 = vadd.f32 %v5008_v58, %v4882_v31  ;;  %v2326_v41 = vmax.f32 %v1736_v21, 0.0  ;;  %v3159_v27 = vmax.f32 %v2569_v1, 0.0  ;;  %v1751_v0 = vadd.f32 %v11424_v40, %v9617_v30  ;;  %v9855_v1 = vpop.f32.mrb[185].mxu0  ;;  %v9857_v35 = vpop.f32.mrb[185].mxu1 }
 0x27b   :  { %v5270_v23 = vadd.f32 %v5269_v26, %v5143_v48  ;;  %3673 = vst [vmem:[%s11296_s6 + $0x1b8] sm:$0xff] %v3160_v34  ;;  %v5145_v32 = vmul.f32 %v3160_v34, %v3160_v34  ;;  %v2584_v57 = vadd.f32 %v9354_v29, %v9617_v30  ;;  %v1746_v38 = vadd.f32 %v9617_v30, %v9356_v20 }
 0x27c   :  { %3544 = vst [vmem:[%s11296_s6 + $0x188] sm:$0xff] %v2326_v41  ;;  %v4615_v31 = vadd.f32 %v4614_v17, %v2326_v41  ;;  %v4883_v21 = vmul.f32 %v2326_v41, %v2326_v41  ;;  %3672 = vst [vmem:[%s11296_s6 + $0x198] sm:$0xff] %v3159_v27  ;;  %v4748_v26 = vadd.f32 %v4747_v59, %v3159_v27  ;;  %v2329_v58 = vmax.f32 %v1751_v0, 0.0 }
 0x27d   :  { %v5144_v48 = vmul.f32 %v3159_v27, %v3159_v27  ;;  %v3162_v39 = vmax.f32 %v2584_v57, 0.0  ;;  %v2328_v29 = vmax.f32 %v1746_v38, 0.0  ;;  %v2579_v20 = vadd.f32 %v9617_v30, %v9362_v9  ;;  %v9870_v57 = vpop.f32.mrb[186].mxu0 }
 0x27e   :  { %v4616_v17 = vadd.f32 %v4615_v31, %v2327_v19  ;;  %v5010_v41 = vadd.f32 %v5009_v28, %v4883_v21  ;;  %v4749_v40 = vadd.f32 %v4748_v26, %v3160_v34  ;;  %3547 = vst [vmem:[%s11296_s6 + $0x1e8] sm:$0xff] %v2329_v58  ;;  %v4886_v59 = vmul.f32 %v2329_v58, %v2329_v58 }
 0x27f   :  { %v5271_v15 = vadd.f32 %v5270_v23, %v5144_v48  ;;  %3675 = vst [vmem:[%s11296_s6 + $0x1f8] sm:$0xff] %v3162_v39  ;;  %v5147_v9 = vmul.f32 %v3162_v39, %v3162_v39  ;;  %3546 = vst [vmem:[%s11296_s6 + $0x1c8] sm:$0xff] %v2328_v29  ;;  %v4885_v19 = vmul.f32 %v2328_v29, %v2328_v29  ;;  %v3161_v28 = vmax.f32 %v2579_v20, 0.0 }
 0x280   :  { %v5011_v34 = vadd.f32 %v5010_v41, %v4884_v11  ;;  %v4617_v0 = vadd.f32 %v4616_v17, %v2328_v29  ;;  %v1761_v23 = vadd.f32 %v9382_v37, %v9617_v30  ;;  %v2594_v21 = vadd.f32 %v9387_v3, %v9617_v30  ;;  %v9879_v11 = vpop.f32.mrb[186].mxu1 }
 0x281   :  { %v5272_v27 = vadd.f32 %v5271_v15, %v5145_v32  ;;  %3674 = vst [vmem:[%s11296_s6 + $0x1d8] sm:$0xff] %v3161_v28  ;;  %v4750_v38 = vadd.f32 %v4749_v40, %v3161_v28  ;;  %v5146_v31 = vmul.f32 %v3161_v28, %v3161_v28  ;;  %v1756_v26 = vadd.f32 %v9617_v30, %v9389_v49  ;;  %v9881_v15 = vpop.f32.mrb[187].mxu0  ;;  %v9885_v20 = vpop.f32.mrb[187].mxu1 }
 0x282   :  { %11426 = vst [vmem:[#allocation14_spill] sm:$0xff] %v9879_v11  ;;  %v4618_v32 = vadd.f32 %v4617_v0, %v2329_v58  ;;  %v5012_v37 = vadd.f32 %v5011_v34, %v4885_v19  ;;  %v2331_v48 = vmax.f32 %v1761_v23, 0.0  ;;  %v2589_v29 = vadd.f32 %v9617_v30, %v9398_v47  ;;  %v11427_v58 = vld [vmem:[#allocation26_spill] sm:$0xff]  ;;  %v9892_v34 = vpop.f32.mrb[188].mxu0 }
 0x283   :  { %v4751_v17 = vadd.f32 %v4750_v38, %v3162_v39  ;;  %v5273_v41 = vadd.f32 %v5272_v27, %v5146_v31  ;;  %v3164_v40 = vmax.f32 %v2594_v21, 0.0  ;;  %v2330_v28 = vmax.f32 %v1756_v26, 0.0  ;;  %11428 = vst [vmem:[#allocation26_spill] sm:$0xff] %v9892_v34  ;;  %v9900_v27 = vpop.f32.mrb[188].mxu1  ;;  %v9902_v23 = vpop.f32.mrb[189].mxu0  ;;  %v11431_v21 = vld [vmem:[#allocation5_spill] sm:$0xff] }
 0x284   :  { %v5013_v3 = vadd.f32 %v5012_v37, %v4886_v59  ;;  %3549 = vst [vmem:[%s11296_s6 + $0x228] sm:$0xff] %v2331_v48  ;;  %v4888_v49 = vmul.f32 %v2331_v48, %v2331_v48  ;;  %v3163_v11 = vmax.f32 %v2589_v29, 0.0  ;;  %v1771_v19 = vadd.f32 %v11427_v58, %v9617_v30  ;;  %11429 = vst [vmem:[#allocation48_spill] sm:$0xff] %v9900_v27  ;;  %v9909_v37 = vpop.f32.mrb[189].mxu1  ;;  %v11434_v58 = vld [vmem:[#allocation27_spill] sm:$0xff] }
 0x285   :  { %v5274_v0 = vadd.f32 %v5273_v41, %v5147_v9  ;;  %3677 = vst [vmem:[%s11296_s6 + $0x238] sm:$0xff] %v3164_v40  ;;  %v5149_v47 = vmul.f32 %v3164_v40, %v3164_v40  ;;  %3548 = vst [vmem:[%s11296_s6 + $0x208] sm:$0xff] %v2330_v28  ;;  %v4619_v39 = vadd.f32 %v4618_v32, %v2330_v28  ;;  %v11433_v32 = vld [vmem:[#allocation15_spill] sm:$0xff] }
 0x286   :  { %v4887_v59 = vmul.f32 %v2330_v28, %v2330_v28  ;;  %11430 = vst [vmem:[#allocation49_spill] sm:$0xff] %v9902_v23  ;;  %3676 = vst [vmem:[%s11296_s6 + $0x218] sm:$0xff] %v3163_v11  ;;  %v4752_v9 = vadd.f32 %v4751_v17, %v3163_v11  ;;  %v5148_v38 = vmul.f32 %v3163_v11, %v3163_v11  ;;  %v2333_v31 = vmax.f32 %v1771_v19, 0.0  ;;  %v9918_v19 = vpop.f32.mrb[190].mxu0 }
 0x287   :  { %v2604_v26 = vadd.f32 %v11431_v21, %v9617_v30  ;;  %11432 = vst [vmem:[#allocation5_spill] sm:$0xff] %v9909_v37  ;;  %v4620_v29 = vadd.f32 %v4619_v39, %v2331_v48  ;;  %v1766_v28 = vadd.f32 %v9617_v30, %v11433_v32  ;;  %v2599_v23 = vadd.f32 %v9617_v30, %v11434_v58  ;;  %v9922_v39 = vpop.f32.mrb[190].mxu1 }
 0x288   :  { %v5014_v41 = vadd.f32 %v5013_v3, %v4887_v59  ;;  %v4753_v27 = vadd.f32 %v4752_v9, %v3164_v40  ;;  %v5275_v34 = vadd.f32 %v5274_v0, %v5148_v38  ;;  %3551 = vst [vmem:[%s11296_s6 + $0x268] sm:$0xff] %v2333_v31  ;;  %v4890_v11 = vmul.f32 %v2333_v31, %v2333_v31  ;;  %v9924_v59 = vpop.f32.mrb[191].mxu0  ;;  %v11438_v9 = vld [vmem:[#allocation16_spill] sm:$0xff] }
 0x289   :  { %v3166_v17 = vmax.f32 %v2604_v26, 0.0  ;;  %11435 = vst [vmem:[#allocation15_spill] sm:$0xff] %v9918_v19  ;;  %v2332_v37 = vmax.f32 %v1766_v28, 0.0  ;;  %v3165_v48 = vmax.f32 %v2599_v23, 0.0  ;;  %v1781_v3 = vadd.f32 %v9450_v6, %v9617_v30  ;;  %11436 = vst [vmem:[#allocation27_spill] sm:$0xff] %v9922_v39  ;;  %v11439_v26 = vld [vmem:[#allocation28_spill] sm:$0xff] }
 0x28a   :  { %v5015_v21 = vadd.f32 %v5014_v41, %v4888_v49  ;;  %11437 = vst [vmem:[#allocation50_spill] sm:$0xff] %v9924_v59  ;;  %v5276_v40 = vadd.f32 %v5275_v34, %v5149_v47  ;;  %v2614_v38 = vadd.f32 %v11438_v9, %v9617_v30  ;;  %v1776_v49 = vadd.f32 %v9617_v30, %v11439_v26  ;;  %v9933_v23 = vpop.f32.mrb[191].mxu1  ;;  %v9943_v26 = vpop.f32.mrb[192].mxu0 }
 0x28b   :  { %3679 = vst [vmem:[%s11296_s6 + $0x278] sm:$0xff] %v3166_v17  ;;  %v5151_v0 = vmul.f32 %v3166_v17, %v3166_v17  ;;  %11440 = vst [vmem:[#allocation16_spill] sm:$0xff] %v9933_v23  ;;  %v4621_v6 = vadd.f32 %v4620_v29, %v2332_v37  ;;  %v4889_v41 = vmul.f32 %v2332_v37, %v2332_v37  ;;  %v2335_v32 = vmax.f32 %v1781_v3, 0.0  ;;  %v9945_v29 = vpop.f32.mrb[192].mxu1 }
 0x28c   :  { %3550 = vst [vmem:[%s11296_s6 + $0x248] sm:$0xff] %v2332_v37  ;;  %3678 = vst [vmem:[%s11296_s6 + $0x258] sm:$0xff] %v3165_v48  ;;  %v4754_v34 = vadd.f32 %v4753_v27, %v3165_v48  ;;  %v5150_v47 = vmul.f32 %v3165_v48, %v3165_v48  ;;  %v3168_v28 = vmax.f32 %v2614_v38, 0.0  ;;  %v2334_v58 = vmax.f32 %v1776_v49, 0.0  ;;  %v9947_v37 = vpop.f32.mrb[193].mxu0 }
 0x28d   :  { %v2609_v9 = vadd.f32 %v9617_v30, %v9468_v52  ;;  %v4622_v23 = vadd.f32 %v4621_v6, %v2333_v31  ;;  %v5016_v59 = vadd.f32 %v5015_v21, %v4889_v41  ;;  %11441 = vst [vmem:[#allocation28_spill] sm:$0xff] %v9945_v29  ;;  %11442 = vst [vmem:[#allocation51_spill] sm:$0xff] %v9947_v37  ;;  %v9958_v21 = vpop.f32.mrb[193].mxu1 }
 0x28e   :  { %v4755_v39 = vadd.f32 %v4754_v34, %v3166_v17  ;;  %v5277_v19 = vadd.f32 %v5276_v40, %v5150_v47  ;;  %3553 = vst [vmem:[%s11296_s6 + $0x2a8] sm:$0xff] %v2335_v32  ;;  %v4892_v27 = vmul.f32 %v2335_v32, %v2335_v32  ;;  %3681 = vst [vmem:[%s11296_s6 + $0x2b8] sm:$0xff] %v3168_v28  ;;  %v11444_v34 = vld [vmem:[#allocation17_spill] sm:$0xff] }
 0x28f   :  { %v5153_v52 = vmul.f32 %v3168_v28, %v3168_v28  ;;  %3552 = vst [vmem:[%s11296_s6 + $0x288] sm:$0xff] %v2334_v58  ;;  %v4891_v31 = vmul.f32 %v2334_v58, %v2334_v58  ;;  %v3167_v17 = vmax.f32 %v2609_v9, 0.0  ;;  %11443 = vst [vmem:[#allocation52_spill] sm:$0xff] %v9958_v21  ;;  %v5017_v48 = vadd.f32 %v5016_v59, %v4890_v11  ;;  %v9969_v9 = vpop.f32.mrb[194].mxu0 }
 0x290   :  { %v5278_v3 = vadd.f32 %v5277_v19, %v5151_v0  ;;  %v4623_v40 = vadd.f32 %v4622_v23, %v2334_v58  ;;  %v1791_v38 = vadd.f32 %v9474_v44, %v9617_v30  ;;  %v2624_v41 = vadd.f32 %v9482_v53, %v9617_v30  ;;  %v11445_v0 = vld [vmem:[#allocation18_spill] sm:$0xff]  ;;  %v9973_v23 = vpop.f32.mrb[194].mxu1  ;;  %v9975_v58 = vpop.f32.mrb[195].mxu0 }
 0x291   :  { %3680 = vst [vmem:[%s11296_s6 + $0x298] sm:$0xff] %v3167_v17  ;;  %v4756_v49 = vadd.f32 %v4755_v39, %v3167_v17  ;;  %v5152_v6 = vmul.f32 %v3167_v17, %v3167_v17  ;;  %v1786_v47 = vadd.f32 %v9617_v30, %v11444_v34  ;;  %v5018_v19 = vadd.f32 %v5017_v48, %v4891_v31  ;;  %v9977_v53 = vpop.f32.mrb[195].mxu1 }
 0x292   :  { %v4624_v11 = vadd.f32 %v4623_v40, %v2335_v32  ;;  %v2337_v59 = vmax.f32 %v1791_v38, 0.0  ;;  %v2619_v44 = vadd.f32 %v9617_v30, %v11445_v0  ;;  %v3170_v21 = vmax.f32 %v2624_v41, 0.0  ;;  %v9990_v38 = vpop.f32.mrb[196].mxu0  ;;  %v9997_v41 = vpop.f32.mrb[196].mxu1  ;;  %v11449_v0 = vld [vmem:[#allocation6_spill] sm:$0xff] }
 0x293   :  { %v4757_v39 = vadd.f32 %v4756_v49, %v3168_v28  ;;  %v5279_v17 = vadd.f32 %v5278_v3, %v5152_v6  ;;  %v2336_v37 = vmax.f32 %v1786_v47, 0.0  ;;  %v5019_v29 = vadd.f32 %v5018_v19, %v4892_v27  ;;  %11446 = vst [vmem:[#allocation17_spill] sm:$0xff] %v9997_v41  ;;  %v9999_v34 = vpop.f32.mrb[197].mxu0 }
 0x294   :  { %3555 = vst [vmem:[%s11296_s6 + $0x2e8] sm:$0xff] %v2337_v59  ;;  %v4894_v32 = vmul.f32 %v2337_v59, %v2337_v59  ;;  %v3169_v31 = vmax.f32 %v2619_v44, 0.0  ;;  %v1801_v48 = vadd.f32 %v9502_v10, %v9617_v30  ;;  %3683 = vst [vmem:[%s11296_s6 + $0x2f8] sm:$0xff] %v3170_v21  ;;  %v5155_v28 = vmul.f32 %v3170_v21, %v3170_v21 }
 0x295   :  { %v5280_v40 = vadd.f32 %v5279_v17, %v5153_v52  ;;  %3554 = vst [vmem:[%s11296_s6 + $0x2c8] sm:$0xff] %v2336_v37  ;;  %v4625_v27 = vadd.f32 %v4624_v11, %v2336_v37  ;;  %v4893_v3 = vmul.f32 %v2336_v37, %v2336_v37  ;;  %v2634_v6 = vadd.f32 %v9504_v50, %v9617_v30  ;;  %v11448_v11 = vld [vmem:[#allocation19_spill] sm:$0xff]  ;;  %v10005_v17 = vpop.f32.mrb[197].mxu1 }
 0x296   :  { %3682 = vst [vmem:[%s11296_s6 + $0x2d8] sm:$0xff] %v3169_v31  ;;  %v4758_v49 = vadd.f32 %v4757_v39, %v3169_v31  ;;  %v5154_v10 = vmul.f32 %v3169_v31, %v3169_v31  ;;  %v2339_v52 = vmax.f32 %v1801_v48, 0.0  ;;  %11447 = vst [vmem:[#allocation18_spill] sm:$0xff] %v9999_v34  ;;  %v1796_v37 = vadd.f32 %v9617_v30, %v11448_v11 }
 0x297   :  { %v4626_v47 = vadd.f32 %v4625_v27, %v2337_v59  ;;  %v5020_v19 = vadd.f32 %v5019_v29, %v4893_v3  ;;  %v2629_v44 = vadd.f32 %v9617_v30, %v11449_v0  ;;  %v3172_v48 = vmax.f32 %v2634_v6, 0.0  ;;  %v10012_v27 = vpop.f32.mrb[198].mxu0 }
 0x298   :  { %v4759_v39 = vadd.f32 %v4758_v49, %v3170_v21  ;;  %v5281_v31 = vadd.f32 %v5280_v40, %v5154_v10  ;;  %3557 = vst [vmem:[%s11296_s6 + $0x328] sm:$0xff] %v2339_v52  ;;  %v4896_v50 = vmul.f32 %v2339_v52, %v2339_v52  ;;  %v2338_v34 = vmax.f32 %v1796_v37, 0.0  ;;  %v10023_v10 = vpop.f32.mrb[199].mxu0 }
 0x299   :  { %v5021_v41 = vadd.f32 %v5020_v19, %v4894_v32  ;;  %v3171_v59 = vmax.f32 %v2629_v44, 0.0  ;;  %v1811_v29 = vadd.f32 %v9526_v4, %v9617_v30  ;;  %3685 = vst [vmem:[%s11296_s6 + $0x338] sm:$0xff] %v3172_v48  ;;  %v5157_v21 = vmul.f32 %v3172_v48, %v3172_v48  ;;  %v10021_v32 = vpop.f32.mrb[198].mxu1  ;;  %11451 = vst [vmem:[#allocation6_spill] sm:$0xff] %v10023_v10 }
 0x29a   :  { %v5282_v3 = vadd.f32 %v5281_v31, %v5155_v28  ;;  %v2644_v40 = vadd.f32 %v9528_v36, %v9617_v30  ;;  %v1806_v49 = vadd.f32 %v9617_v30, %v9530_v13  ;;  %11450 = vst [vmem:[#allocation19_spill] sm:$0xff] %v10021_v32  ;;  %3556 = vst [vmem:[%s11296_s6 + $0x308] sm:$0xff] %v2338_v34  ;;  %v10031_v36 = vpop.f32.mrb[199].mxu1 }
 0x29b   :  { %v4627_v4 = vadd.f32 %v4626_v47, %v2338_v34  ;;  %v4895_v28 = vmul.f32 %v2338_v34, %v2338_v34  ;;  %3684 = vst [vmem:[%s11296_s6 + $0x318] sm:$0xff] %v3171_v59  ;;  %v4760_v6 = vadd.f32 %v4759_v39, %v3171_v59  ;;  %v5156_v19 = vmul.f32 %v3171_v59, %v3171_v59  ;;  %v10035_v47 = vpop.f32.mrb[200].mxu0 }
 0x29c   :  { %v2341_v11 = vmax.f32 %v1811_v29, 0.0  ;;  %v3174_v13 = vmax.f32 %v2644_v40, 0.0  ;;  %v2340_v37 = vmax.f32 %v1806_v49, 0.0  ;;  %v2639_v0 = vadd.f32 %v9617_v30, %v9536_v51 }
 0x29d   :  { %v4628_v44 = vadd.f32 %v4627_v4, %v2339_v52  ;;  %v5022_v31 = vadd.f32 %v5021_v41, %v4895_v28  ;;  %v4761_v10 = vadd.f32 %v4760_v6, %v3172_v48  ;;  %v5283_v32 = vadd.f32 %v5282_v3, %v5156_v19  ;;  %v10046_v41 = vpop.f32.mrb[200].mxu1  ;;  %v10048_v48 = vpop.f32.mrb[201].mxu0 }
 0x29e   :  { %3559 = vst [vmem:[%s11296_s6 + $0x368] sm:$0xff] %v2341_v11  ;;  %v4898_v34 = vmul.f32 %v2341_v11, %v2341_v11  ;;  %3687 = vst [vmem:[%s11296_s6 + $0x378] sm:$0xff] %v3174_v13  ;;  %v5159_v39 = vmul.f32 %v3174_v13, %v3174_v13  ;;  %v4897_v51 = vmul.f32 %v2340_v37, %v2340_v37  ;;  %v3173_v52 = vmax.f32 %v2639_v0, 0.0  ;;  %v10052_v49 = vpop.f32.mrb[201].mxu1  ;;  %v10063_v0 = vpop.f32.mrb[202].mxu0 }
 0x29f   :  { %3558 = vst [vmem:[%s11296_s6 + $0x348] sm:$0xff] %v2340_v37  ;;  %11452 = vst [vmem:[#allocation53_spill] sm:$0xff] %v10048_v48  ;;  %v5023_v59 = vadd.f32 %v5022_v31, %v4896_v50  ;;  %v5284_v29 = vadd.f32 %v5283_v32, %v5157_v21  ;;  %v4629_v3 = vadd.f32 %v4628_v44, %v2340_v37  ;;  %v11454_v37 = vld [vmem:[#allocation29_spill] sm:$0xff] }
 0x2a0   :  { %v1821_v40 = vadd.f32 %v9546_v60, %v9617_v30  ;;  %11453 = vst [vmem:[#allocation54_spill] sm:$0xff] %v10052_v49  ;;  %3686 = vst [vmem:[%s11296_s6 + $0x358] sm:$0xff] %v3173_v52  ;;  %v4762_v4 = vadd.f32 %v4761_v10, %v3173_v52  ;;  %v5158_v28 = vmul.f32 %v3173_v52, %v3173_v52  ;;  %v10065_v10 = vpop.f32.mrb[202].mxu1  ;;  %v10067_v52 = vpop.f32.mrb[203].mxu0 }
 0x2a1   :  { %v2654_v6 = vadd.f32 %v9554_v43, %v9617_v30  ;;  %v1816_v19 = vadd.f32 %v9617_v30, %v9556_v46  ;;  %v4630_v50 = vadd.f32 %v4629_v3, %v2341_v11  ;;  %v5024_v21 = vadd.f32 %v5023_v59, %v4897_v51  ;;  %11455 = vst [vmem:[#allocation29_spill] sm:$0xff] %v10063_v0  ;;  %v11458_v51 = vld [vmem:[#allocation7_spill] sm:$0xff]  ;;  %v10074_v3 = vpop.f32.mrb[203].mxu1 }
 0x2a2   :  { %v2343_v32 = vmax.f32 %v1821_v40, 0.0  ;;  %v2649_v60 = vadd.f32 %v9617_v30, %v11454_v37  ;;  %v4763_v44 = vadd.f32 %v4762_v4, %v3174_v13  ;;  %v5285_v31 = vadd.f32 %v5284_v29, %v5158_v28  ;;  %11456 = vst [vmem:[#allocation55_spill] sm:$0xff] %v10065_v10  ;;  %11457 = vst [vmem:[#allocation56_spill] sm:$0xff] %v10067_v52 }
 0x2a3   :  { %v3176_v49 = vmax.f32 %v2654_v6, 0.0  ;;  %v2342_v48 = vmax.f32 %v1816_v19, 0.0  ;;  %v5025_v43 = vadd.f32 %v5024_v21, %v4898_v34  ;;  %v1831_v59 = vadd.f32 %v11458_v51, %v9617_v30  ;;  %11459 = vst [vmem:[#allocation7_spill] sm:$0xff] %v10074_v3  ;;  %v10087_v21 = vpop.f32.mrb[204].mxu0  ;;  %v11463_v3 = vld [vmem:[#allocation31_spill] sm:$0xff] }
 0x2a4   :  { %3561 = vst [vmem:[%s11296_s6 + $0x3a8] sm:$0xff] %v2343_v32  ;;  %v4900_v46 = vmul.f32 %v2343_v32, %v2343_v32  ;;  %v3175_v11 = vmax.f32 %v2649_v60, 0.0  ;;  %v5286_v13 = vadd.f32 %v5285_v31, %v5159_v39  ;;  %v11460_v39 = vld [vmem:[#allocation8_spill] sm:$0xff]  ;;  %v11462_v31 = vld [vmem:[#allocation30_spill] sm:$0xff]  ;;  %v10095_v52 = vpop.f32.mrb[205].mxu0 }
 0x2a5   :  { %3689 = vst [vmem:[%s11296_s6 + $0x3b8] sm:$0xff] %v3176_v49  ;;  %v5161_v29 = vmul.f32 %v3176_v49, %v3176_v49  ;;  %3560 = vst [vmem:[%s11296_s6 + $0x388] sm:$0xff] %v2342_v48  ;;  %v4631_v34 = vadd.f32 %v4630_v50, %v2342_v48  ;;  %v4899_v40 = vmul.f32 %v2342_v48, %v2342_v48  ;;  %v2345_v6 = vmax.f32 %v1831_v59, 0.0  ;;  %v10093_v50 = vpop.f32.mrb[204].mxu1 }
 0x2a6   :  { %3688 = vst [vmem:[%s11296_s6 + $0x398] sm:$0xff] %v3175_v11  ;;  %v4764_v4 = vadd.f32 %v4763_v44, %v3175_v11  ;;  %v5160_v28 = vmul.f32 %v3175_v11, %v3175_v11  ;;  %v2664_v19 = vadd.f32 %v11460_v39, %v9617_v30  ;;  %11461 = vst [vmem:[#allocation8_spill] sm:$0xff] %v10087_v21 }
 0x2a7   :  { %v4632_v37 = vadd.f32 %v4631_v34, %v2343_v32  ;;  %v5026_v60 = vadd.f32 %v5025_v43, %v4899_v40  ;;  %v1826_v51 = vadd.f32 %v9617_v30, %v11462_v31  ;;  %v2659_v48 = vadd.f32 %v9617_v30, %v11463_v3  ;;  %11464 = vst [vmem:[#allocation30_spill] sm:$0xff] %v10093_v50  ;;  %v10100_v32 = vpop.f32.mrb[205].mxu1  ;;  %v11467_v31 = vld [vmem:[#allocation32_spill] sm:$0xff] }
 0x2a8   :  { %11465 = vst [vmem:[#allocation31_spill] sm:$0xff] %v10095_v52  ;;  %v4765_v44 = vadd.f32 %v4764_v4, %v3176_v49  ;;  %v5287_v11 = vadd.f32 %v5286_v13, %v5160_v28  ;;  %3563 = vst [vmem:[%s11296_s6 + $0x3e8] sm:$0xff] %v2345_v6  ;;  %v4902_v59 = vmul.f32 %v2345_v6, %v2345_v6  ;;  %v3178_v39 = vmax.f32 %v2664_v19, 0.0  ;;  %v11468_v13 = vld [vmem:[#allocation33_spill] sm:$0xff]  ;;  %v11469_v28 = vld [vmem:[#allocation34_spill] sm:$0xff]  ;;  %v10111_v52 = vpop.f32.mrb[206].mxu0 }
 0x2a9   :  { %11466 = vst [vmem:[#allocation57_spill] sm:$0xff] %v10100_v32  ;;  %v5027_v43 = vadd.f32 %v5026_v60, %v4900_v46  ;;  %v2344_v34 = vmax.f32 %v1826_v51, 0.0  ;;  %v3177_v40 = vmax.f32 %v2659_v48, 0.0  ;;  %v1841_v3 = vadd.f32 %v11467_v31, %v9617_v30  ;;  %11470 = vst [vmem:[#allocation32_spill] sm:$0xff] %v10111_v52  ;;  %v10119_v48 = vpop.f32.mrb[206].mxu1  ;;  %v11471_v52 = vld [vmem:[#allocation35_spill] sm:$0xff] }
 0x2aa   :  { %v5288_v21 = vadd.f32 %v5287_v11, %v5161_v29  ;;  %3691 = vst [vmem:[%s11296_s6 + $0x3f8] sm:$0xff] %v3178_v39  ;;  %v5163_v49 = vmul.f32 %v3178_v39, %v3178_v39  ;;  %v2674_v4 = vadd.f32 %v11468_v13, %v9617_v30  ;;  %v1836_v19 = vadd.f32 %v9617_v30, %v11469_v28  ;;  %v10121_v11 = vpop.f32.mrb[207].mxu0  ;;  %v10125_v50 = vpop.f32.mrb[207].mxu1 }
 0x2ab   :  { %3562 = vst [vmem:[%s11296_s6 + $0x3c8] sm:$0xff] %v2344_v34  ;;  %v4633_v46 = vadd.f32 %v4632_v37, %v2344_v34  ;;  %v4901_v60 = vmul.f32 %v2344_v34, %v2344_v34  ;;  %3690 = vst [vmem:[%s11296_s6 + $0x3d8] sm:$0xff] %v3177_v40  ;;  %v4766_v29 = vadd.f32 %v4765_v44, %v3177_v40  ;;  %v2347_v31 = vmax.f32 %v1841_v3, 0.0 }
 0x2ac   :  { %v5162_v51 = vmul.f32 %v3177_v40, %v3177_v40  ;;  %v3180_v13 = vmax.f32 %v2674_v4, 0.0  ;;  %v2346_v28 = vmax.f32 %v1836_v19, 0.0  ;;  %v2669_v32 = vadd.f32 %v9617_v30, %v11471_v52  ;;  %11472 = vst [vmem:[#allocation33_spill] sm:$0xff] %v10125_v50  ;;  %v11474_v4 = vld [vmem:[#allocation36_spill] sm:$0xff] }
 0x2ad   :  { %v4634_v37 = vadd.f32 %v4633_v46, %v2345_v6  ;;  %v5028_v34 = vadd.f32 %v5027_v43, %v4901_v60  ;;  %v4767_v10 = vadd.f32 %v4766_v29, %v3178_v39  ;;  %3565 = vst [vmem:[%s11296_s6 + $0x428] sm:$0xff] %v2347_v31  ;;  %v4904_v44 = vmul.f32 %v2347_v31, %v2347_v31  ;;  %v10136_v6 = vpop.f32.mrb[208].mxu0  ;;  %v10140_v46 = vpop.f32.mrb[208].mxu1 }
 0x2ae   :  { %v5289_v0 = vadd.f32 %v5288_v21, %v5162_v51  ;;  %3693 = vst [vmem:[%s11296_s6 + $0x438] sm:$0xff] %v3180_v13  ;;  %v5165_v40 = vmul.f32 %v3180_v13, %v3180_v13  ;;  %3564 = vst [vmem:[%s11296_s6 + $0x408] sm:$0xff] %v2346_v28  ;;  %v4903_v52 = vmul.f32 %v2346_v28, %v2346_v28  ;;  %v3179_v3 = vmax.f32 %v2669_v32, 0.0  ;;  %v10142_v60 = vpop.f32.mrb[209].mxu0  ;;  %v10150_v32 = vld [vmem:[%s11298_s5] ss:$0 sm:$0xff] }
 0x2af   :  { %11473 = vst [vmem:[#allocation34_spill] sm:$0xff] %v10136_v6  ;;  %v5029_v39 = vadd.f32 %v5028_v34, %v4902_v59  ;;  %v4635_v43 = vadd.f32 %v4634_v37, %v2346_v28  ;;  %v1851_v19 = vadd.f32 %v11474_v4, %v9617_v30  ;;  %11475 = vst [vmem:[#allocation35_spill] sm:$0xff] %v10140_v46  ;;  %v11477_v59 = vld [vmem:[#allocation37_spill] sm:$0xff]  ;;  %v10160_v6 = vpop.f32.mrb[210].mxu0 }
 0x2b0   :  { %v5290_v21 = vadd.f32 %v5289_v0, %v5163_v49  ;;  %11476 = vst [vmem:[#allocation36_spill] sm:$0xff] %v10142_v60  ;;  %3692 = vst [vmem:[%s11296_s6 + $0x418] sm:$0xff] %v3179_v3  ;;  %v4768_v29 = vadd.f32 %v4767_v10, %v3179_v3  ;;  %v5164_v51 = vmul.f32 %v3179_v3, %v3179_v3  ;;  %v10156_v49 = vpop.f32.mrb[209].mxu1 }
 0x2b1   :  { %v2684_v0 = vadd.f32 %v10150_v32, %v9606_v62  ;;  %v1846_v30 = vadd.f32 %v10150_v32, %v11477_v59  ;;  %11478 = vst [vmem:[#allocation37_spill] sm:$0xff] %v10156_v49  ;;  %v4636_v28 = vadd.f32 %v4635_v43, %v2347_v31  ;;  %v5030_v37 = vadd.f32 %v5029_v39, %v4903_v52  ;;  %v11479_v49 = vld [vmem:[#allocation38_spill] sm:$0xff]  ;;  %v10167_v52 = vpop.f32.mrb[210].mxu1  ;;  %v10169_v39 = vpop.f32.mrb[211].mxu0 }
 0x2b2   :  { %v2349_v34 = vmax.f32 %v1851_v19, 0.0  ;;  %v2679_v10 = vadd.f32 %v10150_v32, %v9610_v45  ;;  %v4769_v3 = vadd.f32 %v4768_v29, %v3180_v13  ;;  %v5291_v4 = vadd.f32 %v5290_v21, %v5164_v51  ;;  %11480 = vst [vmem:[#allocation38_spill] sm:$0xff] %v10169_v39  ;;  %v10177_v43 = vpop.f32.mrb[211].mxu1  ;;  %v11482_v51 = vld [vmem:[#allocation39_spill] sm:$0xff] }
 0x2b3   :  { %v3182_v60 = vmax.f32 %v2684_v0, 0.0  ;;  %v2348_v46 = vmax.f32 %v1846_v30, 0.0  ;;  %v5031_v50 = vadd.f32 %v5030_v37, %v4904_v44  ;;  %v1861_v31 = vadd.f32 %v10150_v32, %v11479_v49  ;;  %11481 = vst [vmem:[#allocation58_spill] sm:$0xff] %v10177_v43  ;;  %v11483_v37 = vld [vmem:[#allocation40_spill] sm:$0xff] }
 0x2b4   :  { %3567 = vst [vmem:[%s11296_s6 + $0x468] sm:$0xff] %v2349_v34  ;;  %v4906_v62 = vmul.f32 %v2349_v34, %v2349_v34  ;;  %v3181_v59 = vmax.f32 %v2679_v10, 0.0  ;;  %v5292_v45 = vadd.f32 %v5291_v4, %v5165_v40  ;;  %v2694_v0 = vadd.f32 %v10150_v32, %v11482_v51  ;;  %v11484_v4 = vld [vmem:[#allocation41_spill] sm:$0xff] }
 0x2b5   :  { %3695 = vst [vmem:[%s11296_s6 + $0x478] sm:$0xff] %v3182_v60  ;;  %v5167_v13 = vmul.f32 %v3182_v60, %v3182_v60  ;;  %3566 = vst [vmem:[%s11296_s6 + $0x448] sm:$0xff] %v2348_v46  ;;  %v4637_v44 = vadd.f32 %v4636_v28, %v2348_v46  ;;  %v4905_v21 = vmul.f32 %v2348_v46, %v2348_v46  ;;  %v2351_v40 = vmax.f32 %v1861_v31, 0.0  ;;  %v10188_v28 = vpop.f32.mrb[212].mxu0  ;;  %v10193_v31 = vpop.f32.mrb[212].mxu1 }
 0x2b6   :  { %3694 = vst [vmem:[%s11296_s6 + $0x458] sm:$0xff] %v3181_v59  ;;  %v4770_v19 = vadd.f32 %v4769_v3, %v3181_v59  ;;  %v5166_v29 = vmul.f32 %v3181_v59, %v3181_v59  ;;  %v1856_v10 = vadd.f32 %v10150_v32, %v11483_v37  ;;  %v2689_v46 = vadd.f32 %v10150_v32, %v11484_v4  ;;  %v10199_v37 = vpop.f32.mrb[213].mxu1 }
 0x2b7   :  { %v4638_v30 = vadd.f32 %v4637_v44, %v2349_v34  ;;  %v5032_v49 = vadd.f32 %v5031_v50, %v4905_v21  ;;  %3569 = vst [vmem:[%s11296_s6 + $0x4a8] sm:$0xff] %v2351_v40  ;;  %v4908_v3 = vmul.f32 %v2351_v40, %v2351_v40  ;;  %v3184_v59 = vmax.f32 %v2694_v0, 0.0  ;;  %11485 = vst [vmem:[#allocation39_spill] sm:$0xff] %v10193_v31  ;;  %v10195_v34 = vpop.f32.mrb[213].mxu0  ;;  %v10218_v4 = vpop.f32.mrb[214].mxu1 }
 0x2b8   :  { %v4771_v43 = vadd.f32 %v4770_v19, %v3182_v60  ;;  %v5293_v39 = vadd.f32 %v5292_v45, %v5166_v29  ;;  %11486 = vst [vmem:[#allocation40_spill] sm:$0xff] %v10195_v34  ;;  %v2350_v44 = vmax.f32 %v1856_v10, 0.0  ;;  %v3183_v21 = vmax.f32 %v2689_v46, 0.0  ;;  %11487 = vst [vmem:[#allocation41_spill] sm:$0xff] %v10199_v37  ;;  %v10214_v0 = vpop.f32.mrb[214].mxu0  ;;  %v10222_v31 = vpop.f32.mrb[215].mxu1 }
 0x2b9   :  { %v5033_v50 = vadd.f32 %v5032_v49, %v4906_v62  ;;  %v1871_v51 = vadd.f32 %v10150_v32, %v9629_v5  ;;  %3697 = vst [vmem:[%s11296_s6 + $0x4b8] sm:$0xff] %v3184_v59  ;;  %v5169_v45 = vmul.f32 %v3184_v59, %v3184_v59  ;;  %v2704_v19 = vadd.f32 %v10150_v32, %v9631_v42  ;;  %v10220_v46 = vpop.f32.mrb[215].mxu0 }
 0x2ba   :  { %v5294_v60 = vadd.f32 %v5293_v39, %v5167_v13  ;;  %v1866_v29 = vadd.f32 %v10150_v32, %v9633_v33  ;;  %3568 = vst [vmem:[%s11296_s6 + $0x488] sm:$0xff] %v2350_v44  ;;  %v4639_v62 = vadd.f32 %v4638_v30, %v2350_v44  ;;  %v4907_v5 = vmul.f32 %v2350_v44, %v2350_v44 }
 0x2bb   :  { %3696 = vst [vmem:[%s11296_s6 + $0x498] sm:$0xff] %v3183_v21  ;;  %v4772_v39 = vadd.f32 %v4771_v43, %v3183_v21  ;;  %v5168_v13 = vmul.f32 %v3183_v21, %v3183_v21  ;;  %v2353_v49 = vmax.f32 %v1871_v51, 0.0  ;;  %v3186_v10 = vmax.f32 %v2704_v19, 0.0  ;;  %11488 = vst [vmem:[#allocation59_spill] sm:$0xff] %v10222_v31  ;;  %v10235_v19 = vpop.f32.mrb[216].mxu0 }
 0x2bc   :  { %v2352_v42 = vmax.f32 %v1866_v29, 0.0  ;;  %v2699_v33 = vadd.f32 %v10150_v32, %v9637_v12  ;;  %v4640_v30 = vadd.f32 %v4639_v62, %v2351_v40  ;;  %v5034_v44 = vadd.f32 %v5033_v50, %v4907_v5  ;;  %11489 = vst [vmem:[#allocation60_spill] sm:$0xff] %v10235_v19 }
 0x2bd   :  { %v4773_v37 = vadd.f32 %v4772_v39, %v3184_v59  ;;  %v5295_v34 = vadd.f32 %v5294_v60, %v5168_v13  ;;  %3571 = vst [vmem:[%s11296_s6 + $0x4e8] sm:$0xff] %v2353_v49  ;;  %v4910_v43 = vmul.f32 %v2353_v49, %v2353_v49  ;;  %3699 = vst [vmem:[%s11296_s6 + $0x4f8] sm:$0xff] %v3186_v10  ;;  %v11490_v39 = vld [vmem:[#allocation9_spill] sm:$0xff] }
 0x2be   :  { %v5171_v12 = vmul.f32 %v3186_v10, %v3186_v10  ;;  %3570 = vst [vmem:[%s11296_s6 + $0x4c8] sm:$0xff] %v2352_v42  ;;  %v4909_v40 = vmul.f32 %v2352_v42, %v2352_v42  ;;  %v3185_v50 = vmax.f32 %v2699_v33, 0.0  ;;  %v5035_v59 = vadd.f32 %v5034_v44, %v4908_v3  ;;  %v10244_v3 = vpop.f32.mrb[216].mxu1  ;;  %v11493_v33 = vld [vmem:[#allocation20_spill] sm:$0xff] }
 0x2bf   :  { %v5296_v21 = vadd.f32 %v5295_v34, %v5169_v45  ;;  %v4641_v51 = vadd.f32 %v4640_v30, %v2352_v42  ;;  %v1881_v60 = vadd.f32 %v10150_v32, %v9649_v24  ;;  %v2714_v5 = vadd.f32 %v10150_v32, %v9651_v22  ;;  %11491 = vst [vmem:[#allocation9_spill] sm:$0xff] %v10244_v3  ;;  %v10246_v34 = vpop.f32.mrb[217].mxu0  ;;  %v10250_v44 = vpop.f32.mrb[217].mxu1 }
 0x2c0   :  { %3698 = vst [vmem:[%s11296_s6 + $0x4d8] sm:$0xff] %v3185_v50  ;;  %v4774_v29 = vadd.f32 %v4773_v37, %v3185_v50  ;;  %v5170_v62 = vmul.f32 %v3185_v50, %v3185_v50  ;;  %v1876_v13 = vadd.f32 %v10150_v32, %v11490_v39  ;;  %11492 = vst [vmem:[#allocation61_spill] sm:$0xff] %v10246_v34  ;;  %v11495_v34 = vld [vmem:[#allocation21_spill] sm:$0xff] }
 0x2c1   :  { %v4642_v45 = vadd.f32 %v4641_v51, %v2353_v49  ;;  %v5036_v24 = vadd.f32 %v5035_v59, %v4909_v40  ;;  %v2355_v42 = vmax.f32 %v1881_v60, 0.0  ;;  %v2709_v30 = vadd.f32 %v10150_v32, %v11493_v33  ;;  %11494 = vst [vmem:[#allocation20_spill] sm:$0xff] %v10250_v44  ;;  %v10257_v40 = vpop.f32.mrb[218].mxu0  ;;  %v10265_v51 = vpop.f32.mrb[218].mxu1 }
 0x2c2   :  { %v4775_v37 = vadd.f32 %v4774_v29, %v3186_v10  ;;  %v5297_v50 = vadd.f32 %v5296_v21, %v5170_v62  ;;  %v3188_v19 = vmax.f32 %v2714_v5, 0.0  ;;  %v2354_v31 = vmax.f32 %v1876_v13, 0.0  ;;  %11496 = vst [vmem:[#allocation21_spill] sm:$0xff] %v10257_v40  ;;  %11497 = vst [vmem:[#allocation62_spill] sm:$0xff] %v10265_v51  ;;  %v10267_v60 = vpop.f32.mrb[219].mxu0  ;;  %v11499_v5 = vld [vmem:[#allocation22_spill] sm:$0xff] }
 0x2c3   :  { %v5037_v22 = vadd.f32 %v5036_v24, %v4910_v43  ;;  %3573 = vst [vmem:[%s11296_s6 + $0x528] sm:$0xff] %v2355_v42  ;;  %v4912_v39 = vmul.f32 %v2355_v42, %v2355_v42  ;;  %v3187_v3 = vmax.f32 %v2709_v30, 0.0  ;;  %v1891_v49 = vadd.f32 %v10150_v32, %v11495_v34  ;;  %11498 = vst [vmem:[#allocation63_spill] sm:$0xff] %v10267_v60  ;;  %v10274_v34 = vpop.f32.mrb[219].mxu1  ;;  %v11502_v30 = vld [vmem:[#allocation42_spill] sm:$0xff] }
 0x2c4   :  { %v5298_v59 = vadd.f32 %v5297_v50, %v5171_v12  ;;  %3701 = vst [vmem:[%s11296_s6 + $0x538] sm:$0xff] %v3188_v19  ;;  %v5173_v10 = vmul.f32 %v3188_v19, %v3188_v19  ;;  %3572 = vst [vmem:[%s11296_s6 + $0x508] sm:$0xff] %v2354_v31  ;;  %v4643_v43 = vadd.f32 %v4642_v45, %v2354_v31  ;;  %v11501_v45 = vld [vmem:[#allocation23_spill] sm:$0xff] }
 0x2c5   :  { %v4911_v21 = vmul.f32 %v2354_v31, %v2354_v31  ;;  %3700 = vst [vmem:[%s11296_s6 + $0x518] sm:$0xff] %v3187_v3  ;;  %v4776_v12 = vadd.f32 %v4775_v37, %v3187_v3  ;;  %v5172_v29 = vmul.f32 %v3187_v3, %v3187_v3  ;;  %v2357_v62 = vmax.f32 %v1891_v49, 0.0  ;;  %11500 = vst [vmem:[#allocation22_spill] sm:$0xff] %v10274_v34  ;;  %v10283_v49 = vpop.f32.mrb[220].mxu0 }
 0x2c6   :  { %v2724_v13 = vadd.f32 %v10150_v32, %v11499_v5  ;;  %v4644_v24 = vadd.f32 %v4643_v43, %v2355_v42  ;;  %v1886_v31 = vadd.f32 %v10150_v32, %v11501_v45  ;;  %v2719_v50 = vadd.f32 %v10150_v32, %v11502_v30  ;;  %11503 = vst [vmem:[#allocation23_spill] sm:$0xff] %v10283_v49  ;;  %v10289_v45 = vpop.f32.mrb[221].mxu0 }
 0x2c7   :  { %v5038_v33 = vadd.f32 %v5037_v22, %v4911_v21  ;;  %v4777_v60 = vadd.f32 %v4776_v12, %v3188_v19  ;;  %v5299_v51 = vadd.f32 %v5298_v59, %v5172_v29  ;;  %3575 = vst [vmem:[%s11296_s6 + $0x568] sm:$0xff] %v2357_v62  ;;  %v4914_v3 = vmul.f32 %v2357_v62, %v2357_v62  ;;  %v11504_v22 = vld [vmem:[#allocation10_spill] sm:$0xff]  ;;  %v10287_v21 = vpop.f32.mrb[220].mxu1  ;;  %v11507_v12 = vld [vmem:[#allocation43_spill] sm:$0xff] }
 0x2c8   :  { %v3190_v37 = vmax.f32 %v2724_v13, 0.0  ;;  %v2356_v34 = vmax.f32 %v1886_v31, 0.0  ;;  %v3189_v42 = vmax.f32 %v2719_v50, 0.0  ;;  %v1901_v43 = vadd.f32 %v10150_v32, %v11504_v22  ;;  %11505 = vst [vmem:[#allocation42_spill] sm:$0xff] %v10287_v21  ;;  %11506 = vst [vmem:[#allocation10_spill] sm:$0xff] %v10289_v45  ;;  %v11508_v13 = vld [vmem:[#allocation44_spill] sm:$0xff] }
 0x2c9   :  { %v5039_v5 = vadd.f32 %v5038_v33, %v4912_v39  ;;  %v5300_v19 = vadd.f32 %v5299_v51, %v5173_v10  ;;  %v2734_v29 = vadd.f32 %v10150_v32, %v11507_v12  ;;  %v1896_v39 = vadd.f32 %v10150_v32, %v11508_v13  ;;  %v10298_v33 = vpop.f32.mrb[221].mxu1  ;;  %v11510_v45 = vld [vmem:[#allocation45_spill] sm:$0xff]  ;;  %v10308_v21 = vpop.f32.mrb[222].mxu0 }
 0x2ca   :  { %3703 = vst [vmem:[%s11296_s6 + $0x578] sm:$0xff] %v3190_v37  ;;  %v5175_v59 = vmul.f32 %v3190_v37, %v3190_v37  ;;  %11509 = vst [vmem:[#allocation43_spill] sm:$0xff] %v10298_v33  ;;  %v4645_v31 = vadd.f32 %v4644_v24, %v2356_v34  ;;  %v4913_v30 = vmul.f32 %v2356_v34, %v2356_v34  ;;  %v2359_v50 = vmax.f32 %v1901_v43, 0.0  ;;  %v10310_v24 = vpop.f32.mrb[222].mxu1 }
 0x2cb   :  { %3574 = vst [vmem:[%s11296_s6 + $0x548] sm:$0xff] %v2356_v34  ;;  %3702 = vst [vmem:[%s11296_s6 + $0x558] sm:$0xff] %v3189_v42  ;;  %v4778_v10 = vadd.f32 %v4777_v60, %v3189_v42  ;;  %v5174_v51 = vmul.f32 %v3189_v42, %v3189_v42  ;;  %v3192_v22 = vmax.f32 %v2734_v29, 0.0  ;;  %v2358_v12 = vmax.f32 %v1896_v39, 0.0  ;;  %v10312_v34 = vpop.f32.mrb[223].mxu0  ;;  %v11513_v29 = vld [vmem:[#allocation46_spill] sm:$0xff] }
 0x2cc   :  { %v2729_v13 = vadd.f32 %v10150_v32, %v11510_v45  ;;  %v4646_v33 = vadd.f32 %v4645_v31, %v2357_v62  ;;  %v5040_v49 = vadd.f32 %v5039_v5, %v4913_v30  ;;  %11511 = vst [vmem:[#allocation44_spill] sm:$0xff] %v10312_v34  ;;  %3577 = vst [vmem:[%s11296_s6 + $0x5a8] sm:$0xff] %v2359_v50  ;;  %v10323_v5 = vpop.f32.mrb[223].mxu1 }
 0x2cd   :  { %v4779_v40 = vadd.f32 %v4778_v10, %v3190_v37  ;;  %v5301_v44 = vadd.f32 %v5300_v19, %v5174_v51  ;;  %v4916_v60 = vmul.f32 %v2359_v50, %v2359_v50  ;;  %3705 = vst [vmem:[%s11296_s6 + $0x5b8] sm:$0xff] %v3192_v22  ;;  %v5177_v42 = vmul.f32 %v3192_v22, %v3192_v22 }
 0x2ce   :  { %3576 = vst [vmem:[%s11296_s6 + $0x588] sm:$0xff] %v2358_v12  ;;  %v4915_v62 = vmul.f32 %v2358_v12, %v2358_v12  ;;  %v3191_v37 = vmax.f32 %v2729_v13, 0.0  ;;  %11512 = vst [vmem:[#allocation45_spill] sm:$0xff] %v10323_v5  ;;  %v5041_v43 = vadd.f32 %v5040_v49, %v4914_v3  ;;  %v4647_v19 = vadd.f32 %v4646_v33, %v2358_v12  ;;  %v10334_v13 = vpop.f32.mrb[224].mxu0  ;;  %v10338_v33 = vpop.f32.mrb[224].mxu1 }
 0x2cf   :  { %v5302_v45 = vadd.f32 %v5301_v44, %v5175_v59  ;;  %v1911_v39 = vadd.f32 %v10150_v32, %v11513_v29  ;;  %v2744_v10 = vadd.f32 %v10150_v32, %v9734_v8  ;;  %v1906_v51 = vadd.f32 %v10150_v32, %v9736_v56  ;;  %v10340_v12 = vpop.f32.mrb[225].mxu0  ;;  %v10342_v8 = vpop.f32.mrb[225].mxu1 }
 0x2d0   :  { %3704 = vst [vmem:[%s11296_s6 + $0x598] sm:$0xff] %v3191_v37  ;;  %v4780_v31 = vadd.f32 %v4779_v40, %v3191_v37  ;;  %v5176_v30 = vmul.f32 %v3191_v37, %v3191_v37  ;;  %v4648_v3 = vadd.f32 %v4647_v19, %v2359_v50  ;;  %v5042_v44 = vadd.f32 %v5041_v43, %v4915_v62 }
 0x2d1   :  { %v2361_v49 = vmax.f32 %v1911_v39, 0.0  ;;  %v2739_v59 = vadd.f32 %v10150_v32, %v9742_v7  ;;  %v3194_v29 = vmax.f32 %v2744_v10, 0.0  ;;  %v2360_v5 = vmax.f32 %v1906_v51, 0.0 }
 0x2d2   :  { %v4781_v40 = vadd.f32 %v4780_v31, %v3192_v22  ;;  %v5303_v37 = vadd.f32 %v5302_v45, %v5176_v30  ;;  %v5043_v34 = vadd.f32 %v5042_v44, %v4916_v60  ;;  %v1921_v7 = vadd.f32 %v10150_v32, %v9752_v16  ;;  %v10355_v45 = vpop.f32.mrb[226].mxu0  ;;  %v10362_v31 = vpop.f32.mrb[226].mxu1  ;;  %v11517_v44 = vld [vmem:[#allocation2_spill] sm:$0xff] }
 0x2d3   :  { %3579 = vst [vmem:[%s11296_s6 + $0x5e8] sm:$0xff] %v2361_v49  ;;  %v4918_v56 = vmul.f32 %v2361_v49, %v2361_v49  ;;  %v3193_v50 = vmax.f32 %v2739_v59, 0.0  ;;  %3707 = vst [vmem:[%s11296_s6 + $0x5f8] sm:$0xff] %v3194_v29  ;;  %v5179_v22 = vmul.f32 %v3194_v29, %v3194_v29  ;;  %v4649_v60 = vadd.f32 %v4648_v3, %v2360_v5  ;;  %v10364_v30 = vpop.f32.mrb[227].mxu0  ;;  %v11516_v3 = vld [vmem:[#allocation11_spill] sm:$0xff] }
 0x2d4   :  { %v5304_v62 = vadd.f32 %v5303_v37, %v5177_v42  ;;  %3578 = vst [vmem:[%s11296_s6 + $0x5c8] sm:$0xff] %v2360_v5  ;;  %v4917_v43 = vmul.f32 %v2360_v5, %v2360_v5  ;;  %v2363_v42 = vmax.f32 %v1921_v7, 0.0  ;;  %v2754_v39 = vadd.f32 %v10150_v32, %v9756_v54  ;;  %11514 = vst [vmem:[#allocation46_spill] sm:$0xff] %v10362_v31  ;;  %v10370_v37 = vpop.f32.mrb[227].mxu1 }
 0x2d5   :  { %3706 = vst [vmem:[%s11296_s6 + $0x5d8] sm:$0xff] %v3193_v50  ;;  %v4782_v19 = vadd.f32 %v4781_v40, %v3193_v50  ;;  %v5178_v16 = vmul.f32 %v3193_v50, %v3193_v50  ;;  %11515 = vst [vmem:[#allocation64_spill] sm:$0xff] %v10364_v30  ;;  %v4650_v10 = vadd.f32 %v4649_v60, %v2361_v49  ;;  %v10377_v60 = vpop.f32.mrb[228].mxu0 }
 0x2d6   :  { %v5044_v51 = vadd.f32 %v5043_v34, %v4917_v43  ;;  %v1916_v5 = vadd.f32 %v10150_v32, %v11516_v3  ;;  %v2749_v59 = vadd.f32 %v10150_v32, %v11517_v44  ;;  %11518 = vst [vmem:[#allocation11_spill] sm:$0xff] %v10370_v37  ;;  %3581 = vst [vmem:[%s11296_s6 + $0x628] sm:$0xff] %v2363_v42  ;;  %v3196_v7 = vmax.f32 %v2754_v39, 0.0  ;;  %v10388_v39 = vpop.f32.mrb[229].mxu0 }
 0x2d7   :  { %v4783_v40 = vadd.f32 %v4782_v19, %v3194_v29  ;;  %v5305_v50 = vadd.f32 %v5304_v62, %v5178_v16  ;;  %v4920_v54 = vmul.f32 %v2363_v42, %v2363_v42  ;;  %v1931_v34 = vadd.f32 %v10150_v32, %v9775_v2  ;;  %11519 = vst [vmem:[#allocation2_spill] sm:$0xff] %v10377_v60  ;;  %v11520_v19 = vld [vmem:[#allocation12_spill] sm:$0xff] }
 0x2d8   :  { %v5045_v31 = vadd.f32 %v5044_v51, %v4918_v56  ;;  %v2362_v30 = vmax.f32 %v1916_v5, 0.0  ;;  %v3195_v49 = vmax.f32 %v2749_v59, 0.0  ;;  %3709 = vst [vmem:[%s11296_s6 + $0x638] sm:$0xff] %v3196_v7  ;;  %v5181_v29 = vmul.f32 %v3196_v7, %v3196_v7  ;;  %v10386_v56 = vpop.f32.mrb[228].mxu1  ;;  %11522 = vst [vmem:[#allocation65_spill] sm:$0xff] %v10388_v39 }
 0x2d9   :  { %v5306_v43 = vadd.f32 %v5305_v50, %v5179_v22  ;;  %v2764_v62 = vadd.f32 %v10150_v32, %v9782_v55  ;;  %v1926_v16 = vadd.f32 %v10150_v32, %v11520_v19  ;;  %11521 = vst [vmem:[#allocation12_spill] sm:$0xff] %v10386_v56  ;;  %v10396_v55 = vpop.f32.mrb[229].mxu1  ;;  %v2365_v5 = vmax.f32 %v1931_v34, 0.0  ;;  %v11523_v50 = vld [vmem:[#allocation24_spill] sm:$0xff] }
 0x2da   :  { %3580 = vst [vmem:[%s11296_s6 + $0x608] sm:$0xff] %v2362_v30  ;;  %v4651_v2 = vadd.f32 %v4650_v10, %v2362_v30  ;;  %v4919_v22 = vmul.f32 %v2362_v30, %v2362_v30  ;;  %3708 = vst [vmem:[%s11296_s6 + $0x618] sm:$0xff] %v3195_v49  ;;  %v4784_v51 = vadd.f32 %v4783_v40, %v3195_v49  ;;  %v10400_v10 = vpop.f32.mrb[230].mxu0 }
 0x2db   :  { %v5180_v3 = vmul.f32 %v3195_v49, %v3195_v49  ;;  %v3198_v44 = vmax.f32 %v2764_v62, 0.0  ;;  %v2364_v59 = vmax.f32 %v1926_v16, 0.0  ;;  %v2759_v19 = vadd.f32 %v10150_v32, %v11523_v50  ;;  %11524 = vst [vmem:[#allocation24_spill] sm:$0xff] %v10400_v10  ;;  %3583 = vst [vmem:[%s11296_s6 + $0x668] sm:$0xff] %v2365_v5  ;;  %v10413_v49 = vpop.f32.mrb[231].mxu0  ;;  %v11527_v16 = vld [vmem:[#allocation3_spill] sm:$0xff] }
 0x2dc   :  { %v4652_v39 = vadd.f32 %v4651_v2, %v2363_v42  ;;  %v5046_v56 = vadd.f32 %v5045_v31, %v4919_v22  ;;  %v4785_v60 = vadd.f32 %v4784_v51, %v3196_v7  ;;  %v4922_v30 = vmul.f32 %v2365_v5, %v2365_v5  ;;  %v10411_v7 = vpop.f32.mrb[230].mxu1  ;;  %11526 = vst [vmem:[#allocation67_spill] sm:$0xff] %v10413_v49  ;;  %v11529_v50 = vld [vmem:[#allocation4_spill] sm:$0xff] }
 0x2dd   :  { %v5307_v37 = vadd.f32 %v5306_v43, %v5180_v3  ;;  %3711 = vst [vmem:[%s11296_s6 + $0x678] sm:$0xff] %v3198_v44  ;;  %v5183_v40 = vmul.f32 %v3198_v44, %v3198_v44  ;;  %3582 = vst [vmem:[%s11296_s6 + $0x648] sm:$0xff] %v2364_v59  ;;  %v4921_v42 = vmul.f32 %v2364_v59, %v2364_v59  ;;  %v3197_v31 = vmax.f32 %v2759_v19, 0.0  ;;  %v10417_v22 = vpop.f32.mrb[231].mxu1 }
 0x2de   :  { %11525 = vst [vmem:[#allocation66_spill] sm:$0xff] %v10411_v7  ;;  %v5047_v34 = vadd.f32 %v5046_v56, %v4920_v54  ;;  %v4653_v62 = vadd.f32 %v4652_v39, %v2364_v59  ;;  %v1941_v2 = vadd.f32 %v10150_v32, %v11527_v16  ;;  %11528 = vst [vmem:[#allocation3_spill] sm:$0xff] %v10417_v22  ;;  %v11530_v7 = vld [vmem:[#allocation47_spill] sm:$0xff]  ;;  %v10428_v39 = vpop.f32.mrb[232].mxu0 }
 0x2df   :  { %v5308_v43 = vadd.f32 %v5307_v37, %v5181_v29  ;;  %3710 = vst [vmem:[%s11296_s6 + $0x658] sm:$0xff] %v3197_v31  ;;  %v4786_v51 = vadd.f32 %v4785_v60, %v3197_v31  ;;  %v5182_v3 = vmul.f32 %v3197_v31, %v3197_v31  ;;  %v2774_v19 = vadd.f32 %v10150_v32, %v11529_v50  ;;  %v10430_v60 = vpop.f32.mrb[232].mxu1  ;;  %v10432_v31 = vpop.f32.mrb[233].mxu0 }
 0x2e0   :  { %v1936_v49 = vadd.f32 %v10150_v32, %v11530_v7  ;;  %v4654_v54 = vadd.f32 %v4653_v62, %v2365_v5  ;;  %v5048_v37 = vadd.f32 %v5047_v34, %v4921_v42  ;;  %v2367_v29 = vmax.f32 %v1941_v2, 0.0  ;;  %v10439_v7 = vpop.f32.mrb[233].mxu1  ;;  %v10452_v2 = vpop.f32.mrb[234].mxu0 }
 0x2e1   :  { %v2769_v56 = vadd.f32 %v10150_v32, %v9815_v18  ;;  %v4787_v59 = vadd.f32 %v4786_v51, %v3198_v44  ;;  %v5309_v16 = vadd.f32 %v5308_v43, %v5182_v3  ;;  %v3200_v22 = vmax.f32 %v2774_v19, 0.0  ;;  %11531 = vst [vmem:[#allocation4_spill] sm:$0xff] %v10439_v7  ;;  %v11532_v19 = vld [vmem:[#allocation13_spill] sm:$0xff] }
 0x2e2   :  { %v2366_v10 = vmax.f32 %v1936_v49, 0.0  ;;  %v5049_v50 = vadd.f32 %v5048_v37, %v4922_v30  ;;  %3585 = vst [vmem:[%s11296_s6 + $0x6a8] sm:$0xff] %v2367_v29  ;;  %v4924_v5 = vmul.f32 %v2367_v29, %v2367_v29  ;;  %v1951_v18 = vadd.f32 %v10150_v32, %v9823_v14 }
 0x2e3   :  { %v3199_v42 = vmax.f32 %v2769_v56, 0.0  ;;  %v5310_v44 = vadd.f32 %v5309_v16, %v5183_v40  ;;  %3713 = vst [vmem:[%s11296_s6 + $0x6b8] sm:$0xff] %v3200_v22  ;;  %v5185_v49 = vmul.f32 %v3200_v22, %v3200_v22  ;;  %v2784_v40 = vadd.f32 %v10150_v32, %v9828_v25  ;;  %v11533_v56 = vld [vmem:[#allocation25_spill] sm:$0xff] }
 0x2e4   :  { %3584 = vst [vmem:[%s11296_s6 + $0x688] sm:$0xff] %v2366_v10  ;;  %v4655_v30 = vadd.f32 %v4654_v54, %v2366_v10  ;;  %v4923_v34 = vmul.f32 %v2366_v10, %v2366_v10  ;;  %v2369_v62 = vmax.f32 %v1951_v18, 0.0  ;;  %v1946_v37 = vadd.f32 %v10150_v32, %v11532_v19  ;;  %v10458_v54 = vpop.f32.mrb[234].mxu1 }
 0x2e5   :  { %3712 = vst [vmem:[%s11296_s6 + $0x698] sm:$0xff] %v3199_v42  ;;  %v4788_v43 = vadd.f32 %v4787_v59, %v3199_v42  ;;  %v5184_v14 = vmul.f32 %v3199_v42, %v3199_v42  ;;  %v2779_v10 = vadd.f32 %v10150_v32, %v11533_v56  ;;  %v3202_v25 = vmax.f32 %v2784_v40, 0.0  ;;  %v10463_v42 = vpop.f32.mrb[235].mxu0 }
 0x2e6   :  { %v4656_v51 = vadd.f32 %v4655_v30, %v2367_v29  ;;  %v5050_v3 = vadd.f32 %v5049_v50, %v4923_v34  ;;  %3587 = vst [vmem:[%s11296_s6 + $0x6e8] sm:$0xff] %v2369_v62  ;;  %v4926_v59 = vmul.f32 %v2369_v62, %v2369_v62  ;;  %11534 = vst [vmem:[#allocation47_spill] sm:$0xff] %v10463_v42  ;;  %v10465_v29 = vpop.f32.mrb[235].mxu1  ;;  %v2368_v18 = vmax.f32 %v1946_v37, 0.0 }
 0x2e7   :  { %v4789_v16 = vadd.f32 %v4788_v43, %v3200_v22  ;;  %v5311_v7 = vadd.f32 %v5310_v44, %v5184_v14  ;;  %11535 = vst [vmem:[#allocation13_spill] sm:$0xff] %v10465_v29  ;;  %v3201_v30 = vmax.f32 %v2779_v10, 0.0  ;;  %v1961_v34 = vadd.f32 %v10150_v32, %v9849_v61  ;;  %3715 = vst [vmem:[%s11296_s6 + $0x6f8] sm:$0xff] %v3202_v25  ;;  %v10484_v40 = vpop.f32.mrb[236].mxu1 }
 0x2e8   :  { %v5051_v50 = vadd.f32 %v5050_v3, %v4924_v5  ;;  %v5187_v22 = vmul.f32 %v3202_v25, %v3202_v25  ;;  %v2794_v44 = vadd.f32 %v10150_v32, %v9853_v63  ;;  %v1956_v43 = vadd.f32 %v10150_v32, %v9855_v1  ;;  %3586 = vst [vmem:[%s11296_s6 + $0x6c8] sm:$0xff] %v2368_v18  ;;  %v10490_v42 = vpop.f32.mrb[237].mxu1 }
 0x2e9   :  { %v5312_v19 = vadd.f32 %v5311_v7, %v5185_v49  ;;  %v4657_v5 = vadd.f32 %v4656_v51, %v2368_v18  ;;  %v4925_v14 = vmul.f32 %v2368_v18, %v2368_v18  ;;  %3714 = vst [vmem:[%s11296_s6 + $0x6d8] sm:$0xff] %v3201_v30  ;;  %v4790_v61 = vadd.f32 %v4789_v16, %v3201_v30  ;;  %v10482_v49 = vpop.f32.mrb[236].mxu0 }
 0x2ea   :  { %v5186_v7 = vmul.f32 %v3201_v30, %v3201_v30  ;;  %v2371_v63 = vmax.f32 %v1961_v34, 0.0  ;;  %v3204_v3 = vmax.f32 %v2794_v44, 0.0  ;;  %v2370_v37 = vmax.f32 %v1956_v43, 0.0  ;;  %v10488_v29 = vpop.f32.mrb[237].mxu0  ;;  %11536 = vst [vmem:[#allocation25_spill] sm:$0xff] %v10490_v42 }
 0x2eb   :  { %v2789_v1 = vadd.f32 %v10150_v32, %v9857_v35  ;;  %v4658_v56 = vadd.f32 %v4657_v5, %v2369_v62  ;;  %v5052_v10 = vadd.f32 %v5051_v50, %v4925_v14  ;;  %v4791_v51 = vadd.f32 %v4790_v61, %v3202_v25  ;;  %v11537_v5 = vld [vmem:[#allocation14_spill] sm:$0xff] }
 0x2ec   :  { %v5313_v18 = vadd.f32 %v5312_v19, %v5186_v7  ;;  %3589 = vst [vmem:[%s11296_s6 + $0x728] sm:$0xff] %v2371_v63  ;;  %v4928_v16 = vmul.f32 %v2371_v63, %v2371_v63  ;;  %3717 = vst [vmem:[%s11296_s6 + $0x738] sm:$0xff] %v3204_v3  ;;  %v5189_v30 = vmul.f32 %v3204_v3, %v3204_v3  ;;  %v10510_v7 = vpop.f32.mrb[238].mxu0 }
 0x2ed   :  { %3588 = vst [vmem:[%s11296_s6 + $0x708] sm:$0xff] %v2370_v37  ;;  %v4927_v35 = vmul.f32 %v2370_v37, %v2370_v37  ;;  %v3203_v62 = vmax.f32 %v2789_v1, 0.0  ;;  %v5053_v25 = vadd.f32 %v5052_v10, %v4926_v59  ;;  %v4659_v34 = vadd.f32 %v4658_v56, %v2370_v37  ;;  %11538 = vst [vmem:[#allocation14_spill] sm:$0xff] %v10510_v7  ;;  %v10512_v59 = vpop.f32.mrb[238].mxu1  ;;  %v10516_v56 = vpop.f32.mrb[239].mxu0 }
 0x2ee   :  { %v5314_v50 = vadd.f32 %v5313_v18, %v5187_v22  ;;  %v1971_v19 = vadd.f32 %v10150_v32, %v9870_v57  ;;  %v2804_v14 = vadd.f32 %v10150_v32, %v11537_v5  ;;  %v1966_v61 = vadd.f32 %v10150_v32, %v9881_v15  ;;  %11539 = vst [vmem:[#allocation68_spill] sm:$0xff] %v10512_v59  ;;  %v10518_v10 = vpop.f32.mrb[239].mxu1 }
 0x2ef   :  { %3716 = vst [vmem:[%s11296_s6 + $0x718] sm:$0xff] %v3203_v62  ;;  %v4792_v44 = vadd.f32 %v4791_v51, %v3203_v62  ;;  %v5188_v43 = vmul.f32 %v3203_v62, %v3203_v62  ;;  %v4660_v22 = vadd.f32 %v4659_v34, %v2371_v63  ;;  %v5054_v37 = vadd.f32 %v5053_v25, %v4927_v35  ;;  %v11542_v35 = vld [vmem:[#allocation26_spill] sm:$0xff] }
 0x2f0   :  { %v2373_v1 = vmax.f32 %v1971_v19, 0.0  ;;  %v2799_v57 = vadd.f32 %v10150_v32, %v9885_v20  ;;  %11540 = vst [vmem:[#allocation69_spill] sm:$0xff] %v10516_v56  ;;  %11541 = vst [vmem:[#allocation70_spill] sm:$0xff] %v10518_v10  ;;  %v3206_v62 = vmax.f32 %v2804_v14, 0.0  ;;  %v2372_v5 = vmax.f32 %v1966_v61, 0.0  ;;  %v10536_v14 = vpop.f32.mrb[240].mxu0 }
 0x2f1   :  { %v4793_v51 = vadd.f32 %v4792_v44, %v3204_v3  ;;  %v5315_v18 = vadd.f32 %v5314_v50, %v5188_v43  ;;  %v5055_v42 = vadd.f32 %v5054_v37, %v4928_v16  ;;  %v1981_v25 = vadd.f32 %v10150_v32, %v11542_v35  ;;  %v11543_v43 = vld [vmem:[#allocation48_spill] sm:$0xff]  ;;  %11544 = vst [vmem:[#allocation26_spill] sm:$0xff] %v10536_v14  ;;  %v10538_v61 = vpop.f32.mrb[240].mxu1 }
 0x2f2   :  { %3591 = vst [vmem:[%s11296_s6 + $0x768] sm:$0xff] %v2373_v1  ;;  %v4930_v15 = vmul.f32 %v2373_v1, %v2373_v1  ;;  %v3205_v63 = vmax.f32 %v2799_v57, 0.0  ;;  %3719 = vst [vmem:[%s11296_s6 + $0x778] sm:$0xff] %v3206_v62  ;;  %v5191_v20 = vmul.f32 %v3206_v62, %v3206_v62  ;;  %v4661_v3 = vadd.f32 %v4660_v22, %v2372_v5 }
 0x2f3   :  { %v5316_v34 = vadd.f32 %v5315_v18, %v5189_v30  ;;  %3590 = vst [vmem:[%s11296_s6 + $0x748] sm:$0xff] %v2372_v5  ;;  %v4929_v16 = vmul.f32 %v2372_v5, %v2372_v5  ;;  %v2375_v44 = vmax.f32 %v1981_v25, 0.0  ;;  %v2814_v30 = vadd.f32 %v10150_v32, %v11543_v43  ;;  %11545 = vst [vmem:[#allocation48_spill] sm:$0xff] %v10538_v61  ;;  %v11546_v18 = vld [vmem:[#allocation49_spill] sm:$0xff]  ;;  %v10547_v25 = vpop.f32.mrb[241].mxu0  ;;  %v10549_v43 = vpop.f32.mrb[241].mxu1 }
 0x2f4   :  { %3718 = vst [vmem:[%s11296_s6 + $0x758] sm:$0xff] %v3205_v63  ;;  %v4794_v50 = vadd.f32 %v4793_v51, %v3205_v63  ;;  %v5190_v19 = vmul.f32 %v3205_v63, %v3205_v63  ;;  %v4662_v37 = vadd.f32 %v4661_v3, %v2373_v1  ;;  %v1976_v22 = vadd.f32 %v10150_v32, %v11546_v18  ;;  %v11547_v5 = vld [vmem:[#allocation5_spill] sm:$0xff] }
 0x2f5   :  { %v5056_v57 = vadd.f32 %v5055_v42, %v4929_v16  ;;  %v2809_v35 = vadd.f32 %v10150_v32, %v11547_v5  ;;  %3593 = vst [vmem:[%s11296_s6 + $0x7a8] sm:$0xff] %v2375_v44  ;;  %v4932_v51 = vmul.f32 %v2375_v44, %v2375_v44  ;;  %v3208_v63 = vmax.f32 %v2814_v30, 0.0  ;;  %11548 = vst [vmem:[#allocation49_spill] sm:$0xff] %v10547_v25  ;;  %v11550_v16 = vld [vmem:[#allocation15_spill] sm:$0xff]  ;;  %v10568_v5 = vpop.f32.mrb[242].mxu1 }
 0x2f6   :  { %v4795_v10 = vadd.f32 %v4794_v50, %v3206_v62  ;;  %v5317_v56 = vadd.f32 %v5316_v34, %v5190_v19  ;;  %11549 = vst [vmem:[#allocation5_spill] sm:$0xff] %v10549_v43  ;;  %v2374_v42 = vmax.f32 %v1976_v22, 0.0  ;;  %v1991_v18 = vadd.f32 %v10150_v32, %v11550_v16  ;;  %v11551_v34 = vld [vmem:[#allocation27_spill] sm:$0xff]  ;;  %v11552_v19 = vld [vmem:[#allocation50_spill] sm:$0xff]  ;;  %v10566_v22 = vpop.f32.mrb[242].mxu0  ;;  %11553 = vst [vmem:[#allocation15_spill] sm:$0xff] %v10568_v5 }
 0x2f7   :  { %v5057_v1 = vadd.f32 %v5056_v57, %v4930_v15  ;;  %v3207_v3 = vmax.f32 %v2809_v35, 0.0  ;;  %3721 = vst [vmem:[%s11296_s6 + $0x7b8] sm:$0xff] %v3208_v63  ;;  %v5193_v62 = vmul.f32 %v3208_v63, %v3208_v63  ;;  %v2824_v50 = vadd.f32 %v10150_v32, %v11551_v34  ;;  %v10572_v59 = vpop.f32.mrb[243].mxu0  ;;  %v10574_v7 = vpop.f32.mrb[243].mxu1 }
 0x2f8   :  { %v5318_v61 = vadd.f32 %v5317_v56, %v5191_v20  ;;  %v1986_v30 = vadd.f32 %v10150_v32, %v11552_v19  ;;  %3592 = vst [vmem:[%s11296_s6 + $0x788] sm:$0xff] %v2374_v42  ;;  %v4663_v15 = vadd.f32 %v4662_v37, %v2374_v42  ;;  %v4931_v57 = vmul.f32 %v2374_v42, %v2374_v42  ;;  %v11554_v19 = vld [vmem:[#allocation16_spill] sm:$0xff] }
 0x2f9   :  { %3720 = vst [vmem:[%s11296_s6 + $0x798] sm:$0xff] %v3207_v3  ;;  %v4796_v56 = vadd.f32 %v4795_v10, %v3207_v3  ;;  %v5192_v20 = vmul.f32 %v3207_v3, %v3207_v3  ;;  %v2377_v35 = vmax.f32 %v1991_v18, 0.0  ;;  %v3210_v16 = vmax.f32 %v2824_v50, 0.0  ;;  %11555 = vst [vmem:[#allocation27_spill] sm:$0xff] %v10572_v59 }
 0x2fa   :  { %v2376_v34 = vmax.f32 %v1986_v30, 0.0  ;;  %v2819_v43 = vadd.f32 %v10150_v32, %v11554_v19  ;;  %v4664_v25 = vadd.f32 %v4663_v15, %v2375_v44  ;;  %v5058_v14 = vadd.f32 %v5057_v1, %v4931_v57  ;;  %11556 = vst [vmem:[#allocation50_spill] sm:$0xff] %v10574_v7  ;;  %v11557_v57 = vld [vmem:[#allocation28_spill] sm:$0xff]  ;;  %v10594_v7 = vpop.f32.mrb[244].mxu0 }
 0x2fb   :  { %v4797_v37 = vadd.f32 %v4796_v56, %v3208_v63  ;;  %v5319_v42 = vadd.f32 %v5318_v61, %v5192_v20  ;;  %3595 = vst [vmem:[%s11296_s6 + $0x7e8] sm:$0xff] %v2377_v35  ;;  %v4934_v10 = vmul.f32 %v2377_v35, %v2377_v35  ;;  %3723 = vst [vmem:[%s11296_s6 + $0x7f8] sm:$0xff] %v3210_v16  ;;  %v11558_v20 = vld [vmem:[#allocation51_spill] sm:$0xff] }
 0x2fc   :  { %v5195_v3 = vmul.f32 %v3210_v16, %v3210_v16  ;;  %3594 = vst [vmem:[%s11296_s6 + $0x7c8] sm:$0xff] %v2376_v34  ;;  %v4933_v44 = vmul.f32 %v2376_v34, %v2376_v34  ;;  %v3209_v61 = vmax.f32 %v2819_v43, 0.0  ;;  %v5059_v63 = vadd.f32 %v5058_v14, %v4932_v51  ;;  %v10596_v14 = vpop.f32.mrb[244].mxu1 }
 0x2fd   :  { %v5320_v1 = vadd.f32 %v5319_v42, %v5193_v62  ;;  %v4665_v18 = vadd.f32 %v4664_v25, %v2376_v34  ;;  %v2001_v50 = vadd.f32 %v10150_v32, %v9943_v26  ;;  %v2834_v56 = vadd.f32 %v10150_v32, %v11557_v57  ;;  %v11559_v26 = vld [vmem:[#allocation52_spill] sm:$0xff]  ;;  %v10600_v34 = vpop.f32.mrb[245].mxu0 }
 0x2fe   :  { %3722 = vst [vmem:[%s11296_s6 + $0x7d8] sm:$0xff] %v3209_v61  ;;  %v4798_v30 = vadd.f32 %v4797_v37, %v3209_v61  ;;  %v5194_v15 = vmul.f32 %v3209_v61, %v3209_v61  ;;  %v1996_v19 = vadd.f32 %v10150_v32, %v11558_v20  ;;  %v5060_v25 = vadd.f32 %v5059_v63, %v4933_v44  ;;  %v10602_v37 = vpop.f32.mrb[245].mxu1 }
 0x2ff   :  { %v4666_v51 = vadd.f32 %v4665_v18, %v2377_v35  ;;  %v2379_v43 = vmax.f32 %v2001_v50, 0.0  ;;  %v2829_v62 = vadd.f32 %v10150_v32, %v11559_v26  ;;  %v3212_v57 = vmax.f32 %v2834_v56, 0.0 }
 0x300   :  { %v4799_v42 = vadd.f32 %v4798_v30, %v3210_v16  ;;  %v5321_v61 = vadd.f32 %v5320_v1, %v5194_v15  ;;  %v2378_v59 = vmax.f32 %v1996_v19, 0.0  ;;  %v5061_v5 = vadd.f32 %v5060_v25, %v4934_v10  ;;  %v10622_v15 = vpop.f32.mrb[246].mxu1 }
 0x301   :  { %3597 = vst [vmem:[%s11296_s6 + $0x828] sm:$0xff] %v2379_v43  ;;  %v4936_v20 = vmul.f32 %v2379_v43, %v2379_v43  ;;  %v3211_v35 = vmax.f32 %v2829_v62, 0.0  ;;  %v2011_v44 = vadd.f32 %v10150_v32, %v9969_v9  ;;  %3725 = vst [vmem:[%s11296_s6 + $0x838] sm:$0xff] %v3212_v57  ;;  %v5197_v18 = vmul.f32 %v3212_v57, %v3212_v57 }
 0x302   :  { %v5322_v63 = vadd.f32 %v5321_v61, %v5195_v3  ;;  %3596 = vst [vmem:[%s11296_s6 + $0x808] sm:$0xff] %v2378_v59  ;;  %v4667_v16 = vadd.f32 %v4666_v51, %v2378_v59  ;;  %v4935_v10 = vmul.f32 %v2378_v59, %v2378_v59  ;;  %v2844_v9 = vadd.f32 %v10150_v32, %v9973_v23  ;;  %v10620_v3 = vpop.f32.mrb[246].mxu0  ;;  %v10633_v61 = vpop.f32.mrb[247].mxu1 }
 0x303   :  { %3724 = vst [vmem:[%s11296_s6 + $0x818] sm:$0xff] %v3211_v35  ;;  %v4800_v1 = vadd.f32 %v4799_v42, %v3211_v35  ;;  %v5196_v50 = vmul.f32 %v3211_v35, %v3211_v35  ;;  %v2381_v30 = vmax.f32 %v2011_v44, 0.0  ;;  %v2006_v51 = vadd.f32 %v10150_v32, %v9975_v58  ;;  %v10631_v42 = vpop.f32.mrb[247].mxu0  ;;  %11561 = vst [vmem:[#allocation28_spill] sm:$0xff] %v10633_v61 }
 0x304   :  { %v4668_v56 = vadd.f32 %v4667_v16, %v2379_v43  ;;  %v5062_v19 = vadd.f32 %v5061_v5, %v4935_v10  ;;  %v2839_v59 = vadd.f32 %v10150_v32, %v9977_v53  ;;  %v3214_v23 = vmax.f32 %v2844_v9, 0.0  ;;  %11560 = vst [vmem:[#allocation16_spill] sm:$0xff] %v10631_v42  ;;  %v11563_v16 = vld [vmem:[#allocation18_spill] sm:$0xff]  ;;  %v10652_v9 = vpop.f32.mrb[248].mxu1 }
 0x305   :  { %v4801_v25 = vadd.f32 %v4800_v1, %v3212_v57  ;;  %v5323_v26 = vadd.f32 %v5322_v63, %v5196_v50  ;;  %3599 = vst [vmem:[%s11296_s6 + $0x868] sm:$0xff] %v2381_v30  ;;  %v4938_v62 = vmul.f32 %v2381_v30, %v2381_v30  ;;  %v2380_v5 = vmax.f32 %v2006_v51, 0.0  ;;  %v11562_v57 = vld [vmem:[#allocation17_spill] sm:$0xff]  ;;  %v10650_v50 = vpop.f32.mrb[248].mxu0  ;;  %v10658_v42 = vpop.f32.mrb[249].mxu1 }
 0x306   :  { %v5063_v43 = vadd.f32 %v5062_v19, %v4936_v20  ;;  %v3213_v35 = vmax.f32 %v2839_v59, 0.0  ;;  %v2021_v58 = vadd.f32 %v10150_v32, %v9990_v38  ;;  %3727 = vst [vmem:[%s11296_s6 + $0x878] sm:$0xff] %v3214_v23  ;;  %v5199_v53 = vmul.f32 %v3214_v23, %v3214_v23  ;;  %v10656_v61 = vpop.f32.mrb[249].mxu0  ;;  %11564 = vst [vmem:[#allocation51_spill] sm:$0xff] %v10658_v42 }
 0x307   :  { %v5324_v44 = vadd.f32 %v5323_v26, %v5197_v18  ;;  %v2854_v63 = vadd.f32 %v10150_v32, %v11562_v57  ;;  %v2016_v10 = vadd.f32 %v10150_v32, %v11563_v16  ;;  %3598 = vst [vmem:[%s11296_s6 + $0x848] sm:$0xff] %v2380_v5  ;;  %v4669_v20 = vadd.f32 %v4668_v56, %v2380_v5 }
 0x308   :  { %v4937_v1 = vmul.f32 %v2380_v5, %v2380_v5  ;;  %3726 = vst [vmem:[%s11296_s6 + $0x858] sm:$0xff] %v3213_v35  ;;  %v4802_v38 = vadd.f32 %v4801_v25, %v3213_v35  ;;  %v5198_v18 = vmul.f32 %v3213_v35, %v3213_v35  ;;  %v2383_v19 = vmax.f32 %v2021_v58, 0.0 }
 0x309   :  { %v3216_v51 = vmax.f32 %v2854_v63, 0.0  ;;  %v2382_v59 = vmax.f32 %v2016_v10, 0.0  ;;  %v2849_v26 = vadd.f32 %v10150_v32, %v10005_v17  ;;  %v4670_v56 = vadd.f32 %v4669_v20, %v2381_v30  ;;  %v10677_v20 = vld [vmem:[%s11298_s5] ss:$0 sm:$0xff] }
 0x30a   :  { %v5064_v57 = vadd.f32 %v5063_v43, %v4937_v1  ;;  %v5325_v16 = vadd.f32 %v5324_v44, %v5198_v18  ;;  %v4803_v5 = vadd.f32 %v4802_v38, %v3214_v23  ;;  %3601 = vst [vmem:[%s11296_s6 + $0x8a8] sm:$0xff] %v2383_v19  ;;  %v4940_v25 = vmul.f32 %v2383_v19, %v2383_v19  ;;  %v11565_v1 = vld [vmem:[#allocation19_spill] sm:$0xff]  ;;  %v11566_v18 = vld [vmem:[#allocation6_spill] sm:$0xff] }
 0x30b   :  { %3729 = vst [vmem:[%s11296_s6 + $0x8b8] sm:$0xff] %v3216_v51  ;;  %v5201_v35 = vmul.f32 %v3216_v51, %v3216_v51  ;;  %3600 = vst [vmem:[%s11296_s6 + $0x888] sm:$0xff] %v2382_v59  ;;  %v4939_v17 = vmul.f32 %v2382_v59, %v2382_v59  ;;  %v3215_v30 = vmax.f32 %v2849_v26, 0.0  ;;  %v4671_v23 = vadd.f32 %v4670_v56, %v2382_v59 }
 0x30c   :  { %v5065_v43 = vadd.f32 %v5064_v57, %v4938_v62  ;;  %v5326_v58 = vadd.f32 %v5325_v16, %v5199_v53  ;;  %v2031_v44 = vadd.f32 %v10150_v32, %v10012_v27  ;;  %v2864_v38 = vadd.f32 %v10677_v20, %v11565_v1  ;;  %v10683_v53 = vpop.f32.mrb[250].mxu0  ;;  %v10685_v27 = vpop.f32.mrb[250].mxu1 }
 0x30d   :  { %3728 = vst [vmem:[%s11296_s6 + $0x898] sm:$0xff] %v3215_v30  ;;  %v4804_v63 = vadd.f32 %v4803_v5, %v3215_v30  ;;  %v5200_v10 = vmul.f32 %v3215_v30, %v3215_v30  ;;  %v2026_v62 = vadd.f32 %v10677_v20, %v11566_v18  ;;  %11567 = vst [vmem:[#allocation52_spill] sm:$0xff] %v10685_v27  ;;  %v10689_v16 = vpop.f32.mrb[251].mxu0  ;;  %v10691_v56 = vpop.f32.mrb[251].mxu1 }
 0x30e   :  { %v5066_v32 = vadd.f32 %v5065_v43, %v4939_v17  ;;  %v2385_v59 = vmax.f32 %v2031_v44, 0.0  ;;  %v4672_v26 = vadd.f32 %v4671_v23, %v2383_v19  ;;  %v2859_v57 = vadd.f32 %v10677_v20, %v10031_v36  ;;  %11568 = vst [vmem:[#allocation17_spill] sm:$0xff] %v10689_v16  ;;  %11569 = vst [vmem:[#allocation18_spill] sm:$0xff] %v10691_v56 }
 0x30f   :  { %v5327_v5 = vadd.f32 %v5326_v58, %v5200_v10  ;;  %v3218_v30 = vmax.f32 %v2864_v38, 0.0  ;;  %v2384_v1 = vmax.f32 %v2026_v62, 0.0  ;;  %v4805_v42 = vadd.f32 %v4804_v63, %v3216_v51  ;;  %v10709_v63 = vpop.f32.mrb[252].mxu0  ;;  %v10711_v10 = vpop.f32.mrb[252].mxu1  ;;  %v11572_v62 = vld [vmem:[#allocation53_spill] sm:$0xff] }
 0x310   :  { %3603 = vst [vmem:[%s11296_s6 + $0x8e8] sm:$0xff] %v2385_v59  ;;  %v4942_v18 = vmul.f32 %v2385_v59, %v2385_v59  ;;  %v5067_v27 = vadd.f32 %v5066_v32, %v4940_v25  ;;  %v3217_v17 = vmax.f32 %v2859_v57, 0.0  ;;  %v2041_v19 = vadd.f32 %v10677_v20, %v10035_v47  ;;  %11570 = vst [vmem:[#allocation19_spill] sm:$0xff] %v10709_v63 }
 0x311   :  { %3731 = vst [vmem:[%s11296_s6 + $0x8f8] sm:$0xff] %v3218_v30  ;;  %v5203_v36 = vmul.f32 %v3218_v30, %v3218_v30  ;;  %3602 = vst [vmem:[%s11296_s6 + $0x8c8] sm:$0xff] %v2384_v1  ;;  %v4673_v51 = vadd.f32 %v4672_v26, %v2384_v1  ;;  %v4941_v23 = vmul.f32 %v2384_v1, %v2384_v1 }
 0x312   :  { %v5328_v43 = vadd.f32 %v5327_v5, %v5201_v35  ;;  %3730 = vst [vmem:[%s11296_s6 + $0x8d8] sm:$0xff] %v3217_v17  ;;  %v4806_v25 = vadd.f32 %v4805_v42, %v3217_v17  ;;  %v5202_v58 = vmul.f32 %v3217_v17, %v3217_v17  ;;  %v2387_v44 = vmax.f32 %v2041_v19, 0.0  ;;  %11571 = vst [vmem:[#allocation6_spill] sm:$0xff] %v10711_v10  ;;  %v11573_v35 = vld [vmem:[#allocation54_spill] sm:$0xff]  ;;  %v10720_v17 = vpop.f32.mrb[253].mxu0  ;;  %v10722_v19 = vpop.f32.mrb[253].mxu1 }
 0x313   :  { %v2874_v47 = vadd.f32 %v10677_v20, %v10046_v41  ;;  %v5068_v38 = vadd.f32 %v5067_v27, %v4941_v23  ;;  %v2036_v32 = vadd.f32 %v10677_v20, %v11572_v62  ;;  %v4674_v26 = vadd.f32 %v4673_v51, %v2385_v59  ;;  %11574 = vst [vmem:[#allocation53_spill] sm:$0xff] %v10720_v17  ;;  %v11576_v62 = vld [vmem:[#allocation29_spill] sm:$0xff] }
 0x314   :  { %v2869_v57 = vadd.f32 %v10677_v20, %v11573_v35  ;;  %v5329_v5 = vadd.f32 %v5328_v43, %v5202_v58  ;;  %3605 = vst [vmem:[%s11296_s6 + $0x928] sm:$0xff] %v2387_v44  ;;  %v4944_v42 = vmul.f32 %v2387_v44, %v2387_v44  ;;  %v4807_v41 = vadd.f32 %v4806_v25, %v3218_v30  ;;  %v11577_v58 = vld [vmem:[#allocation55_spill] sm:$0xff]  ;;  %v11578_v30 = vld [vmem:[#allocation56_spill] sm:$0xff] }
 0x315   :  { %v3220_v1 = vmax.f32 %v2874_v47, 0.0  ;;  %11575 = vst [vmem:[#allocation54_spill] sm:$0xff] %v10722_v19  ;;  %v2386_v27 = vmax.f32 %v2036_v32, 0.0  ;;  %v5069_v23 = vadd.f32 %v5068_v38, %v4942_v18  ;;  %v2051_v59 = vadd.f32 %v10677_v20, %v11576_v62 }
 0x316   :  { %v3219_v10 = vmax.f32 %v2869_v57, 0.0  ;;  %v5330_v43 = vadd.f32 %v5329_v5, %v5203_v36  ;;  %v2884_v47 = vadd.f32 %v10677_v20, %v11577_v58  ;;  %v2046_v25 = vadd.f32 %v10677_v20, %v11578_v30  ;;  %v10739_v57 = vpop.f32.mrb[254].mxu0  ;;  %v10741_v36 = vpop.f32.mrb[254].mxu1  ;;  %v11580_v30 = vld [vmem:[#allocation7_spill] sm:$0xff] }
 0x317   :  { %3733 = vst [vmem:[%s11296_s6 + $0x938] sm:$0xff] %v3220_v1  ;;  %v5205_v51 = vmul.f32 %v3220_v1, %v3220_v1  ;;  %3604 = vst [vmem:[%s11296_s6 + $0x908] sm:$0xff] %v2386_v27  ;;  %v4675_v18 = vadd.f32 %v4674_v26, %v2386_v27  ;;  %v4943_v38 = vmul.f32 %v2386_v27, %v2386_v27  ;;  %v2389_v5 = vmax.f32 %v2051_v59, 0.0  ;;  %v10745_v56 = vpop.f32.mrb[255].mxu0  ;;  %v10747_v16 = vpop.f32.mrb[255].mxu1 }
 0x318   :  { %3732 = vst [vmem:[%s11296_s6 + $0x918] sm:$0xff] %v3219_v10  ;;  %v4808_v32 = vadd.f32 %v4807_v41, %v3219_v10  ;;  %v5204_v35 = vmul.f32 %v3219_v10, %v3219_v10  ;;  %11579 = vst [vmem:[#allocation29_spill] sm:$0xff] %v10741_v36  ;;  %v3222_v62 = vmax.f32 %v2884_v47, 0.0  ;;  %v2388_v58 = vmax.f32 %v2046_v25, 0.0  ;;  %v11583_v47 = vld [vmem:[#allocation8_spill] sm:$0xff] }
 0x319   :  { %v2879_v19 = vadd.f32 %v10677_v20, %v11580_v30  ;;  %v5070_v17 = vadd.f32 %v5069_v23, %v4943_v38  ;;  %v4676_v26 = vadd.f32 %v4675_v18, %v2387_v44  ;;  %11581 = vst [vmem:[#allocation55_spill] sm:$0xff] %v10745_v56  ;;  %11582 = vst [vmem:[#allocation56_spill] sm:$0xff] %v10747_v16  ;;  %v11585_v30 = vld [vmem:[#allocation31_spill] sm:$0xff]  ;;  %v11587_v36 = vld [vmem:[#allocation32_spill] sm:$0xff] }
 0x31a   :  { %v5331_v63 = vadd.f32 %v5330_v43, %v5204_v35  ;;  %v4809_v27 = vadd.f32 %v4808_v32, %v3220_v1  ;;  %3607 = vst [vmem:[%s11296_s6 + $0x968] sm:$0xff] %v2389_v5  ;;  %v4946_v10 = vmul.f32 %v2389_v5, %v2389_v5  ;;  %3735 = vst [vmem:[%s11296_s6 + $0x978] sm:$0xff] %v3222_v62  ;;  %v11584_v32 = vld [vmem:[#allocation30_spill] sm:$0xff] }
 0x31b   :  { %v5207_v41 = vmul.f32 %v3222_v62, %v3222_v62  ;;  %3606 = vst [vmem:[%s11296_s6 + $0x948] sm:$0xff] %v2388_v58  ;;  %v4945_v44 = vmul.f32 %v2388_v58, %v2388_v58  ;;  %v3221_v1 = vmax.f32 %v2879_v19, 0.0  ;;  %v4677_v23 = vadd.f32 %v4676_v26, %v2388_v58 }
 0x31c   :  { %v5071_v59 = vadd.f32 %v5070_v17, %v4944_v42  ;;  %v5332_v43 = vadd.f32 %v5331_v63, %v5205_v51  ;;  %v2061_v25 = vadd.f32 %v10677_v20, %v11583_v47  ;;  %v2894_v35 = vadd.f32 %v10677_v20, %v11584_v32  ;;  %v11586_v42 = vld [vmem:[#allocation57_spill] sm:$0xff] }
 0x31d   :  { %3734 = vst [vmem:[%s11296_s6 + $0x958] sm:$0xff] %v3221_v1  ;;  %v4810_v18 = vadd.f32 %v4809_v27, %v3221_v1  ;;  %v5206_v38 = vmul.f32 %v3221_v1, %v3221_v1  ;;  %v2056_v16 = vadd.f32 %v10677_v20, %v11585_v30  ;;  %v4678_v58 = vadd.f32 %v4677_v23, %v2389_v5 }
 0x31e   :  { %v5072_v56 = vadd.f32 %v5071_v59, %v4945_v44  ;;  %v2391_v19 = vmax.f32 %v2061_v25, 0.0  ;;  %v2889_v63 = vadd.f32 %v10677_v20, %v11586_v42  ;;  %v3224_v51 = vmax.f32 %v2894_v35, 0.0 }
 0x31f   :  { %v5333_v17 = vadd.f32 %v5332_v43, %v5206_v38  ;;  %v2390_v26 = vmax.f32 %v2056_v16, 0.0  ;;  %v4811_v47 = vadd.f32 %v4810_v18, %v3222_v62  ;;  %v2071_v30 = vadd.f32 %v10677_v20, %v11587_v36  ;;  %v11588_v18 = vld [vmem:[#allocation33_spill] sm:$0xff] }
 0x320   :  { %3609 = vst [vmem:[%s11296_s6 + $0x9a8] sm:$0xff] %v2391_v19  ;;  %v4948_v27 = vmul.f32 %v2391_v19, %v2391_v19  ;;  %v5073_v1 = vadd.f32 %v5072_v56, %v4946_v10  ;;  %v3223_v32 = vmax.f32 %v2889_v63, 0.0  ;;  %3737 = vst [vmem:[%s11296_s6 + $0x9b8] sm:$0xff] %v3224_v51  ;;  %v5209_v5 = vmul.f32 %v3224_v51, %v3224_v51 }
 0x321   :  { %3608 = vst [vmem:[%s11296_s6 + $0x988] sm:$0xff] %v2390_v26  ;;  %v4679_v16 = vadd.f32 %v4678_v58, %v2390_v26  ;;  %v4947_v62 = vmul.f32 %v2390_v26, %v2390_v26  ;;  %v5334_v44 = vadd.f32 %v5333_v17, %v5207_v41  ;;  %v2393_v23 = vmax.f32 %v2071_v30, 0.0  ;;  %v11591_v30 = vld [vmem:[#allocation36_spill] sm:$0xff] }
 0x322   :  { %3736 = vst [vmem:[%s11296_s6 + $0x998] sm:$0xff] %v3223_v32  ;;  %v4812_v56 = vadd.f32 %v4811_v47, %v3223_v32  ;;  %v5208_v10 = vmul.f32 %v3223_v32, %v3223_v32  ;;  %v2904_v36 = vadd.f32 %v10677_v20, %v10119_v48  ;;  %v2066_v43 = vadd.f32 %v10677_v20, %v10121_v11  ;;  %v11589_v48 = vld [vmem:[#allocation34_spill] sm:$0xff] }
 0x323   :  { %v5074_v59 = vadd.f32 %v5073_v1, %v4947_v62  ;;  %v4680_v25 = vadd.f32 %v4679_v16, %v2391_v19  ;;  %v2899_v38 = vadd.f32 %v10677_v20, %v11588_v18  ;;  %3611 = vst [vmem:[%s11296_s6 + $0x9e8] sm:$0xff] %v2393_v23  ;;  %v4950_v41 = vmul.f32 %v2393_v23, %v2393_v23  ;;  %v11590_v1 = vld [vmem:[#allocation35_spill] sm:$0xff] }
 0x324   :  { %v5335_v35 = vadd.f32 %v5334_v44, %v5208_v10  ;;  %v3226_v58 = vmax.f32 %v2904_v36, 0.0  ;;  %v4813_v42 = vadd.f32 %v4812_v56, %v3224_v51  ;;  %v2392_v63 = vmax.f32 %v2066_v43, 0.0  ;;  %v11592_v36 = vld [vmem:[#allocation37_spill] sm:$0xff] }
 0x325   :  { %v5075_v17 = vadd.f32 %v5074_v59, %v4948_v27  ;;  %v3225_v26 = vmax.f32 %v2899_v38, 0.0  ;;  %v2081_v47 = vadd.f32 %v10677_v20, %v11589_v48  ;;  %v2914_v32 = vadd.f32 %v10677_v20, %v11590_v1 }
 0x326   :  { %3739 = vst [vmem:[%s11296_s6 + $0x9f8] sm:$0xff] %v3226_v58  ;;  %v5211_v11 = vmul.f32 %v3226_v58, %v3226_v58  ;;  %v5336_v19 = vadd.f32 %v5335_v35, %v5209_v5  ;;  %v2076_v16 = vadd.f32 %v10677_v20, %v11591_v30  ;;  %3610 = vst [vmem:[%s11296_s6 + $0x9c8] sm:$0xff] %v2392_v63 }
 0x327   :  { %v4681_v51 = vadd.f32 %v4680_v25, %v2392_v63  ;;  %v4949_v27 = vmul.f32 %v2392_v63, %v2392_v63  ;;  %3738 = vst [vmem:[%s11296_s6 + $0x9d8] sm:$0xff] %v3225_v26  ;;  %v4814_v62 = vadd.f32 %v4813_v42, %v3225_v26  ;;  %v5210_v44 = vmul.f32 %v3225_v26, %v3225_v26 }
 0x328   :  { %v2395_v56 = vmax.f32 %v2081_v47, 0.0  ;;  %v3228_v5 = vmax.f32 %v2914_v32, 0.0  ;;  %v2394_v10 = vmax.f32 %v2076_v16, 0.0  ;;  %v2909_v59 = vadd.f32 %v10677_v20, %v11592_v36  ;;  %v11593_v32 = vld [vmem:[#allocation38_spill] sm:$0xff] }
 0x329   :  { %v5076_v43 = vadd.f32 %v5075_v17, %v4949_v27  ;;  %v5337_v18 = vadd.f32 %v5336_v19, %v5210_v44  ;;  %v4682_v38 = vadd.f32 %v4681_v51, %v2393_v23  ;;  %v4815_v35 = vadd.f32 %v4814_v62, %v3226_v58 }
 0x32a   :  { %3613 = vst [vmem:[%s11296_s6 + $0xa28] sm:$0xff] %v2395_v56  ;;  %v4952_v25 = vmul.f32 %v2395_v56, %v2395_v56  ;;  %3741 = vst [vmem:[%s11296_s6 + $0xa38] sm:$0xff] %v3228_v5  ;;  %v5213_v42 = vmul.f32 %v3228_v5, %v3228_v5  ;;  %v4951_v63 = vmul.f32 %v2394_v10, %v2394_v10  ;;  %v3227_v26 = vmax.f32 %v2909_v59, 0.0 }
 0x32b   :  { %3612 = vst [vmem:[%s11296_s6 + $0xa08] sm:$0xff] %v2394_v10  ;;  %v4683_v17 = vadd.f32 %v4682_v38, %v2394_v10  ;;  %v5077_v48 = vadd.f32 %v5076_v43, %v4950_v41  ;;  %v5338_v23 = vadd.f32 %v5337_v18, %v5211_v11  ;;  %v2091_v58 = vadd.f32 %v10677_v20, %v10160_v6  ;;  %v11594_v41 = vld [vmem:[#allocation58_spill] sm:$0xff] }
 0x32c   :  { %3740 = vst [vmem:[%s11296_s6 + $0xa18] sm:$0xff] %v3227_v26  ;;  %v4816_v47 = vadd.f32 %v4815_v35, %v3227_v26  ;;  %v5212_v19 = vmul.f32 %v3227_v26, %v3227_v26  ;;  %v2924_v1 = vadd.f32 %v10677_v20, %v10167_v52  ;;  %v2086_v30 = vadd.f32 %v10677_v20, %v11593_v32 }
 0x32d   :  { %v5078_v16 = vadd.f32 %v5077_v48, %v4951_v63  ;;  %v2397_v51 = vmax.f32 %v2091_v58, 0.0  ;;  %v4684_v27 = vadd.f32 %v4683_v17, %v2395_v56  ;;  %v2919_v11 = vadd.f32 %v10677_v20, %v11594_v41  ;;  %v11596_v48 = vld [vmem:[#allocation40_spill] sm:$0xff] }
 0x32e   :  { %v5339_v62 = vadd.f32 %v5338_v23, %v5212_v19  ;;  %v3230_v6 = vmax.f32 %v2924_v1, 0.0  ;;  %v2396_v44 = vmax.f32 %v2086_v30, 0.0  ;;  %v4817_v10 = vadd.f32 %v4816_v47, %v3228_v5  ;;  %v11597_v47 = vld [vmem:[#allocation41_spill] sm:$0xff] }
 0x32f   :  { %3615 = vst [vmem:[%s11296_s6 + $0xa68] sm:$0xff] %v2397_v51  ;;  %v4954_v36 = vmul.f32 %v2397_v51, %v2397_v51  ;;  %v5079_v59 = vadd.f32 %v5078_v16, %v4952_v25  ;;  %v3229_v52 = vmax.f32 %v2919_v11, 0.0  ;;  %v2101_v43 = vadd.f32 %v10677_v20, %v10188_v28  ;;  %v11595_v28 = vld [vmem:[#allocation39_spill] sm:$0xff] }
 0x330   :  { %3743 = vst [vmem:[%s11296_s6 + $0xa78] sm:$0xff] %v3230_v6  ;;  %v5215_v56 = vmul.f32 %v3230_v6, %v3230_v6  ;;  %3614 = vst [vmem:[%s11296_s6 + $0xa48] sm:$0xff] %v2396_v44  ;;  %v4685_v5 = vadd.f32 %v4684_v27, %v2396_v44  ;;  %v4953_v18 = vmul.f32 %v2396_v44, %v2396_v44 }
 0x331   :  { %v5340_v38 = vadd.f32 %v5339_v62, %v5213_v42  ;;  %3742 = vst [vmem:[%s11296_s6 + $0xa58] sm:$0xff] %v3229_v52  ;;  %v4818_v35 = vadd.f32 %v4817_v10, %v3229_v52  ;;  %v5214_v25 = vmul.f32 %v3229_v52, %v3229_v52  ;;  %v2399_v63 = vmax.f32 %v2101_v43, 0.0 }
 0x332   :  { %v2934_v26 = vadd.f32 %v10677_v20, %v11595_v28  ;;  %v5080_v17 = vadd.f32 %v5079_v59, %v4953_v18  ;;  %v2096_v23 = vadd.f32 %v10677_v20, %v11596_v48  ;;  %v4686_v58 = vadd.f32 %v4685_v5, %v2397_v51  ;;  %v11598_v5 = vld [vmem:[#allocation59_spill] sm:$0xff] }
 0x333   :  { %v2929_v19 = vadd.f32 %v10677_v20, %v11597_v47  ;;  %v5341_v1 = vadd.f32 %v5340_v38, %v5214_v25  ;;  %3617 = vst [vmem:[%s11296_s6 + $0xaa8] sm:$0xff] %v2399_v63  ;;  %v4956_v42 = vmul.f32 %v2399_v63, %v2399_v63  ;;  %v4819_v30 = vadd.f32 %v4818_v35, %v3230_v6 }
 0x334   :  { %v3232_v32 = vmax.f32 %v2934_v26, 0.0  ;;  %v2398_v16 = vmax.f32 %v2096_v23, 0.0  ;;  %v5081_v27 = vadd.f32 %v5080_v17, %v4954_v36  ;;  %v2111_v11 = vadd.f32 %v10677_v20, %v10214_v0 }
 0x335   :  { %v3231_v41 = vmax.f32 %v2929_v19, 0.0  ;;  %v5342_v62 = vadd.f32 %v5341_v1, %v5215_v56  ;;  %v2944_v44 = vadd.f32 %v10677_v20, %v10218_v4  ;;  %v2106_v10 = vadd.f32 %v10677_v20, %v10220_v46 }
 0x336   :  { %3745 = vst [vmem:[%s11296_s6 + $0xab8] sm:$0xff] %v3232_v32  ;;  %v5217_v51 = vmul.f32 %v3232_v32, %v3232_v32  ;;  %3616 = vst [vmem:[%s11296_s6 + $0xa88] sm:$0xff] %v2398_v16  ;;  %v4687_v6 = vadd.f32 %v4686_v58, %v2398_v16  ;;  %v4955_v36 = vmul.f32 %v2398_v16, %v2398_v16  ;;  %v2401_v52 = vmax.f32 %v2111_v11, 0.0  ;;  %v11599_v58 = vld [vmem:[#allocation60_spill] sm:$0xff]  ;;  %v11601_v16 = vld [vmem:[#allocation61_spill] sm:$0xff] }
 0x337   :  { %3744 = vst [vmem:[%s11296_s6 + $0xa98] sm:$0xff] %v3231_v41  ;;  %v4820_v0 = vadd.f32 %v4819_v30, %v3231_v41  ;;  %v5216_v59 = vmul.f32 %v3231_v41, %v3231_v41  ;;  %v3234_v43 = vmax.f32 %v2944_v44, 0.0  ;;  %v2400_v56 = vmax.f32 %v2106_v10, 0.0 }
 0x338   :  { %v2939_v4 = vadd.f32 %v10677_v20, %v11598_v5  ;;  %v5082_v18 = vadd.f32 %v5081_v27, %v4955_v36  ;;  %v4688_v38 = vadd.f32 %v4687_v6, %v2399_v63  ;;  %3619 = vst [vmem:[%s11296_s6 + $0xae8] sm:$0xff] %v2401_v52  ;;  %v4958_v25 = vmul.f32 %v2401_v52, %v2401_v52  ;;  %v11603_v5 = vld [vmem:[#allocation21_spill] sm:$0xff] }
 0x339   :  { %v5343_v46 = vadd.f32 %v5342_v62, %v5216_v59  ;;  %v4821_v35 = vadd.f32 %v4820_v0, %v3232_v32  ;;  %3747 = vst [vmem:[%s11296_s6 + $0xaf8] sm:$0xff] %v3234_v43  ;;  %v5219_v28 = vmul.f32 %v3234_v43, %v3234_v43  ;;  %3618 = vst [vmem:[%s11296_s6 + $0xac8] sm:$0xff] %v2400_v56  ;;  %v11600_v32 = vld [vmem:[#allocation9_spill] sm:$0xff] }
 0x33a   :  { %v4957_v26 = vmul.f32 %v2400_v56, %v2400_v56  ;;  %v3233_v17 = vmax.f32 %v2939_v4, 0.0  ;;  %v4689_v48 = vadd.f32 %v4688_v38, %v2400_v56  ;;  %v5083_v23 = vadd.f32 %v5082_v18, %v4956_v42  ;;  %v11602_v42 = vld [vmem:[#allocation20_spill] sm:$0xff] }
 0x33b   :  { %v5344_v63 = vadd.f32 %v5343_v46, %v5217_v51  ;;  %v2121_v47 = vadd.f32 %v10677_v20, %v11599_v58  ;;  %v2954_v30 = vadd.f32 %v10677_v20, %v11600_v32  ;;  %v2116_v27 = vadd.f32 %v10677_v20, %v11601_v16 }
 0x33c   :  { %3746 = vst [vmem:[%s11296_s6 + $0xad8] sm:$0xff] %v3233_v17  ;;  %v4822_v19 = vadd.f32 %v4821_v35, %v3233_v17  ;;  %v5218_v1 = vmul.f32 %v3233_v17, %v3233_v17  ;;  %v5084_v41 = vadd.f32 %v5083_v23, %v4957_v26  ;;  %v4690_v62 = vadd.f32 %v4689_v48, %v2401_v52  ;;  %v11604_v26 = vld [vmem:[#allocation62_spill] sm:$0xff]  ;;  %v11605_v23 = vld [vmem:[#allocation63_spill] sm:$0xff] }
 0x33d   :  { %v2403_v11 = vmax.f32 %v2121_v47, 0.0  ;;  %v2949_v51 = vadd.f32 %v10677_v20, %v11602_v42  ;;  %v3236_v10 = vmax.f32 %v2954_v30, 0.0  ;;  %v2402_v6 = vmax.f32 %v2116_v27, 0.0  ;;  %v11606_v47 = vld [vmem:[#allocation22_spill] sm:$0xff] }
 0x33e   :  { %v5345_v44 = vadd.f32 %v5344_v63, %v5218_v1  ;;  %v4823_v36 = vadd.f32 %v4822_v19, %v3234_v43  ;;  %v5085_v59 = vadd.f32 %v5084_v41, %v4958_v25  ;;  %v2131_v4 = vadd.f32 %v10677_v20, %v11603_v5 }
 0x33f   :  { %3621 = vst [vmem:[%s11296_s6 + $0xb28] sm:$0xff] %v2403_v11  ;;  %v4960_v0 = vmul.f32 %v2403_v11, %v2403_v11  ;;  %v3235_v56 = vmax.f32 %v2949_v51, 0.0  ;;  %3749 = vst [vmem:[%s11296_s6 + $0xb38] sm:$0xff] %v3236_v10  ;;  %v5221_v52 = vmul.f32 %v3236_v10, %v3236_v10  ;;  %v4691_v43 = vadd.f32 %v4690_v62, %v2402_v6  ;;  %v11607_v62 = vld [vmem:[#allocation23_spill] sm:$0xff] }
 0x340   :  { %3620 = vst [vmem:[%s11296_s6 + $0xb08] sm:$0xff] %v2402_v6  ;;  %v4959_v18 = vmul.f32 %v2402_v6, %v2402_v6  ;;  %v5346_v46 = vadd.f32 %v5345_v44, %v5219_v28  ;;  %v2405_v25 = vmax.f32 %v2131_v4, 0.0  ;;  %v2964_v17 = vadd.f32 %v10677_v20, %v11604_v26  ;;  %v11608_v44 = vld [vmem:[#allocation42_spill] sm:$0xff] }
 0x341   :  { %3748 = vst [vmem:[%s11296_s6 + $0xb18] sm:$0xff] %v3235_v56  ;;  %v4824_v38 = vadd.f32 %v4823_v36, %v3235_v56  ;;  %v5220_v35 = vmul.f32 %v3235_v56, %v3235_v56  ;;  %v2126_v63 = vadd.f32 %v10677_v20, %v11605_v23  ;;  %v4692_v58 = vadd.f32 %v4691_v43, %v2403_v11  ;;  %v11609_v36 = vld [vmem:[#allocation10_spill] sm:$0xff] }
 0x342   :  { %v5086_v48 = vadd.f32 %v5085_v59, %v4959_v18  ;;  %v2959_v19 = vadd.f32 %v10677_v20, %v11606_v47  ;;  %3623 = vst [vmem:[%s11296_s6 + $0xb68] sm:$0xff] %v2405_v25  ;;  %v4962_v28 = vmul.f32 %v2405_v25, %v2405_v25  ;;  %v3238_v32 = vmax.f32 %v2964_v17, 0.0  ;;  %v11610_v18 = vld [vmem:[#allocation43_spill] sm:$0xff] }
 0x343   :  { %v5347_v1 = vadd.f32 %v5346_v46, %v5220_v35  ;;  %v4825_v30 = vadd.f32 %v4824_v38, %v3236_v10  ;;  %v2404_v16 = vmax.f32 %v2126_v63, 0.0  ;;  %v2141_v42 = vadd.f32 %v10677_v20, %v11607_v62 }
 0x344   :  { %v5087_v27 = vadd.f32 %v5086_v48, %v4960_v0  ;;  %v3237_v41 = vmax.f32 %v2959_v19, 0.0  ;;  %3751 = vst [vmem:[%s11296_s6 + $0xb78] sm:$0xff] %v3238_v32  ;;  %v5223_v11 = vmul.f32 %v3238_v32, %v3238_v32  ;;  %v2974_v6 = vadd.f32 %v10677_v20, %v11608_v44 }
 0x345   :  { %v5348_v51 = vadd.f32 %v5347_v1, %v5221_v52  ;;  %v2136_v59 = vadd.f32 %v10677_v20, %v11609_v36  ;;  %3622 = vst [vmem:[%s11296_s6 + $0xb48] sm:$0xff] %v2404_v16  ;;  %v4693_v10 = vadd.f32 %v4692_v58, %v2404_v16  ;;  %v4961_v0 = vmul.f32 %v2404_v16, %v2404_v16 }
 0x346   :  { %3750 = vst [vmem:[%s11296_s6 + $0xb58] sm:$0xff] %v3237_v41  ;;  %v4826_v56 = vadd.f32 %v4825_v30, %v3237_v41  ;;  %v5222_v5 = vmul.f32 %v3237_v41, %v3237_v41  ;;  %v2407_v4 = vmax.f32 %v2141_v42, 0.0  ;;  %v3240_v52 = vmax.f32 %v2974_v6, 0.0 }
 0x347   :  { %v2406_v43 = vmax.f32 %v2136_v59, 0.0  ;;  %v2969_v46 = vadd.f32 %v10677_v20, %v11610_v18  ;;  %v5088_v38 = vadd.f32 %v5087_v27, %v4961_v0  ;;  %v4694_v26 = vadd.f32 %v4693_v10, %v2405_v25  ;;  %v11611_v27 = vld [vmem:[#allocation44_spill] sm:$0xff] }
 0x348   :  { %v5349_v35 = vadd.f32 %v5348_v51, %v5222_v5  ;;  %v4827_v17 = vadd.f32 %v4826_v56, %v3238_v32  ;;  %3625 = vst [vmem:[%s11296_s6 + $0xba8] sm:$0xff] %v2407_v4  ;;  %v4964_v48 = vmul.f32 %v2407_v4, %v2407_v4  ;;  %3753 = vst [vmem:[%s11296_s6 + $0xbb8] sm:$0xff] %v3240_v52 }
 0x349   :  { %v5225_v23 = vmul.f32 %v3240_v52, %v3240_v52  ;;  %3624 = vst [vmem:[%s11296_s6 + $0xb88] sm:$0xff] %v2406_v43  ;;  %v4963_v63 = vmul.f32 %v2406_v43, %v2406_v43  ;;  %v3239_v58 = vmax.f32 %v2969_v46, 0.0  ;;  %v4695_v47 = vadd.f32 %v4694_v26, %v2406_v43 }
 0x34a   :  { %v5089_v19 = vadd.f32 %v5088_v38, %v4962_v28  ;;  %v5350_v25 = vadd.f32 %v5349_v35, %v5223_v11  ;;  %v2151_v1 = vadd.f32 %v10677_v20, %v10308_v21  ;;  %v2984_v16 = vadd.f32 %v10677_v20, %v10310_v24  ;;  %v11612_v28 = vld [vmem:[#allocation45_spill] sm:$0xff] }
 0x34b   :  { %3752 = vst [vmem:[%s11296_s6 + $0xb98] sm:$0xff] %v3239_v58  ;;  %v4828_v32 = vadd.f32 %v4827_v17, %v3239_v58  ;;  %v5224_v30 = vmul.f32 %v3239_v58, %v3239_v58  ;;  %v2146_v41 = vadd.f32 %v10677_v20, %v11611_v27  ;;  %v4696_v51 = vadd.f32 %v4695_v47, %v2407_v4 }
 0x34c   :  { %v5090_v62 = vadd.f32 %v5089_v19, %v4963_v63  ;;  %v2409_v42 = vmax.f32 %v2151_v1, 0.0  ;;  %v2979_v11 = vadd.f32 %v10677_v20, %v11612_v28  ;;  %v3242_v21 = vmax.f32 %v2984_v16, 0.0  ;;  %v11613_v1 = vld [vmem:[#allocation46_spill] sm:$0xff] }
 0x34d   :  { %v5351_v44 = vadd.f32 %v5350_v25, %v5224_v30  ;;  %v2408_v6 = vmax.f32 %v2146_v41, 0.0  ;;  %v4829_v36 = vadd.f32 %v4828_v32, %v3240_v52  ;;  %v2161_v0 = vadd.f32 %v10677_v20, %v10334_v13  ;;  %v11614_v30 = vld [vmem:[#allocation64_spill] sm:$0xff] }
 0x34e   :  { %3627 = vst [vmem:[%s11296_s6 + $0xbe8] sm:$0xff] %v2409_v42  ;;  %v4966_v59 = vmul.f32 %v2409_v42, %v2409_v42  ;;  %v5091_v10 = vadd.f32 %v5090_v62, %v4964_v48  ;;  %v3241_v24 = vmax.f32 %v2979_v11, 0.0  ;;  %3755 = vst [vmem:[%s11296_s6 + $0xbf8] sm:$0xff] %v3242_v21  ;;  %v5227_v56 = vmul.f32 %v3242_v21, %v3242_v21  ;;  %v11615_v11 = vld [vmem:[#allocation11_spill] sm:$0xff] }
 0x34f   :  { %3626 = vst [vmem:[%s11296_s6 + $0xbc8] sm:$0xff] %v2408_v6  ;;  %v4697_v5 = vadd.f32 %v4696_v51, %v2408_v6  ;;  %v4965_v4 = vmul.f32 %v2408_v6, %v2408_v6  ;;  %v5352_v52 = vadd.f32 %v5351_v44, %v5225_v23  ;;  %v2411_v46 = vmax.f32 %v2161_v0, 0.0 }
 0x350   :  { %3754 = vst [vmem:[%s11296_s6 + $0xbd8] sm:$0xff] %v3241_v24  ;;  %v4830_v43 = vadd.f32 %v4829_v36, %v3241_v24  ;;  %v5226_v18 = vmul.f32 %v3241_v24, %v3241_v24  ;;  %v2994_v13 = vadd.f32 %v10677_v20, %v10338_v33  ;;  %v2156_v35 = vadd.f32 %v10677_v20, %v10340_v12 }
 0x351   :  { %v5092_v38 = vadd.f32 %v5091_v10, %v4965_v4  ;;  %v4698_v26 = vadd.f32 %v4697_v5, %v2409_v42  ;;  %v2989_v17 = vadd.f32 %v10677_v20, %v10342_v8  ;;  %3629 = vst [vmem:[%s11296_s6 + $0xc28] sm:$0xff] %v2411_v46  ;;  %v4968_v23 = vmul.f32 %v2411_v46, %v2411_v46 }
 0x352   :  { %v5353_v48 = vadd.f32 %v5352_v52, %v5226_v18  ;;  %v3244_v63 = vmax.f32 %v2994_v13, 0.0  ;;  %v4831_v58 = vadd.f32 %v4830_v43, %v3242_v21  ;;  %v2410_v47 = vmax.f32 %v2156_v35, 0.0  ;;  %v11616_v43 = vld [vmem:[#allocation2_spill] sm:$0xff] }
 0x353   :  { %v5093_v19 = vadd.f32 %v5092_v38, %v4966_v59  ;;  %v3243_v25 = vmax.f32 %v2989_v17, 0.0  ;;  %v2171_v33 = vadd.f32 %v10677_v20, %v10355_v45  ;;  %v3004_v32 = vadd.f32 %v10677_v20, %v11613_v1  ;;  %v11617_v38 = vld [vmem:[#allocation12_spill] sm:$0xff] }
 0x354   :  { %3757 = vst [vmem:[%s11296_s6 + $0xc38] sm:$0xff] %v3244_v63  ;;  %v5229_v12 = vmul.f32 %v3244_v63, %v3244_v63  ;;  %v5354_v8 = vadd.f32 %v5353_v48, %v5227_v56  ;;  %v2166_v16 = vadd.f32 %v10677_v20, %v11614_v30  ;;  %3628 = vst [vmem:[%s11296_s6 + $0xc08] sm:$0xff] %v2410_v47 }
 0x355   :  { %v4699_v27 = vadd.f32 %v4698_v26, %v2410_v47  ;;  %v4967_v41 = vmul.f32 %v2410_v47, %v2410_v47  ;;  %3756 = vst [vmem:[%s11296_s6 + $0xc18] sm:$0xff] %v3243_v25  ;;  %v4832_v45 = vadd.f32 %v4831_v58, %v3243_v25  ;;  %v5228_v62 = vmul.f32 %v3243_v25, %v3243_v25  ;;  %v11618_v26 = vld [vmem:[#allocation65_spill] sm:$0xff] }
 0x356   :  { %v2413_v42 = vmax.f32 %v2171_v33, 0.0  ;;  %v3246_v51 = vmax.f32 %v3004_v32, 0.0  ;;  %v2412_v28 = vmax.f32 %v2166_v16, 0.0  ;;  %v2999_v44 = vadd.f32 %v10677_v20, %v11615_v11  ;;  %v11619_v32 = vld [vmem:[#allocation24_spill] sm:$0xff] }
 0x357   :  { %v5094_v21 = vadd.f32 %v5093_v19, %v4967_v41  ;;  %v5355_v6 = vadd.f32 %v5354_v8, %v5228_v62  ;;  %v4700_v36 = vadd.f32 %v4699_v27, %v2411_v46  ;;  %v4833_v59 = vadd.f32 %v4832_v45, %v3244_v63 }
 0x358   :  { %3631 = vst [vmem:[%s11296_s6 + $0xc68] sm:$0xff] %v2413_v42  ;;  %v4970_v10 = vmul.f32 %v2413_v42, %v2413_v42  ;;  %3759 = vst [vmem:[%s11296_s6 + $0xc78] sm:$0xff] %v3246_v51  ;;  %v5231_v24 = vmul.f32 %v3246_v51, %v3246_v51  ;;  %v4969_v0 = vmul.f32 %v2412_v28, %v2412_v28  ;;  %v3245_v56 = vmax.f32 %v2999_v44, 0.0  ;;  %v11621_v44 = vld [vmem:[#allocation67_spill] sm:$0xff] }
 0x359   :  { %3630 = vst [vmem:[%s11296_s6 + $0xc48] sm:$0xff] %v2412_v28  ;;  %v4701_v5 = vadd.f32 %v4700_v36, %v2412_v28  ;;  %v5095_v4 = vadd.f32 %v5094_v21, %v4968_v23  ;;  %v5356_v52 = vadd.f32 %v5355_v6, %v5229_v12  ;;  %v2181_v18 = vadd.f32 %v10677_v20, %v11616_v43  ;;  %v11622_v36 = vld [vmem:[#allocation3_spill] sm:$0xff] }
 0x35a   :  { %3758 = vst [vmem:[%s11296_s6 + $0xc58] sm:$0xff] %v3245_v56  ;;  %v4834_v46 = vadd.f32 %v4833_v59, %v3245_v56  ;;  %v5230_v13 = vmul.f32 %v3245_v56, %v3245_v56  ;;  %v3014_v35 = vadd.f32 %v10677_v20, %v11617_v38  ;;  %v2176_v17 = vadd.f32 %v10677_v20, %v11618_v26 }
 0x35b   :  { %v5096_v48 = vadd.f32 %v5095_v4, %v4969_v0  ;;  %v2415_v63 = vmax.f32 %v2181_v18, 0.0  ;;  %v4702_v58 = vadd.f32 %v4701_v5, %v2413_v42  ;;  %v3009_v23 = vadd.f32 %v10677_v20, %v10396_v55 }
 0x35c   :  { %v5357_v47 = vadd.f32 %v5356_v52, %v5230_v13  ;;  %v3248_v19 = vmax.f32 %v3014_v35, 0.0  ;;  %v2414_v25 = vmax.f32 %v2176_v17, 0.0  ;;  %v4835_v33 = vadd.f32 %v4834_v46, %v3246_v51  ;;  %v11620_v51 = vld [vmem:[#allocation66_spill] sm:$0xff] }
 0x35d   :  { %3633 = vst [vmem:[%s11296_s6 + $0xca8] sm:$0xff] %v2415_v63  ;;  %v4972_v12 = vmul.f32 %v2415_v63, %v2415_v63  ;;  %v5097_v8 = vadd.f32 %v5096_v48, %v4970_v10  ;;  %v3247_v1 = vmax.f32 %v3009_v23, 0.0  ;;  %v2191_v30 = vadd.f32 %v10677_v20, %v11619_v32  ;;  %v11623_v23 = vld [vmem:[#allocation4_spill] sm:$0xff] }
 0x35e   :  { %3761 = vst [vmem:[%s11296_s6 + $0xcb8] sm:$0xff] %v3248_v19  ;;  %v5233_v16 = vmul.f32 %v3248_v19, %v3248_v19  ;;  %3632 = vst [vmem:[%s11296_s6 + $0xc88] sm:$0xff] %v2414_v25  ;;  %v4703_v55 = vadd.f32 %v4702_v58, %v2414_v25  ;;  %v4971_v27 = vmul.f32 %v2414_v25, %v2414_v25 }
 0x35f   :  { %v5358_v41 = vadd.f32 %v5357_v47, %v5231_v24  ;;  %3760 = vst [vmem:[%s11296_s6 + $0xc98] sm:$0xff] %v3247_v1  ;;  %v4836_v45 = vadd.f32 %v4835_v33, %v3247_v1  ;;  %v5232_v62 = vmul.f32 %v3247_v1, %v3247_v1  ;;  %v2417_v42 = vmax.f32 %v2191_v30, 0.0 }
 0x360   :  { %v3024_v28 = vadd.f32 %v10677_v20, %v11620_v51  ;;  %v5098_v11 = vadd.f32 %v5097_v8, %v4971_v27  ;;  %v2186_v21 = vadd.f32 %v10677_v20, %v11621_v44  ;;  %v4704_v6 = vadd.f32 %v4703_v55, %v2415_v63  ;;  %v11625_v44 = vld [vmem:[#allocation13_spill] sm:$0xff] }
 0x361   :  { %v3019_v59 = vadd.f32 %v10677_v20, %v11622_v36  ;;  %v5359_v10 = vadd.f32 %v5358_v41, %v5232_v62  ;;  %3635 = vst [vmem:[%s11296_s6 + $0xce8] sm:$0xff] %v2417_v42  ;;  %v4974_v24 = vmul.f32 %v2417_v42, %v2417_v42  ;;  %v4837_v56 = vadd.f32 %v4836_v45, %v3248_v19  ;;  %v11624_v62 = vld [vmem:[#allocation47_spill] sm:$0xff] }
 0x362   :  { %v3250_v0 = vmax.f32 %v3024_v28, 0.0  ;;  %v2416_v5 = vmax.f32 %v2186_v21, 0.0  ;;  %v5099_v4 = vadd.f32 %v5098_v11, %v4972_v12  ;;  %v2201_v43 = vadd.f32 %v10677_v20, %v10428_v39 }
 0x363   :  { %v3249_v52 = vmax.f32 %v3019_v59, 0.0  ;;  %v5360_v46 = vadd.f32 %v5359_v10, %v5233_v16  ;;  %v3034_v13 = vadd.f32 %v10677_v20, %v10430_v60  ;;  %v2196_v38 = vadd.f32 %v10677_v20, %v10432_v31 }
 0x364   :  { %3763 = vst [vmem:[%s11296_s6 + $0xcf8] sm:$0xff] %v3250_v0  ;;  %v5235_v18 = vmul.f32 %v3250_v0, %v3250_v0  ;;  %3634 = vst [vmem:[%s11296_s6 + $0xcc8] sm:$0xff] %v2416_v5  ;;  %v4705_v35 = vadd.f32 %v4704_v6, %v2416_v5  ;;  %v4973_v26 = vmul.f32 %v2416_v5, %v2416_v5  ;;  %v2419_v48 = vmax.f32 %v2201_v43, 0.0 }
 0x365   :  { %3762 = vst [vmem:[%s11296_s6 + $0xcd8] sm:$0xff] %v3249_v52  ;;  %v4838_v39 = vadd.f32 %v4837_v56, %v3249_v52  ;;  %v5234_v17 = vmul.f32 %v3249_v52, %v3249_v52  ;;  %v3252_v63 = vmax.f32 %v3034_v13, 0.0  ;;  %v2418_v58 = vmax.f32 %v2196_v38, 0.0 }
 0x366   :  { %v3029_v60 = vadd.f32 %v10677_v20, %v11623_v23  ;;  %v5100_v47 = vadd.f32 %v5099_v4, %v4973_v26  ;;  %v4706_v19 = vadd.f32 %v4705_v35, %v2417_v42  ;;  %3637 = vst [vmem:[%s11296_s6 + $0xd28] sm:$0xff] %v2419_v48  ;;  %v4976_v33 = vmul.f32 %v2419_v48, %v2419_v48  ;;  %v11626_v26 = vld [vmem:[#allocation25_spill] sm:$0xff] }
 0x367   :  { %v5361_v31 = vadd.f32 %v5360_v46, %v5234_v17  ;;  %v4839_v25 = vadd.f32 %v4838_v39, %v3250_v0  ;;  %3765 = vst [vmem:[%s11296_s6 + $0xd38] sm:$0xff] %v3252_v63  ;;  %v5237_v12 = vmul.f32 %v3252_v63, %v3252_v63  ;;  %3636 = vst [vmem:[%s11296_s6 + $0xd08] sm:$0xff] %v2418_v58 }
 0x368   :  { %v4975_v8 = vmul.f32 %v2418_v58, %v2418_v58  ;;  %v3251_v1 = vmax.f32 %v3029_v60, 0.0  ;;  %v4707_v32 = vadd.f32 %v4706_v19, %v2418_v58  ;;  %v5101_v30 = vadd.f32 %v5100_v47, %v4974_v24 }
 0x369   :  { %v5362_v16 = vadd.f32 %v5361_v31, %v5235_v18  ;;  %v2211_v55 = vadd.f32 %v10677_v20, %v10452_v2  ;;  %v3044_v45 = vadd.f32 %v10677_v20, %v10458_v54  ;;  %v2206_v42 = vadd.f32 %v10677_v20, %v11624_v62 }
 0x36a   :  { %3764 = vst [vmem:[%s11296_s6 + $0xd18] sm:$0xff] %v3251_v1  ;;  %v4840_v27 = vadd.f32 %v4839_v25, %v3251_v1  ;;  %v5236_v41 = vmul.f32 %v3251_v1, %v3251_v1  ;;  %v5102_v51 = vadd.f32 %v5101_v30, %v4975_v8  ;;  %v4708_v11 = vadd.f32 %v4707_v32, %v2419_v48  ;;  %v11628_v25 = vld [vmem:[#allocation68_spill] sm:$0xff] }
 0x36b   :  { %v2421_v28 = vmax.f32 %v2211_v55, 0.0  ;;  %v3039_v21 = vadd.f32 %v10677_v20, %v11625_v44  ;;  %v3254_v2 = vmax.f32 %v3044_v45, 0.0  ;;  %v2420_v36 = vmax.f32 %v2206_v42, 0.0  ;;  %v11630_v45 = vld [vmem:[#allocation70_spill] sm:$0xff] }
 0x36c   :  { %v5363_v6 = vadd.f32 %v5362_v16, %v5236_v41  ;;  %v4841_v59 = vadd.f32 %v4840_v27, %v3252_v63  ;;  %v5103_v24 = vadd.f32 %v5102_v51, %v4976_v33  ;;  %v2221_v0 = vadd.f32 %v10677_v20, %v10482_v49 }
 0x36d   :  { %3639 = vst [vmem:[%s11296_s6 + $0xd68] sm:$0xff] %v2421_v28  ;;  %v4978_v10 = vmul.f32 %v2421_v28, %v2421_v28  ;;  %v3253_v54 = vmax.f32 %v3039_v21, 0.0  ;;  %3767 = vst [vmem:[%s11296_s6 + $0xd78] sm:$0xff] %v3254_v2  ;;  %v5239_v56 = vmul.f32 %v3254_v2, %v3254_v2  ;;  %v4709_v5 = vadd.f32 %v4708_v11, %v2420_v36 }
 0x36e   :  { %3638 = vst [vmem:[%s11296_s6 + $0xd48] sm:$0xff] %v2420_v36  ;;  %v4977_v4 = vmul.f32 %v2420_v36, %v2420_v36  ;;  %v5364_v52 = vadd.f32 %v5363_v6, %v5237_v12  ;;  %v2423_v46 = vmax.f32 %v2221_v0, 0.0  ;;  %v3054_v49 = vadd.f32 %v10677_v20, %v10484_v40  ;;  %v11627_v40 = vld [vmem:[#allocation14_spill] sm:$0xff]  ;;  %v11629_v12 = vld [vmem:[#allocation69_spill] sm:$0xff] }
 0x36f   :  { %3766 = vst [vmem:[%s11296_s6 + $0xd58] sm:$0xff] %v3253_v54  ;;  %v4842_v43 = vadd.f32 %v4841_v59, %v3253_v54  ;;  %v5238_v18 = vmul.f32 %v3253_v54, %v3253_v54  ;;  %v2216_v38 = vadd.f32 %v10677_v20, %v10488_v29  ;;  %v4710_v35 = vadd.f32 %v4709_v5, %v2421_v28  ;;  %v11632_v5 = vld [vmem:[#allocation48_spill] sm:$0xff] }
 0x370   :  { %v5104_v13 = vadd.f32 %v5103_v24, %v4977_v4  ;;  %v3049_v39 = vadd.f32 %v10677_v20, %v11626_v26  ;;  %3641 = vst [vmem:[%s11296_s6 + $0xda8] sm:$0xff] %v2423_v46  ;;  %v4980_v48 = vmul.f32 %v2423_v46, %v2423_v46  ;;  %v3256_v63 = vmax.f32 %v3054_v49, 0.0  ;;  %v11631_v24 = vld [vmem:[#allocation26_spill] sm:$0xff] }
 0x371   :  { %v5365_v17 = vadd.f32 %v5364_v52, %v5238_v18  ;;  %v4843_v58 = vadd.f32 %v4842_v43, %v3254_v2  ;;  %v2422_v23 = vmax.f32 %v2216_v38, 0.0  ;;  %v2231_v31 = vadd.f32 %v10677_v20, %v11627_v40  ;;  %v11633_v52 = vld [vmem:[#allocation49_spill] sm:$0xff] }
 0x372   :  { %v5105_v60 = vadd.f32 %v5104_v13, %v4978_v10  ;;  %v3255_v47 = vmax.f32 %v3049_v39, 0.0  ;;  %3769 = vst [vmem:[%s11296_s6 + $0xdb8] sm:$0xff] %v3256_v63  ;;  %v5241_v29 = vmul.f32 %v3256_v63, %v3256_v63  ;;  %v3064_v33 = vadd.f32 %v10677_v20, %v11628_v25  ;;  %v11121_v10 = vld [vmem:[%s11298_s5] ss:$0 sm:$0xff]  ;;  %v11634_v13 = vld [vmem:[#allocation5_spill] sm:$0xff] }
 0x373   :  { %v5366_v19 = vadd.f32 %v5365_v17, %v5239_v56  ;;  %v2226_v8 = vadd.f32 %v10677_v20, %v11629_v12  ;;  %3640 = vst [vmem:[%s11296_s6 + $0xd88] sm:$0xff] %v2422_v23  ;;  %v4711_v1 = vadd.f32 %v4710_v35, %v2422_v23  ;;  %v4979_v32 = vmul.f32 %v2422_v23, %v2422_v23 }
 0x374   :  { %3768 = vst [vmem:[%s11296_s6 + $0xd98] sm:$0xff] %v3255_v47  ;;  %v4844_v30 = vadd.f32 %v4843_v58, %v3255_v47  ;;  %v5240_v16 = vmul.f32 %v3255_v47, %v3255_v47  ;;  %v2425_v55 = vmax.f32 %v2231_v31, 0.0  ;;  %v3258_v27 = vmax.f32 %v3064_v33, 0.0 }
 0x375   :  { %v2424_v41 = vmax.f32 %v2226_v8, 0.0  ;;  %v3059_v62 = vadd.f32 %v10677_v20, %v11630_v45  ;;  %v5106_v42 = vadd.f32 %v5105_v60, %v4979_v32  ;;  %v4712_v28 = vadd.f32 %v4711_v1, %v2423_v46  ;;  %v11636_v8 = vld [vmem:[#allocation27_spill] sm:$0xff] }
 0x376   :  { %v5367_v51 = vadd.f32 %v5366_v19, %v5240_v16  ;;  %v4845_v11 = vadd.f32 %v4844_v30, %v3256_v63  ;;  %3643 = vst [vmem:[%s11296_s6 + $0xde8] sm:$0xff] %v2425_v55  ;;  %v4982_v44 = vmul.f32 %v2425_v55, %v2425_v55  ;;  %3771 = vst [vmem:[%s11296_s6 + $0xdf8] sm:$0xff] %v3258_v27  ;;  %v11637_v30 = vld [vmem:[#allocation50_spill] sm:$0xff] }
 0x377   :  { %v5243_v21 = vmul.f32 %v3258_v27, %v3258_v27  ;;  %3642 = vst [vmem:[%s11296_s6 + $0xdc8] sm:$0xff] %v2424_v41  ;;  %v4981_v6 = vmul.f32 %v2424_v41, %v2424_v41  ;;  %v3257_v20 = vmax.f32 %v3059_v62, 0.0  ;;  %v4713_v2 = vadd.f32 %v4712_v28, %v2424_v41 }
 0x378   :  { %v5107_v36 = vadd.f32 %v5106_v42, %v4980_v48  ;;  %v5368_v59 = vadd.f32 %v5367_v51, %v5241_v29  ;;  %v2241_v54 = vadd.f32 %v11121_v10, %v11631_v24  ;;  %v3074_v4 = vadd.f32 %v11121_v10, %v11632_v5 }
 0x379   :  { %3770 = vst [vmem:[%s11296_s6 + $0xdd8] sm:$0xff] %v3257_v20  ;;  %v4846_v0 = vadd.f32 %v4845_v11, %v3257_v20  ;;  %v5242_v56 = vmul.f32 %v3257_v20, %v3257_v20  ;;  %v2236_v43 = vadd.f32 %v11121_v10, %v11633_v52  ;;  %v4714_v49 = vadd.f32 %v4713_v2, %v2425_v55 }
 0x37a   :  { %v5108_v18 = vadd.f32 %v5107_v36, %v4981_v6  ;;  %v2427_v46 = vmax.f32 %v2241_v54, 0.0  ;;  %v3069_v38 = vadd.f32 %v11121_v10, %v11634_v13  ;;  %v3260_v26 = vmax.f32 %v3074_v4, 0.0 }
 0x37b   :  { %v5369_v35 = vadd.f32 %v5368_v59, %v5242_v56  ;;  %v2426_v39 = vmax.f32 %v2236_v43, 0.0  ;;  %v4847_v17 = vadd.f32 %v4846_v0, %v3258_v27  ;;  %v2251_v23 = vadd.f32 %v11121_v10, %v10566_v22  ;;  %v11635_v22 = vld [vmem:[#allocation15_spill] sm:$0xff] }
 0x37c   :  { %3645 = vst [vmem:[%s11296_s6 + $0xe28] sm:$0xff] %v2427_v46  ;;  %v4984_v48 = vmul.f32 %v2427_v46, %v2427_v46  ;;  %v5109_v63 = vadd.f32 %v5108_v18, %v4982_v44  ;;  %v3259_v58 = vmax.f32 %v3069_v38, 0.0  ;;  %3773 = vst [vmem:[%s11296_s6 + $0xe38] sm:$0xff] %v3260_v26  ;;  %v5245_v60 = vmul.f32 %v3260_v26, %v3260_v26 }
 0x37d   :  { %3644 = vst [vmem:[%s11296_s6 + $0xe08] sm:$0xff] %v2426_v39  ;;  %v4715_v47 = vadd.f32 %v4714_v49, %v2426_v39  ;;  %v4983_v40 = vmul.f32 %v2426_v39, %v2426_v39  ;;  %v5370_v31 = vadd.f32 %v5369_v35, %v5243_v21  ;;  %v2429_v25 = vmax.f32 %v2251_v23, 0.0  ;;  %v11638_v39 = vld [vmem:[#allocation16_spill] sm:$0xff] }
 0x37e   :  { %3772 = vst [vmem:[%s11296_s6 + $0xe18] sm:$0xff] %v3259_v58  ;;  %v4848_v29 = vadd.f32 %v4847_v17, %v3259_v58  ;;  %v5244_v19 = vmul.f32 %v3259_v58, %v3259_v58  ;;  %v3084_v33 = vadd.f32 %v11121_v10, %v11635_v22  ;;  %v2246_v1 = vadd.f32 %v11121_v10, %v11636_v8  ;;  %v11639_v23 = vld [vmem:[#allocation28_spill] sm:$0xff] }
 0x37f   :  { %v5110_v12 = vadd.f32 %v5109_v63, %v4983_v40  ;;  %v4716_v32 = vadd.f32 %v4715_v47, %v2427_v46  ;;  %v3079_v16 = vadd.f32 %v11121_v10, %v11637_v30  ;;  %3647 = vst [vmem:[%s11296_s6 + $0xe68] sm:$0xff] %v2429_v25  ;;  %v4986_v27 = vmul.f32 %v2429_v25, %v2429_v25 }
 0x380   :  { %v5371_v55 = vadd.f32 %v5370_v31, %v5244_v19  ;;  %v3262_v41 = vmax.f32 %v3084_v33, 0.0  ;;  %v4849_v45 = vadd.f32 %v4848_v29, %v3260_v26  ;;  %v2428_v62 = vmax.f32 %v2246_v1, 0.0 }
 0x381   :  { %v5111_v42 = vadd.f32 %v5110_v12, %v4984_v48  ;;  %v3261_v51 = vmax.f32 %v3079_v16, 0.0  ;;  %v2261_v28 = vadd.f32 %v11121_v10, %v10594_v7  ;;  %v3094_v21 = vadd.f32 %v11121_v10, %v10596_v14 }
 0x382   :  { %3775 = vst [vmem:[%s11296_s6 + $0xe78] sm:$0xff] %v3262_v41  ;;  %v5247_v11 = vmul.f32 %v3262_v41, %v3262_v41  ;;  %v5372_v44 = vadd.f32 %v5371_v55, %v5245_v60  ;;  %v2256_v6 = vadd.f32 %v11121_v10, %v10600_v34  ;;  %3646 = vst [vmem:[%s11296_s6 + $0xe48] sm:$0xff] %v2428_v62 }
 0x383   :  { %v4717_v20 = vadd.f32 %v4716_v32, %v2428_v62  ;;  %v4985_v2 = vmul.f32 %v2428_v62, %v2428_v62  ;;  %3774 = vst [vmem:[%s11296_s6 + $0xe58] sm:$0xff] %v3261_v51  ;;  %v4850_v7 = vadd.f32 %v4849_v45, %v3261_v51  ;;  %v5246_v36 = vmul.f32 %v3261_v51, %v3261_v51 }
 0x384   :  { %v2431_v59 = vmax.f32 %v2261_v28, 0.0  ;;  %v3264_v24 = vmax.f32 %v3094_v21, 0.0  ;;  %v2430_v54 = vmax.f32 %v2256_v6, 0.0  ;;  %v3089_v14 = vadd.f32 %v11121_v10, %v10602_v37 }
 0x385   :  { %v5112_v0 = vadd.f32 %v5111_v42, %v4985_v2  ;;  %v5373_v34 = vadd.f32 %v5372_v44, %v5246_v36  ;;  %v4718_v56 = vadd.f32 %v4717_v20, %v2429_v25  ;;  %v4851_v5 = vadd.f32 %v4850_v7, %v3262_v41  ;;  %v11640_v41 = vld [vmem:[#allocation51_spill] sm:$0xff]  ;;  %v11641_v20 = vld [vmem:[#allocation52_spill] sm:$0xff]  ;;  %v11642_v7 = vld [vmem:[#allocation17_spill] sm:$0xff] }
 0x386   :  { %3649 = vst [vmem:[%s11296_s6 + $0xea8] sm:$0xff] %v2431_v59  ;;  %v4988_v4 = vmul.f32 %v2431_v59, %v2431_v59  ;;  %3777 = vst [vmem:[%s11296_s6 + $0xeb8] sm:$0xff] %v3264_v24  ;;  %v5249_v52 = vmul.f32 %v3264_v24, %v3264_v24  ;;  %v4987_v43 = vmul.f32 %v2430_v54, %v2430_v54  ;;  %v3263_v37 = vmax.f32 %v3089_v14, 0.0 }
 0x387   :  { %3648 = vst [vmem:[%s11296_s6 + $0xe88] sm:$0xff] %v2430_v54  ;;  %v4719_v18 = vadd.f32 %v4718_v56, %v2430_v54  ;;  %v5113_v46 = vadd.f32 %v5112_v0, %v4986_v27  ;;  %v5374_v49 = vadd.f32 %v5373_v34, %v5247_v11  ;;  %v2271_v13 = vadd.f32 %v11121_v10, %v10620_v3  ;;  %v11643_v56 = vld [vmem:[#allocation18_spill] sm:$0xff] }
 0x388   :  { %3776 = vst [vmem:[%s11296_s6 + $0xe98] sm:$0xff] %v3263_v37  ;;  %v4852_v38 = vadd.f32 %v4851_v5, %v3263_v37  ;;  %v5248_v35 = vmul.f32 %v3263_v37, %v3263_v37  ;;  %v3104_v26 = vadd.f32 %v11121_v10, %v10622_v15  ;;  %v2266_v17 = vadd.f32 %v11121_v10, %v11638_v39  ;;  %v11644_v39 = vld [vmem:[#allocation19_spill] sm:$0xff] }
 0x389   :  { %v5114_v48 = vadd.f32 %v5113_v46, %v4987_v43  ;;  %v2433_v63 = vmax.f32 %v2271_v13, 0.0  ;;  %v4720_v58 = vadd.f32 %v4719_v18, %v2431_v59  ;;  %v3099_v60 = vadd.f32 %v11121_v10, %v11639_v23 }
 0x38a   :  { %v5375_v47 = vadd.f32 %v5374_v49, %v5248_v35  ;;  %v3266_v3 = vmax.f32 %v3104_v26, 0.0  ;;  %v2432_v40 = vmax.f32 %v2266_v17, 0.0  ;;  %v4853_v31 = vadd.f32 %v4852_v38, %v3264_v24 }
 0x38b   :  { %3651 = vst [vmem:[%s11296_s6 + $0xee8] sm:$0xff] %v2433_v63  ;;  %v4990_v29 = vmul.f32 %v2433_v63, %v2433_v63  ;;  %v5115_v19 = vadd.f32 %v5114_v48, %v4988_v4  ;;  %v3265_v15 = vmax.f32 %v3099_v60, 0.0  ;;  %v2281_v25 = vadd.f32 %v11121_v10, %v10650_v50  ;;  %v11646_v60 = vld [vmem:[#allocation53_spill] sm:$0xff] }
 0x38c   :  { %3779 = vst [vmem:[%s11296_s6 + $0xef8] sm:$0xff] %v3266_v3  ;;  %v5251_v22 = vmul.f32 %v3266_v3, %v3266_v3  ;;  %3650 = vst [vmem:[%s11296_s6 + $0xec8] sm:$0xff] %v2432_v40  ;;  %v4721_v33 = vadd.f32 %v4720_v58, %v2432_v40  ;;  %v4989_v12 = vmul.f32 %v2432_v40, %v2432_v40  ;;  %v11645_v58 = vld [vmem:[#allocation6_spill] sm:$0xff] }
 0x38d   :  { %v5376_v8 = vadd.f32 %v5375_v47, %v5249_v52  ;;  %3778 = vst [vmem:[%s11296_s6 + $0xed8] sm:$0xff] %v3265_v15  ;;  %v4854_v1 = vadd.f32 %v4853_v31, %v3265_v15  ;;  %v5250_v32 = vmul.f32 %v3265_v15, %v3265_v15  ;;  %v2435_v30 = vmax.f32 %v2281_v25, 0.0 }
 0x38e   :  { %v3114_v50 = vadd.f32 %v11121_v10, %v10652_v9  ;;  %v5116_v16 = vadd.f32 %v5115_v19, %v4989_v12  ;;  %v2276_v55 = vadd.f32 %v11121_v10, %v10656_v61  ;;  %v4722_v27 = vadd.f32 %v4721_v33, %v2433_v63 }
 0x38f   :  { %v3109_v45 = vadd.f32 %v11121_v10, %v11640_v41  ;;  %v5377_v62 = vadd.f32 %v5376_v8, %v5250_v32  ;;  %3653 = vst [vmem:[%s11296_s6 + $0xf28] sm:$0xff] %v2435_v30  ;;  %v4992_v42 = vmul.f32 %v2435_v30, %v2435_v30  ;;  %v4855_v28 = vadd.f32 %v4854_v1, %v3266_v3 }
 0x390   :  { %v3268_v51 = vmax.f32 %v3114_v50, 0.0  ;;  %v2434_v11 = vmax.f32 %v2276_v55, 0.0  ;;  %v5117_v44 = vadd.f32 %v5116_v16, %v4990_v29  ;;  %v2291_v9 = vadd.f32 %v11121_v10, %v10683_v53  ;;  %v11647_v29 = vld [vmem:[#allocation54_spill] sm:$0xff] }
 0x391   :  { %v3267_v21 = vmax.f32 %v3109_v45, 0.0  ;;  %v5378_v6 = vadd.f32 %v5377_v62, %v5251_v22  ;;  %v3124_v2 = vadd.f32 %v11121_v10, %v11641_v20  ;;  %v2286_v36 = vadd.f32 %v11121_v10, %v11642_v7 }
 0x392   :  { %3781 = vst [vmem:[%s11296_s6 + $0xf38] sm:$0xff] %v3268_v51  ;;  %v5253_v61 = vmul.f32 %v3268_v51, %v3268_v51  ;;  %3652 = vst [vmem:[%s11296_s6 + $0xf08] sm:$0xff] %v2434_v11  ;;  %v4723_v59 = vadd.f32 %v4722_v27, %v2434_v11  ;;  %v4991_v24 = vmul.f32 %v2434_v11, %v2434_v11  ;;  %v2437_v14 = vmax.f32 %v2291_v9, 0.0  ;;  %v11650_v11 = vld [vmem:[#allocation56_spill] sm:$0xff] }
 0x393   :  { %3780 = vst [vmem:[%s11296_s6 + $0xf18] sm:$0xff] %v3267_v21  ;;  %v4856_v53 = vadd.f32 %v4855_v28, %v3267_v21  ;;  %v5252_v54 = vmul.f32 %v3267_v21, %v3267_v21  ;;  %v3270_v0 = vmax.f32 %v3124_v2, 0.0  ;;  %v2436_v34 = vmax.f32 %v2286_v36, 0.0 }
 0x394   :  { %v3119_v5 = vadd.f32 %v11121_v10, %v11643_v56  ;;  %v5118_v4 = vadd.f32 %v5117_v44, %v4991_v24  ;;  %v4724_v43 = vadd.f32 %v4723_v59, %v2435_v30  ;;  %3655 = vst [vmem:[%s11296_s6 + $0xf68] sm:$0xff] %v2437_v14  ;;  %v4994_v18 = vmul.f32 %v2437_v14, %v2437_v14 }
 0x395   :  { %v5379_v52 = vadd.f32 %v5378_v6, %v5252_v54  ;;  %v4857_v37 = vadd.f32 %v4856_v53, %v3268_v51  ;;  %3783 = vst [vmem:[%s11296_s6 + $0xf78] sm:$0xff] %v3270_v0  ;;  %v5255_v46 = vmul.f32 %v3270_v0, %v3270_v0  ;;  %3654 = vst [vmem:[%s11296_s6 + $0xf48] sm:$0xff] %v2436_v34 }
 0x396   :  { %v4993_v49 = vmul.f32 %v2436_v34, %v2436_v34  ;;  %v3269_v13 = vmax.f32 %v3119_v5, 0.0  ;;  %v4725_v38 = vadd.f32 %v4724_v43, %v2436_v34  ;;  %v5119_v35 = vadd.f32 %v5118_v4, %v4992_v42  ;;  %v11649_v42 = vld [vmem:[#allocation55_spill] sm:$0xff] }
 0x397   :  { %v5380_v26 = vadd.f32 %v5379_v52, %v5253_v61  ;;  %v2301_v17 = vadd.f32 %v11121_v10, %v11644_v39  ;;  %v3134_v23 = vadd.f32 %v11121_v10, %v11645_v58  ;;  %v2296_v47 = vadd.f32 %v11121_v10, %v11646_v60 }
 0x398   :  { %3782 = vst [vmem:[%s11296_s6 + $0xf58] sm:$0xff] %v3269_v13  ;;  %v4858_v48 = vadd.f32 %v4857_v37, %v3269_v13  ;;  %v5254_v63 = vmul.f32 %v3269_v13, %v3269_v13  ;;  %v5120_v3 = vadd.f32 %v5119_v35, %v4993_v49  ;;  %v4726_v31 = vadd.f32 %v4725_v38, %v2437_v14 }
 0x399   :  { %v2439_v40 = vmax.f32 %v2301_v17, 0.0  ;;  %v3129_v19 = vadd.f32 %v11121_v10, %v11647_v29  ;;  %v3272_v25 = vmax.f32 %v3134_v23, 0.0  ;;  %v2438_v22 = vmax.f32 %v2296_v47, 0.0 }
 0x39a   :  { %v5381_v15 = vadd.f32 %v5380_v26, %v5254_v63  ;;  %v4859_v33 = vadd.f32 %v4858_v48, %v3270_v0  ;;  %v5121_v12 = vadd.f32 %v5120_v3, %v4994_v18  ;;  %v2311_v1 = vadd.f32 %v11121_v10, %v10739_v57  ;;  %v11648_v57 = vld [vmem:[#allocation29_spill] sm:$0xff] }
 0x39b   :  { %3657 = vst [vmem:[%s11296_s6 + $0xfa8] sm:$0xff] %v2439_v40  ;;  %v3271_v8 = vmax.f32 %v3129_v19, 0.0  ;;  %v4996_v32 = vmul.f32 %v2439_v40, %v2439_v40  ;;  %3785 = vst [vmem:[%s11296_s6 + $0xfb8] sm:$0xff] %v3272_v25  ;;  %v4727_v30 = vadd.f32 %v4726_v31, %v2438_v22  ;;  %v4995_v50 = vmul.f32 %v2438_v22, %v2438_v22 }
 0x39c   :  { %3656 = vst [vmem:[%s11296_s6 + $0xf88] sm:$0xff] %v2438_v22  ;;  %v5382_v16 = vadd.f32 %v5381_v15, %v5255_v46  ;;  %v2441_v41 = vmax.f32 %v2311_v1, 0.0  ;;  %v3144_v45 = vadd.f32 %v11121_v10, %v11648_v57  ;;  %v2306_v51 = vadd.f32 %v11121_v10, %v11649_v42 }
 0x39d   :  { %3784 = vst [vmem:[%s11296_s6 + $0xf98] sm:$0xff] %v3271_v8  ;;  %v4860_v55 = vadd.f32 %v4859_v33, %v3271_v8  ;;  %v5256_v27 = vmul.f32 %v3271_v8, %v3271_v8  ;;  %v5122_v62 = vadd.f32 %v5121_v12, %v4995_v50  ;;  %v4728_v28 = vadd.f32 %v4727_v30, %v2439_v40 }
 0x39e   :  { %v3139_v44 = vadd.f32 %v11121_v10, %v11650_v11  ;;  %v5257_v21 = vmul.f32 %v3272_v25, %v3272_v25  ;;  %3659 = vst [vmem:[%s11296_s6 + $0xfe8] sm:$0xff] %v2441_v41  ;;  %v3274_v61 = vmax.f32 %v3144_v45, 0.0  ;;  %v2440_v20 = vmax.f32 %v2306_v51, 0.0 }
 0x39f   :  { %v5383_v9 = vadd.f32 %v5382_v16, %v5256_v27  ;;  %v4861_v6 = vadd.f32 %v4860_v55, %v3272_v25  ;;  %v5123_v2 = vadd.f32 %v5122_v62, %v4996_v32  ;;  %v4998_v54 = vmul.f32 %v2441_v41, %v2441_v41 }
 0x3a0   :  { %v3273_v7 = vmax.f32 %v3139_v44, 0.0  ;;  %3787 = vst [vmem:[%s11296_s6 + $0xff8] sm:$0xff] %v3274_v61  ;;  %3658 = vst [vmem:[%s11296_s6 + $0xfc8] sm:$0xff] %v2440_v20  ;;  %v4729_v10 = vadd.f32 %v4728_v28, %v2440_v20  ;;  %v4997_v59 = vmul.f32 %v2440_v20, %v2440_v20  ;;  %v5259_v14 = vmul.f32 %v3274_v61, %v3274_v61 }
 0x3a1   :  { %v5384_v36 = vadd.f32 %v5383_v9, %v5257_v21 }
 0x3a2   :  { %3786 = vst [vmem:[%s11296_s6 + $0xfd8] sm:$0xff] %v3273_v7  ;;  %v4862_v24 = vadd.f32 %v4861_v6, %v3273_v7  ;;  %v5258_v53 = vmul.f32 %v3273_v7, %v3273_v7  ;;  %v4730_v0 = vadd.f32 %v4729_v10, %v2441_v41  ;;  %v5124_v34 = vadd.f32 %v5123_v2, %v4997_v59 }
 0x3a4   :  { %v4863_v56 = vadd.f32 %v4862_v24, %v3274_v61  ;;  %v5385_v5 = vadd.f32 %v5384_v36, %v5258_v53  ;;  %v4731_v4 = vrot.slane %v4730_v0, 4  ;;  %v5125_v52 = vadd.f32 %v5124_v34, %v4998_v54 }
 0x3a6   :  { %v4864_v43 = vrot.slane %v4863_v56, 4  ;;  %v5386_v37 = vadd.f32 %v5385_v5, %v5259_v14  ;;  %v4732_v18 = vadd.f32 %v4731_v4, %v4730_v0  ;;  %v5126_v46 = vrot.slane %v5125_v52, 4 }
 0x3a8   :  { %v4865_v49 = vadd.f32 %v4864_v43, %v4863_v56  ;;  %v5387_v13 = vrot.slane %v5386_v37, 4  ;;  %v4733_v38 = vrot.slane %v4732_v18, 2  ;;  %v5127_v35 = vadd.f32 %v5126_v46, %v5125_v52 }
 0x3aa   :  { %v4866_v26 = vrot.slane %v4865_v49, 2  ;;  %v5388_v39 = vadd.f32 %v5387_v13, %v5386_v37  ;;  %v4734_v17 = vadd.f32 %v4733_v38, %v4732_v18  ;;  %v5128_v48 = vrot.slane %v5127_v35, 2 }
 0x3ac   :  { %v4867_v63 = vadd.f32 %v4866_v26, %v4865_v49  ;;  %v5389_v58 = vrot.slane %v5388_v39, 2  ;;  %v4735_v23 = vrot.slane %v4734_v17, 1  ;;  %v5129_v60 = vadd.f32 %v5128_v48, %v5127_v35 }
 0x3ae   :  { %v4868_v47 = vrot.slane %v4867_v63, 1  ;;  %v5390_v3 = vadd.f32 %v5389_v58, %v5388_v39  ;;  %v4736_v40 = vadd.f32 %v4735_v23, %v4734_v17  ;;  %v5130_v31 = vrot.slane %v5129_v60, 1 }
 0x3b0   :  { %v4869_v29 = vadd.f32 %v4868_v47, %v4867_v63  ;;  %v5391_v19 = vrot.slane %v5390_v3, 1  ;;  %v5131_v15 = vadd.f32 %v5130_v31, %v5129_v60 }
 0x3b2   :  { %v4870_v25 = vadd.f32 %v4869_v29, %v4736_v40  ;;  %v5392_v22 = vadd.f32 %v5391_v19, %v5390_v3 }
 0x3b4   :  { %v5393_v33 = vadd.f32 %v5392_v22, %v5131_v15  ;;  %5394 = vst [vmem:[%s11300_s8] sm:$0x1] %v4870_v25 }
 0x3b6   :  { %5395 = vst [vmem:[%s11300_s8 + $0x1] sm:$0x1] %v5393_v33 }

</bundles_post_ra>
